<compile_context>
chip_gen: v6e
topology: v6e:2x2x1
jax: 0.10.0
libtpu: 0.0.40
codegen_flags: <defaults>
</compile_context>

<pallas_src>
import jax
import jax.numpy as jnp
from jax import lax
from jax.experimental import pallas as pl
from jax.experimental.pallas import tpu as pltpu

EPS = 1e-5


def _bn_train(x, gamma, beta):
    """PyTorch BatchNorm2d (train mode, biased variance) on [C, HW] data.

    One pass over x for the moments, then a single scale/shift FMA.
    gamma/beta are [C, 1].
    """
    n = x.shape[1]
    inv_n = 1.0 / float(n)
    s1 = jnp.sum(x, axis=1, keepdims=True)         # [C, 1]
    s2 = jnp.sum(x * x, axis=1, keepdims=True)     # [C, 1]
    mean = s1 * inv_n
    var = jnp.maximum(s2 * inv_n - mean * mean, 0.0)   # clamp: cancellation safety
    scale = gamma * lax.rsqrt(var + EPS)           # [C, 1]
    shift = beta - mean * scale                    # [C, 1]
    return x * scale + shift


def fused_kernel(x386_ref, x383_ref, x377_ref,
                 w122_ref, pvec_ref,
                 w123_ref, w124_ref,
                 out_ref):
    # Unpack per-channel vectors from the single packed [C, 8] buffer.
    b122 = pvec_ref[:, 0:1]   # conv2d122 bias
    g75 = pvec_ref[:, 1:2]    # batchnorm2d75 gamma
    be75 = pvec_ref[:, 2:3]   # batchnorm2d75 beta
    g76 = pvec_ref[:, 3:4]    # batchnorm2d76 gamma
    be76 = pvec_ref[:, 4:5]   # batchnorm2d76 beta

    # conv2d122 (1x1, 84->336, bias) on the squeeze vector, then sigmoid.
    # VPU multiply + XLU lane reduction (avoids an N=1 f32 MXU pass at the
    # head of the dependency chain).
    # [336, 84] * [1, 84] -> [336, 84] -> sum over lanes -> [336, 1]
    s = jnp.sum(w122_ref[...] * x386_ref[...], axis=1, keepdims=True) + b122
    gate = jax.nn.sigmoid(s)                                     # [336, 1]

    # channel-wise gate broadcast along the HW (lane) axis  -> x389
    x389 = x383_ref[...] * gate                                  # [336, 196]

    # conv2d123 (1x1, 336->336, no bias): [336,336] @ [336,196]
    # bf16 MXU operands (weights already bf16), f32 accumulation.
    x390 = jnp.dot(w123_ref[...], x389.astype(jnp.bfloat16),
                   preferred_element_type=jnp.float32)
    x391 = _bn_train(x390, g75, be75)                            # batchnorm2d75

    # residual add + relu96 (f32 elementwise)
    x393 = jnp.maximum(x377_ref[...] + x391, 0.0)

    # conv2d124 (1x1, 336->336, no bias) + batchnorm2d76
    x394 = jnp.dot(w124_ref[...], x393.astype(jnp.bfloat16),
                   preferred_element_type=jnp.float32)
    out_ref[...] = _bn_train(x394, g76, be76)


def module_forward(x386, x383, x377, params):
    """x386: [1,84,1,1], x383/x377: [1,336,14,14] (NCHW). Returns NCHW [1,336,14,14]."""
    N, C, H, W = x383.shape
    Cin = x386.shape[1]
    HW = H * W
    assert N == 1, "kernel assumes batch 1 (pure-reshape NCHW <-> [C, HW])"

    # NCHW -> [C, HW]: for N=1 this is a contiguous reshape (no transpose op).
    x383_m = x383.reshape(C, HW)
    x377_m = x377.reshape(C, HW)
    x386_r = x386.reshape(1, Cin)                    # row vector for VPU gate

    # 1x1 conv weights used in native [O, Cin] layout (reshape only).
    w122 = params["w122"].reshape(C, Cin)            # small; stays f32
    w123 = params["w123"].reshape(C, C).astype(jnp.bfloat16)
    w124 = params["w124"].reshape(C, C).astype(jnp.bfloat16)

    # Pack the five per-channel vectors into one [C, 8] buffer (one DMA, one
    # lane-padded VMEM tile instead of five).
    pvec = jnp.concatenate(
        [params["b122"].reshape(C, 1),
         params["g75"].reshape(C, 1),
         params["be75"].reshape(C, 1),
         params["g76"].reshape(C, 1),
         params["be76"].reshape(C, 1),
         jnp.zeros((C, 3), jnp.float32)],
        axis=1)                                      # [C, 8]

    vmem = pl.BlockSpec(memory_space=pltpu.MemorySpace.VMEM)

    flops = 2 * C * C * HW * 2 + 2 * C * Cin + 8 * C * HW
    bytes_accessed = (
        4 * (3 * C * HW)        # x383, x377 in + output out (f32)
        + 4 * (Cin + C * Cin)   # x386 + w122 (f32)
        + 4 * (C * 8)           # packed per-channel vectors (f32)
        + 2 * (2 * C * C)       # w123, w124 (bf16)
    )

    out_m = pl.pallas_call(
        fused_kernel,
        out_shape=jax.ShapeDtypeStruct((C, HW), jnp.float32),
        in_specs=[vmem] * 7,
        out_specs=vmem,
        cost_estimate=pl.CostEstimate(flops=flops,
                                      transcendentals=3 * C,
                                      bytes_accessed=bytes_accessed),
    )(x386_r, x383_m, x377_m, w122, pvec, w123, w124)

    # [C, HW] -> NCHW (again a pure reshape for N=1).
    return out_m.reshape(N, C, H, W)


def _reference(x386, x383, x377, params):
    # pure-JAX f32 reference with PyTorch semantics (for validation)
    N, C, H, W = x383.shape
    Cin = x386.shape[1]
    s = x386.reshape(N, Cin) @ params["w122"].reshape(C, Cin).T + params["b122"]
    s = jax.nn.sigmoid(s).reshape(N, C, 1, 1)
    x389 = s * x383
    x390 = jnp.einsum("nchw,oc->nohw", x389, params["w123"].reshape(C, C))

    def bn(x, g, b):
        mean = jnp.mean(x, axis=(0, 2, 3), keepdims=True)
        var = jnp.mean((x - mean) ** 2, axis=(0, 2, 3), keepdims=True)
        return g.reshape(1, -1, 1, 1) * (x - mean) * lax.rsqrt(var + EPS) \
            + b.reshape(1, -1, 1, 1)

    x391 = bn(x390, params["g75"], params["be75"])
    x393 = jnp.maximum(x377 + x391, 0.0)
    x394 = jnp.einsum("nchw,oc->nohw", x393, params["w124"].reshape(C, C))
    return bn(x394, params["g76"], params["be76"])


if __name__ == "__main__":
    key = jax.random.PRNGKey(0)
    ks = jax.random.split(key, 10)

    C, Cin, H, W = 336, 84, 14, 14
    x386 = jax.random.normal(ks[0], (1, Cin, 1, 1), jnp.float32)
    x383 = jax.random.normal(ks[1], (1, C, H, W), jnp.float32)
    x377 = jax.random.normal(ks[2], (1, C, H, W), jnp.float32)

    params = {
        "w122": jax.random.normal(ks[3], (C, Cin, 1, 1), jnp.float32) * 0.1,
        "b122": jax.random.normal(ks[4], (C,), jnp.float32) * 0.1,
        "w123": jax.random.normal(ks[5], (C, C, 1, 1), jnp.float32) * 0.05,
        "w124": jax.random.normal(ks[6], (C, C, 1, 1), jnp.float32) * 0.05,
        "g75": 1.0 + 0.1 * jax.random.normal(ks[7], (C,), jnp.float32),
        "be75": 0.1 * jax.random.normal(ks[8], (C,), jnp.float32),
        "g76": 1.0 + 0.1 * jax.random.normal(ks[9], (C,), jnp.float32),
        "be76": jnp.zeros((C,), jnp.float32),
    }

    out = jax.jit(module_forward)(x386, x383, x377, params)
    out = jax.block_until_ready(out)
    ref = _reference(x386, x383, x377, params)
    assert out.shape == (1, C, H, W)
    # bf16 MXU operands (f32 accumulate) -> allow a slightly looser tolerance
    # than the pure-f32 reference.
    assert jnp.allclose(out, ref, atol=2e-2, rtol=2e-2), "mismatch vs reference"
    print("KERNEL_OK")
</pallas_src>

<mosaic_0001>
module attributes {stable_mosaic.version = 11 : i64} {
  func.func @fused_kernel(%arg0: memref<1x84xf32, #tpu.memory_space<vmem>>, %arg1: memref<336x196xf32, #tpu.memory_space<vmem>>, %arg2: memref<336x196xf32, #tpu.memory_space<vmem>>, %arg3: memref<336x84xf32, #tpu.memory_space<vmem>>, %arg4: memref<336x8xf32, #tpu.memory_space<vmem>>, %arg5: memref<336x336xbf16, #tpu.memory_space<vmem>>, %arg6: memref<336x336xbf16, #tpu.memory_space<vmem>>, %arg7: memref<336x196xf32, #tpu.memory_space<vmem>>) attributes {dimension_semantics = [], scalar_prefetch = 0 : i64, scratch_operands = 0 : i64, tpu.core_type = #tpu.core_type<tc>} {
    %c0 = arith.constant 0 : index
    %c0_0 = arith.constant 0 : index
    %0 = vector.load %arg4[%c0, %c0_0] : memref<336x8xf32, #tpu.memory_space<vmem>>, vector<336x1xf32>
    %c0_1 = arith.constant 0 : index
    %c1 = arith.constant 1 : index
    %1 = vector.load %arg4[%c0_1, %c1] : memref<336x8xf32, #tpu.memory_space<vmem>>, vector<336x1xf32>
    %c0_2 = arith.constant 0 : index
    %c2 = arith.constant 2 : index
    %2 = vector.load %arg4[%c0_2, %c2] : memref<336x8xf32, #tpu.memory_space<vmem>>, vector<336x1xf32>
    %c0_3 = arith.constant 0 : index
    %c3 = arith.constant 3 : index
    %3 = vector.load %arg4[%c0_3, %c3] : memref<336x8xf32, #tpu.memory_space<vmem>>, vector<336x1xf32>
    %c0_4 = arith.constant 0 : index
    %c4 = arith.constant 4 : index
    %4 = vector.load %arg4[%c0_4, %c4] : memref<336x8xf32, #tpu.memory_space<vmem>>, vector<336x1xf32>
    %c0_5 = arith.constant 0 : index
    %c0_6 = arith.constant 0 : index
    %5 = vector.load %arg3[%c0_5, %c0_6] : memref<336x84xf32, #tpu.memory_space<vmem>>, vector<336x84xf32>
    %c0_7 = arith.constant 0 : index
    %c0_8 = arith.constant 0 : index
    %6 = vector.load %arg0[%c0_7, %c0_8] : memref<1x84xf32, #tpu.memory_space<vmem>>, vector<1x84xf32>
    %7 = vector.broadcast %6 : vector<1x84xf32> to vector<336x84xf32>
    %8 = arith.mulf %5, %7 : vector<336x84xf32>
    %cst = arith.constant dense<0.000000e+00> : vector<336xf32>
    %9 = vector.multi_reduction <add>, %8, %cst [1] : vector<336x84xf32> to vector<336xf32>
    %10 = vector.shape_cast %9 : vector<336xf32> to vector<336x1xf32>
    %11 = arith.addf %10, %0 : vector<336x1xf32>
    %12 = arith.negf %11 : vector<336x1xf32>
    %13 = math.exp %12 : vector<336x1xf32>
    %cst_9 = arith.constant 1.000000e+00 : f32
    %14 = vector.broadcast %cst_9 : f32 to vector<336x1xf32>
    %15 = arith.addf %14, %13 : vector<336x1xf32>
    %16 = arith.divf %14, %15 : vector<336x1xf32>
    %c0_10 = arith.constant 0 : index
    %c0_11 = arith.constant 0 : index
    %17 = vector.load %arg1[%c0_10, %c0_11] : memref<336x196xf32, #tpu.memory_space<vmem>>, vector<336x196xf32>
    %18 = vector.broadcast %16 : vector<336x1xf32> to vector<336x196xf32>
    %19 = arith.mulf %17, %18 : vector<336x196xf32>
    %c0_12 = arith.constant 0 : index
    %c0_13 = arith.constant 0 : index
    %20 = vector.load %arg5[%c0_12, %c0_13] : memref<336x336xbf16, #tpu.memory_space<vmem>>, vector<336x336xbf16>
    %21 = arith.truncf %19 : vector<336x196xf32> to vector<336x196xbf16>
    %cst_14 = arith.constant dense<0.000000e+00> : vector<336x196xf32>
    %22 = tpu.matmul %20, %21, %cst_14 {dimension_numbers = #tpu.dot_dimension_numbers<[1], [0], [0], [1], [0, 0, 1, 1], [], []>} : vector<336x336xbf16>, vector<336x196xbf16>, vector<336x196xf32> -> vector<336x196xf32>
    %cst_15 = arith.constant dense<0.000000e+00> : vector<336xf32>
    %23 = vector.multi_reduction <add>, %22, %cst_15 [1] : vector<336x196xf32> to vector<336xf32>
    %24 = vector.shape_cast %23 : vector<336xf32> to vector<336x1xf32>
    %25 = arith.mulf %22, %22 : vector<336x196xf32>
    %cst_16 = arith.constant dense<0.000000e+00> : vector<336xf32>
    %26 = vector.multi_reduction <add>, %25, %cst_16 [1] : vector<336x196xf32> to vector<336xf32>
    %27 = vector.shape_cast %26 : vector<336xf32> to vector<336x1xf32>
    %cst_17 = arith.constant 0.00510204071 : f32
    %28 = vector.broadcast %cst_17 : f32 to vector<336x1xf32>
    %29 = arith.mulf %24, %28 : vector<336x1xf32>
    %cst_18 = arith.constant 0.00510204071 : f32
    %30 = vector.broadcast %cst_18 : f32 to vector<336x1xf32>
    %31 = arith.mulf %27, %30 : vector<336x1xf32>
    %32 = arith.mulf %29, %29 : vector<336x1xf32>
    %33 = arith.subf %31, %32 : vector<336x1xf32>
    %cst_19 = arith.constant 0.000000e+00 : f32
    %34 = vector.broadcast %cst_19 : f32 to vector<336x1xf32>
    %35 = arith.maximumf %33, %34 : vector<336x1xf32>
    %cst_20 = arith.constant 9.99999974E-6 : f32
    %36 = vector.broadcast %cst_20 : f32 to vector<336x1xf32>
    %37 = arith.addf %35, %36 : vector<336x1xf32>
    %38 = math.rsqrt %37 : vector<336x1xf32>
    %39 = arith.mulf %1, %38 : vector<336x1xf32>
    %40 = arith.mulf %29, %39 : vector<336x1xf32>
    %41 = arith.subf %2, %40 : vector<336x1xf32>
    %42 = vector.broadcast %39 : vector<336x1xf32> to vector<336x196xf32>
    %43 = arith.mulf %22, %42 : vector<336x196xf32>
    %44 = vector.broadcast %41 : vector<336x1xf32> to vector<336x196xf32>
    %45 = arith.addf %43, %44 : vector<336x196xf32>
    %c0_21 = arith.constant 0 : index
    %c0_22 = arith.constant 0 : index
    %46 = vector.load %arg2[%c0_21, %c0_22] : memref<336x196xf32, #tpu.memory_space<vmem>>, vector<336x196xf32>
    %47 = arith.addf %46, %45 : vector<336x196xf32>
    %cst_23 = arith.constant 0.000000e+00 : f32
    %48 = vector.broadcast %cst_23 : f32 to vector<336x196xf32>
    %49 = arith.maximumf %47, %48 : vector<336x196xf32>
    %c0_24 = arith.constant 0 : index
    %c0_25 = arith.constant 0 : index
    %50 = vector.load %arg6[%c0_24, %c0_25] : memref<336x336xbf16, #tpu.memory_space<vmem>>, vector<336x336xbf16>
    %51 = arith.truncf %49 : vector<336x196xf32> to vector<336x196xbf16>
    %cst_26 = arith.constant dense<0.000000e+00> : vector<336x196xf32>
    %52 = tpu.matmul %50, %51, %cst_26 {dimension_numbers = #tpu.dot_dimension_numbers<[1], [0], [0], [1], [0, 0, 1, 1], [], []>} : vector<336x336xbf16>, vector<336x196xbf16>, vector<336x196xf32> -> vector<336x196xf32>
    %cst_27 = arith.constant dense<0.000000e+00> : vector<336xf32>
    %53 = vector.multi_reduction <add>, %52, %cst_27 [1] : vector<336x196xf32> to vector<336xf32>
    %54 = vector.shape_cast %53 : vector<336xf32> to vector<336x1xf32>
    %55 = arith.mulf %52, %52 : vector<336x196xf32>
    %cst_28 = arith.constant dense<0.000000e+00> : vector<336xf32>
    %56 = vector.multi_reduction <add>, %55, %cst_28 [1] : vector<336x196xf32> to vector<336xf32>
    %57 = vector.shape_cast %56 : vector<336xf32> to vector<336x1xf32>
    %cst_29 = arith.constant 0.00510204071 : f32
    %58 = vector.broadcast %cst_29 : f32 to vector<336x1xf32>
    %59 = arith.mulf %54, %58 : vector<336x1xf32>
    %cst_30 = arith.constant 0.00510204071 : f32
    %60 = vector.broadcast %cst_30 : f32 to vector<336x1xf32>
    %61 = arith.mulf %57, %60 : vector<336x1xf32>
    %62 = arith.mulf %59, %59 : vector<336x1xf32>
    %63 = arith.subf %61, %62 : vector<336x1xf32>
    %cst_31 = arith.constant 0.000000e+00 : f32
    %64 = vector.broadcast %cst_31 : f32 to vector<336x1xf32>
    %65 = arith.maximumf %63, %64 : vector<336x1xf32>
    %cst_32 = arith.constant 9.99999974E-6 : f32
    %66 = vector.broadcast %cst_32 : f32 to vector<336x1xf32>
    %67 = arith.addf %65, %66 : vector<336x1xf32>
    %68 = math.rsqrt %67 : vector<336x1xf32>
    %69 = arith.mulf %3, %68 : vector<336x1xf32>
    %70 = arith.mulf %59, %69 : vector<336x1xf32>
    %71 = arith.subf %4, %70 : vector<336x1xf32>
    %72 = vector.broadcast %69 : vector<336x1xf32> to vector<336x196xf32>
    %73 = arith.mulf %52, %72 : vector<336x196xf32>
    %74 = vector.broadcast %71 : vector<336x1xf32> to vector<336x196xf32>
    %75 = arith.addf %73, %74 : vector<336x196xf32>
    %c0_33 = arith.constant 0 : index
    %c0_34 = arith.constant 0 : index
    %76 = vector.load %arg7[%c0_33, %c0_34] : memref<336x196xf32, #tpu.memory_space<vmem>>, vector<336x196xf32>
    tpu.vector_store %arg7[%c0_33, %c0_34], %75 {strides = array<i32>} : memref<336x196xf32, #tpu.memory_space<vmem>>, vector<336x196xf32>,
    return
  }
}

</mosaic_0001>

<bundles_post_ra>
// kernel: module_forward.1
= control target key start
LH: loop header
LB: loop body
LE: loop exit
PB: predicated region body
PF: predicated region fallthrough
CT: control target
= control target key end

     0   :  { %vm160_vm0 = vcmask 687104   ;;  %vm1400_vm1 = vcmask 654336   ;;  %vm1950_vm2 = vcmask 556032   ;;  %s7341_s13 = smov 1   ;;  %s12405_s0 = inlined_call_operand.vmem [shape: f32[1,84], index: 0, kind: input, shape index: {}]   ;;  %s12406_s3 = inlined_call_operand.vmem [shape: f32[336,84], index: 3, kind: input, shape index: {}]   ;;  %s12407_s4 = inlined_call_operand.vmem [shape: f32[336,8], index: 4, kind: input, shape index: {}]   ;;  %s12408_s5 = inlined_call_operand.vmem [shape: bf16[336,336], index: 5, kind: input, shape index: {}]   ;;  %s12409_s1 = inlined_call_operand.vmem [shape: f32[336,196], index: 1, kind: input, shape index: {}]   ;;  %s12410_s6 = inlined_call_operand.vmem [shape: bf16[336,336], index: 6, kind: input, shape index: {}]   ;;  %s12411_s2 = inlined_call_operand.vmem [shape: f32[336,196], index: 2, kind: input, shape index: {}]   ;;  %s12412_s7 = inlined_call_operand.vmem [shape: f32[336,196], index: 7, kind: output, shape index: {}]  }
   0x1   :  { %v71_v0 = vld [vmem:[%s12406_s3 + $0x10] sm:$0xff]  ;;  %v7391_v1 = vld [vmem:[%s12405_s0] ss:$0 sm:$0xff]  ;;  %v72_v5 = vld [vmem:[%s12406_s3 + $0x18] sm:$0xff] }
   0x2   :  { %v69_v2 = vld [vmem:[%s12406_s3] sm:$0xff]  ;;  %v120_v3 = vmul.f32 %v7391_v1, %v71_v0  ;;  %v70_v6 = vld [vmem:[%s12406_s3 + $0x8] sm:$0xff]  ;;  %v121_v7 = vmul.f32 %v7391_v1, %v72_v5  ;;  %v76_v17 = vld [vmem:[%s12406_s3 + $0x38] sm:$0xff] }
   0x3   :  { %v118_v4 = vmul.f32 %v7391_v1, %v69_v2  ;;  %v119_v8 = vmul.f32 %v7391_v1, %v70_v6  ;;  %v74_v9 = vld [vmem:[%s12406_s3 + $0x28] sm:$0xff]  ;;  %v73_v10 = vld [vmem:[%s12406_s3 + $0x20] sm:$0xff]  ;;  %v75_v18 = vld [vmem:[%s12406_s3 + $0x30] sm:$0xff]  ;;  %v125_v21 = vmul.f32 %v7391_v1, %v76_v17 }
   0x4   :  { %v167_v11 = vsel %vm160_vm0, %v120_v3, 0.0  ;;  %v170_v13 = vsel %vm160_vm0, %v121_v7, 0.0  ;;  %v123_v15 = vmul.f32 %v7391_v1, %v74_v9  ;;  %v122_v16 = vmul.f32 %v7391_v1, %v73_v10  ;;  %v78_v23 = vld [vmem:[%s12406_s3 + $0x48] sm:$0xff]  ;;  %v77_v24 = vld [vmem:[%s12406_s3 + $0x40] sm:$0xff]  ;;  %v80_v25 = vld [vmem:[%s12406_s3 + $0x58] sm:$0xff] }
   0x5   :  { %v161_v12 = vsel %vm160_vm0, %v118_v4, 0.0  ;;  %168 = vadd.xlane.f32.xlu1 %v167_v11  ;;  %v164_v14 = vsel %vm160_vm0, %v119_v8, 0.0  ;;  %v124_v22 = vmul.f32 %v7391_v1, %v75_v18  ;;  %v79_v26 = vld [vmem:[%s12406_s3 + $0x50] sm:$0xff]  ;;  %v127_v27 = vmul.f32 %v7391_v1, %v78_v23  ;;  %v82_v32 = vld [vmem:[%s12406_s3 + $0x68] sm:$0xff]  ;;  %v81_v34 = vld [vmem:[%s12406_s3 + $0x60] sm:$0xff] }
   0x6   :  { %162 = vadd.xlane.f32.xlu0 %v161_v12  ;;  %v176_v19 = vsel %vm160_vm0, %v123_v15, 0.0  ;;  %v173_v20 = vsel %vm160_vm0, %v122_v16, 0.0  ;;  %v126_v28 = vmul.f32 %v7391_v1, %v77_v24  ;;  %v182_v29 = vsel %vm160_vm0, %v125_v21, 0.0  ;;  %v102_v35 = vld [vmem:[%s12406_s3 + $0x108] sm:$0xff]  ;;  %v101_v36 = vld [vmem:[%s12406_s3 + $0x100] sm:$0xff]  ;;  %v104_v37 = vld [vmem:[%s12406_s3 + $0x118] sm:$0xff] }
   0x7   :  { %v179_v30 = vsel %vm160_vm0, %v124_v22, 0.0  ;;  %v129_v31 = vmul.f32 %v7391_v1, %v80_v25  ;;  %v128_v33 = vmul.f32 %v7391_v1, %v79_v26  ;;  %v103_v38 = vld [vmem:[%s12406_s3 + $0x110] sm:$0xff]  ;;  %v106_v39 = vld [vmem:[%s12406_s3 + $0x128] sm:$0xff]  ;;  %v188_v40 = vsel %vm160_vm0, %v127_v27, 0.0  ;;  %v105_v43 = vld [vmem:[%s12406_s3 + $0x120] sm:$0xff] }
   0x8   :  { %v185_v41 = vsel %vm160_vm0, %v126_v28, 0.0  ;;  %v131_v42 = vmul.f32 %v7391_v1, %v82_v32  ;;  %v108_v44 = vld [vmem:[%s12406_s3 + $0x138] sm:$0xff]  ;;  %v130_v46 = vmul.f32 %v7391_v1, %v81_v34  ;;  %v151_v47 = vmul.f32 %v7391_v1, %v102_v35  ;;  %v107_v49 = vld [vmem:[%s12406_s3 + $0x130] sm:$0xff]  ;;  %v110_v54 = vld [vmem:[%s12406_s3 + $0x148] sm:$0xff] }
   0x9   :  { %171 = vadd.xlane.f32.xlu1 %v170_v13  ;;  %v194_v45 = vsel %vm160_vm0, %v129_v31, 0.0  ;;  %v150_v48 = vmul.f32 %v7391_v1, %v101_v36  ;;  %v191_v50 = vsel %vm160_vm0, %v128_v33, 0.0  ;;  %v153_v51 = vmul.f32 %v7391_v1, %v104_v37  ;;  %v109_v55 = vld [vmem:[%s12406_s3 + $0x140] sm:$0xff]  ;;  %v84_v5 = vld [vmem:[%s12406_s3 + $0x78] sm:$0xff]  ;;  %v83_v6 = vld [vmem:[%s12406_s3 + $0x70] sm:$0xff] }
   0xa   :  { %165 = vadd.xlane.f32.xlu0 %v164_v14  ;;  %v152_v52 = vmul.f32 %v7391_v1, %v103_v38  ;;  %v155_v53 = vmul.f32 %v7391_v1, %v106_v39  ;;  %v7494_v56 = vsel %vm160_vm0, %v151_v47, 0.0  ;;  %v154_v58 = vmul.f32 %v7391_v1, %v105_v43  ;;  %v86_v14 = vld [vmem:[%s12406_s3 + $0x88] sm:$0xff]  ;;  %v85_v15 = vld [vmem:[%s12406_s3 + $0x80] sm:$0xff]  ;;  %v87_v21 = vld [vmem:[%s12406_s3 + $0x90] sm:$0xff] }
   0xb   :  { %v7497_v57 = vsel %vm160_vm0, %v150_v48, 0.0  ;;  %v157_v59 = vmul.f32 %v7391_v1, %v108_v44  ;;  %v7502_v60 = vsel %vm160_vm0, %v153_v51, 0.0  ;;  %v156_v63 = vmul.f32 %v7391_v1, %v107_v49  ;;  %v90_v26 = vld [vmem:[%s12406_s3 + $0xa8] sm:$0xff]  ;;  %v89_v27 = vld [vmem:[%s12406_s3 + $0xa0] sm:$0xff]  ;;  %v92_v32 = vld [vmem:[%s12406_s3 + $0xb8] sm:$0xff] }
   0xc   :  { %v7505_v61 = vsel %vm160_vm0, %v152_v52, 0.0  ;;  %v7508_v62 = vsel %vm160_vm0, %v155_v53, 0.0  ;;  %v7512_v0 = vsel %vm160_vm0, %v154_v58, 0.0  ;;  %v159_v3 = vmul.f32 %v7391_v1, %v110_v54  ;;  %v91_v33 = vld [vmem:[%s12406_s3 + $0xb0] sm:$0xff]  ;;  %v94_v38 = vld [vmem:[%s12406_s3 + $0xc8] sm:$0xff]  ;;  %v93_v39 = vld [vmem:[%s12406_s3 + $0xc0] sm:$0xff] }
   0xd   :  { %177 = vadd.xlane.f32.xlu1 %v176_v19  ;;  %v7515_v2 = vsel %vm160_vm0, %v157_v59, 0.0  ;;  %v158_v4 = vmul.f32 %v7391_v1, %v109_v55  ;;  %v7526_v7 = vsel %vm160_vm0, %v156_v63, 0.0  ;;  %v200_v10 = vsel %vm160_vm0, %v131_v42, 0.0  ;;  %v96_v44 = vld [vmem:[%s12406_s3 + $0xd8] sm:$0xff]  ;;  %v98_v51 = vld [vmem:[%s12406_s3 + $0xe8] sm:$0xff]  ;;  %v97_v52 = vld [vmem:[%s12406_s3 + $0xe0] sm:$0xff] }
   0xe   :  { %174 = vadd.xlane.f32.xlu0 %v173_v20  ;;  %v7529_v8 = vsel %vm160_vm0, %v159_v3, 0.0  ;;  %v197_v11 = vsel %vm160_vm0, %v130_v46, 0.0  ;;  %v133_v12 = vmul.f32 %v7391_v1, %v84_v5  ;;  %v132_v13 = vmul.f32 %v7391_v1, %v83_v6  ;;  %v88_v20 = vld [vmem:[%s12406_s3 + $0x98] sm:$0xff]  ;;  %v99_v63 = vld [vmem:[%s12406_s3 + $0xf0] sm:$0xff] }
   0xf   :  { %v7532_v9 = vsel %vm160_vm0, %v158_v4, 0.0  ;;  %v135_v18 = vmul.f32 %v7391_v1, %v86_v14  ;;  %v134_v19 = vmul.f32 %v7391_v1, %v85_v15  ;;  %v137_v24 = vmul.f32 %v7391_v1, %v88_v20  ;;  %v100_v59 = vld [vmem:[%s12406_s3 + $0xf8] sm:$0xff]  ;;  %v31_v15 = vld [vmem:[%s12407_s4 + $0x20] sm:$0xff]  ;;  %v32_v20 = vld [vmem:[%s12407_s4 + $0x28] sm:$0xff] }
  0x10   :  { %v206_v16 = vsel %vm160_vm0, %v133_v12, 0.0  ;;  %v203_v17 = vsel %vm160_vm0, %v132_v13, 0.0  ;;  %v136_v25 = vmul.f32 %v7391_v1, %v87_v21  ;;  %v138_v31 = vmul.f32 %v7391_v1, %v89_v27  ;;  %v36_v27 = vld [vmem:[%s12407_s4 + $0x48] sm:$0xff] }
  0x11   :  { %183 = vadd.xlane.f32.xlu1 %v182_v29  ;;  %v212_v22 = vsel %vm160_vm0, %v135_v18, 0.0  ;;  %v209_v23 = vsel %vm160_vm0, %v134_v19, 0.0  ;;  %v218_v28 = vsel %vm160_vm0, %v137_v24, 0.0  ;;  %v141_v36 = vmul.f32 %v7391_v1, %v92_v32 }
  0x12   :  { %180 = vadd.xlane.f32.xlu0 %v179_v30  ;;  %v215_v29 = vsel %vm160_vm0, %v136_v25, 0.0  ;;  %v139_v30 = vmul.f32 %v7391_v1, %v90_v26  ;;  %v221_v35 = vsel %vm160_vm0, %v138_v31, 0.0  ;;  %v140_v37 = vmul.f32 %v7391_v1, %v91_v33  ;;  %v33_v26 = vld [vmem:[%s12407_s4 + $0x30] sm:$0xff]  ;;  %v38_v33 = vld [vmem:[%s12407_s4 + $0x58] sm:$0xff] }
  0x13   :  { %v143_v42 = vmul.f32 %v7391_v1, %v94_v38  ;;  %v142_v43 = vmul.f32 %v7391_v1, %v93_v39  ;;  %v145_v48 = vmul.f32 %v7391_v1, %v96_v44  ;;  %v147_v55 = vmul.f32 %v7391_v1, %v98_v51  ;;  %v35_v44 = vld [vmem:[%s12407_s4 + $0x40] sm:$0xff] }
  0x14   :  { %v224_v34 = vsel %vm160_vm0, %v139_v30, 0.0  ;;  %v146_v58 = vmul.f32 %v7391_v1, %v97_v52  ;;  %v149_v5 = vmul.f32 %v7391_v1, %v100_v59  ;;  %v148_v6 = vmul.f32 %v7391_v1, %v99_v63 }
  0x15   :  { %189 = vadd.xlane.f32.xlu1 %v188_v40  ;;  %v230_v40 = vsel %vm160_vm0, %v141_v36, 0.0  ;;  %v236_v46 = vsel %vm160_vm0, %v143_v42, 0.0  ;;  %v233_v47 = vsel %vm160_vm0, %v142_v43, 0.0  ;;  %v242_v53 = vsel %vm160_vm0, %v145_v48, 0.0  ;;  %v37_v48 = vld [vmem:[%s12407_s4 + $0x50] sm:$0xff] }
  0x16   :  { %186 = vadd.xlane.f32.xlu0 %v185_v41  ;;  %v227_v41 = vsel %vm160_vm0, %v140_v37, 0.0  ;;  %v248_v3 = vsel %vm160_vm0, %v147_v55, 0.0  ;;  %v245_v4 = vsel %vm160_vm0, %v146_v58, 0.0 }
  0x19   :  { %195 = vadd.xlane.f32.xlu1 %v194_v45  ;;  %v95_v45 = vld [vmem:[%s12406_s3 + $0xd0] sm:$0xff] }
  0x1a   :  { %192 = vadd.xlane.f32.xlu0 %v191_v50  ;;  %v144_v49 = vmul.f32 %v7391_v1, %v95_v45  ;;  %v12413_v50 = vmov 0   ;;  %v29_v1 = vld [vmem:[%s12407_s4 + $0x10] sm:$0xff]  ;;  %v40_v45 = vld [vmem:[%s12407_s4 + $0x68] sm:$0xff] }
  0x1b   :  { %6700 = vset.pattern.permute.xlu0 %v12413_v50  ;;  %6701 = vset.pattern.permute.xlu1 %v12413_v50 }
  0x1c   :  { %1739 = vmatprep.mubr.bf16.mxu1 %v12413_v50  ;;  %v239_v54 = vsel %vm160_vm0, %v144_v49, 0.0 }
  0x1d   :  { %201 = vadd.xlane.f32.xlu1 %v200_v10  ;;  %v254_v10 = vsel %vm160_vm0, %v149_v5, 0.0 }
  0x1e   :  { %198 = vadd.xlane.f32.xlu0 %v197_v11  ;;  %v251_v11 = vsel %vm160_vm0, %v148_v6, 0.0 }
  0x21   :  { %207 = vadd.xlane.f32.xlu1 %v206_v16 }
  0x22   :  { %204 = vadd.xlane.f32.xlu0 %v203_v17 }
  0x25   :  { %213 = vadd.xlane.f32.xlu1 %v212_v22 }
  0x26   :  { %210 = vadd.xlane.f32.xlu0 %v209_v23 }
  0x29   :  { %219 = vadd.xlane.f32.xlu1 %v218_v28 }
  0x2a   :  { %216 = vadd.xlane.f32.xlu0 %v215_v29 }
  0x2d   :  { %225 = vadd.xlane.f32.xlu1 %v224_v34 }
  0x2e   :  { %222 = vadd.xlane.f32.xlu0 %v221_v35  ;;  %v34_v35 = vld [vmem:[%s12407_s4 + $0x38] sm:$0xff] }
  0x31   :  { %231 = vadd.xlane.f32.xlu1 %v230_v40 }
  0x32   :  { %228 = vadd.xlane.f32.xlu0 %v227_v41 }
  0x35   :  { %237 = vadd.xlane.f32.xlu1 %v236_v46 }
  0x36   :  { %234 = vadd.xlane.f32.xlu0 %v233_v47 }
  0x39   :  { %243 = vadd.xlane.f32.xlu1 %v242_v53 }
  0x3a   :  { %240 = vadd.xlane.f32.xlu0 %v239_v54 }
  0x3d   :  { %249 = vadd.xlane.f32.xlu1 %v248_v3  ;;  %v42_v3 = vld [vmem:[%s12407_s4 + $0x78] sm:$0xff] }
  0x3e   :  { %246 = vadd.xlane.f32.xlu0 %v245_v4 }
  0x41   :  { %255 = vadd.xlane.f32.xlu1 %v254_v10 }
  0x42   :  { %252 = vadd.xlane.f32.xlu0 %v251_v11 }
  0x45   :  { %261 = vadd.xlane.f32.xlu1 %v7494_v56  ;;  %v27_v56 = vld [vmem:[%s12407_s4] sm:$0xff] }
  0x46   :  { %258 = vadd.xlane.f32.xlu0 %v7497_v57 }
  0x49   :  { %267 = vadd.xlane.f32.xlu1 %v7502_v60 }
  0x4a   :  { %264 = vadd.xlane.f32.xlu0 %v7505_v61 }
  0x4d   :  { %273 = vadd.xlane.f32.xlu1 %v7508_v62 }
  0x4e   :  { %270 = vadd.xlane.f32.xlu0 %v7512_v0  ;;  %v30_v0 = vld [vmem:[%s12407_s4 + $0x18] sm:$0xff] }
  0x51   :  { %279 = vadd.xlane.f32.xlu1 %v7515_v2  ;;  %v28_v2 = vld [vmem:[%s12407_s4 + $0x8] sm:$0xff] }
  0x52   :  { %276 = vadd.xlane.f32.xlu0 %v7526_v7 }
  0x55   :  { %285 = vadd.xlane.f32.xlu1 %v7529_v8 }
  0x56   :  { %282 = vadd.xlane.f32.xlu0 %v7532_v9 }
  0x8e   :  { %v169_v57 = vpop.xlane.xlu1 %168 }
  0x8f   :  { %v163_v60 = vpop.xlane.xlu0 %162  ;;  %v289_v61 = vadd.f32 %v169_v57, %v29_v1 }
  0x90   :  { %v287_v62 = vadd.f32 %v163_v60, %v27_v56  ;;  %v44_v60 = vld [vmem:[%s12407_s4 + $0x88] sm:$0xff] }
  0x91   :  { %v6476_v8 = vmul.f32 -1.442695, %v289_v61  ;;  %v39_v61 = vld [vmem:[%s12407_s4 + $0x60] sm:$0xff] }
  0x92   :  { %v6474_v7 = vmul.f32 -1.442695, %v287_v62  ;;  %v172_v9 = vpop.xlane.xlu1 %171 }
  0x93   :  { %v166_v12 = vpop.xlane.xlu0 %165  ;;  %v290_v13 = vadd.f32 %v172_v9, %v30_v0 }
  0x94   :  { %v288_v14 = vadd.f32 %v166_v12, %v28_v2  ;;  %6918 = vpow2.f32 %v6474_v7 }
  0x95   :  { %6920 = vpow2.f32 %v6476_v8  ;;  %v6477_v17 = vmul.f32 -1.442695, %v290_v13  ;;  %v46_v13 = vld [vmem:[%s12407_s4 + $0x98] sm:$0xff] }
  0x96   :  { %v6475_v16 = vmul.f32 -1.442695, %v288_v14  ;;  %v178_v18 = vpop.xlane.xlu1 %177 }
  0x97   :  { %v175_v19 = vpop.xlane.xlu0 %174  ;;  %v292_v22 = vadd.f32 %v178_v18, %v32_v20 }
  0x98   :  { %v291_v21 = vadd.f32 %v175_v19, %v31_v15  ;;  %6922 = vpow2.f32 %v6475_v16  ;;  %v41_v15 = vld [vmem:[%s12407_s4 + $0x70] sm:$0xff] }
  0x99   :  { %6924 = vpow2.f32 %v6477_v17  ;;  %v6479_v28 = vmul.f32 -1.442695, %v292_v22 }
  0x9a   :  { %v6478_v23 = vmul.f32 -1.442695, %v291_v21  ;;  %v184_v24 = vpop.xlane.xlu1 %183 }
  0x9b   :  { %v181_v25 = vpop.xlane.xlu0 %180  ;;  %v294_v43 = vadd.f32 %v184_v24, %v34_v35 }
  0x9c   :  { %6926 = vpow2.f32 %v6478_v23  ;;  %v293_v29 = vadd.f32 %v181_v25, %v33_v26  ;;  %v43_v23 = vld [vmem:[%s12407_s4 + $0x80] sm:$0xff] }
  0x9d   :  { %6928 = vpow2.f32 %v6479_v28  ;;  %v6481_v59 = vmul.f32 -1.442695, %v294_v43 }
  0x9e   :  { %v190_v30 = vpop.xlane.xlu1 %189  ;;  %v6480_v38 = vmul.f32 -1.442695, %v293_v29 }
  0x9f   :  { %v187_v31 = vpop.xlane.xlu0 %186  ;;  %v296_v32 = vadd.f32 %v190_v30, %v36_v27  ;;  %v48_v27 = vld [vmem:[%s12407_s4 + $0xa8] sm:$0xff] }
  0xa0   :  { %v295_v55 = vadd.f32 %v187_v31, %v35_v44 }
  0xa1   :  { %v6919_v34 = vpop.eup %6918  ;;  %v6483_v36 = vmul.f32 -1.442695, %v296_v32 }
  0xa2   :  { %v455_v37 = vadd.f32 1.0, %v6919_v34  ;;  %v196_v39 = vpop.xlane.xlu1 %195  ;;  %v6921_v41 = vpop.eup %6920  ;;  %v6482_v1 = vmul.f32 -1.442695, %v295_v55 }
  0xa3   :  { %v193_v40 = vpop.xlane.xlu0 %192  ;;  %v298_v42 = vadd.f32 %v196_v39, %v38_v33  ;;  %v457_v49 = vadd.f32 1.0, %v6921_v41 }
  0xa4   :  { %6930 = vrcp.f32 %v455_v37  ;;  %v297_v63 = vadd.f32 %v193_v40, %v37_v48  ;;  %v45_v37 = vld [vmem:[%s12407_s4 + $0x90] sm:$0xff]  ;;  %v50_v40 = vld [vmem:[%s12407_s4 + $0xb8] sm:$0xff] }
  0xa5   :  { %v6923_v46 = vpop.eup %6922  ;;  %6932 = vpow2.f32 %v6483_v36  ;;  %v6485_v47 = vmul.f32 -1.442695, %v298_v42 }
  0xa6   :  { %v456_v51 = vadd.f32 1.0, %v6923_v46  ;;  %6934 = vpow2.f32 %v6480_v38  ;;  %v202_v52 = vpop.xlane.xlu1 %201  ;;  %v6925_v54 = vpop.eup %6924  ;;  %v6484_v57 = vmul.f32 -1.442695, %v297_v63 }
  0xa7   :  { %v199_v53 = vpop.xlane.xlu0 %198  ;;  %v300_v58 = vadd.f32 %v202_v52, %v40_v45  ;;  %v458_v5 = vadd.f32 1.0, %v6925_v54  ;;  %v52_v54 = vld [vmem:[%s12407_s4 + $0xc8] sm:$0xff] }
  0xa8   :  { %6936 = vrcp.f32 %v456_v51  ;;  %v299_v12 = vadd.f32 %v199_v53, %v39_v61 }
  0xa9   :  { %6938 = vpow2.f32 %v6485_v47  ;;  %v6487_v4 = vmul.f32 -1.442695, %v300_v58  ;;  %v6927_v11 = vpop.eup %6926  ;;  %v47_v58 = vld [vmem:[%s12407_s4 + $0xa0] sm:$0xff] }
  0xaa   :  { %6940 = vrcp.f32 %v457_v49  ;;  %v208_v6 = vpop.xlane.xlu1 %207  ;;  %v459_v0 = vadd.f32 1.0, %v6927_v11  ;;  %v6929_v8 = vpop.eup %6928  ;;  %v6486_v25 = vmul.f32 -1.442695, %v299_v12 }
  0xab   :  { %v205_v10 = vpop.xlane.xlu0 %204  ;;  %v302_v56 = vadd.f32 %v208_v6, %v42_v3  ;;  %6942 = vpow2.f32 %v6481_v59  ;;  %v460_v18 = vadd.f32 1.0, %v6929_v8 }
  0xac   :  { %6944 = vpow2.f32 %v6487_v4  ;;  %v301_v26 = vadd.f32 %v205_v10, %v41_v15  ;;  %v49_v4 = vld [vmem:[%s12407_s4 + $0xb0] sm:$0xff] }
  0xad   :  { %v6489_v62 = vmul.f32 -1.442695, %v302_v56  ;;  %6946 = vrcp.f32 %v458_v5  ;;  %v51_v56 = vld [vmem:[%s12407_s4 + $0xc0] sm:$0xff] }
  0xae   :  { %v214_v2 = vpop.xlane.xlu1 %213  ;;  %6948 = vpow2.f32 %v6482_v1  ;;  %v6488_v39 = vmul.f32 -1.442695, %v301_v26 }
  0xaf   :  { %v211_v7 = vpop.xlane.xlu0 %210  ;;  %v304_v9 = vadd.f32 %v214_v2, %v44_v60  ;;  %6950 = vpow2.f32 %v6484_v57 }
  0xb0   :  { %6952 = vpow2.f32 %v6489_v62  ;;  %v303_v32 = vadd.f32 %v211_v7, %v43_v23 }
  0xb1   :  { %v6931_v14 = vpop.eup %6930  ;;  %v6491_v16 = vmul.f32 -1.442695, %v304_v9  ;;  %6954 = vrcp.f32 %v459_v0 }
  0xb2   :  { %v6933_v17 = vpop.eup %6932  ;;  %667 = vperm.xlu0 %6700, %v6931_v14   ;;  %v220_v19 = vpop.xlane.xlu1 %219  ;;  %v6490_v44 = vmul.f32 -1.442695, %v303_v32 }
  0xb3   :  { %v217_v20 = vpop.xlane.xlu0 %216  ;;  %v6935_v21 = vpop.eup %6934  ;;  %v464_v22 = vadd.f32 1.0, %v6933_v17  ;;  %6956 = vpow2.f32 %v6491_v16  ;;  %v306_v24 = vadd.f32 %v220_v19, %v46_v13  ;;  %v56_v17 = vld [vmem:[%s12407_s4 + $0xe8] sm:$0xff] }
  0xb4   :  { %v461_v31 = vadd.f32 1.0, %v6935_v21  ;;  %v305_v45 = vadd.f32 %v217_v20, %v45_v37 }
  0xb5   :  { %v6937_v28 = vpop.eup %6936  ;;  %6958 = vrcp.f32 %v464_v22  ;;  %v6493_v29 = vmul.f32 -1.442695, %v306_v24 }
  0xb6   :  { %v6939_v30 = vpop.eup %6938  ;;  %6960 = vrcp.f32 %v460_v18  ;;  %672 = vperm.xlu1 %6701, %v6937_v28   ;;  %v226_v33 = vpop.xlane.xlu1 %225  ;;  %v6492_v3 = vmul.f32 -1.442695, %v305_v45 }
  0xb7   :  { %v223_v34 = vpop.xlane.xlu0 %222  ;;  %v6941_v35 = vpop.eup %6940  ;;  %v466_v36 = vadd.f32 1.0, %v6939_v30  ;;  %6962 = vpow2.f32 %v6493_v29  ;;  %v308_v38 = vadd.f32 %v226_v33, %v48_v27  ;;  %v58_v29 = vld [vmem:[%s12407_s4 + $0xf8] sm:$0xff]  ;;  %v57_v30 = vld [vmem:[%s12407_s4 + $0xf0] sm:$0xff] }
  0xb8   :  { %6964 = vpow2.f32 %v6486_v25  ;;  %v6943_v41 = vpop.eup %6942  ;;  %v307_v61 = vadd.f32 %v223_v34, %v47_v58  ;;  %v54_v33 = vld [vmem:[%s12407_s4 + $0xd8] sm:$0xff] }
  0xb9   :  { %6966 = vrcp.f32 %v466_v36  ;;  %v6495_v42 = vmul.f32 -1.442695, %v308_v38  ;;  %v6945_v43 = vpop.eup %6944  ;;  %v462_v53 = vadd.f32 1.0, %v6943_v41 }
  0xba   :  { %6968 = vrcp.f32 %v461_v31  ;;  %677 = vperm.xlu1 %6701, %v6941_v35   ;;  %v232_v46 = vpop.xlane.xlu1 %231  ;;  %v6947_v48 = vpop.eup %6946  ;;  %v468_v49 = vadd.f32 1.0, %v6945_v43  ;;  %v6494_v16 = vmul.f32 -1.442695, %v307_v61 }
  0xbb   :  { %v229_v47 = vpop.xlane.xlu0 %228  ;;  %6970 = vpow2.f32 %v6495_v42  ;;  %v310_v51 = vadd.f32 %v232_v46, %v50_v40  ;;  %v6949_v52 = vpop.eup %6948  ;;  %v55_v46 = vld [vmem:[%s12407_s4 + $0xe0] sm:$0xff] }
  0xbc   :  { %6972 = vpow2.f32 %v6488_v39  ;;  %v6951_v55 = vpop.eup %6950  ;;  %v463_v60 = vadd.f32 1.0, %v6949_v52  ;;  %v309_v0 = vadd.f32 %v229_v47, %v49_v4 }
  0xbd   :  { %6974 = vrcp.f32 %v468_v49  ;;  %v6497_v59 = vmul.f32 -1.442695, %v310_v51  ;;  %v6953_v63 = vpop.eup %6952  ;;  %v465_v8 = vadd.f32 1.0, %v6951_v55 }
  0xbe   :  { %6976 = vpow2.f32 %v6490_v44  ;;  %682 = vperm.xlu1 %6701, %v6947_v48   ;;  %v238_v5 = vpop.xlane.xlu1 %237  ;;  %v6955_v10 = vpop.eup %6954  ;;  %v470_v11 = vadd.f32 1.0, %v6953_v63  ;;  %v6496_v20 = vmul.f32 -1.442695, %v309_v0 }
  0xbf   :  { %v235_v6 = vpop.xlane.xlu0 %234  ;;  %6978 = vpow2.f32 %v6497_v59  ;;  %v312_v1 = vadd.f32 %v238_v5, %v52_v54  ;;  %v53_v59 = vld [vmem:[%s12407_s4 + $0xd0] sm:$0xff] }
  0xc0   :  { %v6957_v57 = vpop.eup %6956  ;;  %6980 = vrcp.f32 %v462_v53  ;;  %v311_v9 = vadd.f32 %v235_v6, %v51_v56 }
  0xc1   :  { %6982 = vrcp.f32 %v470_v11  ;;  %v472_v62 = vadd.f32 1.0, %v6957_v57  ;;  %v6499_v2 = vmul.f32 -1.442695, %v312_v1 }
  0xc2   :  { %v6959_v7 = vpop.eup %6958  ;;  %6984 = vpow2.f32 %v6492_v3  ;;  %687 = vperm.xlu1 %6701, %v6955_v10   ;;  %v244_v12 = vpop.xlane.xlu1 %243  ;;  %v6498_v22 = vmul.f32 -1.442695, %v311_v9 }
  0xc3   :  { %v7711_v13 = vpop.xlane.xlu0 %240  ;;  %v6961_v14 = vpop.eup %6960  ;;  %6986 = vrcp.f32 %v472_v62  ;;  %712 = vperm.xlu0 %6700, %v6959_v7   ;;  %v314_v43 = vadd.f32 %v244_v12, %v54_v33 }
  0xc4   :  { %v6963_v15 = vpop.eup %6962  ;;  %6988 = vrcp.f32 %v463_v60  ;;  %v313_v56 = vadd.f32 %v7711_v13, %v53_v59  ;;  %v66_v13 = vld [vmem:[%s12407_s4 + $0x138] sm:$0xff]  ;;  %v60_v59 = vld [vmem:[%s12407_s4 + $0x108] sm:$0xff] }
  0xc5   :  { %v6965_v18 = vpop.eup %6964  ;;  %v474_v19 = vadd.f32 1.0, %v6963_v15  ;;  %6990 = vpow2.f32 %v6499_v2  ;;  %v6501_v58 = vmul.f32 -1.442695, %v314_v43 }
  0xc6   :  { %v6967_v21 = vpop.eup %6966  ;;  %6992 = vrcp.f32 %v465_v8  ;;  %692 = vperm.xlu1 %6701, %v6961_v14   ;;  %v250_v23 = vpop.xlane.xlu1 %249  ;;  %v467_v28 = vadd.f32 1.0, %v6965_v18  ;;  %v6500_v8 = vmul.f32 -1.442695, %v313_v56  ;;  %v65_v14 = vld [vmem:[%s12407_s4 + $0x130] sm:$0xff] }
  0xc7   :  { %v247_v24 = vpop.xlane.xlu0 %246  ;;  %v6969_v25 = vpop.eup %6968  ;;  %6994 = vrcp.f32 %v474_v19  ;;  %722 = vperm.xlu0 %6700, %v6967_v21   ;;  %v316_v26 = vadd.f32 %v250_v23, %v56_v17 }
  0xc8   :  { %v6971_v27 = vpop.eup %6970  ;;  %6996 = vpow2.f32 %v6494_v16  ;;  %v315_v63 = vadd.f32 %v247_v24, %v55_v46 }
  0xc9   :  { %v6973_v31 = vpop.eup %6972  ;;  %v476_v32 = vadd.f32 1.0, %v6971_v27  ;;  %6998 = vpow2.f32 %v6496_v20  ;;  %v6503_v34 = vmul.f32 -1.442695, %v316_v26  ;;  %v67_v26 = vld [vmem:[%s12407_s4 + $0x140] sm:$0xff] }
  0xca   :  { %v6975_v35 = vpop.eup %6974  ;;  %7000 = vpow2.f32 %v6498_v22  ;;  %697 = vperm.xlu1 %6701, %v6969_v25   ;;  %v256_v36 = vpop.xlane.xlu1 %255  ;;  %v469_v42 = vadd.f32 1.0, %v6973_v31  ;;  %v6502_v60 = vmul.f32 -1.442695, %v315_v63  ;;  %v68_v25 = vld [vmem:[%s12407_s4 + $0x148] sm:$0xff] }
  0xcb   :  { %v253_v37 = vpop.xlane.xlu0 %252  ;;  %v6977_v38 = vpop.eup %6976  ;;  %7002 = vrcp.f32 %v476_v32  ;;  %732 = vperm.xlu0 %6700, %v6975_v35   ;;  %v318_v39 = vadd.f32 %v256_v36, %v58_v29  ;;  %v64_v29 = vld [vmem:[%s12407_s4 + $0x128] sm:$0xff]  ;;  %v63_v35 = vld [vmem:[%s12407_s4 + $0x120] sm:$0xff] }
  0xcc   :  { %v317_v40 = vadd.f32 %v253_v37, %v57_v30  ;;  %v6979_v41 = vpop.eup %6978  ;;  %7004 = vrcp.f32 %v467_v28  ;;  %v471_v54 = vadd.f32 1.0, %v6977_v38 }
  0xcd   :  { %v6981_v44 = vpop.eup %6980  ;;  %v478_v45 = vadd.f32 1.0, %v6979_v41  ;;  %7006 = vpow2.f32 %v6503_v34  ;;  %v6505_v47 = vmul.f32 -1.442695, %v318_v39 }
  0xce   :  { %v6983_v48 = vpop.eup %6982  ;;  %v6504_v49 = vmul.f32 -1.442695, %v317_v40  ;;  %702 = vperm.xlu1 %6701, %v6981_v44   ;;  %v7728_v51 = vpop.xlane.xlu1 %261 }
  0xcf   :  { %v7730_v52 = vpop.xlane.xlu0 %258  ;;  %v6985_v53 = vpop.eup %6984  ;;  %7008 = vrcp.f32 %v478_v45  ;;  %742 = vperm.xlu0 %6700, %v6983_v48   ;;  %v62_v45 = vld [vmem:[%s12407_s4 + $0x118] sm:$0xff]  ;;  %v61_v48 = vld [vmem:[%s12407_s4 + $0x110] sm:$0xff] }
  0xd0   :  { %v6987_v55 = vpop.eup %6986  ;;  %7010 = vrcp.f32 %v469_v42  ;;  %v473_v11 = vadd.f32 1.0, %v6985_v53 }
  0xd1   :  { %v6989_v3 = vpop.eup %6988  ;;  %7012 = vpow2.f32 %v6505_v47 }
  0xd2   :  { %v6991_v4 = vpop.eup %6990  ;;  %7014 = vpow2.f32 %v6504_v49  ;;  %707 = vperm.xlu1 %6701, %v6989_v3   ;;  %v7735_v5 = vpop.xlane.xlu1 %267 }
  0xd3   :  { %v7737_v6 = vpop.xlane.xlu0 %264  ;;  %v6993_v10 = vpop.eup %6992  ;;  %7016 = vrcp.f32 %v471_v54  ;;  %v480_v1 = vadd.f32 1.0, %v6991_v4  ;;  %752 = vperm.xlu0 %6700, %v6987_v55   ;;  %v322_v55 = vadd.f32 %v7735_v5, %v62_v45  ;;  %v59_v4 = vld [vmem:[%s12407_s4 + $0x100] sm:$0xff]  ;;  %v320_v5 = vadd.f32 %v7728_v51, %v60_v59 }
  0xd4   :  { %v6995_v57 = vpop.eup %6994  ;;  %7018 = vpow2.f32 %v6501_v58  ;;  %v321_v63 = vadd.f32 %v7737_v6, %v61_v48 }
  0xd5   :  { %v6997_v61 = vpop.eup %6996  ;;  %7020 = vrcp.f32 %v480_v1  ;;  %v6509_v56 = vmul.f32 -1.442695, %v322_v55 }
  0xd6   :  { %v6999_v62 = vpop.eup %6998  ;;  %717 = vperm.xlu1 %6701, %v6993_v10   ;;  %v274_v0 = vpop.xlane.xlu1 %273  ;;  %7022 = vrcp.f32 %v473_v11  ;;  %v475_v12 = vadd.f32 1.0, %v6997_v61  ;;  %v6508_v61 = vmul.f32 -1.442695, %v321_v63 }
  0xd7   :  { %v271_v2 = vpop.xlane.xlu0 %270  ;;  %v7001_v7 = vpop.eup %7000  ;;  %762 = vperm.xlu0 %6700, %v6995_v57   ;;  %7024 = vpow2.f32 %v6502_v60  ;;  %v477_v16 = vadd.f32 1.0, %v6999_v62  ;;  %v324_v42 = vadd.f32 %v274_v0, %v64_v29  ;;  %v319_v60 = vadd.f32 %v7730_v52, %v59_v4 }
  0xd8   :  { %v7003_v9 = vpop.eup %7002  ;;  %v479_v18 = vadd.f32 1.0, %v7001_v7  ;;  %7026 = vpow2.f32 %v6500_v8  ;;  %v323_v46 = vadd.f32 %v271_v2, %v63_v35  ;;  %v6507_v2 = vmul.f32 -1.442695, %v320_v5  ;;  %v611_v5 = vld [vmem:[%s12409_s1 + $0xf0] sm:$0xff] }
  0xd9   :  { %v7005_v15 = vpop.eup %7004  ;;  %7028 = vrcp.f32 %v475_v12  ;;  %v6511_v58 = vmul.f32 -1.442695, %v324_v42  ;;  %v6506_v8 = vmul.f32 -1.442695, %v319_v60  ;;  %v609_v60 = vld [vmem:[%s12409_s1 + $0xe0] sm:$0xff] }
  0xda   :  { %v7007_v17 = vpop.eup %7006  ;;  %727 = vperm.xlu1 %6701, %v7005_v15   ;;  %v280_v19 = vpop.xlane.xlu1 %279  ;;  %7030 = vrcp.f32 %v477_v16  ;;  %v6510_v3 = vmul.f32 -1.442695, %v323_v46 }
  0xdb   :  { %v277_v20 = vpop.xlane.xlu0 %276  ;;  %772 = vperm.xlu0 %6700, %v7003_v9   ;;  %v326_v21 = vadd.f32 %v280_v19, %v66_v13  ;;  %v484_v24 = vadd.f32 1.0, %v7007_v17  ;;  %7032 = vrcp.f32 %v479_v18 }
  0xdc   :  { %v325_v22 = vadd.f32 %v277_v20, %v65_v14  ;;  %v7009_v23 = vpop.eup %7008 }
  0xdd   :  { %v7011_v27 = vpop.eup %7010  ;;  %v6513_v30 = vmul.f32 -1.442695, %v326_v21  ;;  %7034 = vrcp.f32 %v484_v24 }
  0xde   :  { %v7013_v28 = vpop.eup %7012  ;;  %737 = vperm.xlu1 %6701, %v7011_v27   ;;  %v286_v31 = vpop.xlane.xlu1 %285  ;;  %v6512_v36 = vmul.f32 -1.442695, %v325_v22 }
  0xdf   :  { %v283_v32 = vpop.xlane.xlu0 %282  ;;  %v7015_v33 = vpop.eup %7014  ;;  %v486_v34 = vadd.f32 1.0, %v7013_v28  ;;  %782 = vperm.xlu0 %6700, %v7009_v23   ;;  %v328_v37 = vadd.f32 %v286_v31, %v68_v25 }
  0xe0   :  { %v327_v38 = vadd.f32 %v283_v32, %v67_v26  ;;  %v7017_v39 = vpop.eup %7016  ;;  %v485_v40 = vadd.f32 1.0, %v7015_v33 }
  0xe1   :  { %v7019_v41 = vpop.eup %7018  ;;  %7036 = vrcp.f32 %v486_v34  ;;  %v6515_v43 = vmul.f32 -1.442695, %v328_v37 }
  0xe2   :  { %v7021_v44 = vpop.eup %7020  ;;  %7038 = vpow2.f32 %v6513_v30  ;;  %v6514_v47 = vmul.f32 -1.442695, %v327_v38  ;;  %747 = vperm.xlu1 %6701, %v7017_v39   ;;  %v482_v53 = vadd.f32 1.0, %v7019_v41 }
  0xe3   :  { %7040 = vpow2.f32 %v6512_v36  ;;  %792 = vperm.xlu0 %6700, %v7021_v44   ;;  %v7023_v49 = vpop.eup %7022 }
  0xe4   :  { %7042 = vrcp.f32 %v485_v40  ;;  %v7025_v54 = vpop.eup %7024 }
  0xe5   :  { %7044 = vpow2.f32 %v6515_v43  ;;  %v7027_v10 = vpop.eup %7026  ;;  %v483_v11 = vadd.f32 1.0, %v7025_v54  ;;  %v6753_v43 = vld [vmem:[%s12408_s5 + $0x4] ss:$12 sps:$4 sm:$0xff]  }
  0xe6   :  { %7046 = vpow2.f32 %v6514_v47  ;;  %757 = vperm.xlu1 %6701, %v7023_v49   ;;  %v7029_v1 = vpop.eup %7028  ;;  %v481_v62 = vadd.f32 1.0, %v7027_v10  ;;  %1496 = vmatprep.mubr.bf16.mxu0 %v6753_v43  ;;  %v595_v43 = vld [vmem:[%s12409_s1 + $0x70] sm:$0xff] }
  0xe7   :  { %7048 = vrcp.f32 %v482_v53  ;;  %v7031_v57 = vpop.eup %7030 }
  0xe8   :  { %7050 = vpow2.f32 %v6511_v58  ;;  %v7033_v6 = vpop.eup %7032 }
  0xe9   :  { %7052 = vpow2.f32 %v6510_v3 }
  0xea   :  { %767 = vperm.xlu1 %6701, %v7029_v1   ;;  %7054 = vrcp.f32 %v483_v11  ;;  %v7035_v0 = vpop.eup %7034  ;;  %v612_v1 = vld [vmem:[%s12409_s1 + $0xf8] sm:$0xff] }
  0xeb   :  { %7056 = vpow2.f32 %v6509_v56  ;;  %v606_v56 = vld [vmem:[%s12409_s1 + $0xc8] sm:$0xff] }
  0xec   :  { %7058 = vpow2.f32 %v6508_v61 }
  0xed   :  { %7060 = vrcp.f32 %v481_v62 }
  0xee   :  { %v7037_v7 = vpop.eup %7036  ;;  %777 = vperm.xlu1 %6701, %v7031_v57   ;;  %7062 = vpow2.f32 %v6507_v2  ;;  %v610_v57 = vld [vmem:[%s12409_s1 + $0xe8] sm:$0xff]  ;;  %v605_v2 = vld [vmem:[%s12409_s1 + $0xc0] sm:$0xff] }
  0xef   :  { %v7039_v9 = vpop.eup %7038  ;;  %822 = vperm.xlu0 %6700, %v7037_v7   ;;  %7064 = vpow2.f32 %v6506_v8 }
  0xf0   :  { %v7041_v51 = vpop.eup %7040  ;;  %v494_v14 = vadd.f32 1.0, %v7039_v9 }
  0xf1   :  { %v7043_v12 = vpop.eup %7042  ;;  %v493_v16 = vadd.f32 1.0, %v7041_v51 }
  0xf2   :  { %v7045_v52 = vpop.eup %7044  ;;  %787 = vperm.xlu1 %6701, %v7033_v6   ;;  %v608_v6 = vld [vmem:[%s12409_s1 + $0xd8] sm:$0xff] }
  0xf3   :  { %v7047_v13 = vpop.eup %7046  ;;  %v496_v15 = vadd.f32 1.0, %v7045_v52  ;;  %812 = vperm.xlu0 %6700, %v7035_v0   ;;  %v607_v52 = vld [vmem:[%s12409_s1 + $0xd0] sm:$0xff] }
  0xf4   :  { %v495_v17 = vadd.f32 1.0, %v7047_v13  ;;  %v7049_v18 = vpop.eup %7048 }
  0xf5   :  { %7066 = vrcp.f32 %v496_v15  ;;  %v7051_v19 = vpop.eup %7050 }
  0xf6   :  { %7068 = vrcp.f32 %v495_v17  ;;  %817 = vperm.xlu1 %6701, %v7043_v12   ;;  %v7053_v20 = vpop.eup %7052  ;;  %v492_v22 = vadd.f32 1.0, %v7051_v19  ;;  %v602_v12 = vld [vmem:[%s12409_s1 + $0xa8] sm:$0xff]  ;;  %v601_v19 = vld [vmem:[%s12409_s1 + $0xa0] sm:$0xff] }
  0xf7   :  { %7070 = vrcp.f32 %v494_v14  ;;  %802 = vperm.xlu0 %6700, %v7049_v18   ;;  %v7055_v21 = vpop.eup %7054  ;;  %v491_v24 = vadd.f32 1.0, %v7053_v20 }
  0xf8   :  { %7072 = vrcp.f32 %v493_v16  ;;  %v7057_v23 = vpop.eup %7056  ;;  %v604_v16 = vld [vmem:[%s12409_s1 + $0xb8] sm:$0xff] }
  0xf9   :  { %v7059_v25 = vpop.eup %7058  ;;  %v490_v27 = vadd.f32 1.0, %v7057_v23  ;;  %7074 = vrcp.f32 %v492_v22 }
  0xfa   :  { %807 = vperm.xlu1 %6701, %v7055_v21   ;;  %v7061_v26 = vpop.eup %7060  ;;  %v489_v29 = vadd.f32 1.0, %v7059_v25  ;;  %7076 = vrcp.f32 %v491_v24  ;;  %v598_v24 = vld [vmem:[%s12409_s1 + $0x88] sm:$0xff]  ;;  %v603_v25 = vld [vmem:[%s12409_s1 + $0xb0] sm:$0xff] }
  0xfb   :  { %v7063_v28 = vpop.eup %7062  ;;  %7078 = vrcp.f32 %v490_v27  ;;  %v600_v27 = vld [vmem:[%s12409_s1 + $0x98] sm:$0xff] }
  0xfc   :  { %v7065_v30 = vpop.eup %7064  ;;  %v488_v31 = vadd.f32 1.0, %v7063_v28  ;;  %7080 = vrcp.f32 %v489_v29 }
  0xfd   :  { %v487_v33 = vadd.f32 1.0, %v7065_v30 }
  0xfe   :  { %797 = vperm.xlu1 %6701, %v7061_v26   ;;  %7082 = vrcp.f32 %v488_v31  ;;  %v597_v31 = vld [vmem:[%s12409_s1 + $0x80] sm:$0xff] }
  0xff   :  { %7084 = vrcp.f32 %v487_v33 }
 0x102   :  { %v7067_v32 = vpop.eup %7066 }
 0x103   :  { %v7069_v34 = vpop.eup %7068  ;;  %872 = vperm.xlu0 %6700, %v7067_v32  }
 0x104   :  { %v7071_v35 = vpop.eup %7070  ;;  %867 = vperm.xlu1 %6701, %v7069_v34  }
 0x105   :  { %v7073_v36 = vpop.eup %7072 }
 0x106   :  { %v7075_v37 = vpop.eup %7074 }
 0x107   :  { %862 = vperm.xlu0 %6700, %v7071_v35   ;;  %v7077_v38 = vpop.eup %7076  ;;  %v596_v35 = vld [vmem:[%s12409_s1 + $0x78] sm:$0xff] }
 0x108   :  { %857 = vperm.xlu1 %6701, %v7073_v36   ;;  %v7079_v39 = vpop.eup %7078  ;;  %v599_v36 = vld [vmem:[%s12409_s1 + $0x90] sm:$0xff] }
 0x109   :  { %v7081_v40 = vpop.eup %7080 }
 0x10b   :  { %852 = vperm.xlu0 %6700, %v7075_v37   ;;  %v7083_v41 = vpop.eup %7082 }
 0x10c   :  { %847 = vperm.xlu1 %6701, %v7077_v38   ;;  %v7085_v42 = vpop.eup %7084 }
 0x10f   :  { %842 = vperm.xlu0 %6700, %v7079_v39   ;;  %v594_v39 = vld [vmem:[%s12409_s1 + $0x68] sm:$0xff] }
 0x110   :  { %837 = vperm.xlu1 %6701, %v7081_v40  }
 0x113   :  { %832 = vperm.xlu0 %6700, %v7083_v41  }
 0x114   :  { %827 = vperm.xlu1 %6701, %v7085_v42  }
 0x12d   :  { %v7783_v47 = vpop.permute.xlu0 %667 }
 0x131   :  { %v7777_v44 = vpop.permute.xlu1 %672 }
 0x135   :  { %v7779_v45 = vpop.permute.xlu1 %677 }
 0x139   :  { %v7781_v46 = vpop.permute.xlu1 %682 }
 0x13d   :  { %v7785_v48 = vpop.permute.xlu1 %687 }
 0x13e   :  { %v7787_v49 = vpop.permute.xlu0 %712 }
 0x13f   :  { %v894_v37 = vmul.f32 %v7787_v49, %v600_v27  ;;  %v642_v27 = vld [vmem:[%s12409_s1 + $0x1e8] sm:$0xff] }
 0x141   :  { %v7789_v53 = vpop.permute.xlu1 %692 }
 0x142   :  { %v723_v54 = vpop.permute.xlu0 %722 }
 0x143   :  { %v898_v26 = vmul.f32 %v723_v54, %v604_v16  ;;  %v897_v34 = vmul.f32 %v723_v54, %v603_v25 }
 0x145   :  { %v7791_v55 = vpop.permute.xlu1 %697 }
 0x146   :  { %v733_v58 = vpop.permute.xlu0 %732 }
 0x147   :  { %v902_v13 = vmul.f32 %v733_v58, %v608_v6  ;;  %v901_v23 = vmul.f32 %v733_v58, %v607_v52 }
 0x149   :  { %v7793_v59 = vpop.permute.xlu1 %702 }
 0x14a   :  { %v743_v63 = vpop.permute.xlu0 %742  ;;  %v890_v54 = vmul.f32 %v7793_v59, %v596_v35 }
 0x14b   :  { %v906_v0 = vmul.f32 %v743_v63, %v612_v1  ;;  %v905_v51 = vmul.f32 %v743_v63, %v611_v5  ;;  %v893_v63 = vmul.f32 %v7787_v49, %v599_v36  ;;  %v590_v1 = vld [vmem:[%s12409_s1 + $0x48] sm:$0xff]  ;;  %v889_v5 = vmul.f32 %v7793_v59, %v595_v43  ;;  %v589_v59 = vld [vmem:[%s12409_s1 + $0x40] sm:$0xff] }
 0x14c   :  { %v883_v16 = vmul.f32 %v7785_v48, %v589_v59  ;;  %v662_v59 = vld [vmem:[%s12409_s1 + $0x288] sm:$0xff] }
 0x14d   :  { %v708_v3 = vpop.permute.xlu1 %707 }
 0x14e   :  { %v7795_v10 = vpop.permute.xlu0 %752  ;;  %v892_v32 = vmul.f32 %v708_v3, %v598_v24  ;;  %v891_v40 = vmul.f32 %v708_v3, %v597_v31  ;;  %v593_v3 = vld [vmem:[%s12409_s1 + $0x60] sm:$0xff] }
 0x150   :  { %v1052_v58 = vpack.c.bf16 %v894_v37, %v892_v32  ;;  %v1051_v49 = vpack.c.bf16 %v893_v63, %v891_v40  ;;  %v644_v32 = vld [vmem:[%s12409_s1 + $0x1f8] sm:$0xff] }
 0x151   :  { %v718_v4 = vpop.permute.xlu1 %717 }
 0x152   :  { %v7812_v61 = vpop.permute.xlu0 %762  ;;  %v896_v20 = vmul.f32 %v718_v4, %v602_v12  ;;  %v895_v28 = vmul.f32 %v718_v4, %v601_v19  ;;  %v592_v4 = vld [vmem:[%s12409_s1 + $0x58] sm:$0xff]  ;;  %v582_v19 = vld [vmem:[%s12409_s1 + $0x8] sm:$0xff] }
 0x154   :  { %v1054_v33 = vpack.c.bf16 %v898_v26, %v896_v20  ;;  %v1053_v42 = vpack.c.bf16 %v897_v34, %v895_v28  ;;  %v876_v28 = vmul.f32 %v7783_v47, %v582_v19  ;;  %v641_v34 = vld [vmem:[%s12409_s1 + $0x1e0] sm:$0xff]  ;;  %v659_v19 = vld [vmem:[%s12409_s1 + $0x270] sm:$0xff] }
 0x155   :  { %v728_v11 = vpop.permute.xlu1 %727 }
 0x156   :  { %v900_v7 = vmul.f32 %v728_v11, %v606_v56  ;;  %v899_v17 = vmul.f32 %v728_v11, %v605_v2  ;;  %v7834_v21 = vpop.permute.xlu0 %772  ;;  %v888_v11 = vmul.f32 %v7791_v55, %v594_v39  ;;  %v887_v2 = vmul.f32 %v7791_v55, %v593_v3  ;;  %v587_v55 = vld [vmem:[%s12409_s1 + $0x30] sm:$0xff]  ;;  %v638_v39 = vld [vmem:[%s12409_s1 + $0x1c8] sm:$0xff] }
 0x157   :  { %v881_v20 = vmul.f32 %v7781_v46, %v587_v55 }
 0x158   :  { %v1056_v22 = vpack.c.bf16 %v902_v13, %v900_v7  ;;  %v1055_v30 = vpack.c.bf16 %v901_v23, %v899_v17  ;;  %v884_v7 = vmul.f32 %v7785_v48, %v590_v1  ;;  %v1049_v12 = vpack.c.bf16 %v889_v5, %v887_v2  ;;  %v583_v48 = vld [vmem:[%s12409_s1 + $0x10] sm:$0xff]  ;;  %v634_v1 = vld [vmem:[%s12409_s1 + $0x1a8] sm:$0xff] }
 0x159   :  { %v738_v62 = vpop.permute.xlu1 %737  ;;  %v877_v31 = vmul.f32 %v7777_v44, %v583_v48  ;;  %v639_v5 = vld [vmem:[%s12409_s1 + $0x1d0] sm:$0xff]  ;;  %v632_v48 = vld [vmem:[%s12409_s1 + $0x198] sm:$0xff] }
 0x15a   :  { %v904_v8 = vmul.f32 %v738_v62, %v610_v57  ;;  %v903_v9 = vmul.f32 %v738_v62, %v609_v60  ;;  %v7857_v38 = vpop.permute.xlu0 %782  ;;  %v591_v57 = vld [vmem:[%s12409_s1 + $0x50] sm:$0xff]  ;;  %v886_v60 = vmul.f32 %v7789_v53, %v592_v4  ;;  %v1050_v62 = vpack.c.bf16 %v890_v54, %v888_v11 }
 0x15c   :  { %v1058_v14 = vpack.c.bf16 %v906_v0, %v904_v8  ;;  %v1057_v15 = vpack.c.bf16 %v905_v51, %v903_v9  ;;  %v588_v0 = vld [vmem:[%s12409_s1 + $0x38] sm:$0xff]  ;;  %v586_v8 = vld [vmem:[%s12409_s1 + $0x28] sm:$0xff]  ;;  %v885_v9 = vmul.f32 %v7789_v53, %v591_v57  ;;  %v585_v53 = vld [vmem:[%s12409_s1 + $0x20] sm:$0xff] }
 0x15d   :  { %v7829_v18 = vpop.permute.xlu1 %747  ;;  %v882_v52 = vmul.f32 %v7781_v46, %v588_v0  ;;  %v880_v17 = vmul.f32 %v7779_v45, %v586_v8  ;;  %v879_v26 = vmul.f32 %v7779_v45, %v585_v53  ;;  %v581_v46 = vld [vmem:[%s12409_s1] sm:$0xff]  ;;  %v664_v57 = vld [vmem:[%s12409_s1 + $0x298] sm:$0xff]  ;;  %v635_v53 = vld [vmem:[%s12409_s1 + $0x1b0] sm:$0xff] }
 0x15e   :  { %1464 = vmatprep.subr.bf16.mxu0 %v1058_v14  ;;  %v7886_v6 = vpop.permute.xlu0 %792  ;;  %v1048_v14 = vpack.c.bf16 %v886_v60, %v884_v7  ;;  %v1047_v23 = vpack.c.bf16 %v885_v9, %v883_v16  ;;  %v875_v37 = vmul.f32 %v7783_v47, %v581_v46  ;;  %v637_v47 = vld [vmem:[%s12409_s1 + $0x1c0] sm:$0xff]  ;;  %v663_v60 = vld [vmem:[%s12409_s1 + $0x290] sm:$0xff] }
 0x15f   :  { %1465 = vmatpush1.bf16.msra.mxu0 %v1057_v15  ;;  %v584_v15 = vld [vmem:[%s12409_s1 + $0x18] sm:$0xff]  ;;  %v1046_v25 = vpack.c.bf16 %v882_v52, %v880_v17  ;;  %v661_v7 = vld [vmem:[%s12409_s1 + $0x280] sm:$0xff]  ;;  %v630_v52 = vld [vmem:[%s12409_s1 + $0x188] sm:$0xff] }
 0x160   :  { %1466 = vmatprep.subr.bf16.mxu0 %v1056_v22  ;;  %v878_v24 = vmul.f32 %v7777_v44, %v584_v15  ;;  %v643_v44 = vld [vmem:[%s12409_s1 + $0x1f0] sm:$0xff]  ;;  %v633_v8 = vld [vmem:[%s12409_s1 + $0x1a0] sm:$0xff] }
 0x161   :  { %v7845_v29 = vpop.permute.xlu1 %757  ;;  %v629_v46 = vld [vmem:[%s12409_s1 + $0x180] sm:$0xff] }
 0x162   :  { %v1044_v36 = vpack.c.bf16 %v878_v24, %v876_v28 }
 0x163   :  { %1467 = vmatpush1.bf16.msra.mxu0 %v1055_v30 }
 0x164   :  { %1468 = vmatprep.subr.bf16.mxu0 %v1054_v33  ;;  %v1045_v33 = vpack.c.bf16 %v881_v20, %v879_v26  ;;  %v660_v20 = vld [vmem:[%s12409_s1 + $0x278] sm:$0xff]  ;;  %v658_v26 = vld [vmem:[%s12409_s1 + $0x268] sm:$0xff] }
 0x165   :  { %v7862_v41 = vpop.permute.xlu1 %767 }
 0x167   :  { %1469 = vmatpush1.bf16.msra.mxu0 %v1053_v42  ;;  %v640_v42 = vld [vmem:[%s12409_s1 + $0x1d8] sm:$0xff] }
 0x168   :  { %1470 = vmatprep.subr.bf16.mxu0 %v1052_v58  ;;  %v1043_v58 = vpack.c.bf16 %v877_v31, %v875_v37 }
 0x169   :  { %v7880_v56 = vpop.permute.xlu1 %777 }
 0x16a   :  { %v823_v13 = vpop.permute.xlu0 %822 }
 0x16b   :  { %1471 = vmatpush1.bf16.msra.mxu0 %v1051_v49  ;;  %v938_v40 = vmul.f32 %v823_v13, %v644_v32  ;;  %v937_v11 = vmul.f32 %v823_v13, %v643_v44  ;;  %v926_v44 = vmul.f32 %v7886_v6, %v632_v48  ;;  %v618_v48 = vld [vmem:[%s12409_s1 + $0x128] sm:$0xff] }
 0x16c   :  { %1472 = vmatprep.subr.bf16.mxu0 %v1050_v62  ;;  %v636_v62 = vld [vmem:[%s12409_s1 + $0x1b8] sm:$0xff] }
 0x16d   :  { %v7900_v51 = vpop.permute.xlu1 %787 }
 0x16e   :  { %v813_v30 = vpop.permute.xlu0 %812  ;;  %v924_v28 = vmul.f32 %v7900_v51, %v630_v52  ;;  %v624_v52 = vld [vmem:[%s12409_s1 + $0x158] sm:$0xff] }
 0x16f   :  { %1473 = vmatpush1.bf16.msra.mxu0 %v1049_v12  ;;  %v934_v49 = vmul.f32 %v813_v30, %v640_v42  ;;  %v933_v13 = vmul.f32 %v813_v30, %v639_v5 }
 0x170   :  { %1474 = vmatprep.subr.bf16.mxu0 %v1048_v14 }
 0x171   :  { %v818_v22 = vpop.permute.xlu1 %817 }
 0x172   :  { %v936_v35 = vmul.f32 %v818_v22, %v642_v27  ;;  %v935_v43 = vmul.f32 %v818_v22, %v641_v34  ;;  %v803_v63 = vpop.permute.xlu0 %802 }
 0x173   :  { %1475 = vmatpush1.bf16.msra.mxu0 %v1047_v23  ;;  %v930_v17 = vmul.f32 %v803_v63, %v636_v62  ;;  %v929_v34 = vmul.f32 %v803_v63, %v635_v53  ;;  %v923_v63 = vmul.f32 %v7900_v51, %v629_v46  ;;  %v1068_v51 = vpack.c.bf16 %v926_v44, %v924_v28  ;;  %v622_v62 = vld [vmem:[%s12409_s1 + $0x148] sm:$0xff]  ;;  %v621_v53 = vld [vmem:[%s12409_s1 + $0x140] sm:$0xff] }
 0x174   :  { %1476 = vmatprep.subr.bf16.mxu0 %v1046_v25  ;;  %v1074_v3 = vpack.c.bf16 %v938_v40, %v936_v35  ;;  %v1073_v2 = vpack.c.bf16 %v937_v11, %v935_v43  ;;  %v657_v25 = vld [vmem:[%s12409_s1 + $0x260] sm:$0xff]  ;;  %v655_v43 = vld [vmem:[%s12409_s1 + $0x250] sm:$0xff]  ;;  %v918_v46 = vmul.f32 %v7834_v21, %v624_v52 }
 0x175   :  { %v808_v45 = vpop.permute.xlu1 %807  ;;  %v625_v11 = vld [vmem:[%s12409_s1 + $0x160] sm:$0xff] }
 0x176   :  { %v932_v4 = vmul.f32 %v808_v45, %v638_v39  ;;  %v931_v0 = vmul.f32 %v808_v45, %v637_v47  ;;  %v631_v39 = vld [vmem:[%s12409_s1 + $0x190] sm:$0xff]  ;;  %v653_v47 = vld [vmem:[%s12409_s1 + $0x240] sm:$0xff] }
 0x177   :  { %1477 = vmatpush1.bf16.msra.mxu0 %v1045_v33  ;;  %v626_v33 = vld [vmem:[%s12409_s1 + $0x168] sm:$0xff]  ;;  %v6759_v52 = vld [vmem:[%s12408_s5 + $0x34] ss:$12 sps:$4 sm:$0xff]  }
 0x178   :  { %1478 = vmatprep.subr.bf16.mxu0 %v1044_v36  ;;  %v1072_v55 = vpack.c.bf16 %v934_v49, %v932_v4  ;;  %v1071_v27 = vpack.c.bf16 %v933_v13, %v931_v0  ;;  %v654_v4 = vld [vmem:[%s12409_s1 + $0x248] sm:$0xff]  ;;  %v919_v13 = vmul.f32 %v7880_v56, %v625_v11 }
 0x179   :  { %v798_v54 = vpop.permute.xlu1 %797 }
 0x17a   :  { %v928_v9 = vmul.f32 %v798_v54, %v634_v1  ;;  %v927_v24 = vmul.f32 %v798_v54, %v633_v8  ;;  %v656_v54 = vld [vmem:[%s12409_s1 + $0x258] sm:$0xff]  ;;  %v920_v1 = vmul.f32 %v7880_v56, %v626_v33  ;;  %v645_v33 = vld [vmem:[%s12409_s1 + $0x200] sm:$0xff] }
 0x17b   :  { %1479 = vmatpush1.bf16.msra.mxu0 %v1043_v58  ;;  %v628_v58 = vld [vmem:[%s12409_s1 + $0x178] sm:$0xff] }
 0x17c   :  { %1480 = vmatprep.subr.bf16.mxu0 %v1074_v3  ;;  %v1070_v45 = vpack.c.bf16 %v930_v17, %v928_v9  ;;  %v1069_v3 = vpack.c.bf16 %v929_v34, %v927_v24  ;;  %v922_v8 = vmul.f32 %v7857_v38, %v628_v58  ;;  %v916_v17 = vmul.f32 %v7862_v41, %v622_v62  ;;  %v646_v34 = vld [vmem:[%s12409_s1 + $0x208] sm:$0xff] }
 0x17e   :  { %v873_v12 = vpop.permute.xlu0 %872  ;;  %v1066_v56 = vpack.c.bf16 %v922_v8, %v920_v1 }
 0x17f   :  { %v868_v14 = vpop.permute.xlu1 %867  ;;  %1481 = vmatpush2.bf16.msra.mxu0 %v1073_v2  ;;  %v958_v15 = vmul.f32 %v873_v12, %v664_v57  ;;  %v957_v16 = vmul.f32 %v873_v12, %v663_v60  ;;  %v925_v60 = vmul.f32 %v7886_v6, %v631_v39  ;;  %v651_v6 = vld [vmem:[%s12409_s1 + $0x230] sm:$0xff] }
 0x180   :  { %1482 = vmatprep.subr.bf16.mxu0 %v1072_v55  ;;  %v956_v22 = vmul.f32 %v868_v14, %v662_v59  ;;  %v955_v23 = vmul.f32 %v868_v14, %v661_v7  ;;  %v627_v7 = vld [vmem:[%s12409_s1 + $0x170] sm:$0xff]  ;;  %v652_v55 = vld [vmem:[%s12409_s1 + $0x238] sm:$0xff]  ;;  %v649_v14 = vld [vmem:[%s12409_s1 + $0x220] sm:$0xff] }
 0x182   :  { %v863_v30 = vpop.permute.xlu0 %862  ;;  %v1084_v31 = vpack.c.bf16 %v958_v15, %v956_v22  ;;  %v1083_v32 = vpack.c.bf16 %v957_v16, %v955_v23  ;;  %v650_v15 = vld [vmem:[%s12409_s1 + $0x228] sm:$0xff]  ;;  %v1067_v16 = vpack.c.bf16 %v925_v60, %v923_v63  ;;  %v921_v23 = vmul.f32 %v7857_v38, %v627_v7  ;;  %v647_v38 = vld [vmem:[%s12409_s1 + $0x210] sm:$0xff] }
 0x183   :  { %v858_v35 = vpop.permute.xlu1 %857  ;;  %v953_v36 = vmul.f32 %v863_v30, %v659_v19  ;;  %v954_v37 = vmul.f32 %v863_v30, %v660_v20  ;;  %1483 = vmatpush2.bf16.msra.mxu0 %v1071_v27  ;;  %v623_v27 = vld [vmem:[%s12409_s1 + $0x150] sm:$0xff] }
 0x184   :  { %v951_v40 = vmul.f32 %v858_v35, %v657_v25  ;;  %v952_v42 = vmul.f32 %v858_v35, %v658_v26  ;;  %1713 = vmatprep.subr.bf16.mxu1 %v1084_v31  ;;  %1484 = vmatprep.subr.bf16.mxu0 %v1070_v45  ;;  %v648_v31 = vld [vmem:[%s12409_s1 + $0x218] sm:$0xff]  ;;  %v915_v45 = vmul.f32 %v7862_v41, %v621_v53  ;;  %v6765_v53 = vld [vmem:[%s12408_s5 + $0x48] ss:$12 sps:$4 sm:$0xff]  }
 0x185   :  { %1714 = vmatpush1.bf16.msra.mxu1 %v1083_v32  ;;  %v620_v32 = vld [vmem:[%s12409_s1 + $0x138] sm:$0xff]  ;;  %v1065_v35 = vpack.c.bf16 %v921_v23, %v919_v13  ;;  %v1064_v41 = vpack.c.bf16 %v918_v46, %v916_v17  ;;  %v6767_v17 = vld [vmem:[%s12408_s5 + $0x64] ss:$12 sps:$4 sm:$0xff]   ;;  %v6781_v46 = vld [vmem:[%s12408_s5 + $0xa8] ss:$12 sps:$4 sm:$0xff]  }
 0x186   :  { %v853_v5 = vpop.permute.xlu0 %852  ;;  %v1082_v49 = vpack.c.bf16 %v954_v37, %v952_v42  ;;  %v1081_v57 = vpack.c.bf16 %v953_v36, %v951_v40  ;;  %v617_v36 = vld [vmem:[%s12409_s1 + $0x120] sm:$0xff]  ;;  %v912_v37 = vmul.f32 %v7845_v29, %v618_v48  ;;  %v917_v42 = vmul.f32 %v7834_v21, %v623_v27  ;;  %v616_v21 = vld [vmem:[%s12409_s1 + $0x118] sm:$0xff] }
 0x187   :  { %v848_v0 = vpop.permute.xlu1 %847  ;;  %v949_v2 = vmul.f32 %v853_v5, %v655_v43  ;;  %v950_v59 = vmul.f32 %v853_v5, %v656_v54  ;;  %1485 = vmatpush2.bf16.msra.mxu0 %v1069_v3  ;;  %v614_v43 = vld [vmem:[%s12409_s1 + $0x108] sm:$0xff]  ;;  %v911_v1 = vmul.f32 %v7845_v29, %v617_v36  ;;  %v910_v29 = vmul.f32 %v7795_v10, %v616_v21  ;;  %v6758_v13 = vld [vmem:[%s12408_s5 + $0x38] ss:$12 sps:$4 sm:$0xff]   ;;  %v6775_v48 = vld [vmem:[%s12408_s5 + $0x94] ss:$12 sps:$4 sm:$0xff]  }
 0x188   :  { %v947_v9 = vmul.f32 %v848_v0, %v653_v47  ;;  %v948_v12 = vmul.f32 %v848_v0, %v654_v4  ;;  %1715 = vmatprep.subr.bf16.mxu1 %v1082_v49  ;;  %1486 = vmatprep.subr.bf16.mxu0 %v1068_v51  ;;  %v619_v47 = vld [vmem:[%s12409_s1 + $0x130] sm:$0xff]  ;;  %v914_v4 = vmul.f32 %v7812_v61, %v620_v32  ;;  %v613_v49 = vld [vmem:[%s12409_s1 + $0x100] sm:$0xff]  ;;  %v6795_v36 = vld [vmem:[%s12408_s5 + $0x10c] ss:$12 sps:$4 sm:$0xff]  }
 0x189   :  { %1716 = vmatpush1.bf16.msra.mxu1 %v1081_v57  ;;  %v1063_v5 = vpack.c.bf16 %v917_v42, %v915_v45  ;;  %v908_v57 = vmul.f32 %v7829_v18, %v614_v43  ;;  %v913_v0 = vmul.f32 %v7812_v61, %v619_v47  ;;  %v907_v7 = vmul.f32 %v7829_v18, %v613_v49  ;;  %v6755_v18 = vld [vmem:[%s12408_s5 + $0x1c] ss:$12 sps:$4 sm:$0xff]   ;;  %v6773_v23 = vld [vmem:[%s12408_s5 + $0x78] ss:$12 sps:$4 sm:$0xff]   ;;  %v6786_v32 = vld [vmem:[%s12408_s5 + $0xe0] ss:$12 sps:$4 sm:$0xff]  }
 0x18a   :  { %v843_v19 = vpop.permute.xlu0 %842  ;;  %v1080_v20 = vpack.c.bf16 %v950_v59, %v948_v12  ;;  %v1079_v22 = vpack.c.bf16 %v949_v2, %v947_v9  ;;  %v1062_v62 = vpack.c.bf16 %v914_v4, %v912_v37  ;;  %v615_v2 = vld [vmem:[%s12409_s1 + $0x110] sm:$0xff]  ;;  %v6789_v45 = vld [vmem:[%s12408_s5 + $0xd8] ss:$12 sps:$4 sm:$0xff]   ;;  %v6803_v42 = vld [vmem:[%s12408_s5 + $0x13c] ss:$12 sps:$4 sm:$0xff]  }
 0x18b   :  { %v838_v24 = vpop.permute.xlu1 %837  ;;  %v945_v25 = vmul.f32 %v843_v19, %v651_v6  ;;  %v946_v26 = vmul.f32 %v843_v19, %v652_v55  ;;  %1487 = vmatpush2.bf16.msra.mxu0 %v1067_v16  ;;  %v6750_v59 = vld [vmem:[%s12408_s5 + $0x8] ss:$12 sps:$4 sm:$0xff]   ;;  %v1061_v8 = vpack.c.bf16 %v913_v0, %v911_v1  ;;  %v1060_v9 = vpack.c.bf16 %v910_v29, %v908_v57  ;;  %v6751_v6 = vld [vmem:[%s12408_s5] ss:$12 sps:$4 sm:$0xff]   ;;  %v6757_v55 = vld [vmem:[%s12408_s5 + $0x18] ss:$12 sps:$4 sm:$0xff]  }
 0x18c   :  { %v943_v28 = vmul.f32 %v838_v24, %v649_v14  ;;  %v944_v30 = vmul.f32 %v838_v24, %v650_v15  ;;  %1717 = vmatprep.subr.bf16.mxu1 %v1080_v20  ;;  %1488 = vmatprep.subr.bf16.mxu0 %v1066_v56  ;;  %v909_v61 = vmul.f32 %v7795_v10, %v615_v2  ;;  %v6754_v10 = vld [vmem:[%s12408_s5 + $0x20] ss:$12 sps:$4 sm:$0xff]   ;;  %v6761_v14 = vld [vmem:[%s12408_s5 + $0x30] ss:$12 sps:$4 sm:$0xff]   ;;  %v6766_v19 = vld [vmem:[%s12408_s5 + $0x68] ss:$12 sps:$4 sm:$0xff]  }
 0x18d   :  { %1718 = vmatpush1.bf16.msra.mxu1 %v1079_v22  ;;  %v6763_v15 = vld [vmem:[%s12408_s5 + $0x4c] ss:$12 sps:$4 sm:$0xff]   ;;  %v6762_v16 = vld [vmem:[%s12408_s5 + $0x50] ss:$12 sps:$4 sm:$0xff]   ;;  %v6814_v1 = vld [vmem:[%s12408_s5 + $0x188] ss:$12 sps:$4 sm:$0xff]  }
 0x18e   :  { %v833_v39 = vpop.permute.xlu0 %832  ;;  %v1078_v44 = vpack.c.bf16 %v946_v26, %v944_v30  ;;  %v1077_v40 = vpack.c.bf16 %v945_v25, %v943_v28  ;;  %v1059_v12 = vpack.c.bf16 %v909_v61, %v907_v7  ;;  %v6769_v20 = vld [vmem:[%s12408_s5 + $0x60] ss:$12 sps:$4 sm:$0xff]   ;;  %v6771_v22 = vld [vmem:[%s12408_s5 + $0x7c] ss:$12 sps:$4 sm:$0xff]   ;;  %v6774_v24 = vld [vmem:[%s12408_s5 + $0x98] ss:$12 sps:$4 sm:$0xff]  }
 0x18f   :  { %v828_v54 = vpop.permute.xlu1 %827  ;;  %v941_v58 = vmul.f32 %v833_v39, %v647_v38  ;;  %v942_v63 = vmul.f32 %v833_v39, %v648_v31  ;;  %1489 = vmatpush2.bf16.msra.mxu0 %v1065_v35  ;;  %v6770_v56 = vld [vmem:[%s12408_s5 + $0x80] ss:$12 sps:$4 sm:$0xff]   ;;  %v6777_v25 = vld [vmem:[%s12408_s5 + $0x90] ss:$12 sps:$4 sm:$0xff]   ;;  %v6782_v30 = vld [vmem:[%s12408_s5 + $0xc8] ss:$12 sps:$4 sm:$0xff]  }
 0x190   :  { %v939_v3 = vmul.f32 %v828_v54, %v645_v33  ;;  %v940_v11 = vmul.f32 %v828_v54, %v646_v34  ;;  %1719 = vmatprep.subr.bf16.mxu1 %v1078_v44  ;;  %1490 = vmatprep.subr.bf16.mxu0 %v1064_v41  ;;  %v6779_v26 = vld [vmem:[%s12408_s5 + $0xac] ss:$12 sps:$4 sm:$0xff]   ;;  %v6778_v27 = vld [vmem:[%s12408_s5 + $0xb0] ss:$12 sps:$4 sm:$0xff]   ;;  %v6791_v33 = vld [vmem:[%s12408_s5 + $0xf4] ss:$12 sps:$4 sm:$0xff]  }
 0x191   :  { %1720 = vmatpush1.bf16.msra.mxu1 %v1077_v40  ;;  %v6783_v28 = vld [vmem:[%s12408_s5 + $0xc4] ss:$12 sps:$4 sm:$0xff]   ;;  %v6785_v38 = vld [vmem:[%s12408_s5 + $0xc0] ss:$12 sps:$4 sm:$0xff]   ;;  %v6787_v31 = vld [vmem:[%s12408_s5 + $0xdc] ss:$12 sps:$4 sm:$0xff]  }
 0x192   :  { %v1076_v51 = vpack.c.bf16 %v942_v63, %v940_v11  ;;  %v1075_v60 = vpack.c.bf16 %v941_v58, %v939_v3  ;;  %v6790_v34 = vld [vmem:[%s12408_s5 + $0xf8] ss:$12 sps:$4 sm:$0xff]   ;;  %v6793_v35 = vld [vmem:[%s12408_s5 + $0xf0] ss:$12 sps:$4 sm:$0xff]   ;;  %v6797_v39 = vld [vmem:[%s12408_s5 + $0x108] ss:$12 sps:$4 sm:$0xff]  }
 0x193   :  { %1491 = vmatpush2.bf16.msra.mxu0 %v1063_v5  ;;  %v6794_v37 = vld [vmem:[%s12408_s5 + $0x110] ss:$12 sps:$4 sm:$0xff]   ;;  %v6798_v40 = vld [vmem:[%s12408_s5 + $0x128] ss:$12 sps:$4 sm:$0xff]   ;;  %v6801_v41 = vld [vmem:[%s12408_s5 + $0x120] ss:$12 sps:$4 sm:$0xff]  }
 0x194   :  { %1721 = vmatprep.subr.bf16.mxu1 %v1076_v51  ;;  %1492 = vmatprep.subr.bf16.mxu0 %v1062_v62  ;;  %v6799_v44 = vld [vmem:[%s12408_s5 + $0x124] ss:$12 sps:$4 sm:$0xff]   ;;  %v6802_v43 = vld [vmem:[%s12408_s5 + $0x140] ss:$12 sps:$4 sm:$0xff]   ;;  %v6813_v11 = vld [vmem:[%s12408_s5 + $0x168] ss:$12 sps:$4 sm:$0xff]  }
 0x195   :  { %1722 = vmatpush1.bf16.msra.mxu1 %v1075_v60  ;;  %v6805_v54 = vld [vmem:[%s12408_s5 + $0x138] ss:$12 sps:$4 sm:$0xff]   ;;  %v6807_v58 = vld [vmem:[%s12408_s5 + $0x154] ss:$12 sps:$4 sm:$0xff]   ;;  %v6809_v47 = vld [vmem:[%s12408_s5 + $0x150] ss:$12 sps:$4 sm:$0xff]  }
 0x196   :  { %v6806_v63 = vld [vmem:[%s12408_s5 + $0x158] ss:$12 sps:$4 sm:$0xff]   ;;  %v6810_v3 = vld [vmem:[%s12408_s5 + $0x170] ss:$12 sps:$4 sm:$0xff]   ;;  %v6817_v5 = vld [vmem:[%s12408_s5 + $0x180] ss:$12 sps:$4 sm:$0xff]  }
 0x197   :  { %1493 = vmatpush2.bf16.msra.mxu0 %v1061_v8  ;;  %v6811_v4 = vld [vmem:[%s12408_s5 + $0x16c] ss:$12 sps:$4 sm:$0xff]   ;;  %v6815_v21 = vld [vmem:[%s12408_s5 + $0x184] ss:$12 sps:$4 sm:$0xff]   ;;  %v6819_v49 = vld [vmem:[%s12408_s5 + $0x19c] ss:$12 sps:$4 sm:$0xff]  }
 0x198   :  { %1494 = vmatprep.subr.bf16.mxu0 %v1060_v9  ;;  %6579 = vmatmul.mubr.msk.bf16.vlgmr.msra.gmra.mxu1 %vm1400_vm1, %v6750_v59  ;;  %v6818_v57 = vld [vmem:[%s12408_s5 + $0x1a0] ss:$12 sps:$4 sm:$0xff]   ;;  %v6821_v51 = vld [vmem:[%s12408_s5 + $0x198] ss:$12 sps:$4 sm:$0xff]   ;;  %v6825_v0 = vld [vmem:[%s12408_s5 + $0x1b0] ss:$12 sps:$4 sm:$0xff]  }
 0x199   :  { %1749 = vmatprep.mubr.bf16.mxu1 %v12413_v50  ;;  %v6823_v60 = vld [vmem:[%s12408_s5 + $0x1b4] ss:$12 sps:$4 sm:$0xff]   ;;  %v6822_v62 = vld [vmem:[%s12408_s5 + $0x1b8] ss:$12 sps:$4 sm:$0xff]   ;;  %v6826_v29 = vld [vmem:[%s12408_s5 + $0x1d0] ss:$12 sps:$4 sm:$0xff]  }
 0x19a   :  { %v6827_v2 = vld [vmem:[%s12408_s5 + $0x1cc] ss:$12 sps:$4 sm:$0xff]   ;;  %v6829_v59 = vld [vmem:[%s12408_s5 + $0x1c8] ss:$12 sps:$4 sm:$0xff]   ;;  %v6831_v7 = vld [vmem:[%s12408_s5 + $0x1e4] ss:$12 sps:$4 sm:$0xff]  }
 0x19b   :  { %1495 = vmatpush2.bf16.msra.mxu0 %v1059_v12  ;;  %v6830_v8 = vld [vmem:[%s12408_s5 + $0x1e8] ss:$12 sps:$4 sm:$0xff]   ;;  %v6833_v9 = vld [vmem:[%s12408_s5 + $0x1e0] ss:$12 sps:$4 sm:$0xff]  }
 0x19e   :  { %1497 = vmatmul.mubr.bf16.vlgmr.msra.gmra.mxu0 %v6751_v6 }
 0x19f   :  { %1506 = vmatprep.mubr.bf16.mxu0 %v6755_v18 }
 0x1a0   :  { %6580 = vmatmul.mubr.msk.bf16.gmra.mxu1 %vm1400_vm1, %v6754_v10 }
 0x1a1   :  { %1759 = vmatprep.mubr.bf16.mxu1 %v12413_v50 }
 0x1a6   :  { %1507 = vmatmul.mubr.bf16.gmra.mxu0 %v6757_v55 }
 0x1a7   :  { %1516 = vmatprep.mubr.bf16.mxu0 %v6759_v52 }
 0x1a8   :  { %6581 = vmatmul.mubr.msk.bf16.gmra.mxu1 %vm1400_vm1, %v6758_v13 }
 0x1a9   :  { %1769 = vmatprep.mubr.bf16.mxu1 %v12413_v50 }
 0x1ae   :  { %1517 = vmatmul.mubr.bf16.gmra.mxu0 %v6761_v14 }
 0x1af   :  { %1526 = vmatprep.mubr.bf16.mxu0 %v6763_v15 }
 0x1b0   :  { %6582 = vmatmul.mubr.msk.bf16.gmra.mxu1 %vm1400_vm1, %v6762_v16 }
 0x1b1   :  { %1779 = vmatprep.mubr.bf16.mxu1 %v12413_v50 }
 0x1b6   :  { %1527 = vmatmul.mubr.bf16.gmra.mxu0 %v6765_v53 }
 0x1b7   :  { %1536 = vmatprep.mubr.bf16.mxu0 %v6767_v17 }
 0x1b8   :  { %6583 = vmatmul.mubr.msk.bf16.gmra.mxu1 %vm1400_vm1, %v6766_v19 }
 0x1b9   :  { %1789 = vmatprep.mubr.bf16.mxu1 %v12413_v50 }
 0x1be   :  { %1537 = vmatmul.mubr.bf16.gmra.mxu0 %v6769_v20 }
 0x1bf   :  { %1546 = vmatprep.mubr.bf16.mxu0 %v6771_v22 }
 0x1c0   :  { %6584 = vmatmul.mubr.msk.bf16.gmra.mxu1 %vm1400_vm1, %v6770_v56 }
 0x1c1   :  { %1799 = vmatprep.mubr.bf16.mxu1 %v12413_v50 }
 0x1c6   :  { %1547 = vmatmul.mubr.bf16.gmra.mxu0 %v6773_v23 }
 0x1c7   :  { %1556 = vmatprep.mubr.bf16.mxu0 %v6775_v48 }
 0x1c8   :  { %6585 = vmatmul.mubr.msk.bf16.gmra.mxu1 %vm1400_vm1, %v6774_v24 }
 0x1c9   :  { %1809 = vmatprep.mubr.bf16.mxu1 %v12413_v50 }
 0x1ce   :  { %1557 = vmatmul.mubr.bf16.gmra.mxu0 %v6777_v25 }
 0x1cf   :  { %1566 = vmatprep.mubr.bf16.mxu0 %v6779_v26 }
 0x1d0   :  { %6586 = vmatmul.mubr.msk.bf16.gmra.mxu1 %vm1400_vm1, %v6778_v27 }
 0x1d1   :  { %1819 = vmatprep.mubr.bf16.mxu1 %v12413_v50 }
 0x1d6   :  { %1567 = vmatmul.mubr.bf16.gmra.mxu0 %v6781_v46 }
 0x1d7   :  { %1576 = vmatprep.mubr.bf16.mxu0 %v6783_v28 }
 0x1d8   :  { %6587 = vmatmul.mubr.msk.bf16.gmra.mxu1 %vm1400_vm1, %v6782_v30 }
 0x1d9   :  { %1829 = vmatprep.mubr.bf16.mxu1 %v12413_v50 }
 0x1de   :  { %1577 = vmatmul.mubr.bf16.gmra.mxu0 %v6785_v38 }
 0x1df   :  { %1586 = vmatprep.mubr.bf16.mxu0 %v6787_v31 }
 0x1e0   :  { %6588 = vmatmul.mubr.msk.bf16.gmra.mxu1 %vm1400_vm1, %v6786_v32 }
 0x1e1   :  { %1839 = vmatprep.mubr.bf16.mxu1 %v12413_v50 }
 0x1e6   :  { %1587 = vmatmul.mubr.bf16.gmra.mxu0 %v6789_v45 }
 0x1e7   :  { %1596 = vmatprep.mubr.bf16.mxu0 %v6791_v33 }
 0x1e8   :  { %6589 = vmatmul.mubr.msk.bf16.gmra.mxu1 %vm1400_vm1, %v6790_v34 }
 0x1e9   :  { %1849 = vmatprep.mubr.bf16.mxu1 %v12413_v50 }
 0x1ee   :  { %1597 = vmatmul.mubr.bf16.gmra.mxu0 %v6793_v35 }
 0x1ef   :  { %1606 = vmatprep.mubr.bf16.mxu0 %v6795_v36 }
 0x1f0   :  { %6590 = vmatmul.mubr.msk.bf16.gmra.mxu1 %vm1400_vm1, %v6794_v37 }
 0x1f1   :  { %1859 = vmatprep.mubr.bf16.mxu1 %v12413_v50 }
 0x1f6   :  { %1607 = vmatmul.mubr.bf16.gmra.mxu0 %v6797_v39 }
 0x1f7   :  { %1616 = vmatprep.mubr.bf16.mxu0 %v6799_v44 }
 0x1f8   :  { %6591 = vmatmul.mubr.msk.bf16.gmra.mxu1 %vm1400_vm1, %v6798_v40 }
 0x1f9   :  { %1869 = vmatprep.mubr.bf16.mxu1 %v12413_v50 }
 0x1fe   :  { %1617 = vmatmul.mubr.bf16.gmra.mxu0 %v6801_v41 }
 0x1ff   :  { %1626 = vmatprep.mubr.bf16.mxu0 %v6803_v42 }
 0x200   :  { %6592 = vmatmul.mubr.msk.bf16.gmra.mxu1 %vm1400_vm1, %v6802_v43 }
 0x201   :  { %1879 = vmatprep.mubr.bf16.mxu1 %v12413_v50 }
 0x206   :  { %1627 = vmatmul.mubr.bf16.gmra.mxu0 %v6805_v54 }
 0x207   :  { %1636 = vmatprep.mubr.bf16.mxu0 %v6807_v58 }
 0x208   :  { %6593 = vmatmul.mubr.msk.bf16.gmra.mxu1 %vm1400_vm1, %v6806_v63 }
 0x209   :  { %1889 = vmatprep.mubr.bf16.mxu1 %v12413_v50 }
 0x20e   :  { %1637 = vmatmul.mubr.bf16.gmra.mxu0 %v6809_v47 }
 0x20f   :  { %1646 = vmatprep.mubr.bf16.mxu0 %v6811_v4 }
 0x210   :  { %6594 = vmatmul.mubr.msk.bf16.gmra.mxu1 %vm1400_vm1, %v6810_v3 }
 0x211   :  { %1899 = vmatprep.mubr.bf16.mxu1 %v12413_v50 }
 0x216   :  { %1647 = vmatmul.mubr.bf16.gmra.mxu0 %v6813_v11 }
 0x217   :  { %1656 = vmatprep.mubr.bf16.mxu0 %v6815_v21 }
 0x218   :  { %6595 = vmatmul.mubr.msk.bf16.gmra.mxu1 %vm1400_vm1, %v6814_v1 }
 0x219   :  { %1909 = vmatprep.mubr.bf16.mxu1 %v12413_v50 }
 0x21e   :  { %1657 = vmatmul.mubr.bf16.gmra.mxu0 %v6817_v5 }
 0x21f   :  { %1666 = vmatprep.mubr.bf16.mxu0 %v6819_v49 }
 0x220   :  { %6596 = vmatmul.mubr.msk.bf16.gmra.mxu1 %vm1400_vm1, %v6818_v57 }
 0x221   :  { %1919 = vmatprep.mubr.bf16.mxu1 %v12413_v50 }
 0x226   :  { %1667 = vmatmul.mubr.bf16.gmra.mxu0 %v6821_v51 }
 0x227   :  { %1676 = vmatprep.mubr.bf16.mxu0 %v6823_v60 }
 0x228   :  { %6597 = vmatmul.mubr.msk.bf16.gmra.mxu1 %vm1400_vm1, %v6822_v62 }
 0x229   :  { %1929 = vmatprep.mubr.bf16.mxu1 %v12413_v50 }
 0x22e   :  { %1677 = vmatmul.mubr.bf16.gmra.mxu0 %v6825_v0 }
 0x22f   :  { %1686 = vmatprep.mubr.bf16.mxu0 %v6827_v2 }
 0x230   :  { %6598 = vmatmul.mubr.msk.bf16.gmra.mxu1 %vm1400_vm1, %v6826_v29 }
 0x231   :  { %1939 = vmatprep.mubr.bf16.mxu1 %v12413_v50 }
 0x236   :  { %1687 = vmatmul.mubr.bf16.gmra.mxu0 %v6829_v59 }
 0x237   :  { %1696 = vmatprep.mubr.bf16.mxu0 %v6831_v7 }
 0x238   :  { %6599 = vmatmul.mubr.msk.bf16.gmra.mxu1 %vm1400_vm1, %v6830_v8 }
 0x23e   :  { %1697 = vmatmul.mubr.bf16.gmra.mxu0 %v6833_v9 }
 0x23f   :  { %4578 = vmatprep.mubr.bf16.mxu0 %v12413_v50 }
 0x258   :  { %v1741_v61 = vpop.f32.mrf.mxu1 }
 0x25a   :  { %v1743_v12 = vpop.f32.mrf.mxu1 }
 0x25c   :  { %v1745_v6 = vpop.f32.mrf.mxu1 }
 0x25e   :  { %v1498_v18 = vpop.f32.mrf.mxu0  ;;  %v1747_v10 = vpop.f32.mrf.mxu1 }
 0x25f   :  { %v8333_v55 = vadd.f32 %v1741_v61, %v1498_v18 }
 0x260   :  { %v1500_v52 = vpop.f32.mrf.mxu0  ;;  %v1751_v13 = vpop.f32.mrf.mxu1 }
 0x261   :  { %12637 = vst [vmem:[#allocation2_spill] sm:$0xff] %v8333_v55  ;;  %v8335_v14 = vadd.f32 %v1743_v12, %v1500_v52  ;;  %v2119_v23 = vmul.f32 %v8333_v55, %v8333_v55 }
 0x262   :  { %v1502_v15 = vpop.f32.mrf.mxu0  ;;  %v1753_v16 = vpop.f32.mrf.mxu1 }
 0x263   :  { %12638 = vst [vmem:[#allocation3_spill] sm:$0xff] %v8335_v14  ;;  %v1951_v53 = vsel %vm1950_vm2, %v8335_v14, 0.0  ;;  %v2120_v17 = vmul.f32 %v8335_v14, %v8335_v14  ;;  %v8341_v19 = vadd.f32 %v1745_v6, %v1502_v15 }
 0x264   :  { %v1504_v20 = vpop.f32.mrf.mxu0  ;;  %v1755_v22 = vpop.f32.mrf.mxu1  ;;  %v1952_v56 = vadd.f32 %v1951_v53, %v8333_v55 }
 0x265   :  { %12639 = vst [vmem:[#allocation4_spill] sm:$0xff] %v8341_v19  ;;  %v8346_v48 = vadd.f32 %v1747_v10, %v1504_v20  ;;  %v2203_v24 = vsel %vm1950_vm2, %v2120_v17, 0.0  ;;  %v2121_v31 = vmul.f32 %v8341_v19, %v8341_v19 }
 0x266   :  { %v1508_v25 = vpop.f32.mrf.mxu0  ;;  %v1757_v26 = vpop.f32.mrf.mxu1  ;;  %1953 = vadd.xlane.f32.xlu1 %v1952_v56  ;;  %v2204_v27 = vadd.f32 %v2203_v24, %v2119_v23 }
 0x267   :  { %12640 = vst [vmem:[#allocation5_spill] sm:$0xff] %v8346_v48  ;;  %v1955_v46 = vsel %vm1950_vm2, %v8346_v48, 0.0  ;;  %v2122_v28 = vmul.f32 %v8346_v48, %v8346_v48  ;;  %v8363_v44 = vadd.f32 %v1751_v13, %v1508_v25 }
 0x268   :  { %v1510_v30 = vpop.f32.mrf.mxu0  ;;  %v1761_v38 = vpop.f32.mrf.mxu1  ;;  %2205 = vadd.xlane.f32.xlu0 %v2204_v27  ;;  %v1956_v35 = vadd.f32 %v1955_v46, %v8341_v19 }
 0x269   :  { %v8355_v32 = vadd.f32 %v1753_v16, %v1510_v30  ;;  %v2207_v45 = vsel %vm1950_vm2, %v2122_v28, 0.0  ;;  %12642 = vst [vmem:[#allocation7_spill] sm:$0xff] %v8363_v44  ;;  %v2123_v5 = vmul.f32 %v8363_v44, %v8363_v44 }
 0x26a   :  { %v1512_v33 = vpop.f32.mrf.mxu0  ;;  %v1763_v34 = vpop.f32.mrf.mxu1  ;;  %v2208_v36 = vadd.f32 %v2207_v45, %v2121_v31 }
 0x26b   :  { %12641 = vst [vmem:[#allocation6_spill] sm:$0xff] %v8355_v32  ;;  %v1959_v37 = vsel %vm1950_vm2, %v8355_v32, 0.0  ;;  %v2124_v39 = vmul.f32 %v8355_v32, %v8355_v32  ;;  %v8367_v43 = vadd.f32 %v1755_v22, %v1512_v33 }
 0x26c   :  { %v1514_v40 = vpop.f32.mrf.mxu0  ;;  %v1765_v41 = vpop.f32.mrf.mxu1  ;;  %1957 = vadd.xlane.f32.xlu0 %v1956_v35  ;;  %2209 = vadd.xlane.f32.xlu1 %v2208_v36  ;;  %v1960_v63 = vadd.f32 %v1959_v37, %v8363_v44 }
 0x26d   :  { %v8365_v42 = vadd.f32 %v1757_v26, %v1514_v40  ;;  %12644 = vst [vmem:[#allocation9_spill] sm:$0xff] %v8367_v43  ;;  %v2211_v4 = vsel %vm1950_vm2, %v2124_v39, 0.0  ;;  %v2125_v0 = vmul.f32 %v8367_v43, %v8367_v43 }
 0x26e   :  { %v1518_v54 = vpop.f32.mrf.mxu0  ;;  %v1767_v58 = vpop.f32.mrf.mxu1  ;;  %v2212_v62 = vadd.f32 %v2211_v4, %v2123_v5 }
 0x26f   :  { %12643 = vst [vmem:[#allocation8_spill] sm:$0xff] %v8365_v42  ;;  %v1963_v47 = vsel %vm1950_vm2, %v8365_v42, 0.0  ;;  %v2126_v3 = vmul.f32 %v8365_v42, %v8365_v42  ;;  %v8387_v59 = vadd.f32 %v1761_v38, %v1518_v54 }
 0x270   :  { %v1520_v11 = vpop.f32.mrf.mxu0  ;;  %v1771_v21 = vpop.f32.mrf.mxu1  ;;  %1961 = vadd.xlane.f32.xlu0 %v1960_v63  ;;  %v1964_v1 = vadd.f32 %v1963_v47, %v8367_v43 }
 0x271   :  { %v8378_v49 = vadd.f32 %v1763_v34, %v1520_v11  ;;  %v2215_v57 = vsel %vm1950_vm2, %v2126_v3, 0.0  ;;  %12646 = vst [vmem:[#allocation11_spill] sm:$0xff] %v8387_v59  ;;  %v2127_v20 = vmul.f32 %v8387_v59, %v8387_v59 }
 0x272   :  { %v1522_v51 = vpop.f32.mrf.mxu0  ;;  %v1773_v60 = vpop.f32.mrf.mxu1  ;;  %1965 = vadd.xlane.f32.xlu1 %v1964_v1  ;;  %v2216_v9 = vadd.f32 %v2215_v57, %v2125_v0 }
 0x273   :  { %12645 = vst [vmem:[#allocation10_spill] sm:$0xff] %v8378_v49  ;;  %v1967_v2 = vsel %vm1950_vm2, %v8378_v49, 0.0  ;;  %v2128_v29 = vmul.f32 %v8378_v49, %v8378_v49  ;;  %v8391_v12 = vadd.f32 %v1765_v41, %v1522_v51 }
 0x274   :  { %v1524_v7 = vpop.f32.mrf.mxu0  ;;  %v1775_v8 = vpop.f32.mrf.mxu1  ;;  %2213 = vadd.xlane.f32.xlu0 %v2212_v62  ;;  %v1968_v10 = vadd.f32 %v1967_v2, %v8387_v59 }
 0x275   :  { %v8389_v61 = vadd.f32 %v1767_v58, %v1524_v7  ;;  %12648 = vst [vmem:[#allocation13_spill] sm:$0xff] %v8391_v12  ;;  %v2219_v15 = vsel %vm1950_vm2, %v2128_v29, 0.0  ;;  %v2129_v23 = vmul.f32 %v8391_v12, %v8391_v12 }
 0x276   :  { %v1528_v6 = vpop.f32.mrf.mxu0  ;;  %v1777_v18 = vpop.f32.mrf.mxu1  ;;  %2217 = vadd.xlane.f32.xlu1 %v2216_v9  ;;  %v2220_v26 = vadd.f32 %v2219_v15, %v2127_v20 }
 0x277   :  { %12647 = vst [vmem:[#allocation12_spill] sm:$0xff] %v8389_v61  ;;  %v2130_v52 = vmul.f32 %v8389_v61, %v8389_v61  ;;  %v1971_v13 = vsel %vm1950_vm2, %v8389_v61, 0.0  ;;  %v8411_v28 = vadd.f32 %v1771_v21, %v1528_v6 }
 0x278   :  { %v1530_v16 = vpop.f32.mrf.mxu0  ;;  %v1781_v53 = vpop.f32.mrf.mxu1  ;;  %1969 = vadd.xlane.f32.xlu0 %v1968_v10  ;;  %v1972_v17 = vadd.f32 %v1971_v13, %v8391_v12 }
 0x279   :  { %v8402_v22 = vadd.f32 %v1773_v60, %v1530_v16  ;;  %v2223_v56 = vsel %vm1950_vm2, %v2130_v52, 0.0  ;;  %12650 = vst [vmem:[#allocation15_spill] sm:$0xff] %v8411_v28  ;;  %v2131_v63 = vmul.f32 %v8411_v28, %v8411_v28 }
 0x27a   :  { %v1532_v24 = vpop.f32.mrf.mxu0  ;;  %v1783_v25 = vpop.f32.mrf.mxu1  ;;  %1973 = vadd.xlane.f32.xlu1 %v1972_v17  ;;  %v2224_v31 = vadd.f32 %v2223_v56, %v2129_v23 }
 0x27b   :  { %12649 = vst [vmem:[#allocation14_spill] sm:$0xff] %v8402_v22  ;;  %v1975_v27 = vsel %vm1950_vm2, %v8402_v22, 0.0  ;;  %v2132_v46 = vmul.f32 %v8402_v22, %v8402_v22  ;;  %v8415_v33 = vadd.f32 %v1775_v8, %v1532_v24 }
 0x27c   :  { %v1534_v30 = vpop.f32.mrf.mxu0  ;;  %v1785_v38 = vpop.f32.mrf.mxu1  ;;  %2221 = vadd.xlane.f32.xlu0 %v2220_v26  ;;  %v1976_v36 = vadd.f32 %v1975_v27, %v8411_v28 }
 0x27d   :  { %v8413_v45 = vadd.f32 %v1777_v18, %v1534_v30  ;;  %12652 = vst [vmem:[#allocation17_spill] sm:$0xff] %v8415_v33  ;;  %v2227_v40 = vsel %vm1950_vm2, %v2132_v46, 0.0  ;;  %v2133_v3 = vmul.f32 %v8415_v33, %v8415_v33 }
 0x27e   :  { %v1538_v34 = vpop.f32.mrf.mxu0  ;;  %v1787_v35 = vpop.f32.mrf.mxu1  ;;  %2225 = vadd.xlane.f32.xlu1 %v2224_v31  ;;  %v2228_v1 = vadd.f32 %v2227_v40, %v2131_v63 }
 0x27f   :  { %12651 = vst [vmem:[#allocation16_spill] sm:$0xff] %v8413_v45  ;;  %v2134_v37 = vmul.f32 %v8413_v45, %v8413_v45  ;;  %v1979_v39 = vsel %vm1950_vm2, %v8413_v45, 0.0  ;;  %v8435_v51 = vadd.f32 %v1781_v53, %v1538_v34 }
 0x280   :  { %v1540_v41 = vpop.f32.mrf.mxu0  ;;  %v1791_v54 = vpop.f32.mrf.mxu1  ;;  %1977 = vadd.xlane.f32.xlu0 %v1976_v36  ;;  %v1980_v58 = vadd.f32 %v1979_v39, %v8415_v33 }
 0x281   :  { %v8426_v47 = vadd.f32 %v1783_v25, %v1540_v41  ;;  %v2231_v4 = vsel %vm1950_vm2, %v2134_v37, 0.0  ;;  %12654 = vst [vmem:[#allocation19_spill] sm:$0xff] %v8435_v51  ;;  %v2135_v16 = vmul.f32 %v8435_v51, %v8435_v51 }
 0x282   :  { %v1542_v11 = vpop.f32.mrf.mxu0  ;;  %v1793_v21 = vpop.f32.mrf.mxu1  ;;  %1981 = vadd.xlane.f32.xlu1 %v1980_v58  ;;  %v2232_v0 = vadd.f32 %v2231_v4, %v2133_v3 }
 0x283   :  { %12653 = vst [vmem:[#allocation18_spill] sm:$0xff] %v8426_v47  ;;  %v1983_v5 = vsel %vm1950_vm2, %v8426_v47, 0.0  ;;  %v2136_v57 = vmul.f32 %v8426_v47, %v8426_v47  ;;  %v8439_v29 = vadd.f32 %v1785_v38, %v1542_v11 }
 0x284   :  { %v1544_v60 = vpop.f32.mrf.mxu0  ;;  %v1795_v62 = vpop.f32.mrf.mxu1  ;;  %2229 = vadd.xlane.f32.xlu0 %v2228_v1  ;;  %v1984_v9 = vadd.f32 %v1983_v5, %v8435_v51 }
 0x285   :  { %v8437_v2 = vadd.f32 %v1787_v35, %v1544_v60  ;;  %12656 = vst [vmem:[#allocation21_spill] sm:$0xff] %v8439_v29  ;;  %v2235_v10 = vsel %vm1950_vm2, %v2136_v57, 0.0  ;;  %v2137_v20 = vmul.f32 %v8439_v29, %v8439_v29 }
 0x286   :  { %v1548_v7 = vpop.f32.mrf.mxu0  ;;  %v1797_v8 = vpop.f32.mrf.mxu1  ;;  %2233 = vadd.xlane.f32.xlu1 %v2232_v0  ;;  %v2236_v24 = vadd.f32 %v2235_v10, %v2135_v16 }
 0x287   :  { %12655 = vst [vmem:[#allocation20_spill] sm:$0xff] %v8437_v2  ;;  %v2138_v6 = vmul.f32 %v8437_v2, %v8437_v2  ;;  %v1987_v18 = vsel %vm1950_vm2, %v8437_v2, 0.0  ;;  %v8459_v27 = vadd.f32 %v1791_v54, %v1548_v7 }
 0x288   :  { %v1550_v52 = vpop.f32.mrf.mxu0  ;;  %v1801_v13 = vpop.f32.mrf.mxu1  ;;  %1985 = vadd.xlane.f32.xlu0 %v1984_v9  ;;  %v1988_v15 = vadd.f32 %v1987_v18, %v8439_v29 }
 0x289   :  { %v8450_v53 = vadd.f32 %v1793_v21, %v1550_v52  ;;  %v2239_v17 = vsel %vm1950_vm2, %v2138_v6, 0.0  ;;  %12658 = vst [vmem:[#allocation23_spill] sm:$0xff] %v8459_v27  ;;  %v2139_v54 = vmul.f32 %v8459_v27, %v8459_v27 }
 0x28a   :  { %v1552_v56 = vpop.f32.mrf.mxu0  ;;  %v1803_v23 = vpop.f32.mrf.mxu1  ;;  %1989 = vadd.xlane.f32.xlu1 %v1988_v15  ;;  %v2240_v38 = vadd.f32 %v2239_v17, %v2137_v20 }
 0x28b   :  { %12657 = vst [vmem:[#allocation22_spill] sm:$0xff] %v8450_v53  ;;  %v2140_v25 = vmul.f32 %v8450_v53, %v8450_v53  ;;  %v1991_v26 = vsel %vm1950_vm2, %v8450_v53, 0.0  ;;  %v8463_v34 = vadd.f32 %v1795_v62, %v1552_v56 }
 0x28c   :  { %v1554_v46 = vpop.f32.mrf.mxu0  ;;  %v1805_v30 = vpop.f32.mrf.mxu1  ;;  %2237 = vadd.xlane.f32.xlu0 %v2236_v24  ;;  %v1992_v37 = vadd.f32 %v1991_v26, %v8459_v27 }
 0x28d   :  { %v8461_v31 = vadd.f32 %v1797_v8, %v1554_v46  ;;  %12660 = vst [vmem:[#allocation25_spill] sm:$0xff] %v8463_v34  ;;  %v2243_v41 = vsel %vm1950_vm2, %v2140_v25, 0.0  ;;  %v2141_v21 = vmul.f32 %v8463_v34, %v8463_v34 }
 0x28e   :  { %v1558_v35 = vpop.f32.mrf.mxu0  ;;  %v1807_v36 = vpop.f32.mrf.mxu1  ;;  %2241 = vadd.xlane.f32.xlu1 %v2240_v38  ;;  %v2244_v57 = vadd.f32 %v2243_v41, %v2139_v54 }
 0x28f   :  { %12659 = vst [vmem:[#allocation24_spill] sm:$0xff] %v8461_v31  ;;  %v2142_v39 = vmul.f32 %v8461_v31, %v8461_v31  ;;  %v1995_v40 = vsel %vm1950_vm2, %v8461_v31, 0.0  ;;  %v8483_v0 = vadd.f32 %v1801_v13, %v1558_v35 }
 0x290   :  { %v1560_v58 = vpop.f32.mrf.mxu0  ;;  %v1811_v63 = vpop.f32.mrf.mxu1  ;;  %1993 = vadd.xlane.f32.xlu0 %v1992_v37  ;;  %v1996_v4 = vadd.f32 %v1995_v40, %v8463_v34 }
 0x291   :  { %v8474_v3 = vadd.f32 %v1803_v23, %v1560_v58  ;;  %v2247_v11 = vsel %vm1950_vm2, %v2142_v39, 0.0  ;;  %12662 = vst [vmem:[#allocation27_spill] sm:$0xff] %v8483_v0  ;;  %v2143_v20 = vmul.f32 %v8483_v0, %v8483_v0  ;;  %v12415_v58 = vmov 1  }
 0x292   :  { %v1562_v1 = vpop.f32.mrf.mxu0  ;;  %v1813_v5 = vpop.f32.mrf.mxu1  ;;  %1997 = vadd.xlane.f32.xlu1 %v1996_v4  ;;  %v2248_v9 = vadd.f32 %v2247_v11, %v2141_v21  ;;  %6703 = vset.pattern.permute.xlu0 %v12415_v58 }
 0x293   :  { %12661 = vst [vmem:[#allocation26_spill] sm:$0xff] %v8474_v3  ;;  %v2144_v60 = vmul.f32 %v8474_v3, %v8474_v3  ;;  %v1999_v62 = vsel %vm1950_vm2, %v8474_v3, 0.0  ;;  %v8487_v18 = vadd.f32 %v1805_v30, %v1562_v1  ;;  %6702 = vset.pattern.permute.xlu1 %v12415_v58 }
 0x294   :  { %v1564_v7 = vpop.f32.mrf.mxu0  ;;  %v1815_v8 = vpop.f32.mrf.mxu1  ;;  %2245 = vadd.xlane.f32.xlu0 %v2244_v57  ;;  %v2000_v15 = vadd.f32 %v1999_v62, %v8483_v0 }
 0x295   :  { %v8485_v6 = vadd.f32 %v1807_v36, %v1564_v7  ;;  %12664 = vst [vmem:[#allocation29_spill] sm:$0xff] %v8487_v18  ;;  %v2251_v17 = vsel %vm1950_vm2, %v2144_v60, 0.0  ;;  %v2145_v46 = vmul.f32 %v8487_v18, %v8487_v18 }
 0x296   :  { %v1568_v10 = vpop.f32.mrf.mxu0  ;;  %v1817_v52 = vpop.f32.mrf.mxu1  ;;  %2249 = vadd.xlane.f32.xlu1 %v2248_v9  ;;  %v2252_v35 = vadd.f32 %v2251_v17, %v2143_v20 }
 0x297   :  { %12663 = vst [vmem:[#allocation28_spill] sm:$0xff] %v8485_v6  ;;  %v2146_v16 = vmul.f32 %v8485_v6, %v8485_v6  ;;  %v2003_v13 = vsel %vm1950_vm2, %v8485_v6, 0.0  ;;  %v8507_v39 = vadd.f32 %v1811_v63, %v1568_v10 }
 0x298   :  { %v1570_v56 = vpop.f32.mrf.mxu0  ;;  %v1821_v23 = vpop.f32.mrf.mxu1  ;;  %2001 = vadd.xlane.f32.xlu0 %v2000_v15  ;;  %v2004_v24 = vadd.f32 %v2003_v13, %v8487_v18 }
 0x299   :  { %v8498_v25 = vadd.f32 %v1813_v5, %v1570_v56  ;;  %v2255_v26 = vsel %vm1950_vm2, %v2146_v16, 0.0  ;;  %12666 = vst [vmem:[#allocation31_spill] sm:$0xff] %v8507_v39  ;;  %v2147_v62 = vmul.f32 %v8507_v39, %v8507_v39 }
 0x29a   :  { %v1572_v30 = vpop.f32.mrf.mxu0  ;;  %v1823_v38 = vpop.f32.mrf.mxu1  ;;  %2005 = vadd.xlane.f32.xlu1 %v2004_v24  ;;  %v2256_v54 = vadd.f32 %v2255_v26, %v2145_v46 }
 0x29b   :  { %12665 = vst [vmem:[#allocation30_spill] sm:$0xff] %v8498_v25  ;;  %v2148_v36 = vmul.f32 %v8498_v25, %v8498_v25  ;;  %v2007_v37 = vsel %vm1950_vm2, %v8498_v25, 0.0  ;;  %v8513_v11 = vadd.f32 %v1815_v8, %v1572_v30 }
 0x29c   :  { %v1574_v40 = vpop.f32.mrf.mxu0  ;;  %v1825_v41 = vpop.f32.mrf.mxu1  ;;  %2253 = vadd.xlane.f32.xlu0 %v2252_v35  ;;  %v2008_v5 = vadd.f32 %v2007_v37, %v8507_v39 }
 0x29d   :  { %v8510_v4 = vadd.f32 %v1817_v52, %v1574_v40  ;;  %12668 = vst [vmem:[#allocation33_spill] sm:$0xff] %v8513_v11  ;;  %v2259_v60 = vsel %vm1950_vm2, %v2148_v36, 0.0  ;;  %v2149_v15 = vmul.f32 %v8513_v11, %v8513_v11 }
 0x29e   :  { %v1578_v21 = vpop.f32.mrf.mxu0  ;;  %v1827_v1 = vpop.f32.mrf.mxu1  ;;  %2257 = vadd.xlane.f32.xlu1 %v2256_v54  ;;  %v2260_v17 = vadd.f32 %v2259_v60, %v2147_v62 }
 0x29f   :  { %12667 = vst [vmem:[#allocation32_spill] sm:$0xff] %v8510_v4  ;;  %v2150_v63 = vmul.f32 %v8510_v4, %v8510_v4  ;;  %v2011_v57 = vsel %vm1950_vm2, %v8510_v4, 0.0  ;;  %v8533_v24 = vadd.f32 %v1821_v23, %v1578_v21 }
 0x2a0   :  { %v1580_v7 = vpop.f32.mrf.mxu0  ;;  %v1831_v9 = vpop.f32.mrf.mxu1  ;;  %2009 = vadd.xlane.f32.xlu0 %v2008_v5  ;;  %v2012_v8 = vadd.f32 %v2011_v57, %v8513_v11 }
 0x2a1   :  { %v8524_v10 = vadd.f32 %v1823_v38, %v1580_v7  ;;  %v2263_v52 = vsel %vm1950_vm2, %v2150_v63, 0.0  ;;  %12670 = vst [vmem:[#allocation35_spill] sm:$0xff] %v8533_v24  ;;  %v2151_v5 = vmul.f32 %v8533_v24, %v8533_v24 }
 0x2a2   :  { %v1582_v16 = vpop.f32.mrf.mxu0  ;;  %v1833_v13 = vpop.f32.mrf.mxu1  ;;  %2013 = vadd.xlane.f32.xlu1 %v2012_v8  ;;  %v2264_v30 = vadd.f32 %v2263_v52, %v2149_v15 }
 0x2a3   :  { %12669 = vst [vmem:[#allocation34_spill] sm:$0xff] %v8524_v10  ;;  %v2152_v20 = vmul.f32 %v8524_v10, %v8524_v10  ;;  %v2015_v56 = vsel %vm1950_vm2, %v8524_v10, 0.0  ;;  %v8537_v35 = vadd.f32 %v1825_v41, %v1582_v16 }
 0x2a4   :  { %v1584_v26 = vpop.f32.mrf.mxu0  ;;  %v1835_v46 = vpop.f32.mrf.mxu1  ;;  %2261 = vadd.xlane.f32.xlu0 %v2260_v17  ;;  %v2016_v40 = vadd.f32 %v2015_v56, %v8533_v24 }
 0x2a5   :  { %v8535_v38 = vadd.f32 %v1827_v1, %v1584_v26  ;;  %12672 = vst [vmem:[#allocation37_spill] sm:$0xff] %v8537_v35  ;;  %v2267_v21 = vsel %vm1950_vm2, %v2152_v20, 0.0  ;;  %v2153_v62 = vmul.f32 %v8537_v35, %v8537_v35 }
 0x2a6   :  { %v1588_v36 = vpop.f32.mrf.mxu0  ;;  %v1837_v37 = vpop.f32.mrf.mxu1  ;;  %2265 = vadd.xlane.f32.xlu1 %v2264_v30  ;;  %v2268_v52 = vadd.f32 %v2267_v21, %v2151_v5 }
 0x2a7   :  { %12671 = vst [vmem:[#allocation36_spill] sm:$0xff] %v8535_v38  ;;  %v2154_v54 = vmul.f32 %v8535_v38, %v8535_v38  ;;  %v2019_v23 = vsel %vm1950_vm2, %v8535_v38, 0.0  ;;  %v8557_v17 = vadd.f32 %v1831_v9, %v1588_v36 }
 0x2a8   :  { %v1590_v1 = vpop.f32.mrf.mxu0  ;;  %v1841_v63 = vpop.f32.mrf.mxu1  ;;  %2017 = vadd.xlane.f32.xlu0 %v2016_v40  ;;  %v2020_v41 = vadd.f32 %v2019_v23, %v8537_v35 }
 0x2a9   :  { %v8548_v57 = vadd.f32 %v1833_v13, %v1590_v1  ;;  %v2271_v60 = vsel %vm1950_vm2, %v2154_v54, 0.0  ;;  %12674 = vst [vmem:[#allocation39_spill] sm:$0xff] %v8557_v17  ;;  %v2155_v5 = vmul.f32 %v8557_v17, %v8557_v17 }
 0x2aa   :  { %v1592_v7 = vpop.f32.mrf.mxu0  ;;  %v1843_v8 = vpop.f32.mrf.mxu1  ;;  %2021 = vadd.xlane.f32.xlu1 %v2020_v41  ;;  %v2272_v56 = vadd.f32 %v2271_v60, %v2153_v62 }
 0x2ab   :  { %12673 = vst [vmem:[#allocation38_spill] sm:$0xff] %v8548_v57  ;;  %v2156_v15 = vmul.f32 %v8548_v57, %v8548_v57  ;;  %v2023_v16 = vsel %vm1950_vm2, %v8548_v57, 0.0  ;;  %v8561_v30 = vadd.f32 %v1835_v46, %v1592_v7 }
 0x2ac   :  { %v1594_v20 = vpop.f32.mrf.mxu0  ;;  %v1845_v13 = vpop.f32.mrf.mxu1  ;;  %2269 = vadd.xlane.f32.xlu0 %v2268_v52  ;;  %v2024_v23 = vadd.f32 %v2023_v16, %v8557_v17 }
 0x2ad   :  { %v8559_v26 = vadd.f32 %v1837_v37, %v1594_v20  ;;  %12676 = vst [vmem:[#allocation41_spill] sm:$0xff] %v8561_v30  ;;  %v2275_v36 = vsel %vm1950_vm2, %v2156_v15, 0.0  ;;  %v2157_v62 = vmul.f32 %v8561_v30, %v8561_v30 }
 0x2ae   :  { %v1598_v40 = vpop.f32.mrf.mxu0  ;;  %v1847_v54 = vpop.f32.mrf.mxu1  ;;  %2273 = vadd.xlane.f32.xlu1 %v2272_v56  ;;  %v2276_v16 = vadd.f32 %v2275_v36, %v2155_v5 }
 0x2af   :  { %12675 = vst [vmem:[#allocation40_spill] sm:$0xff] %v8559_v26  ;;  %v2158_v21 = vmul.f32 %v8559_v26, %v8559_v26  ;;  %v2027_v9 = vsel %vm1950_vm2, %v8559_v26, 0.0  ;;  %v8581_v56 = vadd.f32 %v1841_v63, %v1598_v40 }
 0x2b0   :  { %v1600_v37 = vpop.f32.mrf.mxu0  ;;  %v1851_v1 = vpop.f32.mrf.mxu1  ;;  %2025 = vadd.xlane.f32.xlu0 %v2024_v23  ;;  %v2028_v46 = vadd.f32 %v2027_v9, %v8561_v30 }
 0x2b1   :  { %v8572_v41 = vadd.f32 %v1843_v8, %v1600_v37  ;;  %v2279_v60 = vsel %vm1950_vm2, %v2158_v21, 0.0  ;;  %12678 = vst [vmem:[#allocation43_spill] sm:$0xff] %v8581_v56 }
 0x2b2   :  { %v1602_v7 = vpop.f32.mrf.mxu0  ;;  %v1853_v52 = vpop.f32.mrf.mxu1  ;;  %2029 = vadd.xlane.f32.xlu1 %v2028_v46  ;;  %v2280_v9 = vadd.f32 %v2279_v60, %v2157_v62  ;;  %v2159_v46 = vmul.f32 %v8581_v56, %v8581_v56 }
 0x2b3   :  { %12677 = vst [vmem:[#allocation42_spill] sm:$0xff] %v8572_v41  ;;  %v2160_v15 = vmul.f32 %v8572_v41, %v8572_v41  ;;  %v2031_v20 = vsel %vm1950_vm2, %v8572_v41, 0.0  ;;  %v8585_v37 = vadd.f32 %v1845_v13, %v1602_v7 }
 0x2b4   :  { %v1604_v23 = vpop.f32.mrf.mxu0  ;;  %v1855_v8 = vpop.f32.mrf.mxu1  ;;  %2277 = vadd.xlane.f32.xlu0 %v2276_v16  ;;  %v2032_v36 = vadd.f32 %v2031_v20, %v8581_v56 }
 0x2b5   :  { %v8583_v21 = vadd.f32 %v1847_v54, %v1604_v23  ;;  %12680 = vst [vmem:[#allocation45_spill] sm:$0xff] %v8585_v37  ;;  %v2283_v40 = vsel %vm1950_vm2, %v2160_v15, 0.0  ;;  %v2161_v16 = vmul.f32 %v8585_v37, %v8585_v37 }
 0x2b6   :  { %v1608_v50 = vpop.f32.mrf.mxu0  ;;  %v1857_v58 = vpop.f32.mrf.mxu1  ;;  %2281 = vadd.xlane.f32.xlu1 %v2280_v9  ;;  %v2284_v9 = vadd.f32 %v2283_v40, %v2159_v46 }
 0x2b7   :  { %12679 = vst [vmem:[#allocation44_spill] sm:$0xff] %v8583_v21  ;;  %v2162_v5 = vmul.f32 %v8583_v21, %v8583_v21  ;;  %v2035_v63 = vsel %vm1950_vm2, %v8583_v21, 0.0 }
 0x2b8   :  { %v1610_v54 = vpop.f32.mrf.mxu0  ;;  %v1861_v60 = vpop.f32.mrf.mxu1  ;;  %2033 = vadd.xlane.f32.xlu0 %v2032_v36  ;;  %v2036_v13 = vadd.f32 %v2035_v63, %v8585_v37  ;;  %v8605_v36 = vadd.f32 %v1851_v1, %v1608_v50 }
 0x2b9   :  { %v8596_v62 = vadd.f32 %v1853_v52, %v1610_v54  ;;  %v2287_v7 = vsel %vm1950_vm2, %v2162_v5, 0.0 }
 0x2ba   :  { %v1612_v20 = vpop.f32.mrf.mxu0  ;;  %v1863_v23 = vpop.f32.mrf.mxu1  ;;  %2037 = vadd.xlane.f32.xlu1 %v2036_v13  ;;  %12682 = vst [vmem:[#allocation47_spill] sm:$0xff] %v8605_v36  ;;  %v2288_v54 = vadd.f32 %v2287_v7, %v2161_v16  ;;  %v2163_v13 = vmul.f32 %v8605_v36, %v8605_v36 }
 0x2bb   :  { %12681 = vst [vmem:[#allocation46_spill] sm:$0xff] %v8596_v62  ;;  %v2164_v15 = vmul.f32 %v8596_v62, %v8596_v62  ;;  %v2039_v26 = vsel %vm1950_vm2, %v8596_v62, 0.0  ;;  %v8609_v30 = vadd.f32 %v1855_v8, %v1612_v20 }
 0x2bc   :  { %v1614_v63 = vpop.f32.mrf.mxu0  ;;  %v1865_v52 = vpop.f32.mrf.mxu1  ;;  %2285 = vadd.xlane.f32.xlu0 %v2284_v9  ;;  %v2040_v40 = vadd.f32 %v2039_v26, %v8605_v36 }
 0x2bd   :  { %v8607_v5 = vadd.f32 %v1857_v58, %v1614_v63  ;;  %12684 = vst [vmem:[#allocation49_spill] sm:$0xff] %v8609_v30  ;;  %v2291_v1 = vsel %vm1950_vm2, %v2164_v15, 0.0  ;;  %v2165_v20 = vmul.f32 %v8609_v30, %v8609_v30 }
 0x2be   :  { %v1618_v21 = vpop.f32.mrf.mxu0  ;;  %v1867_v37 = vpop.f32.mrf.mxu1  ;;  %2289 = vadd.xlane.f32.xlu1 %v2288_v54  ;;  %v2292_v54 = vadd.f32 %v2291_v1, %v2163_v13 }
 0x2bf   :  { %12683 = vst [vmem:[#allocation48_spill] sm:$0xff] %v8607_v5  ;;  %v2166_v46 = vmul.f32 %v8607_v5, %v8607_v5  ;;  %v2043_v50 = vsel %vm1950_vm2, %v8607_v5, 0.0 }
 0x2c0   :  { %v1620_v58 = vpop.f32.mrf.mxu0  ;;  %v1871_v7 = vpop.f32.mrf.mxu1  ;;  %2041 = vadd.xlane.f32.xlu0 %v2040_v40  ;;  %v2044_v8 = vadd.f32 %v2043_v50, %v8609_v30  ;;  %v8629_v40 = vadd.f32 %v1861_v60, %v1618_v21 }
 0x2c1   :  { %v8620_v16 = vadd.f32 %v1863_v23, %v1620_v58  ;;  %v2295_v26 = vsel %vm1950_vm2, %v2166_v46, 0.0 }
 0x2c2   :  { %v1622_v9 = vpop.f32.mrf.mxu0  ;;  %v1873_v63 = vpop.f32.mrf.mxu1  ;;  %2045 = vadd.xlane.f32.xlu1 %v2044_v8  ;;  %12686 = vst [vmem:[#allocation51_spill] sm:$0xff] %v8629_v40  ;;  %v2296_v58 = vadd.f32 %v2295_v26, %v2165_v20  ;;  %v2167_v8 = vmul.f32 %v8629_v40, %v8629_v40 }
 0x2c3   :  { %12685 = vst [vmem:[#allocation50_spill] sm:$0xff] %v8620_v16  ;;  %v2168_v15 = vmul.f32 %v8620_v16, %v8620_v16  ;;  %v2047_v5 = vsel %vm1950_vm2, %v8620_v16, 0.0  ;;  %v8633_v38 = vadd.f32 %v1865_v52, %v1622_v9 }
 0x2c4   :  { %v1624_v50 = vpop.f32.mrf.mxu0  ;;  %v1875_v23 = vpop.f32.mrf.mxu1  ;;  %2293 = vadd.xlane.f32.xlu0 %v2292_v54  ;;  %v2048_v1 = vadd.f32 %v2047_v5, %v8629_v40 }
 0x2c5   :  { %v8631_v46 = vadd.f32 %v1867_v37, %v1624_v50  ;;  %12688 = vst [vmem:[#allocation53_spill] sm:$0xff] %v8633_v38  ;;  %v2299_v60 = vsel %vm1950_vm2, %v2168_v15, 0.0  ;;  %v2169_v9 = vmul.f32 %v8633_v38, %v8633_v38 }
 0x2c6   :  { %v1628_v30 = vpop.f32.mrf.mxu0  ;;  %v1877_v35 = vpop.f32.mrf.mxu1  ;;  %2297 = vadd.xlane.f32.xlu1 %v2296_v58  ;;  %v2300_v58 = vadd.f32 %v2299_v60, %v2167_v8 }
 0x2c7   :  { %12687 = vst [vmem:[#allocation52_spill] sm:$0xff] %v8631_v46  ;;  %v2170_v13 = vmul.f32 %v8631_v46, %v8631_v46  ;;  %v2051_v21 = vsel %vm1950_vm2, %v8631_v46, 0.0 }
 0x2c8   :  { %v1630_v37 = vpop.f32.mrf.mxu0  ;;  %v1881_v26 = vpop.f32.mrf.mxu1  ;;  %2049 = vadd.xlane.f32.xlu0 %v2048_v1  ;;  %v2052_v52 = vadd.f32 %v2051_v21, %v8633_v38  ;;  %v8653_v1 = vadd.f32 %v1871_v7, %v1628_v30 }
 0x2c9   :  { %v8644_v20 = vadd.f32 %v1873_v63, %v1630_v37  ;;  %v2303_v5 = vsel %vm1950_vm2, %v2170_v13, 0.0 }
 0x2ca   :  { %v1632_v54 = vpop.f32.mrf.mxu0  ;;  %v1883_v50 = vpop.f32.mrf.mxu1  ;;  %2053 = vadd.xlane.f32.xlu1 %v2052_v52  ;;  %12690 = vst [vmem:[#allocation55_spill] sm:$0xff] %v8653_v1  ;;  %v2304_v37 = vadd.f32 %v2303_v5, %v2169_v9  ;;  %v2171_v52 = vmul.f32 %v8653_v1, %v8653_v1 }
 0x2cb   :  { %12689 = vst [vmem:[#allocation54_spill] sm:$0xff] %v8644_v20  ;;  %v2172_v15 = vmul.f32 %v8644_v20, %v8644_v20  ;;  %v2055_v46 = vsel %vm1950_vm2, %v8644_v20, 0.0  ;;  %v8657_v16 = vadd.f32 %v1875_v23, %v1632_v54 }
 0x2cc   :  { %v1634_v21 = vpop.f32.mrf.mxu0  ;;  %v1885_v63 = vpop.f32.mrf.mxu1  ;;  %2301 = vadd.xlane.f32.xlu0 %v2300_v58  ;;  %v2056_v60 = vadd.f32 %v2055_v46, %v8653_v1 }
 0x2cd   :  { %v8655_v13 = vadd.f32 %v1877_v35, %v1634_v21  ;;  %12692 = vst [vmem:[#allocation57_spill] sm:$0xff] %v8657_v16  ;;  %v2307_v7 = vsel %vm1950_vm2, %v2172_v15, 0.0  ;;  %v2173_v54 = vmul.f32 %v8657_v16, %v8657_v16 }
 0x2ce   :  { %v1638_v38 = vpop.f32.mrf.mxu0  ;;  %v1887_v40 = vpop.f32.mrf.mxu1  ;;  %2305 = vadd.xlane.f32.xlu1 %v2304_v37  ;;  %v2308_v37 = vadd.f32 %v2307_v7, %v2171_v52 }
 0x2cf   :  { %12691 = vst [vmem:[#allocation56_spill] sm:$0xff] %v8655_v13  ;;  %v2174_v8 = vmul.f32 %v8655_v13, %v8655_v13  ;;  %v2059_v30 = vsel %vm1950_vm2, %v8655_v13, 0.0 }
 0x2d0   :  { %v1640_v35 = vpop.f32.mrf.mxu0  ;;  %v1891_v5 = vpop.f32.mrf.mxu1  ;;  %2057 = vadd.xlane.f32.xlu0 %v2056_v60  ;;  %v2060_v23 = vadd.f32 %v2059_v30, %v8657_v16  ;;  %v8677_v60 = vadd.f32 %v1881_v26, %v1638_v38 }
 0x2d1   :  { %v8668_v9 = vadd.f32 %v1883_v50, %v1640_v35  ;;  %v2311_v46 = vsel %vm1950_vm2, %v2174_v8, 0.0 }
 0x2d2   :  { %v1642_v58 = vpop.f32.mrf.mxu0  ;;  %v1893_v21 = vpop.f32.mrf.mxu1  ;;  %2061 = vadd.xlane.f32.xlu1 %v2060_v23  ;;  %12694 = vst [vmem:[#allocation59_spill] sm:$0xff] %v8677_v60  ;;  %v2312_v35 = vadd.f32 %v2311_v46, %v2173_v54  ;;  %v2175_v23 = vmul.f32 %v8677_v60, %v8677_v60 }
 0x2d3   :  { %12693 = vst [vmem:[#allocation58_spill] sm:$0xff] %v8668_v9  ;;  %v2176_v15 = vmul.f32 %v8668_v9, %v8668_v9  ;;  %v2063_v13 = vsel %vm1950_vm2, %v8668_v9, 0.0  ;;  %v8681_v20 = vadd.f32 %v1885_v63, %v1642_v58 }
 0x2d4   :  { %v1644_v30 = vpop.f32.mrf.mxu0  ;;  %v1895_v50 = vpop.f32.mrf.mxu1  ;;  %2309 = vadd.xlane.f32.xlu0 %v2308_v37  ;;  %v2064_v7 = vadd.f32 %v2063_v13, %v8677_v60 }
 0x2d5   :  { %v8679_v8 = vadd.f32 %v1887_v40, %v1644_v30  ;;  %12696 = vst [vmem:[#allocation61_spill] sm:$0xff] %v8681_v20  ;;  %v2315_v26 = vsel %vm1950_vm2, %v2176_v15, 0.0  ;;  %v2177_v58 = vmul.f32 %v8681_v20, %v8681_v20 }
 0x2d6   :  { %v1648_v16 = vpop.f32.mrf.mxu0  ;;  %v1897_v1 = vpop.f32.mrf.mxu1  ;;  %2313 = vadd.xlane.f32.xlu1 %v2312_v35  ;;  %v2316_v35 = vadd.f32 %v2315_v26, %v2175_v23 }
 0x2d7   :  { %12695 = vst [vmem:[#allocation60_spill] sm:$0xff] %v8679_v8  ;;  %v2178_v52 = vmul.f32 %v8679_v8, %v8679_v8  ;;  %v2067_v38 = vsel %vm1950_vm2, %v8679_v8, 0.0 }
 0x2d8   :  { %v1650_v40 = vpop.f32.mrf.mxu0  ;;  %v1901_v46 = vpop.f32.mrf.mxu1  ;;  %2065 = vadd.xlane.f32.xlu0 %v2064_v7  ;;  %v2068_v63 = vadd.f32 %v2067_v38, %v8681_v20  ;;  %v8701_v7 = vadd.f32 %v1891_v5, %v1648_v16 }
 0x2d9   :  { %v8692_v54 = vadd.f32 %v1893_v21, %v1650_v40  ;;  %v2319_v13 = vsel %vm1950_vm2, %v2178_v52, 0.0 }
 0x2da   :  { %v1652_v37 = vpop.f32.mrf.mxu0  ;;  %v1903_v30 = vpop.f32.mrf.mxu1  ;;  %2069 = vadd.xlane.f32.xlu1 %v2068_v63  ;;  %12698 = vst [vmem:[#allocation63_spill] sm:$0xff] %v8701_v7  ;;  %v2320_v40 = vadd.f32 %v2319_v13, %v2177_v58  ;;  %v2179_v63 = vmul.f32 %v8701_v7, %v8701_v7 }
 0x2db   :  { %12697 = vst [vmem:[#allocation62_spill] sm:$0xff] %v8692_v54  ;;  %v2180_v15 = vmul.f32 %v8692_v54, %v8692_v54  ;;  %v2071_v9 = vsel %vm1950_vm2, %v8692_v54, 0.0  ;;  %v8705_v60 = vadd.f32 %v1895_v50, %v1652_v37 }
 0x2dc   :  { %v1654_v38 = vpop.f32.mrf.mxu0  ;;  %v1905_v21 = vpop.f32.mrf.mxu1  ;;  %2317 = vadd.xlane.f32.xlu0 %v2316_v35  ;;  %v2072_v26 = vadd.f32 %v2071_v9, %v8701_v7 }
 0x2dd   :  { %v8703_v52 = vadd.f32 %v1897_v1, %v1654_v38  ;;  %12700 = vst [vmem:[#allocation65_spill] sm:$0xff] %v8705_v60  ;;  %v2323_v5 = vsel %vm1950_vm2, %v2180_v15, 0.0  ;;  %v2181_v37 = vmul.f32 %v8705_v60, %v8705_v60 }
 0x2de   :  { %v1658_v8 = vpop.f32.mrf.mxu0  ;;  %v1907_v20 = vpop.f32.mrf.mxu1  ;;  %2321 = vadd.xlane.f32.xlu1 %v2320_v40  ;;  %v2324_v40 = vadd.f32 %v2323_v5, %v2179_v63 }
 0x2df   :  { %12699 = vst [vmem:[#allocation64_spill] sm:$0xff] %v8703_v52  ;;  %v2182_v23 = vmul.f32 %v8703_v52, %v8703_v52  ;;  %v2075_v16 = vsel %vm1950_vm2, %v8703_v52, 0.0 }
 0x2e0   :  { %v1660_v1 = vpop.f32.mrf.mxu0  ;;  %v1911_v13 = vpop.f32.mrf.mxu1  ;;  %2073 = vadd.xlane.f32.xlu0 %v2072_v26  ;;  %v2076_v50 = vadd.f32 %v2075_v16, %v8705_v60  ;;  %v8725_v26 = vadd.f32 %v1901_v46, %v1658_v8 }
 0x2e1   :  { %v8716_v58 = vadd.f32 %v1903_v30, %v1660_v1  ;;  %v2327_v9 = vsel %vm1950_vm2, %v2182_v23, 0.0 }
 0x2e2   :  { %v1662_v35 = vpop.f32.mrf.mxu0  ;;  %v1913_v38 = vpop.f32.mrf.mxu1  ;;  %2077 = vadd.xlane.f32.xlu1 %v2076_v50  ;;  %12702 = vst [vmem:[#allocation67_spill] sm:$0xff] %v8725_v26  ;;  %v2328_v1 = vadd.f32 %v2327_v9, %v2181_v37  ;;  %v2183_v50 = vmul.f32 %v8725_v26, %v8725_v26 }
 0x2e3   :  { %12701 = vst [vmem:[#allocation66_spill] sm:$0xff] %v8716_v58  ;;  %v2184_v15 = vmul.f32 %v8716_v58, %v8716_v58  ;;  %v2079_v54 = vsel %vm1950_vm2, %v8716_v58, 0.0  ;;  %v8729_v7 = vadd.f32 %v1905_v21, %v1662_v35 }
 0x2e4   :  { %v1664_v16 = vpop.f32.mrf.mxu0  ;;  %v1915_v30 = vpop.f32.mrf.mxu1  ;;  %2325 = vadd.xlane.f32.xlu0 %v2324_v40  ;;  %v2080_v5 = vadd.f32 %v2079_v54, %v8725_v26 }
 0x2e5   :  { %v8727_v23 = vadd.f32 %v1907_v20, %v1664_v16  ;;  %12704 = vst [vmem:[#allocation69_spill] sm:$0xff] %v8729_v7  ;;  %v2331_v46 = vsel %vm1950_vm2, %v2184_v15, 0.0  ;;  %v2185_v35 = vmul.f32 %v8729_v7, %v8729_v7 }
 0x2e6   :  { %v1668_v62 = vpop.f32.mrf.mxu0  ;;  %v1917_v36 = vpop.f32.mrf.mxu1  ;;  %2329 = vadd.xlane.f32.xlu1 %v2328_v1  ;;  %v2332_v1 = vadd.f32 %v2331_v46, %v2183_v50 }
 0x2e7   :  { %12703 = vst [vmem:[#allocation68_spill] sm:$0xff] %v8727_v23  ;;  %v2186_v63 = vmul.f32 %v8727_v23, %v8727_v23  ;;  %v2083_v8 = vsel %vm1950_vm2, %v8727_v23, 0.0 }
 0x2e8   :  { %v1670_v20 = vpop.f32.mrf.mxu0  ;;  %v1921_v9 = vpop.f32.mrf.mxu1  ;;  %2081 = vadd.xlane.f32.xlu0 %v2080_v5  ;;  %v2084_v21 = vadd.f32 %v2083_v8, %v8729_v7  ;;  %v8749_v5 = vadd.f32 %v1911_v13, %v1668_v62 }
 0x2e9   :  { %v8740_v37 = vadd.f32 %v1913_v38, %v1670_v20  ;;  %v2335_v54 = vsel %vm1950_vm2, %v2186_v63, 0.0 }
 0x2ea   :  { %v1672_v40 = vpop.f32.mrf.mxu0  ;;  %v1923_v16 = vpop.f32.mrf.mxu1  ;;  %2085 = vadd.xlane.f32.xlu1 %v2084_v21  ;;  %12706 = vst [vmem:[#allocation71_spill] sm:$0xff] %v8749_v5  ;;  %v2336_v20 = vadd.f32 %v2335_v54, %v2185_v35  ;;  %v2187_v21 = vmul.f32 %v8749_v5, %v8749_v5 }
 0x2eb   :  { %12705 = vst [vmem:[#allocation70_spill] sm:$0xff] %v8740_v37  ;;  %v2188_v15 = vmul.f32 %v8740_v37, %v8740_v37  ;;  %v2087_v58 = vsel %vm1950_vm2, %v8740_v37, 0.0  ;;  %v8753_v26 = vadd.f32 %v1915_v30, %v1672_v40 }
 0x2ec   :  { %v1674_v8 = vpop.f32.mrf.mxu0  ;;  %v1925_v38 = vpop.f32.mrf.mxu1  ;;  %2333 = vadd.xlane.f32.xlu0 %v2332_v1  ;;  %v2088_v46 = vadd.f32 %v2087_v58, %v8749_v5 }
 0x2ed   :  { %v8751_v63 = vadd.f32 %v1917_v36, %v1674_v8  ;;  %12708 = vst [vmem:[#allocation73_spill] sm:$0xff] %v8753_v26  ;;  %v2339_v13 = vsel %vm1950_vm2, %v2188_v15, 0.0  ;;  %v2189_v8 = vmul.f32 %v8753_v26, %v8753_v26 }
 0x2ee   :  { %v1678_v23 = vpop.f32.mrf.mxu0  ;;  %v1927_v7 = vpop.f32.mrf.mxu1  ;;  %2337 = vadd.xlane.f32.xlu1 %v2336_v20  ;;  %v2340_v15 = vadd.f32 %v2339_v13, %v2187_v21 }
 0x2ef   :  { %12707 = vst [vmem:[#allocation72_spill] sm:$0xff] %v8751_v63  ;;  %v2190_v50 = vmul.f32 %v8751_v63, %v8751_v63  ;;  %v2091_v62 = vsel %vm1950_vm2, %v8751_v63, 0.0  ;;  %v1954_v35 = vpop.xlane.xlu1 %1953 }
 0x2f0   :  { %v1680_v36 = vpop.f32.mrf.mxu0  ;;  %v1931_v54 = vpop.f32.mrf.mxu1  ;;  %2089 = vadd.xlane.f32.xlu0 %v2088_v46  ;;  %v2092_v30 = vadd.f32 %v2091_v62, %v8753_v26  ;;  %v8773_v62 = vadd.f32 %v1921_v9, %v1678_v23 }
 0x2f1   :  { %v8764_v40 = vadd.f32 %v1923_v16, %v1680_v36  ;;  %v2206_v58 = vpop.xlane.xlu0 %2205  ;;  %v2343_v1 = vsel %vm1950_vm2, %v2190_v50, 0.0  ;;  %v8775_v50 = vmul.f32 0.0051020407, %v1954_v35 }
 0x2f2   :  { %v1682_v20 = vpop.f32.mrf.mxu0  ;;  %v1933_v63 = vpop.f32.mrf.mxu1  ;;  %2093 = vadd.xlane.f32.xlu1 %v2092_v30  ;;  %12710 = vst [vmem:[#allocation75_spill] sm:$0xff] %v8773_v62  ;;  %v2344_v5 = vadd.f32 %v2343_v1, %v2189_v8 }
 0x2f3   :  { %12709 = vst [vmem:[#allocation74_spill] sm:$0xff] %v8764_v40  ;;  %v2192_v37 = vmul.f32 %v8764_v40, %v8764_v40  ;;  %v2095_v46 = vsel %vm1950_vm2, %v8764_v40, 0.0  ;;  %v8779_v56 = vadd.f32 %v1925_v38, %v1682_v20  ;;  %v2413_v20 = vmul.f32 0.0051020407, %v2206_v58 }
 0x2f4   :  { %v1684_v16 = vpop.f32.mrf.mxu0  ;;  %v1935_v36 = vpop.f32.mrf.mxu1  ;;  %2341 = vadd.xlane.f32.xlu0 %v2340_v15  ;;  %v2096_v30 = vadd.f32 %v2095_v46, %v8773_v62 }
 0x2f5   :  { %v8777_v41 = vadd.f32 %v1927_v7, %v1684_v16  ;;  %v1958_v26 = vpop.xlane.xlu0 %1957  ;;  %12712 = vst [vmem:[#allocation77_spill] sm:$0xff] %v8779_v56  ;;  %v2210_v9 = vpop.xlane.xlu1 %2209  ;;  %v2347_v35 = vsel %vm1950_vm2, %v2192_v37, 0.0  ;;  %v2191_v7 = vmul.f32 %v8773_v62, %v8773_v62  ;;  %v2193_v37 = vmul.f32 %v8779_v56, %v8779_v56 }
 0x2f6   :  { %v1688_v13 = vpop.f32.mrf.mxu0  ;;  %v1937_v21 = vpop.f32.mrf.mxu1  ;;  %2345 = vadd.xlane.f32.xlu1 %v2344_v5  ;;  %v2455_v5 = vmul.f32 %v8775_v50, %v8775_v50  ;;  %v8812_v24 = vmul.f32 0.0051020407, %v1958_v26 }
 0x2f7   :  { %12711 = vst [vmem:[#allocation76_spill] sm:$0xff] %v8777_v41  ;;  %v2194_v23 = vmul.f32 %v8777_v41, %v8777_v41  ;;  %v2099_v15 = vsel %vm1950_vm2, %v8777_v41, 0.0  ;;  %v2348_v62 = vadd.f32 %v2347_v35, %v2191_v7  ;;  %v8803_v58 = vadd.f32 %v1931_v54, %v1688_v13 }
 0x2f8   :  { %v1690_v1 = vpop.f32.mrf.mxu0  ;;  %v1941_v38 = vpop.f32.mrf.mxu1  ;;  %2097 = vadd.xlane.f32.xlu0 %v2096_v30  ;;  %v2100_v8 = vadd.f32 %v2099_v15, %v8779_v56 }
 0x2f9   :  { %v8792_v46 = vadd.f32 %v1933_v63, %v1690_v1  ;;  %v8794_v16 = vpop.xlane.xlu0 %1961  ;;  %v2351_v40 = vsel %vm1950_vm2, %v2194_v23, 0.0  ;;  %12714 = vst [vmem:[#allocation79_spill] sm:$0xff] %v8803_v58  ;;  %v2497_v23 = vsub.f32 %v2413_v20, %v2455_v5 }
 0x2fa   :  { %v1692_v41 = vpop.f32.mrf.mxu0  ;;  %2101 = vadd.xlane.f32.xlu1 %v2100_v8  ;;  %v1943_v63 = vpop.f32.mrf.mxu1  ;;  %v2352_v17 = vadd.f32 %v2351_v40, %v2193_v37 }
 0x2fb   :  { %12713 = vst [vmem:[#allocation78_spill] sm:$0xff] %v8792_v46  ;;  %v2196_v30 = vmul.f32 %v8792_v46, %v8792_v46  ;;  %v1966_v15 = vpop.xlane.xlu1 %1965  ;;  %v2103_v57 = vsel %vm1950_vm2, %v8792_v46, 0.0  ;;  %v8809_v8 = vadd.f32 %v1935_v36, %v1692_v41 }
 0x2fc   :  { %v1694_v1 = vpop.f32.mrf.mxu0  ;;  %2349 = vadd.xlane.f32.xlu0 %v2348_v62  ;;  %v2104_v7 = vadd.f32 %v2103_v57, %v8803_v58  ;;  %v1945_v41 = vpop.f32.mrf.mxu1  ;;  %v2539_v57 = vmax.f32 %v2497_v23, 0.0 }
 0x2fd   :  { %v8805_v10 = vadd.f32 %v1937_v21, %v1694_v1  ;;  %v8807_v56 = vpop.xlane.xlu0 %2213  ;;  %12716 = vst [vmem:[#allocation81_spill] sm:$0xff] %v8809_v8  ;;  %v2355_v62 = vsel %vm1950_vm2, %v2196_v30, 0.0  ;;  %v2195_v21 = vmul.f32 %v8803_v58, %v8803_v58  ;;  %v2197_v37 = vmul.f32 %v8809_v8, %v8809_v8 }
 0x2fe   :  { %v1698_v35 = vpop.f32.mrf.mxu0  ;;  %2353 = vadd.xlane.f32.xlu1 %v2352_v17  ;;  %v8827_v1 = vmul.f32 0.0051020407, %v1966_v15  ;;  %v2456_v58 = vmul.f32 %v8812_v24, %v8812_v24  ;;  %v2415_v34 = vmul.f32 0.0051020407, %v8807_v56  ;;  %v8956_v56 = vld [vmem:[%s12407_s4 + $0x38] sm:$0xff] }
 0x2ff   :  { %12715 = vst [vmem:[#allocation80_spill] sm:$0xff] %v8805_v10  ;;  %v2198_v54 = vmul.f32 %v8805_v10, %v8805_v10  ;;  %v2218_v13 = vpop.xlane.xlu1 %2217  ;;  %v2107_v40 = vsel %vm1950_vm2, %v8805_v10, 0.0  ;;  %v2356_v46 = vadd.f32 %v2355_v62, %v2195_v21 }
 0x300   :  { %v1700_v36 = vpop.f32.mrf.mxu0  ;;  %2105 = vadd.xlane.f32.xlu0 %v2104_v7  ;;  %v2108_v17 = vadd.f32 %v2107_v40, %v8809_v8  ;;  %v8835_v40 = vadd.f32 %v1941_v38, %v1698_v35  ;;  %v2581_v8 = vadd.f32 1e-05, %v2539_v57  ;;  %v2458_v52 = vmul.f32 %v8827_v1, %v8827_v1 }
 0x301   :  { %v8822_v26 = vadd.f32 %v1943_v63, %v1700_v36  ;;  %v1970_v5 = vpop.xlane.xlu0 %1969  ;;  %v2359_v20 = vsel %vm1950_vm2, %v2198_v54, 0.0  ;;  %v1947_v54 = vpop.f32.mrf.mxu1  ;;  %v2416_v36 = vmul.f32 0.0051020407, %v2218_v13 }
 0x302   :  { %v1702_v30 = vpop.f32.mrf.mxu0  ;;  %2109 = vadd.xlane.f32.xlu1 %v2108_v17  ;;  %12718 = vst [vmem:[#allocation83_spill] sm:$0xff] %v8835_v40  ;;  %v2360_v15 = vadd.f32 %v2359_v20, %v2197_v37  ;;  %v2414_v17 = vmul.f32 0.0051020407, %v2210_v9  ;;  %7086 = vrsqrt.f32 %v2581_v8 }
 0x303   :  { %12717 = vst [vmem:[#allocation82_spill] sm:$0xff] %v8822_v26  ;;  %v2200_v7 = vmul.f32 %v8822_v26, %v8822_v26  ;;  %v1974_v23 = vpop.xlane.xlu1 %1973  ;;  %v2111_v63 = vsel %vm1950_vm2, %v8822_v26, 0.0  ;;  %v8841_v60 = vadd.f32 %v1945_v41, %v1702_v30  ;;  %v2500_v9 = vsub.f32 %v2416_v36, %v2458_v52 }
 0x304   :  { %v1704_v10 = vpop.f32.mrf.mxu0  ;;  %2357 = vadd.xlane.f32.xlu0 %v2356_v46  ;;  %v2112_v26 = vadd.f32 %v2111_v63, %v8835_v40  ;;  %v2498_v38 = vsub.f32 %v2414_v17, %v2456_v58  ;;  %v8850_v41 = vmul.f32 0.0051020407, %v1970_v5  ;;  %v8852_v37 = vmul.f32 0.0051020407, %v1974_v23 }
 0x305   :  { %v8837_v62 = vadd.f32 %v1947_v54, %v1704_v10  ;;  %v2222_v21 = vpop.xlane.xlu0 %2221  ;;  %12720 = vst [vmem:[#allocation85_spill] sm:$0xff] %v8841_v60  ;;  %v2363_v46 = vsel %vm1950_vm2, %v2200_v7, 0.0  ;;  %v2199_v10 = vmul.f32 %v8835_v40, %v8835_v40 }
 0x306   :  { %2361 = vadd.xlane.f32.xlu1 %v2360_v15  ;;  %v2540_v30 = vmax.f32 %v2498_v38, 0.0  ;;  %v2417_v63 = vmul.f32 0.0051020407, %v2222_v21  ;;  %v2542_v15 = vmax.f32 %v2500_v9, 0.0  ;;  %v2459_v52 = vmul.f32 %v8850_v41, %v8850_v41 }
 0x307   :  { %12719 = vst [vmem:[#allocation84_spill] sm:$0xff] %v8837_v62  ;;  %v2226_v35 = vpop.xlane.xlu1 %2225  ;;  %v2115_v13 = vsel %vm1950_vm2, %v8837_v62, 0.0  ;;  %v2364_v58 = vadd.f32 %v2363_v46, %v2199_v10  ;;  %v2460_v8 = vmul.f32 %v8852_v37, %v8852_v37 }
 0x308   :  { %2113 = vadd.xlane.f32.xlu0 %v2112_v26  ;;  %v2116_v57 = vadd.f32 %v2115_v13, %v8841_v60  ;;  %v2418_v7 = vmul.f32 0.0051020407, %v2226_v35  ;;  %v2582_v5 = vadd.f32 1e-05, %v2540_v30  ;;  %v2501_v36 = vsub.f32 %v2417_v63, %v2459_v52 }
 0x309   :  { %v1978_v20 = vpop.xlane.xlu0 %1977  ;;  %v2584_v23 = vadd.f32 1e-05, %v2542_v15 }
 0x30a   :  { %2117 = vadd.xlane.f32.xlu1 %v2116_v57  ;;  %v2502_v13 = vsub.f32 %v2418_v7, %v2460_v8  ;;  %v8858_v57 = vmul.f32 0.0051020407, %v1978_v20  ;;  %7088 = vrsqrt.f32 %v2582_v5  ;;  %v2543_v35 = vmax.f32 %v2501_v36, 0.0  ;;  %v8871_v36 = vld [vmem:[%s12407_s4] sm:$0xff] }
 0x30b   :  { %v1982_v54 = vpop.xlane.xlu1 %1981  ;;  %7090 = vrsqrt.f32 %v2584_v23 }
 0x30c   :  { %2365 = vadd.xlane.f32.xlu0 %v2364_v58  ;;  %v8860_v21 = vmul.f32 0.0051020407, %v1982_v54  ;;  %v2544_v9 = vmax.f32 %v2502_v13, 0.0  ;;  %v2461_v40 = vmul.f32 %v8858_v57, %v8858_v57  ;;  %v2585_v20 = vadd.f32 1e-05, %v2543_v35 }
 0x30d   :  { %v2230_v26 = vpop.xlane.xlu0 %2229 }
 0x30e   :  { %v2419_v46 = vmul.f32 0.0051020407, %v2230_v26  ;;  %v2462_v15 = vmul.f32 %v8860_v21, %v8860_v21  ;;  %v2586_v54 = vadd.f32 1e-05, %v2544_v9  ;;  %7092 = vrsqrt.f32 %v2585_v20 }
 0x30f   :  { %v2234_v17 = vpop.xlane.xlu1 %2233  ;;  %v7087_v63 = vpop.eup %7086 }
 0x310   :  { %v2420_v58 = vmul.f32 0.0051020407, %v2234_v17  ;;  %v2503_v7 = vsub.f32 %v2419_v46, %v2461_v40  ;;  %v2665_v17 = vmul.f32 %v8871_v36, %v7087_v63  ;;  %7094 = vrsqrt.f32 %v2586_v54 }
 0x311   :  { %v1986_v38 = vpop.xlane.xlu0 %1985 }
 0x312   :  { %v2504_v8 = vsub.f32 %v2420_v58, %v2462_v15  ;;  %v8866_v5 = vmul.f32 0.0051020407, %v1986_v38  ;;  %v2545_v13 = vmax.f32 %v2503_v7, 0.0 }
 0x313   :  { %v1990_v10 = vpop.xlane.xlu1 %1989 }
 0x314   :  { %v8874_v23 = vmul.f32 0.0051020407, %v1990_v10  ;;  %v2546_v35 = vmax.f32 %v2504_v8, 0.0  ;;  %v2463_v38 = vmul.f32 %v8866_v5, %v8866_v5  ;;  %v2587_v15 = vadd.f32 1e-05, %v2545_v13 }
 0x315   :  { %v2238_v30 = vpop.xlane.xlu0 %2237 }
 0x316   :  { %v2421_v55 = vmul.f32 0.0051020407, %v2238_v30  ;;  %v2464_v58 = vmul.f32 %v8874_v23, %v8874_v23  ;;  %v2588_v43 = vadd.f32 1e-05, %v2546_v35  ;;  %v2707_v30 = vmul.f32 %v2665_v17, %v8775_v50 }
 0x317   :  { %v2242_v52 = vpop.xlane.xlu1 %2241  ;;  %v7089_v10 = vpop.eup %7088  ;;  %7096 = vrsqrt.f32 %v2587_v15 }
 0x318   :  { %v2422_v46 = vmul.f32 0.0051020407, %v2242_v52  ;;  %v2505_v19 = vsub.f32 %v2421_v55, %v2463_v38  ;;  %v7091_v7 = vpop.eup %7090  ;;  %v8889_v55 = vld [vmem:[%s12407_s4 + $0x8] sm:$0xff]  ;;  %7098 = vrsqrt.f32 %v2588_v43 }
 0x319   :  { %v1994_v26 = vpop.xlane.xlu0 %1993  ;;  %v8892_v50 = vmul.f32 %v8889_v55, %v7089_v10 }
 0x31a   :  { %v2506_v20 = vsub.f32 %v2422_v46, %v2464_v58  ;;  %v8881_v44 = vmul.f32 0.0051020407, %v1994_v26  ;;  %v2547_v8 = vmax.f32 %v2505_v19, 0.0 }
 0x31b   :  { %2961 = vperm.xlu1 %6702, %v2665_v17   ;;  %v1998_v40 = vpop.xlane.xlu1 %1997  ;;  %v7093_v15 = vpop.eup %7092 }
 0x31c   :  { %v8883_v52 = vmul.f32 0.0051020407, %v1998_v40  ;;  %v2548_v26 = vmax.f32 %v2506_v20, 0.0  ;;  %v8897_v40 = vld [vmem:[%s12407_s4 + $0x18] sm:$0xff]  ;;  %v2465_v35 = vmul.f32 %v8881_v44, %v8881_v44  ;;  %v2589_v43 = vadd.f32 1e-05, %v2547_v8 }
 0x31d   :  { %v2246_v9 = vpop.xlane.xlu0 %2245  ;;  %v8900_v19 = vmul.f32 %v8897_v40, %v7091_v7 }
 0x31e   :  { %v2423_v12 = vmul.f32 0.0051020407, %v2246_v9  ;;  %v2466_v38 = vmul.f32 %v8883_v52, %v8883_v52  ;;  %7100 = vrsqrt.f32 %v2589_v43 }
 0x31f   :  { %v2250_v63 = vpop.xlane.xlu1 %2249  ;;  %v2710_v20 = vmul.f32 %v8900_v19, %v8827_v1 }
 0x320   :  { %v2424_v17 = vmul.f32 0.0051020407, %v2250_v63  ;;  %v2507_v9 = vsub.f32 %v2423_v12, %v2465_v35  ;;  %v2590_v63 = vadd.f32 1e-05, %v2548_v26  ;;  %v7257_v12 = vld [vmem:[%s12407_s4 + $0x20] sm:$0xff] }
 0x321   :  { %v2002_v54 = vpop.xlane.xlu0 %2001  ;;  %v8917_v26 = vmul.f32 %v7257_v12, %v7093_v15 }
 0x322   :  { %2791 = vrot.lane.b32.xlu0 %v2707_v30, %s7341_s13  ;;  %v2508_v10 = vsub.f32 %v2424_v17, %v2466_v38  ;;  %v7095_v30 = vpop.eup %7094  ;;  %v8909_v7 = vmul.f32 0.0051020407, %v2002_v54  ;;  %v2549_v6 = vmax.f32 %v2507_v9, 0.0  ;;  %7102 = vrsqrt.f32 %v2590_v63  ;;  %v8922_v54 = vld [vmem:[%s12407_s4 + $0x28] sm:$0xff] }
 0x323   :  { %v2006_v13 = vpop.xlane.xlu1 %2005  ;;  %v8930_v38 = vmul.f32 0.0051020407, %v8794_v16 }
 0x324   :  { %v8911_v33 = vmul.f32 0.0051020407, %v2006_v13  ;;  %v2550_v1 = vmax.f32 %v2508_v10, 0.0  ;;  %v8925_v13 = vmul.f32 %v8922_v54, %v7095_v30  ;;  %v2467_v35 = vmul.f32 %v8909_v7, %v8909_v7  ;;  %v7097_v63 = vpop.eup %7096 }
 0x325   :  { %v2254_v46 = vpop.xlane.xlu0 %2253  ;;  %v2591_v9 = vadd.f32 1e-05, %v2549_v6  ;;  %v7099_v12 = vpop.eup %7098  ;;  %v2457_v16 = vmul.f32 %v8930_v38, %v8930_v38 }
 0x326   :  { %2966 = vperm.xlu0 %6703, %v8892_v50   ;;  %v2425_v18 = vmul.f32 0.0051020407, %v2254_v46  ;;  %v2468_v43 = vmul.f32 %v8911_v33, %v8911_v33  ;;  %v2592_v10 = vadd.f32 1e-05, %v2550_v1  ;;  %v2712_v30 = vmul.f32 %v8925_v13, %v8852_v37  ;;  %v8948_v37 = vld [vmem:[%s12407_s4 + $0x30] sm:$0xff] }
 0x327   :  { %v2258_v58 = vpop.xlane.xlu1 %2257  ;;  %7104 = vrsqrt.f32 %v2591_v9  ;;  %v2499_v9 = vsub.f32 %v2415_v34, %v2457_v16 }
 0x328   :  { %v2426_v17 = vmul.f32 0.0051020407, %v2258_v58  ;;  %v2509_v58 = vsub.f32 %v2425_v18, %v2467_v35  ;;  %7106 = vrsqrt.f32 %v2592_v10 }
 0x329   :  { %v2010_v42 = vpop.xlane.xlu0 %2009  ;;  %v2541_v16 = vmax.f32 %v2499_v9, 0.0 }
 0x32a   :  { %2797 = vrot.lane.b32.xlu0 %v2710_v20, %s7341_s13  ;;  %v2510_v20 = vsub.f32 %v2426_v17, %v2468_v43  ;;  %v8937_v4 = vmul.f32 0.0051020407, %v2010_v42  ;;  %v2551_v6 = vmax.f32 %v2509_v58, 0.0  ;;  %v8951_v42 = vmul.f32 %v8948_v37, %v7097_v63 }
 0x32b   :  { %v2014_v8 = vpop.xlane.xlu1 %2013  ;;  %v2202_v58 = vmul.f32 %v8837_v62, %v8837_v62  ;;  %v2201_v62 = vmul.f32 %v8841_v60, %v8841_v60 }
 0x32c   :  { %v8942_v2 = vmul.f32 0.0051020407, %v2014_v8  ;;  %v2552_v17 = vmax.f32 %v2510_v20, 0.0  ;;  %v8959_v8 = vmul.f32 %v8956_v56, %v7099_v12 }
 0x32d   :  { %v2262_v46 = vpop.xlane.xlu0 %2261 }
 0x32e   :  { %2981 = vperm.xlu0 %6703, %v8917_v26   ;;  %v2427_v18 = vmul.f32 0.0051020407, %v2262_v46  ;;  %v2469_v46 = vmul.f32 %v8937_v4, %v8937_v4  ;;  %v2470_v63 = vmul.f32 %v8942_v2, %v8942_v2  ;;  %v2594_v31 = vadd.f32 1e-05, %v2552_v17 }
 0x32f   :  { %v2266_v15 = vpop.xlane.xlu1 %2265  ;;  %v2714_v29 = vmul.f32 %v8959_v8, %v8860_v21 }
 0x330   :  { %v2428_v35 = vmul.f32 0.0051020407, %v2266_v15  ;;  %v2593_v15 = vadd.f32 1e-05, %v2551_v6  ;;  %v2511_v10 = vsub.f32 %v2427_v18, %v2469_v46  ;;  %v2367_v6 = vsel %vm1950_vm2, %v2202_v58, 0.0 }
 0x331   :  { %v2018_v11 = vpop.xlane.xlu0 %2017 }
 0x332   :  { %2801 = vrot.lane.b32.xlu0 %v2712_v30, %s7341_s13  ;;  %v7101_v30 = vpop.eup %7100  ;;  %v2512_v12 = vsub.f32 %v2428_v35, %v2470_v63  ;;  %v8970_v61 = vmul.f32 0.0051020407, %v2018_v11  ;;  %7108 = vrsqrt.f32 %v2593_v15  ;;  %v2553_v18 = vmax.f32 %v2511_v10, 0.0  ;;  %v8981_v11 = vld [vmem:[%s12407_s4 + $0x40] sm:$0xff] }
 0x333   :  { %v2022_v1 = vpop.xlane.xlu1 %2021  ;;  %v7103_v45 = vpop.eup %7102  ;;  %v8984_v21 = vmul.f32 %v8981_v11, %v7101_v30  ;;  %7110 = vrsqrt.f32 %v2594_v31  ;;  %v2368_v63 = vadd.f32 %v2367_v6, %v2201_v62  ;;  %v2583_v15 = vadd.f32 1e-05, %v2541_v16 }
 0x334   :  { %v8974_v32 = vmul.f32 0.0051020407, %v2022_v1  ;;  %v2554_v46 = vmax.f32 %v2512_v12, 0.0  ;;  %v2595_v31 = vadd.f32 1e-05, %v2553_v18  ;;  %v7105_v12 = vpop.eup %7104 }
 0x335   :  { %v2270_v43 = vpop.xlane.xlu0 %2269  ;;  %v7107_v0 = vpop.eup %7106  ;;  %7112 = vrsqrt.f32 %v2583_v15 }
 0x336   :  { %2991 = vperm.xlu0 %6703, %v8951_v42   ;;  %v2429_v17 = vmul.f32 0.0051020407, %v2270_v43  ;;  %v2471_v43 = vmul.f32 %v8970_v61, %v8970_v61  ;;  %v2472_v10 = vmul.f32 %v8974_v32, %v8974_v32  ;;  %v2596_v60 = vadd.f32 1e-05, %v2554_v46  ;;  %v9009_v46 = vld [vmem:[%s12407_s4 + $0x50] sm:$0xff] }
 0x337   :  { %v2274_v20 = vpop.xlane.xlu1 %2273  ;;  %7114 = vrsqrt.f32 %v2595_v31 }
 0x338   :  { %v2430_v1 = vmul.f32 0.0051020407, %v2274_v20  ;;  %v2513_v20 = vsub.f32 %v2429_v17, %v2471_v43  ;;  %7116 = vrsqrt.f32 %v2596_v60 }
 0x339   :  { %v2026_v34 = vpop.xlane.xlu0 %2025 }
 0x33a   :  { %2805 = vrot.lane.b32.xlu0 %v2714_v29, %s7341_s13  ;;  %v8989_v29 = vld [vmem:[%s12407_s4 + $0x48] sm:$0xff]  ;;  %v2514_v3 = vsub.f32 %v2430_v1, %v2472_v10  ;;  %v9001_v53 = vmul.f32 0.0051020407, %v2026_v34  ;;  %v2555_v6 = vmax.f32 %v2513_v20, 0.0 }
 0x33b   :  { %v2030_v35 = vpop.xlane.xlu1 %2029  ;;  %v8992_v9 = vmul.f32 %v8989_v29, %v7103_v45 }
 0x33c   :  { %v9003_v16 = vmul.f32 0.0051020407, %v2030_v35  ;;  %v2556_v34 = vmax.f32 %v2514_v3, 0.0  ;;  %v9017_v35 = vld [vmem:[%s12407_s4 + $0x58] sm:$0xff]  ;;  %v2597_v60 = vadd.f32 1e-05, %v2555_v6 }
 0x33d   :  { %v2278_v58 = vpop.xlane.xlu0 %2277  ;;  %v2716_v45 = vmul.f32 %v8992_v9, %v8874_v23  ;;  %v9012_v23 = vmul.f32 %v9009_v46, %v7105_v12  ;;  %v9020_v43 = vmul.f32 %v9017_v35, %v7107_v0 }
 0x33e   :  { %3001 = vperm.xlu0 %6703, %v8984_v21   ;;  %v2431_v18 = vmul.f32 0.0051020407, %v2278_v58  ;;  %v2473_v58 = vmul.f32 %v9001_v53, %v9001_v53  ;;  %v2474_v15 = vmul.f32 %v9003_v16, %v9003_v16  ;;  %v2598_v20 = vadd.f32 1e-05, %v2556_v34 }
 0x33f   :  { %2369 = vadd.xlane.f32.xlu1 %v2368_v63  ;;  %v2282_v30 = vpop.xlane.xlu1 %2281  ;;  %v7109_v31 = vpop.eup %7108  ;;  %v2718_v12 = vmul.f32 %v9020_v43, %v8883_v52  ;;  %7118 = vrsqrt.f32 %v2597_v60  ;;  %v2708_v60 = vmul.f32 %v8892_v50, %v8812_v24 }
 0x340   :  { %v2432_v1 = vmul.f32 0.0051020407, %v2282_v30  ;;  %v2515_v3 = vsub.f32 %v2431_v18, %v2473_v58  ;;  %v7111_v0 = vpop.eup %7110  ;;  %v9037_v18 = vld [vmem:[%s12407_s4 + $0x60] sm:$0xff]  ;;  %7120 = vrsqrt.f32 %v2598_v20 }
 0x341   :  { %v2034_v62 = vpop.xlane.xlu0 %2033  ;;  %v9040_v34 = vmul.f32 %v9037_v18, %v7109_v31 }
 0x342   :  { %2809 = vrot.lane.b32.xlu0 %v2716_v45, %s7341_s13  ;;  %v2516_v30 = vsub.f32 %v2432_v1, %v2474_v15  ;;  %v9029_v45 = vmul.f32 0.0051020407, %v2034_v62  ;;  %v2557_v51 = vmax.f32 %v2515_v3, 0.0  ;;  %v7113_v3 = vpop.eup %7112 }
 0x343   :  { %v2038_v17 = vpop.xlane.xlu1 %2037 }
 0x344   :  { %v9031_v47 = vmul.f32 0.0051020407, %v2038_v17  ;;  %v2558_v52 = vmax.f32 %v2516_v30, 0.0  ;;  %v9045_v17 = vld [vmem:[%s12407_s4 + $0x68] sm:$0xff]  ;;  %v2475_v58 = vmul.f32 %v9029_v45, %v9029_v45  ;;  %v7115_v30 = vpop.eup %7114 }
 0x345   :  { %v2286_v63 = vpop.xlane.xlu0 %2285  ;;  %12721 = vst [vmem:[#allocation86_spill] sm:$0xff] %v9045_v17  ;;  %v9048_v1 = vmul.f32 %v9045_v17, %v7111_v0  ;;  %v7117_v49 = vpop.eup %7116 }
 0x346   :  { %3011 = vperm.xlu0 %6703, %v9012_v23   ;;  %v2433_v22 = vmul.f32 0.0051020407, %v2286_v63  ;;  %v2476_v15 = vmul.f32 %v9031_v47, %v9031_v47 }
 0x347   :  { %v2290_v10 = vpop.xlane.xlu1 %2289  ;;  %v2720_v28 = vmul.f32 %v9048_v1, %v8911_v33  ;;  %v9074_v33 = vld [vmem:[%s12407_s4 + $0x70] sm:$0xff] }
 0x348   :  { %v2434_v62 = vmul.f32 0.0051020407, %v2290_v10  ;;  %v2599_v10 = vadd.f32 1e-05, %v2557_v51  ;;  %v2517_v31 = vsub.f32 %v2433_v22, %v2475_v58  ;;  %v9068_v22 = vld [vmem:[%s12407_s4 + $0x10] sm:$0xff] }
 0x349   :  { %v2042_v27 = vpop.xlane.xlu0 %2041  ;;  %v2667_v51 = vmul.f32 %v9068_v22, %v7113_v3 }
 0x34a   :  { %2813 = vrot.lane.b32.xlu0 %v2718_v12, %s7341_s13  ;;  %v2600_v12 = vadd.f32 1e-05, %v2558_v52  ;;  %v2518_v0 = vsub.f32 %v2434_v62, %v2476_v15  ;;  %v9060_v59 = vmul.f32 0.0051020407, %v2042_v27  ;;  %7122 = vrsqrt.f32 %v2599_v10  ;;  %v9082_v62 = vld [vmem:[%s12407_s4 + $0x78] sm:$0xff] }
 0x34b   :  { %v2046_v6 = vpop.xlane.xlu1 %2045  ;;  %v2559_v24 = vmax.f32 %v2517_v31, 0.0  ;;  %v9077_v27 = vmul.f32 %v9074_v33, %v7115_v30  ;;  %12722 = vst [vmem:[#allocation87_spill] sm:$0xff] %v9082_v62  ;;  %v9085_v58 = vmul.f32 %v9082_v62, %v7117_v49  ;;  %v2709_v3 = vmul.f32 %v2667_v51, %v8930_v38 }
 0x34c   :  { %v9062_v14 = vmul.f32 0.0051020407, %v2046_v6  ;;  %7124 = vrsqrt.f32 %v2600_v12  ;;  %v7119_v30 = vpop.eup %7118 }
 0x34d   :  { %v2294_v63 = vpop.xlane.xlu0 %2293  ;;  %v2601_v10 = vadd.f32 1e-05, %v2559_v24  ;;  %v2722_v49 = vmul.f32 %v9085_v58, %v8942_v2  ;;  %v7121_v25 = vpop.eup %7120 }
 0x34e   :  { %3021 = vperm.xlu0 %6703, %v9040_v34   ;;  %v2435_v50 = vmul.f32 0.0051020407, %v2294_v63  ;;  %v2477_v63 = vmul.f32 %v9060_v59, %v9060_v59 }
 0x34f   :  { %v2298_v20 = vpop.xlane.xlu1 %2297  ;;  %7126 = vrsqrt.f32 %v2601_v10 }
 0x350   :  { %2793 = vrot.lane.b32.xlu1 %v2708_v60, %s7341_s13  ;;  %v2436_v6 = vmul.f32 0.0051020407, %v2298_v20  ;;  %v2478_v60 = vmul.f32 %v9062_v14, %v9062_v14  ;;  %v2519_v31 = vsub.f32 %v2435_v50, %v2477_v63  ;;  %v9104_v50 = vld [vmem:[%s12407_s4 + $0x80] sm:$0xff] }
 0x351   :  { %v2050_v48 = vpop.xlane.xlu0 %2049  ;;  %12723 = vst [vmem:[#allocation88_spill] sm:$0xff] %v9104_v50 }
 0x352   :  { %2817 = vrot.lane.b32.xlu0 %v2720_v28, %s7341_s13  ;;  %v2560_v28 = vmax.f32 %v2518_v0, 0.0  ;;  %v2520_v0 = vsub.f32 %v2436_v6, %v2478_v60  ;;  %v9096_v39 = vmul.f32 0.0051020407, %v2050_v48  ;;  %v2561_v38 = vmax.f32 %v2519_v31, 0.0 }
 0x353   :  { %v2054_v52 = vpop.xlane.xlu1 %2053 }
 0x354   :  { %2971 = vperm.xlu1 %6702, %v2667_v51   ;;  %v2602_v12 = vadd.f32 1e-05, %v2560_v28  ;;  %v9098_v62 = vmul.f32 0.0051020407, %v2054_v52  ;;  %v9107_v28 = vmul.f32 %v9104_v50, %v7119_v30  ;;  %v2562_v48 = vmax.f32 %v2520_v0, 0.0  ;;  %v9113_v52 = vld [vmem:[%s12407_s4 + $0x88] sm:$0xff] }
 0x355   :  { %v2302_v15 = vpop.xlane.xlu0 %2301  ;;  %12724 = vst [vmem:[#allocation89_spill] sm:$0xff] %v9113_v52  ;;  %v9116_v6 = vmul.f32 %v9113_v52, %v7121_v25  ;;  %v2479_v63 = vmul.f32 %v9096_v39, %v9096_v39 }
 0x356   :  { %3031 = vperm.xlu0 %6703, %v9077_v27   ;;  %v2437_v51 = vmul.f32 0.0051020407, %v2302_v15  ;;  %7128 = vrsqrt.f32 %v2602_v12  ;;  %v2480_v60 = vmul.f32 %v9098_v62, %v9098_v62  ;;  %v2604_v30 = vadd.f32 1e-05, %v2562_v48 }
 0x357   :  { %v2306_v20 = vpop.xlane.xlu1 %2305  ;;  %v2724_v25 = vmul.f32 %v9116_v6, %v8974_v32 }
 0x358   :  { %2795 = vrot.lane.b32.xlu1 %v2709_v3, %s7341_s13  ;;  %v2438_v2 = vmul.f32 0.0051020407, %v2306_v20  ;;  %v2603_v3 = vadd.f32 1e-05, %v2561_v38  ;;  %v2521_v10 = vsub.f32 %v2437_v51, %v2479_v63  ;;  %v7123_v20 = vpop.eup %7122  ;;  %v9136_v51 = vld [vmem:[%s12407_s4 + $0x90] sm:$0xff] }
 0x359   :  { %v2058_v17 = vpop.xlane.xlu0 %2057  ;;  %v7125_v0 = vpop.eup %7124  ;;  %12725 = vst [vmem:[#allocation90_spill] sm:$0xff] %v9136_v51  ;;  %v9139_v48 = vmul.f32 %v9136_v51, %v7123_v20 }
 0x35a   :  { %2821 = vrot.lane.b32.xlu0 %v2722_v49, %s7341_s13  ;;  %v2522_v12 = vsub.f32 %v2438_v2, %v2480_v60  ;;  %v9128_v49 = vmul.f32 0.0051020407, %v2058_v17  ;;  %7130 = vrsqrt.f32 %v2603_v3 }
 0x35b   :  { %v2062_v24 = vpop.xlane.xlu1 %2061  ;;  %7132 = vrsqrt.f32 %v2604_v30 }
 0x35c   :  { %2976 = vperm.xlu1 %6702, %v8900_v19   ;;  %v2711_v19 = vmul.f32 %v8917_v26, %v8850_v41  ;;  %v9130_v52 = vmul.f32 0.0051020407, %v2062_v24  ;;  %v2563_v41 = vmax.f32 %v2521_v10, 0.0  ;;  %v2564_v32 = vmax.f32 %v2522_v12, 0.0  ;;  %v9145_v24 = vld [vmem:[%s12407_s4 + $0x98] sm:$0xff]  ;;  %v7127_v10 = vpop.eup %7126 }
 0x35d   :  { %v2310_v15 = vpop.xlane.xlu0 %2309  ;;  %12726 = vst [vmem:[#allocation91_spill] sm:$0xff] %v9145_v24  ;;  %v9148_v2 = vmul.f32 %v9145_v24, %v7125_v0  ;;  %v2481_v63 = vmul.f32 %v9128_v49, %v9128_v49 }
 0x35e   :  { %3041 = vperm.xlu0 %6703, %v9107_v28   ;;  %v2439_v26 = vmul.f32 0.0051020407, %v2310_v15  ;;  %v2482_v60 = vmul.f32 %v9130_v52, %v9130_v52 }
 0x35f   :  { %v2314_v31 = vpop.xlane.xlu1 %2313  ;;  %v2726_v30 = vmul.f32 %v9148_v2, %v9003_v16 }
 0x360   :  { %2799 = vrot.lane.b32.xlu1 %v2711_v19, %s7341_s13  ;;  %v2440_v17 = vmul.f32 0.0051020407, %v2314_v31  ;;  %v2605_v19 = vadd.f32 1e-05, %v2563_v41  ;;  %v2523_v3 = vsub.f32 %v2439_v26, %v2481_v63  ;;  %v2606_v31 = vadd.f32 1e-05, %v2564_v32 }
 0x361   :  { %v2066_v50 = vpop.xlane.xlu0 %2065  ;;  %v9168_v41 = vld [vmem:[%s12407_s4 + $0xa0] sm:$0xff] }
 0x362   :  { %2825 = vrot.lane.b32.xlu0 %v2724_v25, %s7341_s13  ;;  %v2524_v20 = vsub.f32 %v2440_v17, %v2482_v60  ;;  %v9160_v25 = vmul.f32 0.0051020407, %v2066_v50  ;;  %7134 = vrsqrt.f32 %v2605_v19  ;;  %12727 = vst [vmem:[#allocation92_spill] sm:$0xff] %v9168_v41  ;;  %v9171_v26 = vmul.f32 %v9168_v41, %v7127_v10 }
 0x363   :  { %v2070_v38 = vpop.xlane.xlu1 %2069  ;;  %v7129_v12 = vpop.eup %7128  ;;  %7136 = vrsqrt.f32 %v2606_v31 }
 0x364   :  { %2986 = vperm.xlu1 %6702, %v8925_v13   ;;  %v2713_v13 = vmul.f32 %v8951_v42, %v8858_v57  ;;  %v9162_v51 = vmul.f32 0.0051020407, %v2070_v38  ;;  %v2565_v57 = vmax.f32 %v2523_v3, 0.0  ;;  %v2566_v16 = vmax.f32 %v2524_v20, 0.0  ;;  %v9177_v38 = vld [vmem:[%s12407_s4 + $0xa8] sm:$0xff] }
 0x365   :  { %v2318_v15 = vpop.xlane.xlu0 %2317  ;;  %v9180_v32 = vmul.f32 %v9177_v38, %v7129_v12  ;;  %v2483_v17 = vmul.f32 %v9160_v25, %v9160_v25 }
 0x366   :  { %3051 = vperm.xlu0 %6703, %v9139_v48   ;;  %v2441_v42 = vmul.f32 0.0051020407, %v2318_v15  ;;  %v2484_v15 = vmul.f32 %v9162_v51, %v9162_v51  ;;  %v2607_v60 = vadd.f32 1e-05, %v2565_v57  ;;  %v2608_v3 = vadd.f32 1e-05, %v2566_v16 }
 0x367   :  { %v2322_v0 = vpop.xlane.xlu1 %2321  ;;  %v7131_v19 = vpop.eup %7130  ;;  %v2728_v31 = vmul.f32 %v9180_v32, %v9031_v47  ;;  %v9205_v47 = vld [vmem:[%s12407_s4 + $0xb8] sm:$0xff] }
 0x368   :  { %2803 = vrot.lane.b32.xlu1 %v2713_v13, %s7341_s13  ;;  %v2442_v50 = vmul.f32 0.0051020407, %v2322_v0  ;;  %v2525_v13 = vsub.f32 %v2441_v42, %v2483_v17  ;;  %v7133_v20 = vpop.eup %7132  ;;  %7138 = vrsqrt.f32 %v2607_v60 }
 0x369   :  { %v2074_v24 = vpop.xlane.xlu0 %2073  ;;  %7140 = vrsqrt.f32 %v2608_v3  ;;  %v9208_v57 = vmul.f32 %v9205_v47, %v7133_v20  ;;  %v2719_v20 = vmul.f32 %v9040_v34, %v8909_v7 }
 0x36a   :  { %2829 = vrot.lane.b32.xlu0 %v2726_v30, %s7341_s13  ;;  %v2526_v10 = vsub.f32 %v2442_v50, %v2484_v15  ;;  %v2567_v12 = vmax.f32 %v2525_v13, 0.0 }
 0x36b   :  { %v2078_v16 = vpop.xlane.xlu1 %2077 }
 0x36c   :  { %2996 = vperm.xlu1 %6702, %v8959_v8   ;;  %v2715_v8 = vmul.f32 %v8984_v21, %v8866_v5  ;;  %v2568_v0 = vmax.f32 %v2526_v10, 0.0  ;;  %v9197_v5 = vld [vmem:[%s12407_s4 + $0xb0] sm:$0xff]  ;;  %v2609_v50 = vadd.f32 1e-05, %v2567_v12 }
 0x36d   :  { %v2326_v63 = vpop.xlane.xlu0 %2325  ;;  %12728 = vst [vmem:[#allocation93_spill] sm:$0xff] %v9197_v5  ;;  %v9200_v21 = vmul.f32 %v9197_v5, %v7131_v19  ;;  %v9219_v19 = vmul.f32 0.0051020407, %v2074_v24  ;;  %v9238_v24 = vmul.f32 0.0051020407, %v2078_v16 }
 0x36e   :  { %3061 = vperm.xlu0 %6703, %v9171_v26   ;;  %v2610_v15 = vadd.f32 1e-05, %v2568_v0  ;;  %7142 = vrsqrt.f32 %v2609_v50 }
 0x36f   :  { %v7135_v17 = vpop.eup %7134  ;;  %v2330_v3 = vpop.xlane.xlu1 %2329 }
 0x370   :  { %2807 = vrot.lane.b32.xlu1 %v2715_v8, %s7341_s13  ;;  %v2730_v8 = vmul.f32 %v9208_v57, %v9062_v14  ;;  %v7137_v60 = vpop.eup %7136  ;;  %7144 = vrsqrt.f32 %v2610_v15  ;;  %v9233_v14 = vld [vmem:[%s12407_s4 + $0xc8] sm:$0xff]  ;;  %v2444_v12 = vmul.f32 0.0051020407, %v2330_v3 }
 0x371   :  { %v2082_v30 = vpop.xlane.xlu0 %2081  ;;  %v9236_v10 = vmul.f32 %v9233_v14, %v7137_v60  ;;  %v9267_v60 = vld [vmem:[%s12407_s4 + $0xd8] sm:$0xff] }
 0x372   :  { %2833 = vrot.lane.b32.xlu0 %v2728_v31, %s7341_s13 }
 0x373   :  { %v2732_v50 = vmul.f32 %v9236_v10, %v9098_v62  ;;  %v2086_v34 = vpop.xlane.xlu1 %2085 }
 0x374   :  { %3006 = vperm.xlu1 %6702, %v8992_v9   ;;  %v2717_v9 = vmul.f32 %v9012_v23, %v8881_v44  ;;  %v9225_v44 = vld [vmem:[%s12407_s4 + $0xc0] sm:$0xff] }
 0x375   :  { %v2334_v42 = vpop.xlane.xlu0 %2333  ;;  %12729 = vst [vmem:[#allocation94_spill] sm:$0xff] %v9225_v44  ;;  %v9228_v23 = vmul.f32 %v9225_v44, %v7135_v17  ;;  %v7139_v0 = vpop.eup %7138  ;;  %v2486_v17 = vmul.f32 %v9238_v24, %v9238_v24  ;;  %v9286_v44 = vmul.f32 0.0051020407, %v2086_v34  ;;  %v9301_v34 = vld [vmem:[%s12407_s4 + $0xe8] sm:$0xff] }
 0x376   :  { %3071 = vperm.xlu0 %6703, %v9200_v21   ;;  %v7141_v16 = vpop.eup %7140 }
 0x377   :  { %v2528_v7 = vsub.f32 %v2444_v12, %v2486_v17  ;;  %v9270_v3 = vmul.f32 %v9267_v60, %v7141_v16  ;;  %v2721_v12 = vmul.f32 %v9077_v27, %v8937_v4  ;;  %v2338_v41 = vpop.xlane.xlu1 %2337 }
 0x378   :  { %2811 = vrot.lane.b32.xlu1 %v2717_v9, %s7341_s13  ;;  %v2485_v9 = vmul.f32 %v9219_v19, %v9219_v19 }
 0x379   :  { %v9216_v13 = vpop.xlane.xlu0 %2089  ;;  %v2734_v17 = vmul.f32 %v9270_v3, %v9130_v52  ;;  %v9293_v52 = vld [vmem:[%s12407_s4 + $0xe0] sm:$0xff] }
 0x37a   :  { %2837 = vrot.lane.b32.xlu0 %v2730_v8, %s7341_s13  ;;  %v9259_v8 = vld [vmem:[%s12407_s4 + $0xd0] sm:$0xff]  ;;  %12731 = vst [vmem:[#allocation96_spill] sm:$0xff] %v9293_v52 }
 0x37b   :  { %12730 = vst [vmem:[#allocation95_spill] sm:$0xff] %v9259_v8  ;;  %v9262_v62 = vmul.f32 %v9259_v8, %v7139_v0  ;;  %v2570_v0 = vmax.f32 %v2528_v7, 0.0  ;;  %v12511_v8 = vmov 2  }
 0x37c   :  { %3016 = vperm.xlu1 %6702, %v9020_v43   ;;  %v2443_v43 = vmul.f32 0.0051020407, %v2326_v63 }
 0x37d   :  { %v9240_v31 = vpop.xlane.xlu0 %2341  ;;  %v2612_v4 = vadd.f32 1e-05, %v2570_v0 }
 0x37e   :  { %3081 = vperm.xlu0 %6703, %v9228_v23   ;;  %v2527_v15 = vsub.f32 %v2443_v43, %v2485_v9  ;;  %v9272_v43 = vmul.f32 0.0051020407, %v2082_v30  ;;  %v2445_v9 = vmul.f32 0.0051020407, %v2334_v42  ;;  %v2446_v42 = vmul.f32 0.0051020407, %v2338_v41 }
 0x37f   :  { %v2723_v41 = vmul.f32 %v9107_v28, %v8970_v61  ;;  %v2447_v28 = vmul.f32 0.0051020407, %v9240_v31 }
 0x380   :  { %2815 = vrot.lane.b32.xlu1 %v2719_v20, %s7341_s13  ;;  %v2487_v30 = vmul.f32 %v9272_v43, %v9272_v43 }
 0x381   :  { %v9252_v63 = vpop.xlane.xlu0 %2097 }
 0x382   :  { %2841 = vrot.lane.b32.xlu0 %v2732_v50, %s7341_s13  ;;  %v7143_v50 = vpop.eup %7142  ;;  %v2529_v27 = vsub.f32 %v2445_v9, %v2487_v30  ;;  %v9319_v30 = vmul.f32 0.0051020407, %v9216_v13  ;;  %v2725_v13 = vmul.f32 %v9139_v48, %v9001_v53 }
 0x383   :  { %v7145_v16 = vpop.eup %7144  ;;  %v9296_v7 = vmul.f32 %v9293_v52, %v7143_v50  ;;  %v2094_v50 = vpop.xlane.xlu1 %2093 }
 0x384   :  { %3026 = vperm.xlu1 %6702, %v9048_v1   ;;  %v2569_v1 = vmax.f32 %v2527_v15, 0.0  ;;  %v2571_v0 = vmax.f32 %v2529_v27, 0.0 }
 0x385   :  { %v9274_v20 = vpop.xlane.xlu0 %2349 }
 0x386   :  { %3091 = vperm.xlu0 %6703, %v9262_v62   ;;  %v2611_v15 = vadd.f32 1e-05, %v2569_v1  ;;  %v9304_v1 = vmul.f32 %v9301_v34, %v7145_v16 }
 0x387   :  { %v2346_v27 = vpop.xlane.xlu1 %2345 }
 0x388   :  { %2819 = vrot.lane.b32.xlu1 %v2721_v12, %s7341_s13  ;;  %7146 = vrsqrt.f32 %v2611_v15  ;;  %v2613_v15 = vadd.f32 1e-05, %v2571_v0  ;;  %v2448_v0 = vmul.f32 0.0051020407, %v2346_v27 }
 0x389   :  { %v9284_v5 = vpop.xlane.xlu0 %2105  ;;  %7148 = vrsqrt.f32 %v2612_v4 }
 0x38a   :  { %2845 = vrot.lane.b32.xlu0 %v2734_v17, %s7341_s13  ;;  %v2736_v17 = vmul.f32 %v9304_v1, %v9162_v51  ;;  %v2489_v51 = vmul.f32 %v9319_v30, %v9319_v30  ;;  %7150 = vrsqrt.f32 %v2613_v15  ;;  %v9341_v15 = vmul.f32 0.0051020407, %v9252_v63 }
 0x38b   :  { %v2102_v48 = vpop.xlane.xlu1 %2101 }
 0x38c   :  { %3036 = vperm.xlu1 %6702, %v9085_v58   ;;  %v2488_v58 = vmul.f32 %v9286_v44, %v9286_v44 }
 0x38d   :  { %v9306_v12 = vpop.xlane.xlu0 %2357 }
 0x38e   :  { %3101 = vperm.xlu0 %6703, %v9296_v7   ;;  %v2530_v9 = vsub.f32 %v2446_v42, %v2488_v58  ;;  %v9331_v42 = vmul.f32 0.0051020407, %v2094_v50  ;;  %v2727_v50 = vmul.f32 %v9171_v26, %v9029_v45  ;;  %v12732_v26 = vmov 1  }
 0x390   :  { %2823 = vrot.lane.b32.xlu1 %v2723_v41, %s7341_s13  ;;  %v2572_v61 = vmax.f32 %v2530_v9, 0.0  ;;  %v2531_v41 = vsub.f32 %v2447_v28, %v2489_v51  ;;  %v2449_v51 = vmul.f32 0.0051020407, %v9274_v20 }
 0x391   :  { %v9316_v16 = vpop.xlane.xlu0 %2113 }
 0x392   :  { %2849 = vrot.lane.b32.xlu0 %v2736_v17, %s7341_s13  ;;  %v2614_v58 = vadd.f32 1e-05, %v2572_v61  ;;  %v2490_v17 = vmul.f32 %v9331_v42, %v9331_v42  ;;  %v2573_v52 = vmax.f32 %v2531_v41, 0.0 }
 0x393   :  { %6704 = vset.pattern.permute.xlu0 %v12511_v8 }
 0x394   :  { %3046 = vperm.xlu1 %6702, %v9116_v6   ;;  %7152 = vrsqrt.f32 %v2614_v58  ;;  %v2532_v53 = vsub.f32 %v2448_v0, %v2490_v17  ;;  %v2615_v45 = vadd.f32 1e-05, %v2573_v52  ;;  %v2354_v58 = vpop.xlane.xlu1 %2353  ;;  %v9369_v52 = vmul.f32 0.0051020407, %v2102_v48  ;;  %v9378_v17 = vld [vmem:[%s12407_s4 + $0x100] sm:$0xff] }
 0x395   :  { %v9325_v4 = vpop.xlane.xlu0 %2365  ;;  %v7147_v9 = vpop.eup %7146 }
 0x396   :  { %v7149_v8 = vpop.eup %7148  ;;  %v2574_v63 = vmax.f32 %v2532_v53, 0.0  ;;  %7154 = vrsqrt.f32 %v2615_v45  ;;  %v9390_v45 = vmul.f32 0.0051020407, %v9284_v5  ;;  %v2451_v5 = vmul.f32 0.0051020407, %v9306_v12 }
 0x397   :  { %v7151_v41 = vpop.eup %7150 }
 0x398   :  { %2827 = vrot.lane.b32.xlu1 %v2725_v13, %s7341_s13  ;;  %v2491_v13 = vmul.f32 %v9341_v15, %v9341_v15  ;;  %v2616_v0 = vadd.f32 1e-05, %v2574_v63 }
 0x399   :  { %v2792_v31 = vpop.permute.xlu0 %2791 }
 0x39a   :  { %v2917_v6 = vsub.f32 %v8871_v36, %v2792_v31  ;;  %v9346_v36 = vld [vmem:[%s12407_s4 + $0xf0] sm:$0xff]  ;;  %v2533_v31 = vsub.f32 %v2449_v51, %v2491_v13  ;;  %7156 = vrsqrt.f32 %v2616_v0  ;;  %v9397_v51 = vld [vmem:[%s12407_s4 + $0x108] sm:$0xff] }
 0x39b   :  { %v9349_v61 = vmul.f32 %v9346_v36, %v7147_v9  ;;  %v2729_v9 = vmul.f32 %v9200_v21, %v9060_v59  ;;  %v2110_v21 = vpop.xlane.xlu1 %2109 }
 0x39c   :  { %3056 = vperm.xlu1 %6702, %v9148_v2   ;;  %3255 = vperm.xlu0 %6704, %v2917_v6   ;;  %v9354_v2 = vld [vmem:[%s12407_s4 + $0xf8] sm:$0xff]  ;;  %v2450_v6 = vmul.f32 0.0051020407, %v2354_v58  ;;  %v2575_v48 = vmax.f32 %v2533_v31, 0.0 }
 0x39d   :  { %v9357_v28 = vmul.f32 %v9354_v2, %v7149_v8 }
 0x39e   :  { %v2617_v58 = vadd.f32 1e-05, %v2575_v48 }
 0x39f   :  { %v2738_v8 = vmul.f32 %v9357_v28, %v9238_v24  ;;  %v9381_v24 = vmul.f32 %v9378_v17, %v7151_v41  ;;  %v12734_v41 = vmov 2   ;;  %v2362_v31 = vpop.xlane.xlu1 %2361 }
 0x3a0   :  { %2831 = vrot.lane.b32.xlu1 %v2727_v50, %s7341_s13  ;;  %6705 = vset.pattern.permute.xlu0 %v12732_v26  ;;  %7158 = vrsqrt.f32 %v2617_v58 }
 0x3a1   :  { %v9362_v27 = vpop.permute.xlu0 %2966  ;;  %3111 = vperm.xlu0 %6705, %v9349_v61   ;;  %v7153_v53 = vpop.eup %7152 }
 0x3a2   :  { %12733 = vst [vmem:[#allocation97_spill] sm:$0xff] %v9362_v27  ;;  %v9400_v13 = vmul.f32 %v9397_v51, %v7153_v53 }
 0x3a4   :  { %3066 = vperm.xlu1 %6702, %v9180_v32   ;;  %v2492_v32 = vmul.f32 %v9369_v52, %v9369_v52 }
 0x3a5   :  { %v2798_v20 = vpop.permute.xlu0 %2797  ;;  %2853 = vrot.lane.b32.xlu0 %v2738_v8, %s7341_s13 }
 0x3a6   :  { %v2534_v59 = vsub.f32 %v2450_v6, %v2492_v32  ;;  %v2920_v63 = vsub.f32 %v8897_v40, %v2798_v20  ;;  %v2731_v40 = vmul.f32 %v9228_v23, %v9096_v39  ;;  %v2740_v20 = vmul.f32 %v9400_v13, %v9286_v44  ;;  %v7155_v6 = vpop.eup %7154  ;;  %v9421_v23 = vld [vmem:[%s12407_s4 + $0x110] sm:$0xff] }
 0x3a7   :  { %v2452_v39 = vmul.f32 0.0051020407, %v2362_v31  ;;  %v9424_v44 = vmul.f32 %v9421_v23, %v7155_v6 }
 0x3a8   :  { %2835 = vrot.lane.b32.xlu1 %v2729_v9, %s7341_s13  ;;  %v2576_v0 = vmax.f32 %v2534_v59, 0.0  ;;  %v9411_v9 = vmul.f32 0.0051020407, %v2110_v21  ;;  %v7157_v21 = vpop.eup %7156 }
 0x3a9   :  { %v9386_v50 = vpop.permute.xlu0 %2981  ;;  %3121 = vperm.xlu0 %6705, %v9381_v24  }
 0x3aa   :  { %v2618_v12 = vadd.f32 1e-05, %v2576_v0  ;;  %v2494_v48 = vmul.f32 %v9411_v9, %v9411_v9  ;;  %v9433_v0 = vmul.f32 0.0051020407, %v9316_v16 }
 0x3ac   :  { %3076 = vperm.xlu1 %6702, %v9208_v57   ;;  %v2493_v57 = vmul.f32 %v9390_v45, %v9390_v45  ;;  %7160 = vrsqrt.f32 %v2618_v12  ;;  %v2536_v58 = vsub.f32 %v2452_v39, %v2494_v48  ;;  %v2118_v12 = vpop.xlane.xlu1 %2117 }
 0x3ad   :  { %v2802_v8 = vpop.permute.xlu0 %2801  ;;  %6709 = vset.pattern.permute.xlu0 %v12734_v41  ;;  %v7159_v6 = vpop.eup %7158 }
 0x3ae   :  { %3270 = vperm.xlu0 %6709, %v2920_v63   ;;  %v2535_v53 = vsub.f32 %v2451_v5, %v2493_v57  ;;  %v2922_v5 = vsub.f32 %v8922_v54, %v2802_v8  ;;  %v9441_v57 = vld [vmem:[%s12407_s4 + $0x118] sm:$0xff]  ;;  %v2495_v54 = vmul.f32 %v9433_v0, %v9433_v0 }
 0x3af   :  { %v9444_v31 = vmul.f32 %v9441_v57, %v7157_v21 }
 0x3b0   :  { %2839 = vrot.lane.b32.xlu1 %v2731_v40, %s7341_s13  ;;  %v2577_v63 = vmax.f32 %v2535_v53, 0.0  ;;  %v2735_v53 = vmul.f32 %v9296_v7, %v9160_v25  ;;  %v9469_v7 = vpop.permute.xlu1 %2961 }
 0x3b1   :  { %v9413_v32 = vpop.permute.xlu0 %2991  ;;  %v2742_v8 = vmul.f32 %v9444_v31, %v9331_v42  ;;  %12735 = vst [vmem:[#allocation98_spill] sm:$0xff] %v9469_v7 }
 0x3b2   :  { %2857 = vrot.lane.b32.xlu0 %v2740_v20, %s7341_s13  ;;  %v2619_v20 = vadd.f32 1e-05, %v2577_v63  ;;  %v9472_v63 = vmul.f32 0.0051020407, %v2118_v12 }
 0x3b3   :  { %6712 = vset.pattern.permute.xlu0 %v12732_v26 }
 0x3b4   :  { %3086 = vperm.xlu1 %6702, %v9236_v10   ;;  %v2733_v10 = vmul.f32 %v9262_v62, %v9128_v49  ;;  %v2578_v49 = vmax.f32 %v2536_v58, 0.0  ;;  %v2453_v62 = vmul.f32 0.0051020407, %v9325_v4  ;;  %7162 = vrsqrt.f32 %v2619_v20  ;;  %v9463_v4 = vld [vmem:[%s12407_s4 + $0x120] sm:$0xff]  ;;  %v9482_v20 = vld [vmem:[%s12407_s4 + $0x128] sm:$0xff] }
 0x3b5   :  { %v2806_v59 = vpop.permute.xlu0 %2805  ;;  %v9466_v42 = vmul.f32 %v9463_v4, %v7159_v6 }
 0x3b6   :  { %3131 = vperm.xlu0 %6712, %v9424_v44   ;;  %v2620_v39 = vadd.f32 1e-05, %v2578_v49  ;;  %v2537_v48 = vsub.f32 %v2453_v62, %v2495_v54  ;;  %v2924_v58 = vsub.f32 %v8956_v56, %v2806_v59  ;;  %v2496_v56 = vmul.f32 %v9472_v63, %v9472_v63 }
 0x3b8   :  { %2843 = vrot.lane.b32.xlu1 %v2733_v10, %s7341_s13  ;;  %7164 = vrsqrt.f32 %v2620_v39  ;;  %v2579_v25 = vmax.f32 %v2537_v48, 0.0  ;;  %v9504_v48 = vld [vmem:[%s12407_s4 + $0x130] sm:$0xff] }
 0x3b9   :  { %v9436_v40 = vpop.permute.xlu0 %3001  ;;  %v7161_v21 = vpop.eup %7160 }
 0x3ba   :  { %6713 = vset.pattern.permute.xlu0 %v12734_v41  ;;  %v9485_v49 = vmul.f32 %v9482_v20, %v7161_v21  ;;  %v2621_v62 = vadd.f32 1e-05, %v2579_v25 }
 0x3bb   :  { %3280 = vperm.xlu0 %6713, %v2922_v5   ;;  %v2737_v5 = vmul.f32 %v9349_v61, %v9219_v19 }
 0x3bc   :  { %3096 = vperm.xlu1 %6702, %v9270_v3   ;;  %v2744_v61 = vmul.f32 %v9485_v49, %v9369_v52  ;;  %7166 = vrsqrt.f32 %v2621_v62  ;;  %v9519_v62 = vld [vmem:[%s12407_s4 + $0x138] sm:$0xff] }
 0x3bd   :  { %v2810_v16 = vpop.permute.xlu0 %2809 }
 0x3bf   :  { %2861 = vrot.lane.b32.xlu0 %v2742_v8, %s7341_s13 }
 0x3c0   :  { %2847 = vrot.lane.b32.xlu1 %v2735_v53, %s7341_s13  ;;  %6716 = vset.pattern.permute.xlu0 %v12732_v26 }
 0x3c1   :  { %v9458_v3 = vpop.permute.xlu0 %3011  ;;  %v7163_v54 = vpop.eup %7162 }
 0x3c2   :  { %v9507_v52 = vmul.f32 %v9504_v48, %v7163_v54 }
 0x3c3   :  { %3141 = vperm.xlu0 %6716, %v9466_v42  }
 0x3c4   :  { %3106 = vperm.xlu1 %6702, %v9304_v1  }
 0x3c5   :  { %v9474_v10 = vpop.permute.xlu0 %2813  ;;  %v7165_v25 = vpop.eup %7164 }
 0x3c7   :  { %6717 = vset.pattern.permute.xlu0 %v12734_v41 }
 0x3c8   :  { %2851 = vrot.lane.b32.xlu1 %v2737_v5, %s7341_s13  ;;  %3290 = vperm.xlu0 %6717, %v2924_v58   ;;  %v2370_v1 = vpop.xlane.xlu1 %2369  ;;  %v2926_v5 = vsub.f32 %v8989_v29, %v2810_v16 }
 0x3c9   :  { %v2454_v59 = vmul.f32 0.0051020407, %v2370_v1  ;;  %v9491_v19 = vpop.permute.xlu0 %3021  ;;  %6706 = vset.pattern.permute.xlu1 %v12734_v41  ;;  %v9522_v1 = vmul.f32 %v9519_v62, %v7165_v25 }
 0x3cb   :  { %v2538_v8 = vsub.f32 %v2454_v59, %v2496_v56  ;;  %v2746_v16 = vmul.f32 %v9522_v1, %v9411_v9  ;;  %v2739_v9 = vmul.f32 %v9381_v24, %v9272_v43 }
 0x3cc   :  { %2865 = vrot.lane.b32.xlu0 %v2744_v61, %s7341_s13  ;;  %v2794_v6 = vpop.permute.xlu1 %2793  ;;  %v7167_v61 = vpop.eup %7166 }
 0x3cd   :  { %v2580_v12 = vmax.f32 %v2538_v8, 0.0  ;;  %v2918_v53 = vsub.f32 %v8889_v55, %v2794_v6  ;;  %v9498_v39 = vpop.permute.xlu0 %2817  ;;  %6720 = vset.pattern.permute.xlu0 %v12732_v26 }
 0x3cf   :  { %v2622_v21 = vadd.f32 1e-05, %v2580_v12  ;;  %3260 = vperm.xlu1 %6706, %v2918_v53  }
 0x3d0   :  { %3151 = vperm.xlu0 %6720, %v9507_v52   ;;  %v9510_v58 = vpop.permute.xlu1 %2971 }
 0x3d1   :  { %7168 = vrsqrt.f32 %v2622_v21  ;;  %v9512_v55 = vpop.permute.xlu0 %3031  ;;  %v9556_v21 = vld [vmem:[%s12407_s4 + $0x148] sm:$0xff] }
 0x3d3   :  { %6707 = vset.pattern.permute.xlu1 %v12732_v26 }
 0x3d4   :  { %6721 = vset.pattern.permute.xlu0 %v12734_v41  ;;  %3116 = vperm.xlu1 %6707, %v9357_v28   ;;  %v2796_v56 = vpop.permute.xlu1 %2795  ;;  %v9541_v28 = vld [vmem:[%s12407_s4 + $0x140] sm:$0xff] }
 0x3d5   :  { %v9526_v59 = vpop.permute.xlu0 %2821  ;;  %3300 = vperm.xlu0 %6721, %v2926_v5   ;;  %v2919_v29 = vsub.f32 %v9068_v22, %v2796_v56  ;;  %v9544_v22 = vmul.f32 %v9541_v28, %v7167_v61  ;;  %v7296_v56 = vld [vmem:[%s12407_s4 + $0x20] sm:$0xff] }
 0x3d8   :  { %6708 = vset.pattern.permute.xlu1 %v12734_v41  ;;  %v9532_v54 = vpop.permute.xlu1 %2976 }
 0x3d9   :  { %v9534_v8 = vpop.permute.xlu0 %3041  ;;  %2869 = vrot.lane.b32.xlu0 %v2746_v16, %s7341_s13  ;;  %3265 = vperm.xlu1 %6708, %v2919_v29  }
 0x3da   :  { %12736 = vst [vmem:[#allocation99_spill] sm:$0xff] %v9534_v8  ;;  %6724 = vset.pattern.permute.xlu0 %v12732_v26 }
 0x3dc   :  { %v2800_v6 = vpop.permute.xlu1 %2799 }
 0x3dd   :  { %v9548_v12 = vpop.permute.xlu0 %2825  ;;  %3161 = vperm.xlu0 %6724, %v9544_v22   ;;  %2855 = vrot.lane.b32.xlu1 %v2739_v9, %s7341_s13  ;;  %v2921_v29 = vsub.f32 %v7296_v56, %v2800_v6 }
 0x3de   :  { %v7169_v53 = vpop.eup %7168  ;;  %6710 = vset.pattern.permute.xlu1 %v12732_v26 }
 0x3df   :  { %v9559_v25 = vmul.f32 %v9556_v21, %v7169_v53 }
 0x3e0   :  { %v9561_v5 = vpop.permute.xlu1 %2986 }
 0x3e1   :  { %v9563_v43 = vpop.permute.xlu0 %3051  ;;  %3126 = vperm.xlu1 %6710, %v9400_v13   ;;  %v2748_v24 = vmul.f32 %v9559_v25, %v9472_v63  ;;  %6726 = vset.pattern.permute.xlu0 %v12734_v41  ;;  %v2741_v13 = vmul.f32 %v9424_v44, %v9319_v30 }
 0x3e2   :  { %12737 = vst [vmem:[#allocation100_spill] sm:$0xff] %v9563_v43  ;;  %v12799_v43 = vld [vmem:[#allocation28_spill] sm:$0xff] }
 0x3e3   :  { %2873 = vrot.lane.b32.xlu0 %v2748_v24, %s7341_s13 }
 0x3e4   :  { %v2804_v16 = vpop.permute.xlu1 %2803 }
 0x3e5   :  { %v9573_v61 = vpop.permute.xlu0 %2829  ;;  %6711 = vset.pattern.permute.xlu1 %v12734_v41  ;;  %v2923_v56 = vsub.f32 %v8948_v37, %v2804_v16 }
 0x3e6   :  { %3275 = vperm.xlu1 %6711, %v2921_v29  }
 0x3e8   :  { %v9576_v9 = vpop.permute.xlu1 %2996 }
 0x3e9   :  { %v9580_v63 = vpop.permute.xlu0 %3061 }
 0x3ea   :  { %12738 = vst [vmem:[#allocation101_spill] sm:$0xff] %v9580_v63  ;;  %2859 = vrot.lane.b32.xlu1 %v2741_v13, %s7341_s13  ;;  %v2743_v13 = vmul.f32 %v9466_v42, %v9341_v15  ;;  %v2745_v42 = vmul.f32 %v9507_v52, %v9390_v45  ;;  %v2928_v52 = vsub.f32 %v9017_v35, %v9474_v10  ;;  %v12746_v10 = vld [vmem:[#allocation87_spill] sm:$0xff] }
 0x3eb   :  { %6714 = vset.pattern.permute.xlu1 %v12732_v26 }
 0x3ec   :  { %v2808_v53 = vpop.permute.xlu1 %2807 }
 0x3ed   :  { %v9584_v24 = vpop.permute.xlu0 %2833 }
 0x3ee   :  { %3136 = vperm.xlu1 %6714, %v9444_v31  }
 0x3f0   :  { %v9587_v6 = vpop.permute.xlu1 %3006 }
 0x3f1   :  { %v9590_v29 = vpop.permute.xlu0 %3071 }
 0x3f2   :  { %12739 = vst [vmem:[#allocation102_spill] sm:$0xff] %v9590_v29  ;;  %6715 = vset.pattern.permute.xlu1 %v12734_v41 }
 0x3f3   :  { %3285 = vperm.xlu1 %6715, %v2923_v56   ;;  %v2925_v56 = vsub.f32 %v8981_v11, %v2808_v53 }
 0x3f4   :  { %v2812_v30 = vpop.permute.xlu1 %2811 }
 0x3f5   :  { %v9593_v44 = vpop.permute.xlu0 %2837 }
 0x3f7   :  { %2863 = vrot.lane.b32.xlu1 %v2743_v13, %s7341_s13 }
 0x3f8   :  { %v9598_v63 = vpop.permute.xlu1 %3016  ;;  %6718 = vset.pattern.permute.xlu1 %v12732_v26 }
 0x3f9   :  { %v9601_v31 = vpop.permute.xlu0 %3081 }
 0x3fa   :  { %12740 = vst [vmem:[#allocation103_spill] sm:$0xff] %v9601_v31 }
 0x3fb   :  { %3146 = vperm.xlu1 %6718, %v9485_v49  }
 0x3fc   :  { %v2816_v37 = vpop.permute.xlu1 %2815 }
 0x3fd   :  { %v9604_v16 = vpop.permute.xlu0 %2841  ;;  %v2929_v53 = vsub.f32 %v9037_v18, %v2816_v37  ;;  %v12744_v18 = vld [vmem:[#allocation89_spill] sm:$0xff] }
 0x3fe   :  { %v2934_v37 = vsub.f32 %v12744_v18, %v9548_v12 }
 0x3ff   :  { %6719 = vset.pattern.permute.xlu1 %v12734_v41 }
 0x400   :  { %3295 = vperm.xlu1 %6719, %v2925_v56   ;;  %v9608_v29 = vpop.permute.xlu1 %3026  ;;  %v2927_v56 = vsub.f32 %v9009_v46, %v2812_v30 }
 0x401   :  { %v9610_v15 = vpop.permute.xlu0 %3091  ;;  %v3196_v8 = vmul.f32 %v9608_v29, %v12799_v43 }
 0x402   :  { %12741 = vst [vmem:[#allocation104_spill] sm:$0xff] %v9610_v15 }
 0x404   :  { %2867 = vrot.lane.b32.xlu1 %v2745_v42, %s7341_s13  ;;  %v2820_v13 = vpop.permute.xlu1 %2819 }
 0x405   :  { %v2931_v49 = vsub.f32 %v9074_v33, %v2820_v13  ;;  %6722 = vset.pattern.permute.xlu1 %v12732_v26  ;;  %v2846_v31 = vpop.permute.xlu0 %2845  ;;  %v2932_v13 = vsub.f32 %v12746_v10, %v9526_v59 }
 0x407   :  { %3325 = vperm.xlu0 %6726, %v2931_v49  }
 0x408   :  { %3156 = vperm.xlu1 %6722, %v9522_v1   ;;  %v9618_v11 = vpop.permute.xlu1 %3036  ;;  %v2747_v1 = vmul.f32 %v9544_v22, %v9433_v0  ;;  %v12748_v22 = vld [vmem:[#allocation86_spill] sm:$0xff] }
 0x409   :  { %v9625_v33 = vpop.permute.xlu0 %3101  ;;  %v2930_v12 = vsub.f32 %v12748_v22, %v9498_v39 }
 0x40a   :  { %12742 = vst [vmem:[#allocation105_spill] sm:$0xff] %v9625_v33 }
 0x40b   :  { %3315 = vperm.xlu0 %6726, %v2929_v53   ;;  %v12750_v53 = vld [vmem:[#allocation88_spill] sm:$0xff] }
 0x40c   :  { %6723 = vset.pattern.permute.xlu1 %v12734_v41  ;;  %v2824_v45 = vpop.permute.xlu1 %2823 }
 0x40d   :  { %3305 = vperm.xlu1 %6723, %v2927_v56   ;;  %v2850_v46 = vpop.permute.xlu0 %2849  ;;  %v2933_v56 = vsub.f32 %v12750_v53, %v2824_v45 }
 0x40f   :  { %3310 = vperm.xlu0 %6726, %v2928_v52  }
 0x410   :  { %v9629_v42 = vpop.permute.xlu1 %3046 }
 0x411   :  { %12743 = vst [vmem:[#allocation106_spill] sm:$0xff] %v9629_v42  ;;  %2871 = vrot.lane.b32.xlu1 %v2747_v1, %s7341_s13  ;;  %v12752_v1 = vld [vmem:[#allocation90_spill] sm:$0xff] }
 0x412   :  { %6725 = vset.pattern.permute.xlu1 %v12732_v26 }
 0x413   :  { %3340 = vperm.xlu0 %6726, %v2934_v37  }
 0x414   :  { %v2828_v30 = vpop.permute.xlu1 %2827 }
 0x415   :  { %3166 = vperm.xlu1 %6725, %v9559_v25   ;;  %v2935_v59 = vsub.f32 %v12752_v1, %v2828_v30 }
 0x417   :  { %v9636_v35 = vpop.permute.xlu0 %3255 }
 0x418   :  { %12745 = vst [vmem:[#allocation89_spill] sm:$0xff] %v9636_v35  ;;  %v9640_v0 = vpop.permute.xlu1 %3056 }
 0x419   :  { %12747 = vst [vmem:[#allocation87_spill] sm:$0xff] %v9640_v0  ;;  %6727 = vset.pattern.permute.xlu1 %v12734_v41 }
 0x41a   :  { %3330 = vperm.xlu1 %6727, %v2932_v13   ;;  %v2946_v13 = vsub.f32 %v9301_v34, %v2850_v46  ;;  %v2940_v34 = vsub.f32 %v9205_v47, %v9593_v44  ;;  %v12760_v47 = vld [vmem:[#allocation96_spill] sm:$0xff] }
 0x41c   :  { %v9645_v49 = vpop.permute.xlu0 %3111  ;;  %v2832_v26 = vpop.permute.xlu1 %2831 }
 0x41d   :  { %12749 = vst [vmem:[#allocation86_spill] sm:$0xff] %v9645_v49  ;;  %v12795_v49 = vld [vmem:[#allocation25_spill] sm:$0xff] }
 0x41e   :  { %3320 = vperm.xlu1 %6727, %v2930_v12   ;;  %v2944_v12 = vsub.f32 %v9267_v60, %v2846_v31  ;;  %v2938_v60 = vsub.f32 %v9177_v38, %v9584_v24  ;;  %v12762_v38 = vld [vmem:[#allocation95_spill] sm:$0xff] }
 0x420   :  { %v2854_v25 = vpop.permute.xlu0 %2853  ;;  %v9648_v52 = vpop.permute.xlu1 %3066 }
 0x421   :  { %12751 = vst [vmem:[#allocation88_spill] sm:$0xff] %v9648_v52  ;;  %v2948_v41 = vsub.f32 %v9354_v2, %v2854_v25  ;;  %v2942_v2 = vsub.f32 %v9233_v14, %v9604_v16  ;;  %v12783_v52 = vld [vmem:[#allocation18_spill] sm:$0xff] }
 0x422   :  { %3335 = vperm.xlu1 %6727, %v2933_v56  }
 0x424   :  { %v9651_v18 = vpop.permute.xlu0 %3121  ;;  %v2836_v37 = vpop.permute.xlu1 %2835 }
 0x425   :  { %12753 = vst [vmem:[#allocation90_spill] sm:$0xff] %v9651_v18 }
 0x426   :  { %3345 = vperm.xlu1 %6727, %v2935_v59  }
 0x428   :  { %v9654_v10 = vpop.permute.xlu1 %3076 }
 0x429   :  { %12754 = vst [vmem:[#allocation107_spill] sm:$0xff] %v9654_v10  ;;  %v9656_v39 = vpop.permute.xlu0 %3270  ;;  %v3186_v10 = vmul.f32 %v9436_v40, %v12783_v52 }
 0x42a   :  { %3410 = vperm.xlu1 %6727, %v2948_v41  }
 0x42c   :  { %v2840_v45 = vpop.permute.xlu1 %2839 }
 0x42d   :  { %v2858_v22 = vpop.permute.xlu0 %2857 }
 0x42e   :  { %3400 = vperm.xlu1 %6727, %v2946_v13  }
 0x430   :  { %v9660_v53 = vpop.permute.xlu1 %3086 }
 0x431   :  { %12755 = vst [vmem:[#allocation108_spill] sm:$0xff] %v9660_v53  ;;  %v9662_v30 = vpop.permute.xlu0 %3131  ;;  %v12789_v53 = vld [vmem:[#allocation6_spill] sm:$0xff] }
 0x432   :  { %12756 = vst [vmem:[#allocation109_spill] sm:$0xff] %v9662_v30  ;;  %3390 = vperm.xlu1 %6727, %v2944_v12   ;;  %v9782_v33 = vmul.f32 %v9510_v58, %v12789_v53  ;;  %v3577_v53 = vld [vmem:[%s12411_s2 + $0xf0] sm:$0xff] }
 0x434   :  { %v2844_v56 = vpop.permute.xlu1 %2843 }
 0x435   :  { %v2943_v24 = vsub.f32 %v12762_v38, %v2844_v56 }
 0x436   :  { %v9666_v25 = vpop.permute.xlu0 %3280  ;;  %3380 = vperm.xlu1 %6727, %v2942_v2  }
 0x438   :  { %v9670_v46 = vpop.permute.xlu1 %3096 }
 0x439   :  { %12757 = vst [vmem:[#allocation110_spill] sm:$0xff] %v9670_v46  ;;  %v12785_v46 = vld [vmem:[#allocation23_spill] sm:$0xff] }
 0x43a   :  { %v2862_v1 = vpop.permute.xlu0 %2861  ;;  %3370 = vperm.xlu1 %6727, %v2940_v34  }
 0x43c   :  { %v2848_v31 = vpop.permute.xlu1 %2847 }
 0x43d   :  { %v2945_v44 = vsub.f32 %v12760_v47, %v2848_v31 }
 0x43e   :  { %v9674_v59 = vpop.permute.xlu0 %3141  ;;  %3360 = vperm.xlu1 %6727, %v2938_v60  }
 0x43f   :  { %12758 = vst [vmem:[#allocation111_spill] sm:$0xff] %v9674_v59  ;;  %v12764_v59 = vld [vmem:[#allocation94_spill] sm:$0xff] }
 0x440   :  { %v9676_v41 = vpop.permute.xlu1 %3106  ;;  %v2941_v30 = vsub.f32 %v12764_v59, %v2840_v45 }
 0x441   :  { %12759 = vst [vmem:[#allocation112_spill] sm:$0xff] %v9676_v41  ;;  %v12796_v41 = vld [vmem:[#allocation33_spill] sm:$0xff] }
 0x443   :  { %v9678_v14 = vpop.permute.xlu0 %3290 }
 0x444   :  { %v2852_v16 = vpop.permute.xlu1 %2851 }
 0x445   :  { %v2947_v13 = vsub.f32 %v9346_v36, %v2852_v16 }
 0x447   :  { %v2866_v12 = vpop.permute.xlu0 %2865  ;;  %3405 = vperm.xlu0 %6726, %v2947_v13   ;;  %v12765_v13 = vld [vmem:[#allocation93_spill] sm:$0xff] }
 0x448   :  { %v2939_v31 = vsub.f32 %v12765_v13, %v2836_v37 }
 0x44a   :  { %v9682_v2 = vpop.permute.xlu1 %3260 }
 0x44b   :  { %v9684_v34 = vpop.permute.xlu0 %3151  ;;  %3395 = vperm.xlu0 %6726, %v2945_v44   ;;  %v12767_v44 = vld [vmem:[#allocation92_spill] sm:$0xff] }
 0x44c   :  { %12761 = vst [vmem:[#allocation96_spill] sm:$0xff] %v9684_v34  ;;  %v2937_v56 = vsub.f32 %v12767_v44, %v2832_v26  ;;  %v2954_v26 = vsub.f32 %v9482_v20, %v2866_v12  ;;  %v2952_v44 = vsub.f32 %v9441_v57, %v2862_v1 }
 0x44f   :  { %3385 = vperm.xlu0 %6726, %v2943_v24   ;;  %v9687_v60 = vpop.permute.xlu1 %3116  ;;  %v12769_v24 = vld [vmem:[#allocation91_spill] sm:$0xff] }
 0x450   :  { %12763 = vst [vmem:[#allocation95_spill] sm:$0xff] %v9687_v60  ;;  %v9689_v18 = vpop.permute.xlu0 %3300  ;;  %v2936_v0 = vsub.f32 %v12769_v24, %v9573_v61 }
 0x453   :  { %3375 = vperm.xlu0 %6726, %v2941_v30  }
 0x454   :  { %v2870_v36 = vpop.permute.xlu0 %2869  ;;  %v9692_v16 = vpop.permute.xlu1 %3265 }
 0x455   :  { %v2956_v37 = vsub.f32 %v9519_v62, %v2870_v36  ;;  %v6836_v62 = vld [vmem:[%s12410_s6 + $0x4] ss:$12 sps:$4 sm:$0xff]  }
 0x456   :  { %4335 = vmatprep.mubr.bf16.mxu1 %v6836_v62  ;;  %v12777_v62 = vld [vmem:[#allocation5_spill] sm:$0xff] }
 0x457   :  { %3365 = vperm.xlu0 %6726, %v2939_v31  }
 0x458   :  { %v9695_v47 = vpop.permute.xlu0 %3161  ;;  %v9697_v34 = vpop.permute.xlu1 %2855 }
 0x459   :  { %12766 = vst [vmem:[#allocation94_spill] sm:$0xff] %v9695_v47  ;;  %v12779_v47 = vld [vmem:[#allocation10_spill] sm:$0xff] }
 0x45b   :  { %3355 = vperm.xlu0 %6726, %v2937_v56  }
 0x45c   :  { %v9700_v38 = vpop.permute.xlu1 %3126  ;;  %v2874_v45 = vpop.permute.xlu0 %2873 }
 0x45d   :  { %12768 = vst [vmem:[#allocation93_spill] sm:$0xff] %v9700_v38  ;;  %v2958_v30 = vsub.f32 %v9556_v21, %v2874_v45  ;;  %v2950_v21 = vsub.f32 %v9397_v51, %v2858_v22  ;;  %v12773_v22 = vld [vmem:[#allocation31_spill] sm:$0xff]  ;;  %v9741_v38 = vmul.f32 %v9362_v27, %v12777_v62 }
 0x45e   :  { %v3197_v45 = vmul.f32 %v9512_v55, %v12773_v22  ;;  %v9749_v22 = vmul.f32 %v9386_v50, %v12779_v47  ;;  %v3568_v27 = vld [vmem:[%s12411_s2 + $0xa8] sm:$0xff] }
 0x45f   :  { %3350 = vperm.xlu0 %6726, %v2936_v0  }
 0x461   :  { %v9705_v59 = vpop.permute.xlu1 %3275 }
 0x463   :  { %3460 = vperm.xlu0 %6726, %v2958_v30   ;;  %v12774_v30 = vld [vmem:[#allocation30_spill] sm:$0xff] }
 0x465   :  { %v9708_v13 = vpop.permute.xlu1 %2859 }
 0x466   :  { %v2951_v43 = vsub.f32 %v9421_v23, %v9708_v13  ;;  %v3569_v23 = vld [vmem:[%s12411_s2 + $0xb0] sm:$0xff] }
 0x467   :  { %3450 = vperm.xlu0 %6726, %v2956_v37   ;;  %v3198_v37 = vmul.f32 %v9512_v55, %v12774_v30  ;;  %v3575_v55 = vld [vmem:[%s12411_s2 + $0xe0] sm:$0xff] }
 0x469   :  { %v9711_v31 = vpop.permute.xlu1 %3136 }
 0x46a   :  { %12770 = vst [vmem:[#allocation92_spill] sm:$0xff] %v9711_v31  ;;  %v12778_v31 = vld [vmem:[#allocation11_spill] sm:$0xff] }
 0x46b   :  { %3440 = vperm.xlu0 %6726, %v2954_v26  }
 0x46e   :  { %v9714_v61 = vpop.permute.xlu1 %3285 }
 0x46f   :  { %3430 = vperm.xlu0 %6726, %v2952_v44   ;;  %v12775_v44 = vld [vmem:[#allocation3_spill] sm:$0xff] }
 0x472   :  { %v9717_v0 = vpop.permute.xlu1 %2863 }
 0x473   :  { %3420 = vperm.xlu0 %6726, %v2950_v21   ;;  %v9737_v21 = vmul.f32 %v9469_v7, %v12775_v44  ;;  %v12780_v44 = vld [vmem:[#allocation15_spill] sm:$0xff] }
 0x474   :  { %v9759_v62 = vmul.f32 %v9413_v32, %v12780_v44 }
 0x475   :  { %12776 = vst [vmem:[#allocation31_spill] sm:$0xff] %v9737_v21 }
 0x476   :  { %v9719_v56 = vpop.permute.xlu1 %3146 }
 0x477   :  { %12771 = vst [vmem:[#allocation91_spill] sm:$0xff] %v9719_v56  ;;  %v9745_v56 = vmul.f32 %v9386_v50, %v12778_v31  ;;  %v12781_v31 = vld [vmem:[#allocation14_spill] sm:$0xff]  ;;  %v12782_v50 = vld [vmem:[#allocation19_spill] sm:$0xff] }
 0x478   :  { %v9765_v47 = vmul.f32 %v9436_v40, %v12782_v50  ;;  %v12790_v40 = vld [vmem:[#allocation12_spill] sm:$0xff] }
 0x479   :  { %v9786_v52 = vmul.f32 %v9561_v5, %v12790_v40  ;;  %v3578_v40 = vld [vmem:[%s12411_s2 + $0xf8] sm:$0xff] }
 0x47b   :  { %v9724_v20 = vpop.permute.xlu1 %3295 }
 0x47f   :  { %v2868_v12 = vpop.permute.xlu1 %2867 }
 0x482   :  { %v3326_v57 = vpop.permute.xlu0 %3325 }
 0x483   :  { %v9726_v36 = vpop.permute.xlu1 %3156  ;;  %v3492_v30 = vadd.f32 %v3326_v57, %v3198_v37 }
 0x484   :  { %12772 = vst [vmem:[#allocation113_spill] sm:$0xff] %v9726_v36  ;;  %v3182_v36 = vmul.f32 %v9413_v32, %v12781_v31  ;;  %v2955_v32 = vsub.f32 %v9504_v48, %v2868_v12  ;;  %v12788_v31 = vld [vmem:[#allocation26_spill] sm:$0xff]  ;;  %v12793_v48 = vld [vmem:[#allocation24_spill] sm:$0xff] }
 0x485   :  { %v3194_v50 = vmul.f32 %v9491_v19, %v12788_v31 }
 0x486   :  { %v3316_v24 = vpop.permute.xlu0 %3315 }
 0x488   :  { %v9728_v1 = vpop.permute.xlu1 %3305 }
 0x48c   :  { %v2872_v51 = vpop.permute.xlu1 %2871 }
 0x48d   :  { %v2957_v26 = vsub.f32 %v9541_v28, %v2872_v51  ;;  %v3576_v28 = vld [vmem:[%s12411_s2 + $0xe8] sm:$0xff]  ;;  %v3491_v51 = vadd.f32 %v3326_v57, %v3197_v45  ;;  %v3189_v57 = vmul.f32 %v9458_v3, %v12785_v46  ;;  %v12786_v45 = vld [vmem:[#allocation22_spill] sm:$0xff]  ;;  %v12791_v46 = vld [vmem:[#allocation16_spill] sm:$0xff] }
 0x48e   :  { %v3190_v37 = vmul.f32 %v9458_v3, %v12786_v45  ;;  %v3311_v3 = vpop.permute.xlu0 %3310  ;;  %v12792_v45 = vld [vmem:[#allocation21_spill] sm:$0xff]  ;;  %v3660_v31 = vadd.f32 %v3576_v28, %v3492_v30  ;;  %v3572_v30 = vld [vmem:[%s12411_s2 + $0xc8] sm:$0xff] }
 0x48f   :  { %3455 = vperm.xlu1 %6727, %v2957_v26   ;;  %v12787_v26 = vld [vmem:[#allocation27_spill] sm:$0xff]  ;;  %v3659_v12 = vadd.f32 %v3575_v55, %v3491_v51  ;;  %v12797_v55 = vld [vmem:[#allocation32_spill] sm:$0xff]  ;;  %v3571_v51 = vld [vmem:[%s12411_s2 + $0xc0] sm:$0xff] }
 0x490   :  { %v9769_v42 = vpop.permute.xlu1 %3166  ;;  %v3193_v44 = vmul.f32 %v9491_v19, %v12787_v26  ;;  %v9794_v26 = vmul.f32 %v9587_v6, %v12792_v45  ;;  %v3192_v19 = vmul.f32 %v9598_v63, %v12793_v48  ;;  %v3191_v45 = vmul.f32 %v9598_v63, %v12795_v49 }
 0x491   :  { %12784 = vst [vmem:[#allocation30_spill] sm:$0xff] %v9769_v42  ;;  %v9790_v42 = vmul.f32 %v9576_v9, %v12791_v46  ;;  %v12794_v46 = vld [vmem:[#allocation20_spill] sm:$0xff]  ;;  %v3199_v48 = vmul.f32 %v9618_v11, %v12796_v41  ;;  %v3200_v28 = vmul.f32 %v9618_v11, %v12797_v55  ;;  %v2953_v63 = vsub.f32 %v9463_v4, %v9717_v0  ;;  %v12798_v11 = vld [vmem:[#allocation29_spill] sm:$0xff] }
 0x492   :  { %v3188_v15 = vmul.f32 %v9587_v6, %v12794_v46  ;;  %v3570_v6 = vld [vmem:[%s12411_s2 + $0xb8] sm:$0xff]  ;;  %v3487_v49 = vadd.f32 %v3316_v24, %v3193_v44  ;;  %v3488_v41 = vadd.f32 %v3316_v24, %v3194_v50  ;;  %v3195_v55 = vmul.f32 %v9608_v29, %v12798_v11  ;;  %v3573_v0 = vld [vmem:[%s12411_s2 + $0xd0] sm:$0xff] }
 0x493   :  { %3445 = vperm.xlu1 %6727, %v2955_v32   ;;  %v3486_v32 = vadd.f32 %v3311_v3, %v3192_v19  ;;  %v3743_v7 = vmax.f32 %v3659_v12, 0.0  ;;  %v3484_v4 = vadd.f32 %v9728_v1, %v3190_v37  ;;  %v3744_v24 = vmax.f32 %v3660_v31, 0.0  ;;  %v3574_v37 = vld [vmem:[%s12411_s2 + $0xd8] sm:$0xff]  ;;  %v3564_v31 = vld [vmem:[%s12411_s2 + $0x88] sm:$0xff] }
 0x494   :  { %v3482_v21 = vadd.f32 %v9689_v18, %v3188_v15  ;;  %v3480_v29 = vadd.f32 %v9724_v20, %v3186_v10  ;;  %v3655_v50 = vadd.f32 %v3571_v51, %v3487_v49  ;;  %v3656_v19 = vadd.f32 %v3572_v30, %v3488_v41  ;;  %v3567_v51 = vld [vmem:[%s12411_s2 + $0xa0] sm:$0xff] }
 0x495   :  { %v3331_v46 = vpop.permute.xlu1 %3330  ;;  %v3485_v12 = vadd.f32 %v3311_v3, %v3191_v45  ;;  %v2949_v3 = vsub.f32 %v9378_v17, %v9697_v34  ;;  %v3652_v45 = vadd.f32 %v3568_v27, %v3484_v4  ;;  %v3479_v17 = vadd.f32 %v9724_v20, %v9765_v47  ;;  %v3563_v27 = vld [vmem:[%s12411_s2 + $0x80] sm:$0xff]  ;;  %v3560_v20 = vld [vmem:[%s12411_s2 + $0x68] sm:$0xff] }
 0x496   :  { %v3493_v60 = vadd.f32 %v3331_v46, %v3199_v48  ;;  %v3494_v35 = vadd.f32 %v3331_v46, %v3200_v28  ;;  %v3654_v48 = vadd.f32 %v3570_v6, %v3486_v32  ;;  %v3648_v34 = vadd.f32 %v3564_v31, %v3480_v29  ;;  %v12800_v29 = vld [vmem:[#allocation17_spill] sm:$0xff] }
 0x497   :  { %3435 = vperm.xlu1 %6727, %v2953_v63   ;;  %v3740_v41 = vmax.f32 %v3656_v19, 0.0  ;;  %v3481_v11 = vadd.f32 %v9689_v18, %v9794_v26  ;;  %v3562_v18 = vld [vmem:[%s12411_s2 + $0x78] sm:$0xff]  ;;  %v3475_v26 = vadd.f32 %v9714_v61, %v9759_v62 }
 0x498   :  { %v3661_v44 = vadd.f32 %v3577_v53, %v3493_v60  ;;  %v3662_v15 = vadd.f32 %v3578_v40, %v3494_v35  ;;  %v3476_v53 = vadd.f32 %v9714_v61, %v3182_v36  ;;  %v3483_v40 = vadd.f32 %v9728_v1, %v3189_v57  ;;  %v3556_v61 = vld [vmem:[%s12411_s2 + $0x48] sm:$0xff] }
 0x499   :  { %v3321_v28 = vpop.permute.xlu1 %3320  ;;  %v3739_v36 = vmax.f32 %v3655_v50, 0.0  ;;  %v3653_v1 = vadd.f32 %v3569_v23, %v3485_v12  ;;  %v3738_v46 = vmax.f32 %v3654_v48, 0.0  ;;  %v3472_v50 = vadd.f32 %v9705_v59, %v9749_v22  ;;  %v12801_v48 = vld [vmem:[#allocation8_spill] sm:$0xff]  ;;  %v12802_v22 = vld [vmem:[#allocation13_spill] sm:$0xff] }
 0x49a   :  { %v3745_v10 = vmax.f32 %v3661_v44, 0.0  ;;  %v3489_v60 = vadd.f32 %v3321_v28, %v3195_v55  ;;  %v3490_v35 = vadd.f32 %v3321_v28, %v3196_v8  ;;  %v3746_v13 = vmax.f32 %v3662_v15, 0.0  ;;  %v3566_v8 = vld [vmem:[%s12411_s2 + $0x98] sm:$0xff]  ;;  %v3565_v55 = vld [vmem:[%s12411_s2 + $0x90] sm:$0xff] }
 0x49b   :  { %3425 = vperm.xlu1 %6727, %v2951_v43   ;;  %v3651_v47 = vadd.f32 %v3567_v51, %v3483_v40  ;;  %v3650_v4 = vadd.f32 %v3566_v8, %v3482_v21  ;;  %v3736_v43 = vmax.f32 %v3652_v45, 0.0  ;;  %v3647_v44 = vadd.f32 %v3563_v27, %v3479_v17  ;;  %v3559_v21 = vld [vmem:[%s12411_s2 + $0x60] sm:$0xff]  ;;  %v3557_v27 = vld [vmem:[%s12411_s2 + $0x50] sm:$0xff] }
 0x49c   :  { %v3657_v30 = vadd.f32 %v3573_v0, %v3489_v60  ;;  %v3658_v6 = vadd.f32 %v3574_v37, %v3490_v35  ;;  %v3898_v63 = vpack.c.bf16 %v3746_v13, %v3744_v24  ;;  %v3897_v49 = vpack.c.bf16 %v3745_v10, %v3743_v7  ;;  %v3561_v60 = vld [vmem:[%s12411_s2 + $0x70] sm:$0xff]  ;;  %v3558_v13 = vld [vmem:[%s12411_s2 + $0x58] sm:$0xff]  ;;  %v3555_v51 = vld [vmem:[%s12411_s2 + $0x40] sm:$0xff] }
 0x49d   :  { %v3478_v7 = vadd.f32 %v9678_v14, %v9790_v42  ;;  %v3183_v42 = vmul.f32 %v9576_v9, %v12800_v29  ;;  %v3737_v15 = vmax.f32 %v3653_v1, 0.0  ;;  %v3644_v19 = vadd.f32 %v3560_v20, %v3476_v53 }
 0x49e   :  { %v3741_v57 = vmax.f32 %v3657_v30, 0.0  ;;  %4303 = vmatprep.subr.bf16.mxu1 %v3898_v63  ;;  %v3742_v32 = vmax.f32 %v3658_v6, 0.0  ;;  %v3894_v12 = vpack.c.bf16 %v3738_v46, %v3736_v43  ;;  %v3732_v9 = vmax.f32 %v3648_v34, 0.0  ;;  %v3552_v34 = vld [vmem:[%s12411_s2 + $0x28] sm:$0xff] }
 0x49f   :  { %3415 = vperm.xlu1 %6727, %v2949_v3   ;;  %4304 = vmatpush1.bf16.msra.mxu1 %v3897_v49  ;;  %v3176_v37 = vmul.f32 %v9532_v54, %v12801_v48  ;;  %v3477_v28 = vadd.f32 %v9678_v14, %v3183_v42  ;;  %v3649_v31 = vadd.f32 %v3565_v55, %v3481_v11  ;;  %v3735_v62 = vmax.f32 %v3651_v47, 0.0  ;;  %v12803_v49 = vld [vmem:[#allocation7_spill] sm:$0xff]  ;;  %v3551_v11 = vld [vmem:[%s12411_s2 + $0x20] sm:$0xff]  ;;  %v3550_v42 = vld [vmem:[%s12411_s2 + $0x18] sm:$0xff] }
 0x4a0   :  { %v3896_v0 = vpack.c.bf16 %v3742_v32, %v3740_v41  ;;  %v3895_v24 = vpack.c.bf16 %v3741_v57, %v3739_v36  ;;  %v3179_v23 = vmul.f32 %v9561_v5, %v12802_v22  ;;  %v3474_v10 = vadd.f32 %v9666_v25, %v9786_v52  ;;  %v9902_v5 = vpop.permute.xlu1 %3335 }
 0x4a1   :  { %v3646_v35 = vadd.f32 %v3562_v18, %v3478_v7  ;;  %v3734_v14 = vmax.f32 %v3650_v4, 0.0  ;;  %v3471_v3 = vadd.f32 %v9705_v59, %v9745_v56  ;;  %v3643_v53 = vadd.f32 %v3559_v21, %v3475_v26  ;;  %v12805_v4 = vld [vmem:[#allocation4_spill] sm:$0xff]  ;;  %v12808_v26 = vld [vmem:[#allocation98_spill] sm:$0xff] }
 0x4a2   :  { %4305 = vmatprep.subr.bf16.mxu1 %v3896_v0  ;;  %v3731_v40 = vmax.f32 %v3647_v44, 0.0  ;;  %v3893_v45 = vpack.c.bf16 %v3737_v15, %v3735_v62  ;;  %v3468_v52 = vadd.f32 %v9692_v16, %v9782_v33  ;;  %v3640_v30 = vadd.f32 %v3556_v61, %v3472_v50  ;;  %v12804_v33 = vld [vmem:[#allocation9_spill] sm:$0xff]  ;;  %v12809_v15 = vld [vmem:[#allocation31_spill] sm:$0xff]  ;;  %v3549_v61 = vld [vmem:[%s12411_s2 + $0x10] sm:$0xff] }
 0x4a3   :  { %4306 = vmatpush1.bf16.msra.mxu1 %v3895_v24  ;;  %v3892_v6 = vpack.c.bf16 %v3734_v14, %v3732_v9  ;;  %v3728_v63 = vmax.f32 %v3644_v19, 0.0  ;;  %v3173_v8 = vmul.f32 %v9510_v58, %v12803_v49  ;;  %v3473_v59 = vadd.f32 %v9666_v25, %v3179_v23  ;;  %v3554_v25 = vld [vmem:[%s12411_s2 + $0x38] sm:$0xff]  ;;  %v3553_v19 = vld [vmem:[%s12411_s2 + $0x30] sm:$0xff]  ;;  %v3548_v9 = vld [vmem:[%s12411_s2 + $0x8] sm:$0xff] }
 0x4a4   :  { %4307 = vmatprep.subr.bf16.mxu1 %v3894_v12  ;;  %v3645_v56 = vadd.f32 %v3561_v60, %v3477_v28  ;;  %v3733_v17 = vmax.f32 %v3649_v31, 0.0  ;;  %v3175_v36 = vmul.f32 %v9532_v54, %v12804_v33  ;;  %v3470_v1 = vadd.f32 %v9656_v39, %v3176_v37  ;;  %v12806_v0 = vld [vmem:[#allocation97_spill] sm:$0xff]  ;;  %v9936_v18 = vpop.permute.xlu1 %3345  ;;  %v3547_v14 = vld [vmem:[%s12411_s2] sm:$0xff] }
 0x4a5   :  { %v3642_v57 = vadd.f32 %v3558_v13, %v3474_v10  ;;  %v3730_v58 = vmax.f32 %v3646_v35, 0.0  ;;  %v3467_v41 = vadd.f32 %v9692_v16, %v3173_v8  ;;  %v3639_v32 = vadd.f32 %v3555_v51, %v3471_v3  ;;  %v12810_v50 = vld [vmem:[#allocation89_spill] sm:$0xff] }
 0x4a6   :  { %v3727_v46 = vmax.f32 %v3643_v53, 0.0  ;;  %v3891_v7 = vpack.c.bf16 %v3733_v17, %v3731_v40  ;;  %v3466_v54 = vadd.f32 %v9682_v2, %v9741_v38  ;;  %v3636_v20 = vadd.f32 %v3552_v34, %v3468_v52  ;;  %v12807_v38 = vld [vmem:[#allocation2_spill] sm:$0xff]  ;;  %v12811_v33 = vld [vmem:[#allocation65_spill] sm:$0xff] }
 0x4a7   :  { %4308 = vmatpush1.bf16.msra.mxu1 %v3893_v45  ;;  %v3890_v47 = vpack.c.bf16 %v3730_v58, %v3728_v63  ;;  %v3724_v55 = vmax.f32 %v3640_v30, 0.0  ;;  %v3171_v24 = vmul.f32 %v12806_v0, %v12805_v4  ;;  %v3469_v43 = vadd.f32 %v9656_v39, %v3175_v36  ;;  %v12812_v36 = vld [vmem:[#allocation95_spill] sm:$0xff]  ;;  %v12819_v4 = vld [vmem:[#allocation38_spill] sm:$0xff] }
 0x4a8   :  { %4309 = vmatprep.subr.bf16.mxu1 %v3892_v6  ;;  %v3641_v29 = vadd.f32 %v3557_v27, %v3473_v59  ;;  %v3729_v16 = vmax.f32 %v3645_v56, 0.0  ;;  %v3169_v44 = vmul.f32 %v12808_v26, %v12807_v38  ;;  %v3464_v21 = vadd.f32 %v12810_v50, %v12809_v15  ;;  %v3411_v40 = vpop.permute.xlu1 %3410  ;;  %v12813_v27 = vld [vmem:[#allocation64_spill] sm:$0xff]  ;;  %v12822_v26 = vld [vmem:[#allocation42_spill] sm:$0xff]  ;;  %v12823_v15 = vld [vmem:[#allocation47_spill] sm:$0xff] }
 0x4a9   :  { %v3638_v39 = vadd.f32 %v3554_v25, %v3470_v1  ;;  %v3726_v12 = vmax.f32 %v3642_v57, 0.0  ;;  %v3465_v48 = vadd.f32 %v9682_v2, %v3171_v24  ;;  %v3635_v37 = vadd.f32 %v3551_v11, %v3467_v41  ;;  %v9976_v24 = vpop.permute.xlu0 %3340 }
 0x4aa   :  { %v3723_v28 = vmax.f32 %v3639_v32, 0.0  ;;  %v3889_v31 = vpack.c.bf16 %v3729_v16, %v3727_v46  ;;  %v3634_v62 = vadd.f32 %v3550_v42, %v3466_v54  ;;  %v3720_v23 = vmax.f32 %v3636_v20, 0.0  ;;  %v12814_v32 = vld [vmem:[#allocation35_spill] sm:$0xff]  ;;  %v12816_v54 = vld [vmem:[#allocation34_spill] sm:$0xff]  ;;  %v12821_v42 = vld [vmem:[#allocation101_spill] sm:$0xff] }
 0x4ab   :  { %4310 = vmatpush1.bf16.msra.mxu1 %v3891_v7  ;;  %v3888_v22 = vpack.c.bf16 %v3726_v12, %v3724_v55  ;;  %v3463_v10 = vadd.f32 %v12810_v50, %v3169_v44  ;;  %v3637_v60 = vadd.f32 %v3553_v19, %v3469_v43  ;;  %v3725_v35 = vmax.f32 %v3641_v29, 0.0  ;;  %v12815_v46 = vld [vmem:[#allocation99_spill] sm:$0xff]  ;;  %v3609_v43 = vld [vmem:[%s12411_s2 + $0x1f0] sm:$0xff]  ;;  %v3610_v29 = vld [vmem:[%s12411_s2 + $0x1f8] sm:$0xff] }
 0x4ac   :  { %4311 = vmatprep.subr.bf16.mxu1 %v3890_v47  ;;  %v3632_v2 = vadd.f32 %v3548_v9, %v3464_v21  ;;  %v3722_v13 = vmax.f32 %v3638_v39, 0.0  ;;  %v3633_v3 = vadd.f32 %v3549_v61, %v3465_v48  ;;  %v3719_v53 = vmax.f32 %v3635_v37, 0.0  ;;  %v3401_v17 = vpop.permute.xlu1 %3400  ;;  %v12817_v20 = vld [vmem:[#allocation39_spill] sm:$0xff]  ;;  %v12818_v47 = vld [vmem:[#allocation100_spill] sm:$0xff]  ;;  %v12824_v50 = vld [vmem:[#allocation102_spill] sm:$0xff] }
 0x4ad   :  { %v3887_v45 = vpack.c.bf16 %v3725_v35, %v3723_v28  ;;  %v3718_v51 = vmax.f32 %v3634_v62, 0.0  ;;  %v3631_v30 = vadd.f32 %v3547_v14, %v3463_v10  ;;  %v3721_v6 = vmax.f32 %v3637_v60, 0.0  ;;  %v12820_v16 = vld [vmem:[#allocation43_spill] sm:$0xff]  ;;  %v12825_v19 = vld [vmem:[#allocation46_spill] sm:$0xff]  ;;  %v12830_v61 = vld [vmem:[#allocation112_spill] sm:$0xff] }
 0x4ae   :  { %v3886_v52 = vpack.c.bf16 %v3722_v13, %v3720_v23  ;;  %v3716_v63 = vmax.f32 %v3632_v2, 0.0  ;;  %v3717_v49 = vmax.f32 %v3633_v3, 0.0  ;;  %v3231_v1 = vmul.f32 %v12812_v36, %v12811_v33  ;;  %v12826_v12 = vld [vmem:[#allocation51_spill] sm:$0xff]  ;;  %v12828_v37 = vld [vmem:[#allocation50_spill] sm:$0xff] }
 0x4af   :  { %4312 = vmatpush1.bf16.msra.mxu1 %v3889_v31  ;;  %v3885_v8 = vpack.c.bf16 %v3721_v6, %v3719_v53  ;;  %v3715_v56 = vmax.f32 %v3631_v30, 0.0  ;;  %v3232_v57 = vmul.f32 %v12812_v36, %v12813_v27  ;;  %v9962_v7 = vmul.f32 %v12815_v46, %v12814_v32  ;;  %v12827_v9 = vld [vmem:[#allocation103_spill] sm:$0xff]  ;;  %v12829_v31 = vld [vmem:[#allocation61_spill] sm:$0xff]  ;;  %v12833_v60 = vld [vmem:[#allocation86_spill] sm:$0xff] }
 0x4b0   :  { %4313 = vmatprep.subr.bf16.mxu1 %v3888_v22  ;;  %v3884_v59 = vpack.c.bf16 %v3718_v51, %v3716_v63  ;;  %v3525_v58 = vadd.f32 %v3411_v40, %v3231_v1  ;;  %v3391_v41 = vpop.permute.xlu1 %3390  ;;  %v9966_v11 = vmul.f32 %v12815_v46, %v12816_v54  ;;  %v9970_v55 = vmul.f32 %v12818_v47, %v12817_v20  ;;  %v12831_v22 = vld [vmem:[#allocation60_spill] sm:$0xff]  ;;  %v12832_v10 = vld [vmem:[#allocation63_spill] sm:$0xff]  ;;  %v12834_v14 = vld [vmem:[#allocation62_spill] sm:$0xff] }
 0x4b1   :  { %v3883_v34 = vpack.c.bf16 %v3717_v49, %v3715_v56  ;;  %v3526_v25 = vadd.f32 %v3411_v40, %v3232_v57  ;;  %v9974_v0 = vmul.f32 %v12818_v47, %v12819_v4  ;;  %v9986_v38 = vmul.f32 %v12821_v42, %v12820_v16  ;;  %v12835_v53 = vld [vmem:[#allocation55_spill] sm:$0xff]  ;;  %v12836_v40 = vld [vmem:[#allocation104_spill] sm:$0xff]  ;;  %v3607_v63 = vld [vmem:[%s12411_s2 + $0x1e0] sm:$0xff] }
 0x4b2   :  { %v9990_v44 = vmul.f32 %v12821_v42, %v12822_v26  ;;  %v9994_v21 = vmul.f32 %v12824_v50, %v12823_v15  ;;  %v9998_v39 = vmul.f32 %v12824_v50, %v12825_v19  ;;  %v10002_v48 = vmul.f32 %v12827_v9, %v12826_v12  ;;  %v3608_v49 = vld [vmem:[%s12411_s2 + $0x1e8] sm:$0xff]  ;;  %v12839_v56 = vld [vmem:[#allocation105_spill] sm:$0xff]  ;;  %v12840_v33 = vld [vmem:[#allocation58_spill] sm:$0xff] }
 0x4b3   :  { %4314 = vmatpush1.bf16.msra.mxu1 %v3887_v45  ;;  %v10006_v28 = vmul.f32 %v12827_v9, %v12828_v37  ;;  %v3227_v62 = vmul.f32 %v12830_v61, %v12829_v31  ;;  %v3228_v23 = vmul.f32 %v12830_v61, %v12831_v22  ;;  %v3229_v35 = vmul.f32 %v12833_v60, %v12832_v10  ;;  %v3605_v1 = vld [vmem:[%s12411_s2 + $0x1d0] sm:$0xff]  ;;  %v12844_v47 = vld [vmem:[#allocation57_spill] sm:$0xff]  ;;  %v12845_v4 = vld [vmem:[#allocation110_spill] sm:$0xff] }
 0x4b4   :  { %4315 = vmatprep.subr.bf16.mxu1 %v3886_v52  ;;  %v3230_v2 = vmul.f32 %v12833_v60, %v12834_v14  ;;  %v3693_v13 = vadd.f32 %v3609_v43, %v3525_v58  ;;  %v3694_v3 = vadd.f32 %v3610_v29, %v3526_v25  ;;  %v3221_v45 = vmul.f32 %v12836_v40, %v12835_v53  ;;  %v12837_v52 = vld [vmem:[#allocation54_spill] sm:$0xff]  ;;  %v3381_v27 = vpop.permute.xlu1 %3380  ;;  %v12841_v25 = vld [vmem:[#allocation53_spill] sm:$0xff]  ;;  %v12842_v32 = vld [vmem:[#allocation108_spill] sm:$0xff] }
 0x4b5   :  { %v3222_v51 = vmul.f32 %v12836_v40, %v12837_v52  ;;  %v3521_v30 = vadd.f32 %v3401_v17, %v3227_v62  ;;  %v3522_v6 = vadd.f32 %v3401_v17, %v3228_v23  ;;  %v3226_v36 = vmul.f32 %v12839_v56, %v12840_v33  ;;  %v3606_v17 = vld [vmem:[%s12411_s2 + $0x1d8] sm:$0xff]  ;;  %v12843_v54 = vld [vmem:[#allocation52_spill] sm:$0xff]  ;;  %v3603_v31 = vld [vmem:[%s12411_s2 + $0x1c0] sm:$0xff] }
 0x4b6   :  { %v3219_v46 = vmul.f32 %v12842_v32, %v12841_v25  ;;  %v3220_v20 = vmul.f32 %v12842_v32, %v12843_v54  ;;  %v3223_v43 = vmul.f32 %v12845_v4, %v12844_v47  ;;  %v12846_v29 = vld [vmem:[#allocation56_spill] sm:$0xff]  ;;  %v3777_v42 = vmax.f32 %v3693_v13, 0.0  ;;  %v3604_v61 = vld [vmem:[%s12411_s2 + $0x1c8] sm:$0xff]  ;;  %v3602_v23 = vld [vmem:[%s12411_s2 + $0x1b8] sm:$0xff] }
 0x4b7   :  { %4316 = vmatpush1.bf16.msra.mxu1 %v3885_v8  ;;  %v3224_v16 = vmul.f32 %v12845_v4, %v12846_v29  ;;  %v3778_v50 = vmax.f32 %v3694_v3, 0.0  ;;  %v3689_v19 = vadd.f32 %v3605_v1, %v3521_v30  ;;  %v3690_v12 = vadd.f32 %v3606_v17, %v3522_v6  ;;  %v3601_v22 = vld [vmem:[%s12411_s2 + $0x1b0] sm:$0xff]  ;;  %v12847_v14 = vld [vmem:[#allocation37_spill] sm:$0xff]  ;;  %v3599_v1 = vld [vmem:[%s12411_s2 + $0x1a0] sm:$0xff] }
 0x4b8   :  { %4317 = vmatprep.subr.bf16.mxu1 %v3884_v59  ;;  %v12838_v59 = vld [vmem:[#allocation59_spill] sm:$0xff]  ;;  %v3517_v9 = vadd.f32 %v3391_v41, %v3223_v43  ;;  %v12849_v3 = vld [vmem:[#allocation36_spill] sm:$0xff]  ;;  %v3513_v40 = vadd.f32 %v3381_v27, %v3219_v46  ;;  %v3514_v52 = vadd.f32 %v3381_v27, %v3220_v20  ;;  %v3598_v6 = vld [vmem:[%s12411_s2 + $0x198] sm:$0xff] }
 0x4b9   :  { %v3518_v37 = vadd.f32 %v3391_v41, %v3224_v16  ;;  %v3597_v30 = vld [vmem:[%s12411_s2 + $0x190] sm:$0xff]  ;;  %v3600_v17 = vld [vmem:[%s12411_s2 + $0x1a8] sm:$0xff]  ;;  %v12850_v54 = vld [vmem:[#allocation49_spill] sm:$0xff] }
 0x4ba   :  { %v3685_v33 = vadd.f32 %v3601_v22, %v3517_v9  ;;  %v12851_v20 = vld [vmem:[#allocation107_spill] sm:$0xff]  ;;  %v12852_v4 = vld [vmem:[#allocation48_spill] sm:$0xff]  ;;  %v3681_v29 = vadd.f32 %v3597_v30, %v3513_v40  ;;  %v3682_v16 = vadd.f32 %v3598_v6, %v3514_v52 }
 0x4bb   :  { %4318 = vmatpush1.bf16.msra.mxu1 %v3883_v34  ;;  %v3225_v34 = vmul.f32 %v12839_v56, %v12838_v59  ;;  %v3215_v47 = vmul.f32 %v12851_v20, %v12850_v54  ;;  %v3216_v43 = vmul.f32 %v12851_v20, %v12852_v4  ;;  %v3496_v20 = vadd.f32 %v9902_v5, %v9966_v11  ;;  %v3587_v11 = vld [vmem:[%s12411_s2 + $0x140] sm:$0xff] }
 0x4bc   :  { %v3765_v52 = vmax.f32 %v3681_v29, 0.0  ;;  %v3766_v30 = vmax.f32 %v3682_v16, 0.0  ;;  %v3500_v4 = vadd.f32 %v9936_v18, %v9974_v0 }
 0x4c2   :  { %v3406_v8 = vpop.permute.xlu0 %3405 }
 0x4c3   :  { %v3523_v57 = vadd.f32 %v3406_v8, %v3229_v35  ;;  %v3524_v58 = vadd.f32 %v3406_v8, %v3230_v2  ;;  %v12848_v2 = vld [vmem:[#allocation106_spill] sm:$0xff] }
 0x4c4   :  { %v10058_v13 = vmul.f32 %v12848_v2, %v12847_v14  ;;  %v10062_v53 = vmul.f32 %v12848_v2, %v12849_v3  ;;  %v12854_v14 = vld [vmem:[#allocation88_spill] sm:$0xff] }
 0x4c5   :  { %v3691_v26 = vadd.f32 %v3607_v63, %v3523_v57  ;;  %v3692_v15 = vadd.f32 %v3608_v49, %v3524_v58  ;;  %v3371_v63 = vpop.permute.xlu1 %3370  ;;  %v3774_v57 = vmax.f32 %v3690_v12, 0.0  ;;  %v12855_v3 = vld [vmem:[#allocation44_spill] sm:$0xff] }
 0x4c6   :  { %v3396_v62 = vpop.permute.xlu0 %3395  ;;  %v3509_v12 = vadd.f32 %v3371_v63, %v3215_v47  ;;  %v3510_v9 = vadd.f32 %v3371_v63, %v3216_v43  ;;  %v3212_v40 = vmul.f32 %v12854_v14, %v12855_v3  ;;  %v3499_v47 = vadd.f32 %v9936_v18, %v9970_v55  ;;  %v3588_v18 = vld [vmem:[%s12411_s2 + $0x148] sm:$0xff]  ;;  %v3579_v3 = vld [vmem:[%s12411_s2 + $0x100] sm:$0xff] }
 0x4c7   :  { %v3775_v10 = vmax.f32 %v3691_v26, 0.0  ;;  %v3519_v60 = vadd.f32 %v3396_v62, %v3225_v34  ;;  %v3520_v41 = vadd.f32 %v3396_v62, %v3226_v36  ;;  %v3776_v35 = vmax.f32 %v3692_v15, 0.0  ;;  %v3594_v62 = vld [vmem:[%s12411_s2 + $0x178] sm:$0xff] }
 0x4c8   :  { %v3773_v34 = vmax.f32 %v3689_v19, 0.0  ;;  %v3686_v36 = vadd.f32 %v3602_v23, %v3518_v37  ;;  %v3769_v19 = vmax.f32 %v3685_v33, 0.0  ;;  %v3592_v33 = vld [vmem:[%s12411_s2 + $0x168] sm:$0xff] }
 0x4c9   :  { %v3687_v49 = vadd.f32 %v3603_v31, %v3519_v60  ;;  %v3688_v8 = vadd.f32 %v3604_v61, %v3520_v41  ;;  %v3914_v59 = vpack.c.bf16 %v3778_v50, %v3776_v35  ;;  %v3913_v56 = vpack.c.bf16 %v3777_v42, %v3775_v10  ;;  %v3593_v61 = vld [vmem:[%s12411_s2 + $0x170] sm:$0xff]  ;;  %v3361_v22 = vpop.permute.xlu1 %3360  ;;  %v12853_v35 = vld [vmem:[#allocation45_spill] sm:$0xff] }
 0x4ca   :  { %v3386_v27 = vpop.permute.xlu0 %3385  ;;  %v3770_v31 = vmax.f32 %v3686_v36, 0.0  ;;  %v3211_v2 = vmul.f32 %v12854_v14, %v12853_v35 }
 0x4cb   :  { %v3771_v58 = vmax.f32 %v3687_v49, 0.0  ;;  %v3515_v25 = vadd.f32 %v3386_v27, %v3221_v45  ;;  %v3516_v32 = vadd.f32 %v3386_v27, %v3222_v51  ;;  %4319 = vmatprep.subr.bf16.mxu1 %v3914_v59  ;;  %v3772_v46 = vmax.f32 %v3688_v8, 0.0  ;;  %v3595_v45 = vld [vmem:[%s12411_s2 + $0x180] sm:$0xff]  ;;  %v3596_v51 = vld [vmem:[%s12411_s2 + $0x188] sm:$0xff] }
 0x4cc   :  { %4320 = vmatpush2.bf16.msra.mxu1 %v3913_v56  ;;  %v3677_v59 = vadd.f32 %v3593_v61, %v3509_v12  ;;  %v3678_v56 = vadd.f32 %v3594_v62, %v3510_v9  ;;  %v3498_v61 = vadd.f32 %v9976_v24, %v10062_v53  ;;  %v3495_v62 = vadd.f32 %v9902_v5, %v9962_v7  ;;  %v3585_v53 = vld [vmem:[%s12411_s2 + $0x130] sm:$0xff]  ;;  %v3586_v5 = vld [vmem:[%s12411_s2 + $0x138] sm:$0xff] }
 0x4cd   :  { %v3683_v42 = vadd.f32 %v3599_v1, %v3515_v25  ;;  %v3684_v26 = vadd.f32 %v3600_v17, %v3516_v32  ;;  %v3912_v15 = vpack.c.bf16 %v3774_v57, %v3772_v46  ;;  %v3911_v50 = vpack.c.bf16 %v3773_v34, %v3771_v58  ;;  %v3589_v1 = vld [vmem:[%s12411_s2 + $0x150] sm:$0xff]  ;;  %v3590_v17 = vld [vmem:[%s12411_s2 + $0x158] sm:$0xff]  ;;  %v12857_v46 = vld [vmem:[#allocation87_spill] sm:$0xff] }
 0x4ce   :  { %v3376_v37 = vpop.permute.xlu0 %3375  ;;  %v3506_v34 = vadd.f32 %v3361_v22, %v3212_v40  ;;  %v12856_v32 = vld [vmem:[#allocation41_spill] sm:$0xff]  ;;  %v3762_v0 = vmax.f32 %v3678_v56, 0.0 }
 0x4cf   :  { %v3767_v23 = vmax.f32 %v3683_v42, 0.0  ;;  %v3511_v10 = vadd.f32 %v3376_v37, %v10002_v48  ;;  %v3512_v60 = vadd.f32 %v3376_v37, %v10006_v28  ;;  %4321 = vmatprep.subr.bf16.mxu1 %v3912_v15  ;;  %v3768_v41 = vmax.f32 %v3684_v26, 0.0  ;;  %v3591_v28 = vld [vmem:[%s12411_s2 + $0x160] sm:$0xff]  ;;  %v12858_v37 = vld [vmem:[#allocation40_spill] sm:$0xff] }
 0x4d0   :  { %4322 = vmatpush2.bf16.msra.mxu1 %v3911_v50  ;;  %v3505_v48 = vadd.f32 %v3361_v22, %v3211_v2  ;;  %v3207_v54 = vmul.f32 %v12857_v46, %v12856_v32  ;;  %v3761_v42 = vmax.f32 %v3677_v59, 0.0  ;;  %v3674_v15 = vadd.f32 %v3590_v17, %v3506_v34  ;;  %v3583_v50 = vld [vmem:[%s12411_s2 + $0x120] sm:$0xff] }
 0x4d1   :  { %v3679_v6 = vadd.f32 %v3595_v45, %v3511_v10  ;;  %v3680_v63 = vadd.f32 %v3596_v51, %v3512_v60  ;;  %v3910_v49 = vpack.c.bf16 %v3770_v31, %v3768_v41  ;;  %v3909_v8 = vpack.c.bf16 %v3769_v19, %v3767_v23  ;;  %v3584_v19 = vld [vmem:[%s12411_s2 + $0x128] sm:$0xff]  ;;  %v3582_v23 = vld [vmem:[%s12411_s2 + $0x118] sm:$0xff] }
 0x4d2   :  { %v3366_v36 = vpop.permute.xlu0 %3365  ;;  %v3673_v26 = vadd.f32 %v3589_v1, %v3505_v48  ;;  %v3208_v31 = vmul.f32 %v12857_v46, %v12858_v37  ;;  %v3667_v41 = vadd.f32 %v3583_v50, %v3499_v47  ;;  %v3668_v35 = vadd.f32 %v3584_v19, %v3500_v4  ;;  %v6837_v47 = vld [vmem:[%s12410_s6 + $0x1c] ss:$12 sps:$4 sm:$0xff]   ;;  %v6839_v4 = vld [vmem:[%s12410_s6 + $0x18] ss:$12 sps:$4 sm:$0xff]  }
 0x4d3   :  { %v3763_v27 = vmax.f32 %v3679_v6, 0.0  ;;  %v3507_v57 = vadd.f32 %v3366_v36, %v9994_v21  ;;  %v3508_v58 = vadd.f32 %v3366_v36, %v9998_v39  ;;  %4323 = vmatprep.subr.bf16.mxu1 %v3910_v49  ;;  %v3764_v25 = vmax.f32 %v3680_v63, 0.0  ;;  %v3580_v21 = vld [vmem:[%s12411_s2 + $0x108] sm:$0xff]  ;;  %v12862_v37 = vld [vmem:[#allocation81_spill] sm:$0xff] }
 0x4d4   :  { %4324 = vmatpush2.bf16.msra.mxu1 %v3909_v8  ;;  %v3664_v22 = vadd.f32 %v3580_v21, %v3496_v20  ;;  %v3757_v14 = vmax.f32 %v3673_v26, 0.0  ;;  %v3758_v2 = vmax.f32 %v3674_v15, 0.0  ;;  %v3497_v63 = vadd.f32 %v9976_v24, %v10058_v13  ;;  %v3581_v8 = vld [vmem:[%s12411_s2 + $0x110] sm:$0xff]  ;;  %v6834_v20 = vld [vmem:[%s12410_s6] ss:$12 sps:$4 sm:$0xff]   ;;  %v12859_v15 = vld [vmem:[#allocation85_spill] sm:$0xff] }
 0x4d5   :  { %v3675_v39 = vadd.f32 %v3591_v28, %v3507_v57  ;;  %v3676_v43 = vadd.f32 %v3592_v33, %v3508_v58  ;;  %v3908_v29 = vpack.c.bf16 %v3766_v30, %v3764_v25  ;;  %v3907_v16 = vpack.c.bf16 %v3765_v52, %v3763_v27  ;;  %v6840_v21 = vld [vmem:[%s12410_s6 + $0x34] ss:$12 sps:$4 sm:$0xff]  }
 0x4d6   :  { %v3356_v55 = vpop.permute.xlu0 %3355  ;;  %v3666_v49 = vadd.f32 %v3582_v23, %v3498_v61  ;;  %v3663_v28 = vadd.f32 %v3579_v3, %v3495_v62  ;;  %v3748_v33 = vmax.f32 %v3664_v22, 0.0  ;;  %v3751_v36 = vmax.f32 %v3667_v41, 0.0  ;;  %v12864_v62 = vld [vmem:[#allocation80_spill] sm:$0xff]  ;;  %v6851_v23 = vld [vmem:[%s12410_s6 + $0x7c] ss:$12 sps:$4 sm:$0xff]  }
 0x4d7   :  { %v3759_v12 = vmax.f32 %v3675_v39, 0.0  ;;  %v3503_v9 = vadd.f32 %v3356_v55, %v9986_v38  ;;  %v3504_v45 = vadd.f32 %v3356_v55, %v9990_v44  ;;  %4325 = vmatprep.subr.bf16.mxu1 %v3908_v29  ;;  %v3760_v51 = vmax.f32 %v3676_v43, 0.0  ;;  %v6842_v39 = vld [vmem:[%s12410_s6 + $0x30] ss:$12 sps:$4 sm:$0xff]   ;;  %v6843_v43 = vld [vmem:[%s12410_s6 + $0x4c] ss:$12 sps:$4 sm:$0xff]  }
 0x4d8   :  { %4326 = vmatpush2.bf16.msra.mxu1 %v3907_v16  ;;  %v3752_v17 = vmax.f32 %v3668_v35, 0.0  ;;  %v3665_v57 = vadd.f32 %v3581_v8, %v3497_v63  ;;  %v3750_v58 = vmax.f32 %v3666_v49, 0.0  ;;  %v3747_v25 = vmax.f32 %v3663_v28, 0.0  ;;  %v6845_v16 = vld [vmem:[%s12410_s6 + $0x48] ss:$12 sps:$4 sm:$0xff]   ;;  %v12868_v35 = vld [vmem:[#allocation77_spill] sm:$0xff] }
 0x4d9   :  { %v3671_v38 = vadd.f32 %v3587_v11, %v3503_v9  ;;  %v3672_v10 = vadd.f32 %v3588_v18, %v3504_v45  ;;  %v3906_v44 = vpack.c.bf16 %v3762_v0, %v3760_v51  ;;  %v3905_v60 = vpack.c.bf16 %v3761_v42, %v3759_v12  ;;  %v6847_v42 = vld [vmem:[%s12410_s6 + $0x64] ss:$12 sps:$4 sm:$0xff]   ;;  %v3630_v9 = vld [vmem:[%s12411_s2 + $0x298] sm:$0xff]  ;;  %v6849_v51 = vld [vmem:[%s12410_s6 + $0x60] ss:$12 sps:$4 sm:$0xff]  }
 0x4da   :  { %v3351_v7 = vpop.permute.xlu0 %3350  ;;  %v3900_v32 = vpack.c.bf16 %v3750_v58, %v3748_v33  ;;  %v3749_v46 = vmax.f32 %v3665_v57, 0.0  ;;  %v12860_v11 = vld [vmem:[#allocation30_spill] sm:$0xff]  ;;  %v12861_v55 = vld [vmem:[#allocation84_spill] sm:$0xff]  ;;  %v12871_v49 = vld [vmem:[#allocation71_spill] sm:$0xff] }
 0x4db   :  { %v3755_v40 = vmax.f32 %v3671_v38, 0.0  ;;  %v3501_v52 = vadd.f32 %v3351_v7, %v3207_v54  ;;  %v3502_v30 = vadd.f32 %v3351_v7, %v3208_v31  ;;  %4327 = vmatprep.subr.bf16.mxu1 %v3906_v44  ;;  %v3756_v6 = vmax.f32 %v3672_v10, 0.0  ;;  %v3629_v12 = vld [vmem:[%s12411_s2 + $0x290] sm:$0xff]  ;;  %v12863_v31 = vld [vmem:[#allocation113_spill] sm:$0xff]  ;;  %v12865_v38 = vld [vmem:[#allocation83_spill] sm:$0xff] }
 0x4dc   :  { %4328 = vmatpush2.bf16.msra.mxu1 %v3905_v60  ;;  %v3899_v54 = vpack.c.bf16 %v3749_v46, %v3747_v25  ;;  %v3251_v18 = vmul.f32 %v12860_v11, %v12859_v15  ;;  %v3252_v0 = vmul.f32 %v12860_v11, %v12861_v55  ;;  %v3247_v61 = vmul.f32 %v12863_v31, %v12862_v37  ;;  %v12866_v10 = vld [vmem:[#allocation94_spill] sm:$0xff]  ;;  %v12872_v8 = vld [vmem:[#allocation109_spill] sm:$0xff]  ;;  %v12877_v25 = vld [vmem:[#allocation79_spill] sm:$0xff] }
 0x4dd   :  { %v3669_v59 = vadd.f32 %v3585_v53, %v3501_v52  ;;  %v3670_v56 = vadd.f32 %v3586_v5, %v3502_v30  ;;  %v3904_v48 = vpack.c.bf16 %v3758_v2, %v3756_v6  ;;  %v3903_v34 = vpack.c.bf16 %v3757_v14, %v3755_v40  ;;  %v12867_v60 = vld [vmem:[#allocation82_spill] sm:$0xff]  ;;  %v12869_v14 = vld [vmem:[#allocation91_spill] sm:$0xff]  ;;  %v12870_v5 = vld [vmem:[#allocation76_spill] sm:$0xff] }
 0x4de   :  { %v3461_v29 = vpop.permute.xlu0 %3460  ;;  %v3248_v22 = vmul.f32 %v12863_v31, %v12864_v62  ;;  %v3249_v44 = vmul.f32 %v12866_v10, %v12865_v38  ;;  %v3250_v41 = vmul.f32 %v12866_v10, %v12867_v60  ;;  %v3243_v53 = vmul.f32 %v12869_v14, %v12868_v35  ;;  %v3627_v30 = vld [vmem:[%s12411_s2 + $0x280] sm:$0xff]  ;;  %v3628_v6 = vld [vmem:[%s12411_s2 + $0x288] sm:$0xff]  ;;  %v3626_v28 = vld [vmem:[%s12411_s2 + $0x278] sm:$0xff] }
 0x4df   :  { %v3753_v1 = vmax.f32 %v3669_v59, 0.0  ;;  %4329 = vmatprep.subr.bf16.mxu1 %v3904_v48  ;;  %v3754_v27 = vmax.f32 %v3670_v56, 0.0  ;;  %v3545_v50 = vadd.f32 %v3461_v29, %v3251_v18  ;;  %v3546_v19 = vadd.f32 %v3461_v29, %v3252_v0  ;;  %v12873_v56 = vld [vmem:[#allocation70_spill] sm:$0xff]  ;;  %v3624_v15 = vld [vmem:[%s12411_s2 + $0x268] sm:$0xff] }
 0x4e0   :  { %4330 = vmatpush2.bf16.msra.mxu1 %v3903_v34  ;;  %v3244_v7 = vmul.f32 %v12869_v14, %v12870_v5  ;;  %v10220_v59 = vmul.f32 %v12872_v8, %v12871_v49  ;;  %v10224_v48 = vmul.f32 %v12872_v8, %v12873_v56  ;;  %v3625_v34 = vld [vmem:[%s12411_s2 + $0x270] sm:$0xff]  ;;  %v12876_v57 = vld [vmem:[#allocation74_spill] sm:$0xff]  ;;  %v3620_v14 = vld [vmem:[%s12411_s2 + $0x248] sm:$0xff] }
 0x4e1   :  { %v3902_v24 = vpack.c.bf16 %v3754_v27, %v3752_v17  ;;  %v3901_v13 = vpack.c.bf16 %v3753_v1, %v3751_v36  ;;  %v3713_v2 = vadd.f32 %v3629_v12, %v3545_v50  ;;  %v3714_v3 = vadd.f32 %v3630_v9, %v3546_v19  ;;  %v12874_v1 = vld [vmem:[#allocation75_spill] sm:$0xff]  ;;  %v12880_v12 = vld [vmem:[#allocation73_spill] sm:$0xff]  ;;  %v12881_v9 = vld [vmem:[#allocation92_spill] sm:$0xff] }
 0x4e2   :  { %v3451_v26 = vpop.permute.xlu0 %3450  ;;  %v12875_v17 = vld [vmem:[#allocation111_spill] sm:$0xff]  ;;  %v6853_v10 = vld [vmem:[%s12410_s6 + $0x78] ss:$12 sps:$4 sm:$0xff]  }
 0x4e3   :  { %4331 = vmatprep.subr.bf16.mxu1 %v3902_v24  ;;  %v3541_v40 = vadd.f32 %v3451_v26, %v3247_v61  ;;  %v3542_v52 = vadd.f32 %v3451_v26, %v3248_v22  ;;  %v3241_v27 = vmul.f32 %v12875_v17, %v12874_v1  ;;  %v3242_v24 = vmul.f32 %v12875_v17, %v12876_v57  ;;  %v3623_v26 = vld [vmem:[%s12411_s2 + $0x260] sm:$0xff]  ;;  %v12883_v49 = vld [vmem:[#allocation69_spill] sm:$0xff] }
 0x4e4   :  { %4332 = vmatpush2.bf16.msra.mxu1 %v3901_v13  ;;  %v3797_v29 = vmax.f32 %v3713_v2, 0.0  ;;  %v3798_v18 = vmax.f32 %v3714_v3, 0.0  ;;  %v3619_v35 = vld [vmem:[%s12411_s2 + $0x240] sm:$0xff]  ;;  %v3617_v2 = vld [vmem:[%s12411_s2 + $0x230] sm:$0xff]  ;;  %v3618_v3 = vld [vmem:[%s12411_s2 + $0x238] sm:$0xff] }
 0x4e5   :  { %4333 = vmatprep.subr.bf16.mxu1 %v3900_v32  ;;  %v12878_v32 = vld [vmem:[#allocation96_spill] sm:$0xff]  ;;  %v12884_v8 = vld [vmem:[#allocation93_spill] sm:$0xff] }
 0x4e6   :  { %v3441_v45 = vpop.permute.xlu0 %3440  ;;  %v3245_v46 = vmul.f32 %v12878_v32, %v12877_v25  ;;  %v3235_v56 = vmul.f32 %v12884_v8, %v12883_v49  ;;  %v6873_v49 = vld [vmem:[%s12410_s6 + $0xf4] ss:$12 sps:$4 sm:$0xff]  }
 0x4e7   :  { %v3537_v13 = vadd.f32 %v3441_v45, %v3243_v53  ;;  %v3538_v58 = vadd.f32 %v3441_v45, %v3244_v7  ;;  %v3239_v45 = vmul.f32 %v12881_v9, %v12880_v12  ;;  %v6855_v7 = vld [vmem:[%s12410_s6 + $0x94] ss:$12 sps:$4 sm:$0xff]  }
 0x4e8   :  { %4334 = vmatpush2.bf16.msra.mxu1 %v3899_v54  ;;  %v12879_v54 = vld [vmem:[#allocation78_spill] sm:$0xff] }
 0x4e9   :  { %v3611_v12 = vld [vmem:[%s12411_s2 + $0x200] sm:$0xff] }
 0x4eb   :  { %4336 = vmatmul.mubr.bf16.vlgmr.msra.gmra.mxu1 %v6834_v20  ;;  %v3246_v20 = vmul.f32 %v12878_v32, %v12879_v54  ;;  %v3615_v32 = vld [vmem:[%s12411_s2 + $0x220] sm:$0xff] }
 0x4ec   :  { %4345 = vmatprep.mubr.bf16.mxu1 %v6837_v47  ;;  %v3621_v47 = vld [vmem:[%s12411_s2 + $0x250] sm:$0xff] }
 0x4ed   :  { %v3705_v31 = vadd.f32 %v3621_v47, %v3537_v13  ;;  %v3614_v47 = vld [vmem:[%s12411_s2 + $0x218] sm:$0xff] }
 0x4f3   :  { %4346 = vmatmul.mubr.bf16.gmra.mxu1 %v6839_v4  ;;  %v3622_v4 = vld [vmem:[%s12411_s2 + $0x258] sm:$0xff] }
 0x4f4   :  { %4355 = vmatprep.mubr.bf16.mxu1 %v6840_v21  ;;  %v3431_v21 = vpop.permute.xlu0 %3430  ;;  %v3706_v61 = vadd.f32 %v3622_v4, %v3538_v58 }
 0x4f5   :  { %v3533_v60 = vadd.f32 %v3431_v21, %v3239_v45 }
 0x4fb   :  { %4356 = vmatmul.mubr.bf16.gmra.mxu1 %v6842_v39 }
 0x4fc   :  { %4365 = vmatprep.mubr.bf16.mxu1 %v6843_v43 }
 0x503   :  { %4366 = vmatmul.mubr.bf16.gmra.mxu1 %v6845_v16  ;;  %v3709_v16 = vadd.f32 %v3625_v34, %v3541_v40  ;;  %v3421_v40 = vpop.permute.xlu0 %3420  ;;  %v12885_v34 = vld [vmem:[#allocation68_spill] sm:$0xff] }
 0x504   :  { %4375 = vmatprep.mubr.bf16.mxu1 %v6847_v42  ;;  %v3710_v42 = vadd.f32 %v3626_v28, %v3542_v52  ;;  %v3236_v28 = vmul.f32 %v12884_v8, %v12885_v34  ;;  %v3529_v58 = vadd.f32 %v3421_v40, %v3235_v56  ;;  %v6854_v8 = vld [vmem:[%s12410_s6 + $0x38] ss:$12 sps:$4 sm:$0xff]   ;;  %v6871_v56 = vld [vmem:[%s12410_s6 + $0xf0] ss:$12 sps:$4 sm:$0xff]  }
 0x505   :  { %v6877_v34 = vld [vmem:[%s12410_s6 + $0x10c] ss:$12 sps:$4 sm:$0xff]  }
 0x506   :  { %v3794_v5 = vmax.f32 %v3710_v42, 0.0  ;;  %v3530_v25 = vadd.f32 %v3421_v40, %v3236_v28  ;;  %v12889_v40 = vmov 0   ;;  %v6858_v28 = vld [vmem:[%s12410_s6 + $0x50] ss:$12 sps:$4 sm:$0xff]  }
 0x50a   :  { %v3456_v63 = vpop.permute.xlu1 %3455 }
 0x50b   :  { %v3543_v33 = vadd.f32 %v3456_v63, %v3249_v44  ;;  %v3544_v36 = vadd.f32 %v3456_v63, %v3250_v41  ;;  %4376 = vmatmul.mubr.bf16.gmra.mxu1 %v6849_v51  ;;  %v12882_v51 = vld [vmem:[#allocation72_spill] sm:$0xff]  ;;  %v3793_v44 = vmax.f32 %v3709_v16, 0.0  ;;  %v12887_v16 = vld [vmem:[#allocation90_spill] sm:$0xff] }
 0x50c   :  { %4385 = vmatprep.mubr.bf16.mxu1 %v6851_v23  ;;  %v3240_v37 = vmul.f32 %v12881_v9, %v12882_v51  ;;  %v3612_v9 = vld [vmem:[%s12411_s2 + $0x208] sm:$0xff] }
 0x50d   :  { %v3711_v39 = vadd.f32 %v3627_v30, %v3543_v33  ;;  %v3712_v43 = vadd.f32 %v3628_v6, %v3544_v36  ;;  %v3789_v33 = vmax.f32 %v3705_v31, 0.0  ;;  %v3790_v36 = vmax.f32 %v3706_v61, 0.0 }
 0x50e   :  { %v3446_v11 = vpop.permute.xlu1 %3445  ;;  %v3534_v41 = vadd.f32 %v3431_v21, %v3240_v37  ;;  %v6861_v37 = vld [vmem:[%s12410_s6 + $0xac] ss:$12 sps:$4 sm:$0xff]  }
 0x50f   :  { %v3795_v55 = vmax.f32 %v3711_v39, 0.0  ;;  %v3539_v0 = vadd.f32 %v3446_v11, %v3245_v46  ;;  %v3540_v50 = vadd.f32 %v3446_v11, %v3246_v20  ;;  %v3796_v19 = vmax.f32 %v3712_v43, 0.0  ;;  %v3616_v46 = vld [vmem:[%s12411_s2 + $0x228] sm:$0xff]  ;;  %v3613_v20 = vld [vmem:[%s12411_s2 + $0x210] sm:$0xff] }
 0x511   :  { %v3707_v62 = vadd.f32 %v3623_v26, %v3539_v0  ;;  %v3708_v22 = vadd.f32 %v3624_v15, %v3540_v50  ;;  %v3924_v23 = vpack.c.bf16 %v3798_v18, %v3796_v19  ;;  %v3923_v38 = vpack.c.bf16 %v3797_v29, %v3795_v55  ;;  %v12886_v29 = vld [vmem:[#allocation67_spill] sm:$0xff]  ;;  %v12888_v26 = vld [vmem:[#allocation66_spill] sm:$0xff] }
 0x512   :  { %v3436_v53 = vpop.permute.xlu1 %3435  ;;  %v3233_v42 = vmul.f32 %v12887_v16, %v12886_v29  ;;  %v3234_v15 = vmul.f32 %v12887_v16, %v12888_v26  ;;  %v3697_v50 = vadd.f32 %v3613_v20, %v3529_v58  ;;  %v3698_v19 = vadd.f32 %v3614_v47, %v3530_v25  ;;  %v6870_v58 = vld [vmem:[%s12410_s6 + $0x98] ss:$12 sps:$4 sm:$0xff]   ;;  %v6887_v25 = vld [vmem:[%s12410_s6 + $0x150] ss:$12 sps:$4 sm:$0xff]   ;;  %v6878_v47 = vld [vmem:[%s12410_s6 + $0xc8] ss:$12 sps:$4 sm:$0xff]  }
 0x513   :  { %v3791_v52 = vmax.f32 %v3707_v62, 0.0  ;;  %v3535_v30 = vadd.f32 %v3436_v53, %v3241_v27  ;;  %v3536_v6 = vadd.f32 %v3436_v53, %v3242_v24  ;;  %4552 = vmatprep.subr.bf16.mxu0 %v3924_v23  ;;  %6684 = vmatprep.subr.bf16.mxu1 %v3924_v23  ;;  %v3792_v63 = vmax.f32 %v3708_v22, 0.0  ;;  %v6897_v20 = vld [vmem:[%s12410_s6 + $0x184] ss:$12 sps:$4 sm:$0xff]   ;;  %v6905_v29 = vld [vmem:[%s12410_s6 + $0x1b4] ss:$12 sps:$4 sm:$0xff]  }
 0x514   :  { %4553 = vmatpush1.bf16.msra.mxu0 %v3923_v38  ;;  %6689 = vmatpush1.bf16.msra.mxu1 %v3923_v38  ;;  %v3701_v27 = vadd.f32 %v3617_v2, %v3533_v60  ;;  %v3702_v24 = vadd.f32 %v3618_v3, %v3534_v41  ;;  %v3781_v60 = vmax.f32 %v3697_v50, 0.0  ;;  %v6865_v2 = vld [vmem:[%s12410_s6 + $0xc4] ss:$12 sps:$4 sm:$0xff]   ;;  %v6846_v3 = vld [vmem:[%s12410_s6 + $0x8] ss:$12 sps:$4 sm:$0xff]  }
 0x515   :  { %v3703_v1 = vadd.f32 %v3619_v35, %v3535_v30  ;;  %v3704_v17 = vadd.f32 %v3620_v14, %v3536_v6  ;;  %v3922_v57 = vpack.c.bf16 %v3794_v5, %v3792_v63  ;;  %v3921_v13 = vpack.c.bf16 %v3793_v44, %v3791_v52  ;;  %4386 = vmatmul.mubr.bf16.gmra.mxu1 %v6853_v10  ;;  %v6863_v52 = vld [vmem:[%s12410_s6 + $0xc0] ss:$12 sps:$4 sm:$0xff]   ;;  %v6869_v30 = vld [vmem:[%s12410_s6 + $0xdc] ss:$12 sps:$4 sm:$0xff]   ;;  %v6867_v63 = vld [vmem:[%s12410_s6 + $0xd8] ss:$12 sps:$4 sm:$0xff]  }
 0x516   :  { %v3426_v54 = vpop.permute.xlu1 %3425  ;;  %4395 = vmatprep.mubr.bf16.mxu1 %v6855_v7  ;;  %v3786_v51 = vmax.f32 %v3702_v24, 0.0  ;;  %v3782_v14 = vmax.f32 %v3698_v19, 0.0  ;;  %v6859_v7 = vld [vmem:[%s12410_s6 + $0xa8] ss:$12 sps:$4 sm:$0xff]   ;;  %v6850_v6 = vld [vmem:[%s12410_s6 + $0x20] ss:$12 sps:$4 sm:$0xff]  }
 0x517   :  { %v3787_v4 = vmax.f32 %v3703_v1, 0.0  ;;  %v3531_v21 = vadd.f32 %v3426_v54, %v10220_v59  ;;  %v3532_v39 = vadd.f32 %v3426_v54, %v10224_v48  ;;  %4554 = vmatprep.subr.bf16.mxu0 %v3922_v57  ;;  %6685 = vmatprep.subr.bf16.mxu1 %v3922_v57  ;;  %v3788_v43 = vmax.f32 %v3704_v17, 0.0  ;;  %v6857_v59 = vld [vmem:[%s12410_s6 + $0x90] ss:$12 sps:$4 sm:$0xff]   ;;  %v6862_v1 = vld [vmem:[%s12410_s6 + $0x68] ss:$12 sps:$4 sm:$0xff]  }
 0x518   :  { %4555 = vmatpush1.bf16.msra.mxu0 %v3921_v13  ;;  %6690 = vmatpush1.bf16.msra.mxu1 %v3921_v13  ;;  %v3785_v48 = vmax.f32 %v3701_v27, 0.0  ;;  %v6879_v17 = vld [vmem:[%s12410_s6 + $0x120] ss:$12 sps:$4 sm:$0xff]   ;;  %v6885_v57 = vld [vmem:[%s12410_s6 + $0x13c] ss:$12 sps:$4 sm:$0xff]  }
 0x519   :  { %v3699_v11 = vadd.f32 %v3615_v32, %v3531_v21  ;;  %v3700_v18 = vadd.f32 %v3616_v46, %v3532_v39  ;;  %v3920_v55 = vpack.c.bf16 %v3790_v36, %v3788_v43  ;;  %v3919_v0 = vpack.c.bf16 %v3789_v33, %v3787_v4  ;;  %v6875_v33 = vld [vmem:[%s12410_s6 + $0x108] ss:$12 sps:$4 sm:$0xff]   ;;  %v6881_v36 = vld [vmem:[%s12410_s6 + $0x124] ss:$12 sps:$4 sm:$0xff]   ;;  %v6866_v13 = vld [vmem:[%s12410_s6 + $0x80] ss:$12 sps:$4 sm:$0xff]  }
 0x51a   :  { %v3416_v45 = vpop.permute.xlu1 %3415  ;;  %v6883_v27 = vld [vmem:[%s12410_s6 + $0x138] ss:$12 sps:$4 sm:$0xff]   ;;  %v6889_v24 = vld [vmem:[%s12410_s6 + $0x154] ss:$12 sps:$4 sm:$0xff]   ;;  %v6874_v46 = vld [vmem:[%s12410_s6 + $0xb0] ss:$12 sps:$4 sm:$0xff]  }
 0x51b   :  { %v3783_v31 = vmax.f32 %v3699_v11, 0.0  ;;  %v3527_v61 = vadd.f32 %v3416_v45, %v3233_v42  ;;  %v3528_v62 = vadd.f32 %v3416_v45, %v3234_v15  ;;  %4556 = vmatprep.subr.bf16.mxu0 %v3920_v55  ;;  %6686 = vmatprep.subr.bf16.mxu1 %v3920_v55  ;;  %v3784_v22 = vmax.f32 %v3700_v18, 0.0  ;;  %v6893_v32 = vld [vmem:[%s12410_s6 + $0x16c] ss:$12 sps:$4 sm:$0xff]   ;;  %v6891_v54 = vld [vmem:[%s12410_s6 + $0x168] ss:$12 sps:$4 sm:$0xff]  }
 0x51c   :  { %4557 = vmatpush1.bf16.msra.mxu0 %v3919_v0  ;;  %6691 = vmatpush1.bf16.msra.mxu1 %v3919_v0  ;;  %v6895_v4 = vld [vmem:[%s12410_s6 + $0x180] ss:$12 sps:$4 sm:$0xff]   ;;  %v6901_v21 = vld [vmem:[%s12410_s6 + $0x19c] ss:$12 sps:$4 sm:$0xff]   ;;  %v6899_v43 = vld [vmem:[%s12410_s6 + $0x198] ss:$12 sps:$4 sm:$0xff]  }
 0x51d   :  { %v3695_v23 = vadd.f32 %v3611_v12, %v3527_v61  ;;  %v3696_v38 = vadd.f32 %v3612_v9, %v3528_v62  ;;  %v3918_v10 = vpack.c.bf16 %v3786_v51, %v3784_v22  ;;  %v3917_v44 = vpack.c.bf16 %v3785_v48, %v3783_v31  ;;  %4396 = vmatmul.mubr.bf16.gmra.mxu1 %v6857_v59  ;;  %v6882_v39 = vld [vmem:[%s12410_s6 + $0xe0] ss:$12 sps:$4 sm:$0xff]   ;;  %v6886_v16 = vld [vmem:[%s12410_s6 + $0xf8] ss:$12 sps:$4 sm:$0xff]   ;;  %v6903_v42 = vld [vmem:[%s12410_s6 + $0x1b0] ss:$12 sps:$4 sm:$0xff]  }
 0x51e   :  { %4405 = vmatprep.mubr.bf16.mxu1 %v6861_v37  ;;  %v6909_v26 = vld [vmem:[%s12410_s6 + $0x1cc] ss:$12 sps:$4 sm:$0xff]   ;;  %v6890_v15 = vld [vmem:[%s12410_s6 + $0x110] ss:$12 sps:$4 sm:$0xff]   ;;  %v6907_v11 = vld [vmem:[%s12410_s6 + $0x1c8] ss:$12 sps:$4 sm:$0xff]  }
 0x51f   :  { %v3779_v41 = vmax.f32 %v3695_v23, 0.0  ;;  %4558 = vmatprep.subr.bf16.mxu0 %v3918_v10  ;;  %6687 = vmatprep.subr.bf16.mxu1 %v3918_v10  ;;  %v3780_v35 = vmax.f32 %v3696_v38, 0.0  ;;  %v6913_v18 = vld [vmem:[%s12410_s6 + $0x1e4] ss:$12 sps:$4 sm:$0xff]   ;;  %v6894_v55 = vld [vmem:[%s12410_s6 + $0x128] ss:$12 sps:$4 sm:$0xff]  }
 0x520   :  { %4559 = vmatpush1.bf16.msra.mxu0 %v3917_v44  ;;  %6692 = vmatpush1.bf16.msra.mxu1 %v3917_v44  ;;  %v6911_v0 = vld [vmem:[%s12410_s6 + $0x1e0] ss:$12 sps:$4 sm:$0xff]   ;;  %v6915_v48 = vld [vmem:[%s12410_s6 + $0x1d0] ss:$12 sps:$4 sm:$0xff]   ;;  %v6902_v50 = vld [vmem:[%s12410_s6 + $0x158] ss:$12 sps:$4 sm:$0xff]  }
 0x521   :  { %v3916_v53 = vpack.c.bf16 %v3782_v14, %v3780_v35  ;;  %v3915_v5 = vpack.c.bf16 %v3781_v60, %v3779_v41  ;;  %v6898_v59 = vld [vmem:[%s12410_s6 + $0x140] ss:$12 sps:$4 sm:$0xff]   ;;  %v6917_v19 = vld [vmem:[%s12410_s6 + $0x1e8] ss:$12 sps:$4 sm:$0xff]   ;;  %v6906_v12 = vld [vmem:[%s12410_s6 + $0x170] ss:$12 sps:$4 sm:$0xff]  }
 0x522   :  { %v6910_v9 = vld [vmem:[%s12410_s6 + $0x188] ss:$12 sps:$4 sm:$0xff]   ;;  %v6914_v45 = vld [vmem:[%s12410_s6 + $0x1a0] ss:$12 sps:$4 sm:$0xff]   ;;  %v6916_v62 = vld [vmem:[%s12410_s6 + $0x1b8] ss:$12 sps:$4 sm:$0xff]  }
 0x523   :  { %4560 = vmatprep.subr.bf16.mxu0 %v3916_v53  ;;  %6688 = vmatprep.subr.bf16.mxu1 %v3916_v53 }
 0x524   :  { %4561 = vmatpush1.bf16.msra.mxu0 %v3915_v5  ;;  %6693 = vmatpush1.bf16.msra.mxu1 %v3915_v5 }
 0x525   :  { %4406 = vmatmul.mubr.bf16.gmra.mxu1 %v6859_v7 }
 0x526   :  { %4415 = vmatprep.mubr.bf16.mxu1 %v6865_v2 }
 0x527   :  { %6663 = vmatmul.mubr.msk.bf16.vlgmr.msra.gmra.mxu0 %vm1400_vm1, %v6846_v3 }
 0x528   :  { %4588 = vmatprep.mubr.bf16.mxu0 %v12889_v40 }
 0x52d   :  { %4416 = vmatmul.mubr.bf16.gmra.mxu1 %v6863_v52 }
 0x52e   :  { %4425 = vmatprep.mubr.bf16.mxu1 %v6869_v30 }
 0x52f   :  { %6664 = vmatmul.mubr.msk.bf16.gmra.mxu0 %vm1400_vm1, %v6850_v6 }
 0x530   :  { %4598 = vmatprep.mubr.bf16.mxu0 %v12889_v40 }
 0x535   :  { %4426 = vmatmul.mubr.bf16.gmra.mxu1 %v6867_v63 }
 0x536   :  { %4435 = vmatprep.mubr.bf16.mxu1 %v6873_v49 }
 0x537   :  { %6665 = vmatmul.mubr.msk.bf16.gmra.mxu0 %vm1400_vm1, %v6854_v8 }
 0x538   :  { %4608 = vmatprep.mubr.bf16.mxu0 %v12889_v40 }
 0x53d   :  { %4436 = vmatmul.mubr.bf16.gmra.mxu1 %v6871_v56 }
 0x53e   :  { %4445 = vmatprep.mubr.bf16.mxu1 %v6877_v34 }
 0x53f   :  { %6666 = vmatmul.mubr.msk.bf16.gmra.mxu0 %vm1400_vm1, %v6858_v28 }
 0x540   :  { %4618 = vmatprep.mubr.bf16.mxu0 %v12889_v40 }
 0x545   :  { %4446 = vmatmul.mubr.bf16.gmra.mxu1 %v6875_v33 }
 0x546   :  { %4455 = vmatprep.mubr.bf16.mxu1 %v6881_v36 }
 0x547   :  { %6667 = vmatmul.mubr.msk.bf16.gmra.mxu0 %vm1400_vm1, %v6862_v1 }
 0x548   :  { %4628 = vmatprep.mubr.bf16.mxu0 %v12889_v40 }
 0x54d   :  { %4456 = vmatmul.mubr.bf16.gmra.mxu1 %v6879_v17 }
 0x54e   :  { %4465 = vmatprep.mubr.bf16.mxu1 %v6885_v57 }
 0x54f   :  { %6668 = vmatmul.mubr.msk.bf16.gmra.mxu0 %vm1400_vm1, %v6866_v13 }
 0x550   :  { %4638 = vmatprep.mubr.bf16.mxu0 %v12889_v40 }
 0x555   :  { %4466 = vmatmul.mubr.bf16.gmra.mxu1 %v6883_v27 }
 0x556   :  { %4475 = vmatprep.mubr.bf16.mxu1 %v6889_v24 }
 0x557   :  { %6669 = vmatmul.mubr.msk.bf16.gmra.mxu0 %vm1400_vm1, %v6870_v58 }
 0x558   :  { %4648 = vmatprep.mubr.bf16.mxu0 %v12889_v40 }
 0x55d   :  { %4476 = vmatmul.mubr.bf16.gmra.mxu1 %v6887_v25 }
 0x55e   :  { %4485 = vmatprep.mubr.bf16.mxu1 %v6893_v32 }
 0x55f   :  { %6670 = vmatmul.mubr.msk.bf16.gmra.mxu0 %vm1400_vm1, %v6874_v46 }
 0x560   :  { %4658 = vmatprep.mubr.bf16.mxu0 %v12889_v40 }
 0x565   :  { %4486 = vmatmul.mubr.bf16.gmra.mxu1 %v6891_v54 }
 0x566   :  { %4495 = vmatprep.mubr.bf16.mxu1 %v6897_v20 }
 0x567   :  { %6671 = vmatmul.mubr.msk.bf16.gmra.mxu0 %vm1400_vm1, %v6878_v47 }
 0x568   :  { %4668 = vmatprep.mubr.bf16.mxu0 %v12889_v40 }
 0x56d   :  { %4496 = vmatmul.mubr.bf16.gmra.mxu1 %v6895_v4 }
 0x56e   :  { %4505 = vmatprep.mubr.bf16.mxu1 %v6901_v21 }
 0x56f   :  { %6672 = vmatmul.mubr.msk.bf16.gmra.mxu0 %vm1400_vm1, %v6882_v39 }
 0x570   :  { %4678 = vmatprep.mubr.bf16.mxu0 %v12889_v40 }
 0x575   :  { %4506 = vmatmul.mubr.bf16.gmra.mxu1 %v6899_v43 }
 0x576   :  { %4515 = vmatprep.mubr.bf16.mxu1 %v6905_v29 }
 0x577   :  { %6673 = vmatmul.mubr.msk.bf16.gmra.mxu0 %vm1400_vm1, %v6886_v16 }
 0x578   :  { %4688 = vmatprep.mubr.bf16.mxu0 %v12889_v40 }
 0x57d   :  { %4516 = vmatmul.mubr.bf16.gmra.mxu1 %v6903_v42 }
 0x57e   :  { %4525 = vmatprep.mubr.bf16.mxu1 %v6909_v26 }
 0x57f   :  { %6674 = vmatmul.mubr.msk.bf16.gmra.mxu0 %vm1400_vm1, %v6890_v15 }
 0x580   :  { %4698 = vmatprep.mubr.bf16.mxu0 %v12889_v40 }
 0x585   :  { %4526 = vmatmul.mubr.bf16.gmra.mxu1 %v6907_v11 }
 0x586   :  { %4535 = vmatprep.mubr.bf16.mxu1 %v6913_v18 }
 0x587   :  { %6675 = vmatmul.mubr.msk.bf16.gmra.mxu0 %vm1400_vm1, %v6894_v55 }
 0x588   :  { %4708 = vmatprep.mubr.bf16.mxu0 %v12889_v40 }
 0x58d   :  { %4536 = vmatmul.mubr.bf16.gmra.mxu1 %v6911_v0 }
 0x58e   :  { %4768 = vmatprep.mubr.bf16.mxu1 %v12889_v40 }
 0x58f   :  { %6676 = vmatmul.mubr.msk.bf16.gmra.mxu0 %vm1400_vm1, %v6898_v59 }
 0x590   :  { %4718 = vmatprep.mubr.bf16.mxu0 %v12889_v40 }
 0x595   :  { %6682 = vmatmul.mubr.msk.bf16.vlgmr.msra.gmra.mxu1 %vm1400_vm1, %v6915_v48 }
 0x596   :  { %4778 = vmatprep.mubr.bf16.mxu1 %v12889_v40 }
 0x597   :  { %6677 = vmatmul.mubr.msk.bf16.gmra.mxu0 %vm1400_vm1, %v6902_v50 }
 0x598   :  { %4728 = vmatprep.mubr.bf16.mxu0 %v12889_v40 }
 0x59d   :  { %6683 = vmatmul.mubr.msk.bf16.gmra.mxu1 %vm1400_vm1, %v6917_v19 }
 0x59f   :  { %6678 = vmatmul.mubr.msk.bf16.gmra.mxu0 %vm1400_vm1, %v6906_v12 }
 0x5a0   :  { %4738 = vmatprep.mubr.bf16.mxu0 %v12889_v40 }
 0x5a7   :  { %6679 = vmatmul.mubr.msk.bf16.gmra.mxu0 %vm1400_vm1, %v6910_v9 }
 0x5a8   :  { %4748 = vmatprep.mubr.bf16.mxu0 %v12889_v40 }
 0x5ab   :  { %v4337_v51 = vpop.f32.mrf.mxu1 }
 0x5ad   :  { %v4339_v37 = vpop.f32.mrf.mxu1 }
 0x5af   :  { %6680 = vmatmul.mubr.msk.bf16.gmra.mxu0 %vm1400_vm1, %v6914_v45  ;;  %v4341_v31 = vpop.f32.mrf.mxu1 }
 0x5b0   :  { %4758 = vmatprep.mubr.bf16.mxu0 %v12889_v40 }
 0x5b1   :  { %v4343_v61 = vpop.f32.mrf.mxu1 }
 0x5b3   :  { %v4347_v22 = vpop.f32.mrf.mxu1 }
 0x5b5   :  { %v4349_v23 = vpop.f32.mrf.mxu1 }
 0x5b7   :  { %6681 = vmatmul.mubr.msk.bf16.gmra.mxu0 %vm1400_vm1, %v6916_v62  ;;  %v10493_v38 = vpop.f32.mrf.mxu1 }
 0x5b9   :  { %v4353_v10 = vpop.f32.mrf.mxu1 }
 0x5bb   :  { %v10495_v44 = vpop.f32.mrf.mxu1 }
 0x5bd   :  { %v10497_v60 = vpop.f32.mrf.mxu1 }
 0x5bf   :  { %v10499_v41 = vpop.f32.mrf.mxu1 }
 0x5c1   :  { %v10501_v35 = vpop.f32.mrf.mxu1 }
 0x5c3   :  { %v10503_v14 = vpop.f32.mrf.mxu1 }
 0x5c5   :  { %v10505_v53 = vpop.f32.mrf.mxu1 }
 0x5c7   :  { %v10507_v5 = vpop.f32.mrf.mxu1 }
 0x5c9   :  { %v10509_v7 = vpop.f32.mrf.mxu1 }
 0x5cb   :  { %v10511_v2 = vpop.f32.mrf.mxu1 }
 0x5cd   :  { %v10513_v3 = vpop.f32.mrf.mxu1 }
 0x5cf   :  { %v10515_v40 = vpop.f32.mrf.mxu1 }
 0x5d1   :  { %v10517_v52 = vpop.f32.mrf.mxu1 }
 0x5d5   :  { %v10519_v30 = vpop.f32.mrf.mxu1 }
 0x5d7   :  { %v10521_v6 = vpop.f32.mrf.mxu1 }
 0x5d9   :  { %v10523_v63 = vpop.f32.mrf.mxu1 }
 0x5db   :  { %v10525_v49 = vpop.f32.mrf.mxu1 }
 0x5dd   :  { %v10527_v8 = vpop.f32.mrf.mxu1 }
 0x5df   :  { %v10529_v56 = vpop.f32.mrf.mxu1 }
 0x5e1   :  { %v10531_v34 = vpop.f32.mrf.mxu1 }
 0x5e3   :  { %v10533_v28 = vpop.f32.mrf.mxu1 }
 0x5e5   :  { %v10535_v33 = vpop.f32.mrf.mxu1 }
 0x5e7   :  { %v4580_v36 = vpop.f32.mrf.mxu0  ;;  %v10537_v1 = vpop.f32.mrf.mxu1 }
 0x5e8   :  { %v10539_v17 = vadd.f32 %v4580_v36, %v4337_v51 }
 0x5e9   :  { %v4582_v57 = vpop.f32.mrf.mxu0  ;;  %v10541_v13 = vpop.f32.mrf.mxu1 }
 0x5ea   :  { %12890 = vst [vmem:[#allocation3_spill] sm:$0xff] %v10539_v17  ;;  %v10543_v27 = vadd.f32 %v4582_v57, %v4339_v37  ;;  %v4957_v46 = vmul.f32 %v10539_v17, %v10539_v17 }
 0x5eb   :  { %v4584_v24 = vpop.f32.mrf.mxu0  ;;  %v10545_v58 = vpop.f32.mrf.mxu1 }
 0x5ec   :  { %12891 = vst [vmem:[#allocation5_spill] sm:$0xff] %v10543_v27  ;;  %v4958_v25 = vmul.f32 %v10543_v27, %v10543_v27  ;;  %v4789_v32 = vsel %vm1950_vm2, %v10543_v27, 0.0  ;;  %v10553_v54 = vadd.f32 %v4584_v24, %v4341_v31 }
 0x5ed   :  { %v4586_v20 = vpop.f32.mrf.mxu0  ;;  %v4790_v47 = vadd.f32 %v4789_v32, %v10539_v17  ;;  %v10556_v4 = vpop.f32.mrf.mxu1 }
 0x5ee   :  { %12892 = vst [vmem:[#allocation11_spill] sm:$0xff] %v10553_v54  ;;  %v10558_v21 = vadd.f32 %v4586_v20, %v4343_v61  ;;  %v5041_v39 = vsel %vm1950_vm2, %v4958_v25, 0.0  ;;  %v4959_v15 = vmul.f32 %v10553_v54, %v10553_v54 }
 0x5ef   :  { %v4590_v43 = vpop.f32.mrf.mxu0  ;;  %v5042_v29 = vadd.f32 %v5041_v39, %v4957_v46  ;;  %4791 = vadd.xlane.f32.xlu1 %v4790_v47  ;;  %v10561_v16 = vpop.f32.mrf.mxu1 }
 0x5f0   :  { %12893 = vst [vmem:[#allocation10_spill] sm:$0xff] %v10558_v21  ;;  %v4960_v42 = vmul.f32 %v10558_v21, %v10558_v21  ;;  %v4793_v26 = vsel %vm1950_vm2, %v10558_v21, 0.0  ;;  %v10581_v45 = vadd.f32 %v4590_v43, %v4347_v22 }
 0x5f1   :  { %v4592_v11 = vpop.f32.mrf.mxu0  ;;  %5043 = vadd.xlane.f32.xlu0 %v5042_v29  ;;  %v10569_v18 = vpop.f32.mrf.mxu1  ;;  %v4794_v48 = vadd.f32 %v4793_v26, %v10553_v54 }
 0x5f2   :  { %v10571_v55 = vadd.f32 %v4592_v11, %v4349_v23  ;;  %v5045_v0 = vsel %vm1950_vm2, %v4960_v42, 0.0  ;;  %12895 = vst [vmem:[#allocation14_spill] sm:$0xff] %v10581_v45 }
 0x5f3   :  { %v4594_v59 = vpop.f32.mrf.mxu0  ;;  %v5046_v50 = vadd.f32 %v5045_v0, %v4959_v15  ;;  %v10575_v19 = vpop.f32.mrf.mxu1 }
 0x5f4   :  { %12894 = vst [vmem:[#allocation15_spill] sm:$0xff] %v10571_v55  ;;  %v4962_v12 = vmul.f32 %v10571_v55, %v10571_v55  ;;  %v4797_v9 = vsel %vm1950_vm2, %v10571_v55, 0.0  ;;  %v10588_v61 = vadd.f32 %v4594_v59, %v10493_v38 }
 0x5f5   :  { %v4596_v51 = vpop.f32.mrf.mxu0  ;;  %4795 = vadd.xlane.f32.xlu0 %v4794_v48  ;;  %5047 = vadd.xlane.f32.xlu1 %v5046_v50  ;;  %v10583_v37 = vpop.f32.mrf.mxu1  ;;  %v4798_v23 = vadd.f32 %v4797_v9, %v10581_v45 }
 0x5f6   :  { %v10585_v31 = vadd.f32 %v4596_v51, %v4353_v10  ;;  %12897 = vst [vmem:[#allocation18_spill] sm:$0xff] %v10588_v61  ;;  %v5049_v24 = vsel %vm1950_vm2, %v4962_v12, 0.0  ;;  %v4961_v10 = vmul.f32 %v10581_v45, %v10581_v45  ;;  %v4963_v47 = vmul.f32 %v10588_v61, %v10588_v61 }
 0x5f7   :  { %v4600_v62 = vpop.f32.mrf.mxu0  ;;  %v10591_v36 = vpop.f32.mrf.mxu1 }
 0x5f8   :  { %12896 = vst [vmem:[#allocation19_spill] sm:$0xff] %v10585_v31  ;;  %v4964_v57 = vmul.f32 %v10585_v31, %v10585_v31  ;;  %v4801_v22 = vsel %vm1950_vm2, %v10585_v31, 0.0  ;;  %v5050_v43 = vadd.f32 %v5049_v24, %v4961_v10  ;;  %v10616_v15 = vadd.f32 %v4600_v62, %v10495_v44 }
 0x5f9   :  { %v4602_v25 = vpop.f32.mrf.mxu0  ;;  %4799 = vadd.xlane.f32.xlu0 %v4798_v23  ;;  %v4802_v38 = vadd.f32 %v4801_v22, %v10588_v61  ;;  %v10601_v32 = vpop.f32.mrf.mxu1 }
 0x5fa   :  { %v10604_v46 = vadd.f32 %v4602_v25, %v10497_v60  ;;  %v5053_v20 = vsel %vm1950_vm2, %v4964_v57, 0.0  ;;  %12899 = vst [vmem:[#allocation22_spill] sm:$0xff] %v10616_v15 }
 0x5fb   :  { %v4604_v39 = vpop.f32.mrf.mxu0  ;;  %4803 = vadd.xlane.f32.xlu1 %v4802_v38  ;;  %v10609_v29 = vpop.f32.mrf.mxu1  ;;  %v5054_v11 = vadd.f32 %v5053_v20, %v4963_v47 }
 0x5fc   :  { %12898 = vst [vmem:[#allocation23_spill] sm:$0xff] %v10604_v46  ;;  %v4966_v42 = vmul.f32 %v10604_v46, %v10604_v46  ;;  %v4805_v26 = vsel %vm1950_vm2, %v10604_v46, 0.0  ;;  %v10624_v48 = vadd.f32 %v4604_v39, %v10499_v41 }
 0x5fd   :  { %v4606_v60 = vpop.f32.mrf.mxu0  ;;  %5051 = vadd.xlane.f32.xlu0 %v5050_v43  ;;  %v10618_v0 = vpop.f32.mrf.mxu1  ;;  %v4806_v12 = vadd.f32 %v4805_v26, %v10616_v15 }
 0x5fe   :  { %v10621_v59 = vadd.f32 %v4606_v60, %v10501_v35  ;;  %12901 = vst [vmem:[#allocation26_spill] sm:$0xff] %v10624_v48  ;;  %v5057_v62 = vsel %vm1950_vm2, %v4966_v42, 0.0  ;;  %v4965_v35 = vmul.f32 %v10616_v15, %v10616_v15  ;;  %v4967_v10 = vmul.f32 %v10624_v48, %v10624_v48 }
 0x5ff   :  { %v4610_v50 = vpop.f32.mrf.mxu0  ;;  %5055 = vadd.xlane.f32.xlu1 %v5054_v11  ;;  %v10627_v9 = vpop.f32.mrf.mxu1 }
 0x600   :  { %12900 = vst [vmem:[#allocation27_spill] sm:$0xff] %v10621_v59  ;;  %v4968_v44 = vmul.f32 %v10621_v59, %v10621_v59  ;;  %v4809_v51 = vsel %vm1950_vm2, %v10621_v59, 0.0  ;;  %v5058_v38 = vadd.f32 %v5057_v62, %v4965_v35  ;;  %v10652_v43 = vadd.f32 %v4610_v50, %v10503_v14 }
 0x601   :  { %v4612_v23 = vpop.f32.mrf.mxu0  ;;  %4807 = vadd.xlane.f32.xlu0 %v4806_v12  ;;  %v4810_v41 = vadd.f32 %v4809_v51, %v10624_v48  ;;  %v10637_v57 = vpop.f32.mrf.mxu1 }
 0x602   :  { %v10640_v22 = vadd.f32 %v4612_v23, %v10505_v53  ;;  %v5061_v24 = vsel %vm1950_vm2, %v4968_v44, 0.0  ;;  %12903 = vst [vmem:[#allocation12_spill] sm:$0xff] %v10652_v43 }
 0x603   :  { %v4614_v25 = vpop.f32.mrf.mxu0  ;;  %4811 = vadd.xlane.f32.xlu1 %v4810_v41  ;;  %v10645_v20 = vpop.f32.mrf.mxu1  ;;  %v5062_v42 = vadd.f32 %v5061_v24, %v4967_v10 }
 0x604   :  { %12902 = vst [vmem:[#allocation6_spill] sm:$0xff] %v10640_v22  ;;  %v4970_v47 = vmul.f32 %v10640_v22, %v10640_v22  ;;  %v4813_v39 = vsel %vm1950_vm2, %v10640_v22, 0.0  ;;  %v10660_v11 = vadd.f32 %v4614_v25, %v10507_v5 }
 0x605   :  { %v4616_v53 = vpop.f32.mrf.mxu0  ;;  %5059 = vadd.xlane.f32.xlu0 %v5058_v38  ;;  %v10654_v26 = vpop.f32.mrf.mxu1  ;;  %v4814_v44 = vadd.f32 %v4813_v39, %v10652_v43 }
 0x606   :  { %v10657_v60 = vadd.f32 %v4616_v53, %v10509_v7  ;;  %12905 = vst [vmem:[#allocation21_spill] sm:$0xff] %v10660_v11  ;;  %v5065_v62 = vsel %vm1950_vm2, %v4970_v47, 0.0  ;;  %v4969_v7 = vmul.f32 %v10652_v43, %v10652_v43  ;;  %v4971_v10 = vmul.f32 %v10660_v11, %v10660_v11 }
 0x607   :  { %v4620_v12 = vpop.f32.mrf.mxu0  ;;  %5063 = vadd.xlane.f32.xlu1 %v5062_v42  ;;  %v10663_v51 = vpop.f32.mrf.mxu1 }
 0x608   :  { %12904 = vst [vmem:[#allocation16_spill] sm:$0xff] %v10657_v60  ;;  %v4972_v14 = vmul.f32 %v10657_v60, %v10657_v60  ;;  %v4817_v50 = vsel %vm1950_vm2, %v10657_v60, 0.0  ;;  %v5066_v38 = vadd.f32 %v5065_v62, %v4969_v7  ;;  %v10688_v42 = vadd.f32 %v4620_v12, %v10511_v2 }
 0x609   :  { %v4622_v35 = vpop.f32.mrf.mxu0  ;;  %4815 = vadd.xlane.f32.xlu0 %v4814_v44  ;;  %v4818_v5 = vadd.f32 %v4817_v50, %v10660_v11  ;;  %v10673_v23 = vpop.f32.mrf.mxu1 }
 0x60a   :  { %v10676_v41 = vadd.f32 %v4622_v35, %v10513_v3  ;;  %v5069_v24 = vsel %vm1950_vm2, %v4972_v14, 0.0  ;;  %12907 = vst [vmem:[#allocation20_spill] sm:$0xff] %v10688_v42 }
 0x60b   :  { %v4624_v25 = vpop.f32.mrf.mxu0  ;;  %4819 = vadd.xlane.f32.xlu1 %v4818_v5  ;;  %v10681_v47 = vpop.f32.mrf.mxu1  ;;  %v5070_v44 = vadd.f32 %v5069_v24, %v4971_v10 }
 0x60c   :  { %12906 = vst [vmem:[#allocation24_spill] sm:$0xff] %v10676_v41  ;;  %v4974_v39 = vmul.f32 %v10676_v41, %v10676_v41  ;;  %v4821_v53 = vsel %vm1950_vm2, %v10676_v41, 0.0  ;;  %v10696_v62 = vadd.f32 %v4624_v25, %v10515_v40 }
 0x60d   :  { %v4626_v3 = vpop.f32.mrf.mxu0  ;;  %5067 = vadd.xlane.f32.xlu0 %v5066_v38  ;;  %v10690_v14 = vpop.f32.mrf.mxu1  ;;  %v4822_v35 = vadd.f32 %v4821_v53, %v10688_v42 }
 0x60e   :  { %v10693_v50 = vadd.f32 %v4626_v3, %v10517_v52  ;;  %12909 = vst [vmem:[#allocation33_spill] sm:$0xff] %v10696_v62  ;;  %v5073_v24 = vsel %vm1950_vm2, %v4974_v39, 0.0  ;;  %v4973_v52 = vmul.f32 %v10688_v42, %v10688_v42  ;;  %v4975_v3 = vmul.f32 %v10696_v62, %v10696_v62 }
 0x60f   :  { %v4630_v7 = vpop.f32.mrf.mxu0  ;;  %5071 = vadd.xlane.f32.xlu1 %v5070_v44  ;;  %v10699_v5 = vpop.f32.mrf.mxu1 }
 0x610   :  { %12908 = vst [vmem:[#allocation25_spill] sm:$0xff] %v10693_v50  ;;  %v4976_v2 = vmul.f32 %v10693_v50, %v10693_v50  ;;  %v4825_v12 = vsel %vm1950_vm2, %v10693_v50, 0.0  ;;  %v5074_v39 = vadd.f32 %v5073_v24, %v4973_v52  ;;  %v10724_v41 = vadd.f32 %v4630_v7, %v10519_v30 }
 0x611   :  { %v4632_v10 = vpop.f32.mrf.mxu0  ;;  %4823 = vadd.xlane.f32.xlu0 %v4822_v35  ;;  %v4826_v40 = vadd.f32 %v4825_v12, %v10696_v62  ;;  %v10709_v25 = vpop.f32.mrf.mxu1 }
 0x612   :  { %v10712_v38 = vadd.f32 %v4632_v10, %v10521_v6  ;;  %v5077_v53 = vsel %vm1950_vm2, %v4976_v2, 0.0  ;;  %12911 = vst [vmem:[#allocation29_spill] sm:$0xff] %v10724_v41 }
 0x613   :  { %v4634_v44 = vpop.f32.mrf.mxu0  ;;  %4827 = vadd.xlane.f32.xlu1 %v4826_v40  ;;  %v10717_v50 = vpop.f32.mrf.mxu1  ;;  %v5078_v2 = vadd.f32 %v5077_v53, %v4975_v3 }
 0x614   :  { %12910 = vst [vmem:[#allocation32_spill] sm:$0xff] %v10712_v38  ;;  %v4978_v35 = vmul.f32 %v10712_v38, %v10712_v38  ;;  %v4829_v12 = vsel %vm1950_vm2, %v10712_v38, 0.0  ;;  %v10732_v24 = vadd.f32 %v4634_v44, %v10523_v63 }
 0x615   :  { %v4636_v6 = vpop.f32.mrf.mxu0  ;;  %5075 = vadd.xlane.f32.xlu0 %v5074_v39  ;;  %v10726_v10 = vpop.f32.mrf.mxu1  ;;  %v4830_v40 = vadd.f32 %v4829_v12, %v10724_v41 }
 0x616   :  { %v10729_v62 = vadd.f32 %v4636_v6, %v10525_v49  ;;  %12913 = vst [vmem:[#allocation17_spill] sm:$0xff] %v10732_v24  ;;  %v5081_v53 = vsel %vm1950_vm2, %v4978_v35, 0.0  ;;  %v4977_v49 = vmul.f32 %v10724_v41, %v10724_v41  ;;  %v4979_v6 = vmul.f32 %v10732_v24, %v10732_v24 }
 0x617   :  { %v4640_v52 = vpop.f32.mrf.mxu0  ;;  %5079 = vadd.xlane.f32.xlu1 %v5078_v2  ;;  %v10735_v42 = vpop.f32.mrf.mxu1 }
 0x618   :  { %12912 = vst [vmem:[#allocation28_spill] sm:$0xff] %v10729_v62  ;;  %v4980_v30 = vmul.f32 %v10729_v62, %v10729_v62  ;;  %v4833_v7 = vsel %vm1950_vm2, %v10729_v62, 0.0  ;;  %v5082_v35 = vadd.f32 %v5081_v53, %v4977_v49  ;;  %v10760_v41 = vadd.f32 %v4640_v52, %v10527_v8 }
 0x619   :  { %v4642_v3 = vpop.f32.mrf.mxu0  ;;  %4831 = vadd.xlane.f32.xlu0 %v4830_v40  ;;  %v4834_v63 = vadd.f32 %v4833_v7, %v10732_v24  ;;  %v10745_v44 = vpop.f32.mrf.mxu1 }
 0x61a   :  { %v10748_v39 = vadd.f32 %v4642_v3, %v10529_v56  ;;  %v5085_v12 = vsel %vm1950_vm2, %v4980_v30, 0.0  ;;  %12915 = vst [vmem:[#allocation13_spill] sm:$0xff] %v10760_v41 }
 0x61b   :  { %v4644_v2 = vpop.f32.mrf.mxu0  ;;  %4835 = vadd.xlane.f32.xlu1 %v4834_v63  ;;  %v10753_v38 = vpop.f32.mrf.mxu1  ;;  %v5086_v30 = vadd.f32 %v5085_v12, %v4979_v6 }
 0x61c   :  { %12914 = vst [vmem:[#allocation8_spill] sm:$0xff] %v10748_v39  ;;  %v4982_v40 = vmul.f32 %v10748_v39, %v10748_v39  ;;  %v4837_v7 = vsel %vm1950_vm2, %v10748_v39, 0.0  ;;  %v10768_v53 = vadd.f32 %v4644_v2, %v10531_v34 }
 0x61d   :  { %v4646_v56 = vpop.f32.mrf.mxu0  ;;  %5083 = vadd.xlane.f32.xlu0 %v5082_v35  ;;  %v10762_v3 = vpop.f32.mrf.mxu1  ;;  %v4838_v63 = vadd.f32 %v4837_v7, %v10760_v41 }
 0x61e   :  { %v10765_v62 = vadd.f32 %v4646_v56, %v10533_v28  ;;  %12917 = vst [vmem:[#allocation9_spill] sm:$0xff] %v10768_v53  ;;  %v5089_v12 = vsel %vm1950_vm2, %v4982_v40, 0.0  ;;  %v4981_v28 = vmul.f32 %v10760_v41, %v10760_v41  ;;  %v4983_v56 = vmul.f32 %v10768_v53, %v10768_v53 }
 0x61f   :  { %v4650_v49 = vpop.f32.mrf.mxu0  ;;  %5087 = vadd.xlane.f32.xlu1 %v5086_v30  ;;  %v10771_v24 = vpop.f32.mrf.mxu1 }
 0x620   :  { %12916 = vst [vmem:[#allocation7_spill] sm:$0xff] %v10765_v62  ;;  %v4984_v8 = vmul.f32 %v10765_v62, %v10765_v62  ;;  %v4841_v52 = vsel %vm1950_vm2, %v10765_v62, 0.0  ;;  %v5090_v40 = vadd.f32 %v5089_v12, %v4981_v28  ;;  %v10796_v41 = vadd.f32 %v4650_v49, %v10535_v33 }
 0x621   :  { %v4652_v6 = vpop.f32.mrf.mxu0  ;;  %4839 = vadd.xlane.f32.xlu0 %v4838_v63  ;;  %v4842_v34 = vadd.f32 %v4841_v52, %v10768_v53  ;;  %v10781_v2 = vpop.f32.mrf.mxu1 }
 0x622   :  { %v10784_v35 = vadd.f32 %v4652_v6, %v10537_v1  ;;  %v5093_v7 = vsel %vm1950_vm2, %v4984_v8, 0.0  ;;  %12919 = vst [vmem:[#allocation97_spill] sm:$0xff] %v10796_v41 }
 0x623   :  { %v4654_v30 = vpop.f32.mrf.mxu0  ;;  %4843 = vadd.xlane.f32.xlu1 %v4842_v34  ;;  %v10789_v39 = vpop.f32.mrf.mxu1  ;;  %v5094_v8 = vadd.f32 %v5093_v7, %v4983_v56 }
 0x624   :  { %12918 = vst [vmem:[#allocation4_spill] sm:$0xff] %v10784_v35  ;;  %v4986_v63 = vmul.f32 %v10784_v35, %v10784_v35  ;;  %v4845_v52 = vsel %vm1950_vm2, %v10784_v35, 0.0  ;;  %v10804_v12 = vadd.f32 %v4654_v30, %v10541_v13 }
 0x625   :  { %v4656_v1 = vpop.f32.mrf.mxu0  ;;  %5091 = vadd.xlane.f32.xlu0 %v5090_v40  ;;  %v10798_v6 = vpop.f32.mrf.mxu1  ;;  %v4846_v34 = vadd.f32 %v4845_v52, %v10796_v41  ;;  %v12557_v40 = vmov 3  }
 0x626   :  { %v10801_v62 = vadd.f32 %v4656_v1, %v10545_v58  ;;  %12921 = vst [vmem:[#allocation98_spill] sm:$0xff] %v10804_v12  ;;  %v5097_v7 = vsel %vm1950_vm2, %v4986_v63, 0.0  ;;  %v4985_v58 = vmul.f32 %v10796_v41, %v10796_v41  ;;  %6728 = vset.pattern.permute.xlu1 %v12557_v40  ;;  %6729 = vset.pattern.permute.xlu0 %v12557_v40 }
 0x627   :  { %v4660_v28 = vpop.f32.mrf.mxu0  ;;  %5095 = vadd.xlane.f32.xlu1 %v5094_v8  ;;  %v10807_v53 = vpop.f32.mrf.mxu1  ;;  %v4987_v63 = vmul.f32 %v10804_v12, %v10804_v12 }
 0x628   :  { %12920 = vst [vmem:[#allocation2_spill] sm:$0xff] %v10801_v62  ;;  %v4988_v33 = vmul.f32 %v10801_v62, %v10801_v62  ;;  %v4849_v49 = vsel %vm1950_vm2, %v10801_v62, 0.0 }
 0x629   :  { %v4662_v56 = vpop.f32.mrf.mxu0  ;;  %4847 = vadd.xlane.f32.xlu0 %v4846_v34  ;;  %v4850_v13 = vadd.f32 %v4849_v49, %v10804_v12  ;;  %v10817_v30 = vpop.f32.mrf.mxu1  ;;  %v5098_v34 = vadd.f32 %v5097_v7, %v4985_v58 }
 0x62a   :  { %v10821_v52 = vadd.f32 %v4662_v56, %v10561_v16  ;;  %v5101_v1 = vsel %vm1950_vm2, %v4988_v33, 0.0  ;;  %v10834_v16 = vadd.f32 %v4660_v28, %v10556_v4 }
 0x62b   :  { %v4664_v8 = vpop.f32.mrf.mxu0  ;;  %4851 = vadd.xlane.f32.xlu1 %v4850_v13  ;;  %v10827_v35 = vpop.f32.mrf.mxu1  ;;  %v5102_v56 = vadd.f32 %v5101_v1, %v4987_v63 }
 0x62c   :  { %12922 = vst [vmem:[#allocation31_spill] sm:$0xff] %v10821_v52  ;;  %v4990_v49 = vmul.f32 %v10821_v52, %v10821_v52  ;;  %v4853_v41 = vsel %vm1950_vm2, %v10821_v52, 0.0  ;;  %12923 = vst [vmem:[#allocation89_spill] sm:$0xff] %v10834_v16  ;;  %v10842_v7 = vadd.f32 %v4664_v8, %v10569_v18 }
 0x62d   :  { %v4666_v33 = vpop.f32.mrf.mxu0  ;;  %5099 = vadd.xlane.f32.xlu0 %v5098_v34  ;;  %v10836_v40 = vpop.f32.mrf.mxu1  ;;  %v4854_v13 = vadd.f32 %v4853_v41, %v10834_v16 }
 0x62e   :  { %v10839_v62 = vadd.f32 %v4666_v33, %v10575_v19  ;;  %12925 = vst [vmem:[#allocation95_spill] sm:$0xff] %v10842_v7  ;;  %v5105_v1 = vsel %vm1950_vm2, %v4990_v49, 0.0  ;;  %v4989_v19 = vmul.f32 %v10834_v16, %v10834_v16  ;;  %v4991_v33 = vmul.f32 %v10842_v7, %v10842_v7 }
 0x62f   :  { %v4670_v58 = vpop.f32.mrf.mxu0  ;;  %5103 = vadd.xlane.f32.xlu1 %v5102_v56  ;;  %v10845_v12 = vpop.f32.mrf.mxu1 }
 0x630   :  { %12924 = vst [vmem:[#allocation65_spill] sm:$0xff] %v10839_v62  ;;  %v4992_v4 = vmul.f32 %v10839_v62, %v10839_v62  ;;  %v4857_v28 = vsel %vm1950_vm2, %v10839_v62, 0.0  ;;  %v5106_v49 = vadd.f32 %v5105_v1, %v4989_v19  ;;  %v10870_v16 = vadd.f32 %v4670_v58, %v10583_v37 }
 0x631   :  { %v4672_v63 = vpop.f32.mrf.mxu0  ;;  %4855 = vadd.xlane.f32.xlu0 %v4854_v13  ;;  %v4858_v18 = vadd.f32 %v4857_v28, %v10842_v7  ;;  %v10855_v8 = vpop.f32.mrf.mxu1 }
 0x632   :  { %v10858_v41 = vadd.f32 %v4672_v63, %v10591_v36  ;;  %v5109_v34 = vsel %vm1950_vm2, %v4992_v4, 0.0  ;;  %12927 = vst [vmem:[#allocation35_spill] sm:$0xff] %v10870_v16 }
 0x633   :  { %v4674_v56 = vpop.f32.mrf.mxu0  ;;  %4859 = vadd.xlane.f32.xlu1 %v4858_v18  ;;  %v10863_v52 = vpop.f32.mrf.mxu1  ;;  %v5110_v4 = vadd.f32 %v5109_v34, %v4991_v33 }
 0x634   :  { %12926 = vst [vmem:[#allocation64_spill] sm:$0xff] %v10858_v41  ;;  %v4994_v13 = vmul.f32 %v10858_v41, %v10858_v41  ;;  %v4861_v28 = vsel %vm1950_vm2, %v10858_v41, 0.0  ;;  %v10878_v1 = vadd.f32 %v4674_v56, %v10601_v32 }
 0x635   :  { %v4676_v36 = vpop.f32.mrf.mxu0  ;;  %5107 = vadd.xlane.f32.xlu0 %v5106_v49  ;;  %v10872_v63 = vpop.f32.mrf.mxu1  ;;  %v4862_v18 = vadd.f32 %v4861_v28, %v10870_v16 }
 0x636   :  { %v10875_v62 = vadd.f32 %v4676_v36, %v10609_v29  ;;  %12929 = vst [vmem:[#allocation34_spill] sm:$0xff] %v10878_v1  ;;  %v5113_v34 = vsel %vm1950_vm2, %v4994_v13, 0.0  ;;  %v4993_v29 = vmul.f32 %v10870_v16, %v10870_v16  ;;  %v4995_v36 = vmul.f32 %v10878_v1, %v10878_v1 }
 0x637   :  { %v4680_v19 = vpop.f32.mrf.mxu0  ;;  %5111 = vadd.xlane.f32.xlu1 %v5110_v4  ;;  %v10881_v7 = vpop.f32.mrf.mxu1 }
 0x638   :  { %12928 = vst [vmem:[#allocation99_spill] sm:$0xff] %v10875_v62  ;;  %v4996_v37 = vmul.f32 %v10875_v62, %v10875_v62  ;;  %v4865_v58 = vsel %vm1950_vm2, %v10875_v62, 0.0  ;;  %v5114_v13 = vadd.f32 %v5113_v34, %v4993_v29  ;;  %v10906_v16 = vadd.f32 %v4680_v19, %v10618_v0 }
 0x639   :  { %v4682_v33 = vpop.f32.mrf.mxu0  ;;  %4863 = vadd.xlane.f32.xlu0 %v4862_v18  ;;  %v4866_v32 = vadd.f32 %v4865_v58, %v10878_v1  ;;  %v10891_v56 = vpop.f32.mrf.mxu1 }
 0x63a   :  { %v10894_v49 = vadd.f32 %v4682_v33, %v10627_v9  ;;  %v5117_v28 = vsel %vm1950_vm2, %v4996_v37, 0.0  ;;  %12931 = vst [vmem:[#allocation100_spill] sm:$0xff] %v10906_v16 }
 0x63b   :  { %v4684_v4 = vpop.f32.mrf.mxu0  ;;  %4867 = vadd.xlane.f32.xlu1 %v4866_v32  ;;  %v10899_v41 = vpop.f32.mrf.mxu1  ;;  %v5118_v37 = vadd.f32 %v5117_v28, %v4995_v36 }
 0x63c   :  { %12930 = vst [vmem:[#allocation39_spill] sm:$0xff] %v10894_v49  ;;  %v4998_v18 = vmul.f32 %v10894_v49, %v10894_v49  ;;  %v4869_v58 = vsel %vm1950_vm2, %v10894_v49, 0.0  ;;  %v10914_v34 = vadd.f32 %v4684_v4, %v10637_v57 }
 0x63d   :  { %v4686_v9 = vpop.f32.mrf.mxu0  ;;  %5115 = vadd.xlane.f32.xlu0 %v5114_v13  ;;  %v10908_v33 = vpop.f32.mrf.mxu1  ;;  %v4870_v32 = vadd.f32 %v4869_v58, %v10906_v16 }
 0x63e   :  { %v10911_v62 = vadd.f32 %v4686_v9, %v10645_v20  ;;  %12933 = vst [vmem:[#allocation43_spill] sm:$0xff] %v10914_v34  ;;  %v5121_v28 = vsel %vm1950_vm2, %v4998_v18, 0.0  ;;  %v4997_v20 = vmul.f32 %v10906_v16, %v10906_v16  ;;  %v4999_v58 = vmul.f32 %v10914_v34, %v10914_v34 }
 0x63f   :  { %v4690_v29 = vpop.f32.mrf.mxu0  ;;  %5119 = vadd.xlane.f32.xlu1 %v5118_v37  ;;  %v10917_v1 = vpop.f32.mrf.mxu1 }
 0x640   :  { %12932 = vst [vmem:[#allocation38_spill] sm:$0xff] %v10911_v62  ;;  %v5000_v0 = vmul.f32 %v10911_v62, %v10911_v62  ;;  %v4873_v19 = vsel %vm1950_vm2, %v10911_v62, 0.0  ;;  %v5122_v37 = vadd.f32 %v5121_v28, %v4997_v20 }
 0x641   :  { %v4692_v36 = vpop.f32.mrf.mxu0  ;;  %4871 = vadd.xlane.f32.xlu0 %v4870_v32  ;;  %v4874_v57 = vadd.f32 %v4873_v19, %v10914_v34  ;;  %v10933_v49 = vpop.f32.mrf.mxu1  ;;  %v10940_v19 = vadd.f32 %v4690_v29, %v10654_v26 }
 0x642   :  { %v10928_v4 = vadd.f32 %v4692_v36, %v10663_v51  ;;  %v5125_v13 = vsel %vm1950_vm2, %v5000_v0, 0.0 }
 0x643   :  { %v4694_v9 = vpop.f32.mrf.mxu0  ;;  %4875 = vadd.xlane.f32.xlu1 %v4874_v57  ;;  %12935 = vst [vmem:[#allocation42_spill] sm:$0xff] %v10940_v19  ;;  %v5126_v0 = vadd.f32 %v5125_v13, %v4999_v58  ;;  %v10949_v16 = vpop.f32.mrf.mxu1 }
 0x644   :  { %12934 = vst [vmem:[#allocation101_spill] sm:$0xff] %v10928_v4  ;;  %v5002_v18 = vmul.f32 %v10928_v4, %v10928_v4  ;;  %v4877_v32 = vsel %vm1950_vm2, %v10928_v4, 0.0  ;;  %v10946_v57 = vadd.f32 %v4694_v9, %v10673_v23 }
 0x645   :  { %v4696_v51 = vpop.f32.mrf.mxu0  ;;  %5123 = vadd.xlane.f32.xlu0 %v5122_v37  ;;  %v4878_v20 = vadd.f32 %v4877_v32, %v10940_v19 }
 0x646   :  { %v10943_v36 = vadd.f32 %v4696_v51, %v10681_v47  ;;  %12937 = vst [vmem:[#allocation102_spill] sm:$0xff] %v10946_v57  ;;  %v5129_v29 = vsel %vm1950_vm2, %v5002_v18, 0.0  ;;  %v5001_v47 = vmul.f32 %v10940_v19, %v10940_v19  ;;  %v5003_v37 = vmul.f32 %v10946_v57, %v10946_v57 }
 0x647   :  { %v4700_v28 = vpop.f32.mrf.mxu0  ;;  %5127 = vadd.xlane.f32.xlu1 %v5126_v0  ;;  %v10965_v0 = vpop.f32.mrf.mxu1 }
 0x648   :  { %12936 = vst [vmem:[#allocation47_spill] sm:$0xff] %v10943_v36  ;;  %v5004_v4 = vmul.f32 %v10943_v36, %v10943_v36  ;;  %v4881_v26 = vsel %vm1950_vm2, %v10943_v36, 0.0  ;;  %v5130_v51 = vadd.f32 %v5129_v29, %v5001_v47 }
 0x649   :  { %v4702_v13 = vpop.f32.mrf.mxu0  ;;  %4879 = vadd.xlane.f32.xlu0 %v4878_v20  ;;  %v4882_v23 = vadd.f32 %v4881_v26, %v10946_v57  ;;  %v10972_v26 = vadd.f32 %v4700_v28, %v10690_v14  ;;  %v10981_v19 = vpop.f32.mrf.mxu1 }
 0x64a   :  { %v10960_v58 = vadd.f32 %v4702_v13, %v10699_v5  ;;  %v5133_v9 = vsel %vm1950_vm2, %v5004_v4, 0.0 }
 0x64b   :  { %v4704_v32 = vpop.f32.mrf.mxu0  ;;  %4883 = vadd.xlane.f32.xlu1 %v4882_v23  ;;  %12939 = vst [vmem:[#allocation51_spill] sm:$0xff] %v10972_v26  ;;  %v5134_v4 = vadd.f32 %v5133_v9, %v5003_v37 }
 0x64c   :  { %12938 = vst [vmem:[#allocation46_spill] sm:$0xff] %v10960_v58  ;;  %v5006_v18 = vmul.f32 %v10960_v58, %v10960_v58  ;;  %v4885_v20 = vsel %vm1950_vm2, %v10960_v58, 0.0  ;;  %v10978_v23 = vadd.f32 %v4704_v32, %v10709_v25 }
 0x64d   :  { %v4706_v5 = vpop.f32.mrf.mxu0  ;;  %5131 = vadd.xlane.f32.xlu0 %v5130_v51  ;;  %v4886_v47 = vadd.f32 %v4885_v20, %v10972_v26 }
 0x64e   :  { %v10975_v13 = vadd.f32 %v4706_v5, %v10717_v50  ;;  %12941 = vst [vmem:[#allocation50_spill] sm:$0xff] %v10978_v23  ;;  %v5137_v28 = vsel %vm1950_vm2, %v5006_v18, 0.0  ;;  %v5005_v50 = vmul.f32 %v10972_v26, %v10972_v26  ;;  %v5007_v51 = vmul.f32 %v10978_v23, %v10978_v23 }
 0x64f   :  { %v4710_v29 = vpop.f32.mrf.mxu0  ;;  %5135 = vadd.xlane.f32.xlu1 %v5134_v4  ;;  %v10997_v4 = vpop.f32.mrf.mxu1 }
 0x650   :  { %12940 = vst [vmem:[#allocation103_spill] sm:$0xff] %v10975_v13  ;;  %v5008_v58 = vmul.f32 %v10975_v13, %v10975_v13  ;;  %v4889_v14 = vsel %vm1950_vm2, %v10975_v13, 0.0  ;;  %v5138_v5 = vadd.f32 %v5137_v28, %v5005_v50 }
 0x651   :  { %v4712_v9 = vpop.f32.mrf.mxu0  ;;  %4887 = vadd.xlane.f32.xlu0 %v4886_v47  ;;  %v4890_v25 = vadd.f32 %v4889_v14, %v10978_v23  ;;  %v11004_v14 = vadd.f32 %v4710_v29, %v10726_v10  ;;  %v11013_v26 = vpop.f32.mrf.mxu1 }
 0x652   :  { %v10992_v37 = vadd.f32 %v4712_v9, %v10735_v42  ;;  %v5141_v32 = vsel %vm1950_vm2, %v5008_v58, 0.0 }
 0x653   :  { %v4714_v20 = vpop.f32.mrf.mxu0  ;;  %4891 = vadd.xlane.f32.xlu1 %v4890_v25  ;;  %12943 = vst [vmem:[#allocation112_spill] sm:$0xff] %v11004_v14  ;;  %v5142_v58 = vadd.f32 %v5141_v32, %v5007_v51 }
 0x654   :  { %12942 = vst [vmem:[#allocation61_spill] sm:$0xff] %v10992_v37  ;;  %v5010_v18 = vmul.f32 %v10992_v37, %v10992_v37  ;;  %v4893_v47 = vsel %vm1950_vm2, %v10992_v37, 0.0  ;;  %v11010_v25 = vadd.f32 %v4714_v20, %v10745_v44 }
 0x655   :  { %v4716_v42 = vpop.f32.mrf.mxu0  ;;  %5139 = vadd.xlane.f32.xlu0 %v5138_v5  ;;  %v4894_v50 = vadd.f32 %v4893_v47, %v11004_v14 }
 0x656   :  { %v11007_v9 = vadd.f32 %v4716_v42, %v10753_v38  ;;  %12945 = vst [vmem:[#allocation63_spill] sm:$0xff] %v11010_v25  ;;  %v5145_v29 = vsel %vm1950_vm2, %v5010_v18, 0.0  ;;  %v5009_v38 = vmul.f32 %v11004_v14, %v11004_v14  ;;  %v5011_v5 = vmul.f32 %v11010_v25, %v11010_v25 }
 0x657   :  { %v4720_v28 = vpop.f32.mrf.mxu0  ;;  %5143 = vadd.xlane.f32.xlu1 %v5142_v58  ;;  %v11029_v58 = vpop.f32.mrf.mxu1 }
 0x658   :  { %12944 = vst [vmem:[#allocation60_spill] sm:$0xff] %v11007_v9  ;;  %v5012_v37 = vmul.f32 %v11007_v9, %v11007_v9  ;;  %v4897_v10 = vsel %vm1950_vm2, %v11007_v9, 0.0  ;;  %v5146_v42 = vadd.f32 %v5145_v29, %v5009_v38 }
 0x659   :  { %v4722_v32 = vpop.f32.mrf.mxu0  ;;  %4895 = vadd.xlane.f32.xlu0 %v4894_v50  ;;  %v4898_v44 = vadd.f32 %v4897_v10, %v11010_v25  ;;  %v11036_v10 = vadd.f32 %v4720_v28, %v10762_v3  ;;  %v11045_v14 = vpop.f32.mrf.mxu1 }
 0x65a   :  { %v11024_v51 = vadd.f32 %v4722_v32, %v10771_v24  ;;  %v5149_v20 = vsel %vm1950_vm2, %v5012_v37, 0.0 }
 0x65b   :  { %v4724_v47 = vpop.f32.mrf.mxu0  ;;  %4899 = vadd.xlane.f32.xlu1 %v4898_v44  ;;  %12947 = vst [vmem:[#allocation62_spill] sm:$0xff] %v11036_v10  ;;  %v5150_v37 = vadd.f32 %v5149_v20, %v5011_v5 }
 0x65c   :  { %12946 = vst [vmem:[#allocation86_spill] sm:$0xff] %v11024_v51  ;;  %v5014_v18 = vmul.f32 %v11024_v51, %v11024_v51  ;;  %v4901_v50 = vsel %vm1950_vm2, %v11024_v51, 0.0  ;;  %v11042_v44 = vadd.f32 %v4724_v47, %v10781_v2 }
 0x65d   :  { %v4726_v24 = vpop.f32.mrf.mxu0  ;;  %5147 = vadd.xlane.f32.xlu0 %v5146_v42  ;;  %v4902_v38 = vadd.f32 %v4901_v50, %v11036_v10 }
 0x65e   :  { %v11039_v32 = vadd.f32 %v4726_v24, %v10789_v39  ;;  %12949 = vst [vmem:[#allocation104_spill] sm:$0xff] %v11042_v44  ;;  %v5153_v28 = vsel %vm1950_vm2, %v5014_v18, 0.0  ;;  %v5013_v39 = vmul.f32 %v11036_v10, %v11036_v10  ;;  %v5015_v42 = vmul.f32 %v11042_v44, %v11042_v44 }
 0x65f   :  { %v4730_v29 = vpop.f32.mrf.mxu0  ;;  %5151 = vadd.xlane.f32.xlu1 %v5150_v37  ;;  %v11061_v37 = vpop.f32.mrf.mxu1 }
 0x660   :  { %12948 = vst [vmem:[#allocation55_spill] sm:$0xff] %v11039_v32  ;;  %v5016_v51 = vmul.f32 %v11039_v32, %v11039_v32  ;;  %v4905_v3 = vsel %vm1950_vm2, %v11039_v32, 0.0  ;;  %v5154_v24 = vadd.f32 %v5153_v28, %v5013_v39 }
 0x661   :  { %v4732_v20 = vpop.f32.mrf.mxu0  ;;  %4903 = vadd.xlane.f32.xlu0 %v4902_v38  ;;  %v4906_v2 = vadd.f32 %v4905_v3, %v11042_v44  ;;  %v11068_v3 = vadd.f32 %v4730_v29, %v10798_v6  ;;  %v11077_v10 = vpop.f32.mrf.mxu1 }
 0x662   :  { %v11056_v5 = vadd.f32 %v4732_v20, %v10807_v53  ;;  %v5157_v47 = vsel %vm1950_vm2, %v5016_v51, 0.0 }
 0x663   :  { %v4734_v50 = vpop.f32.mrf.mxu0  ;;  %4907 = vadd.xlane.f32.xlu1 %v4906_v2  ;;  %12951 = vst [vmem:[#allocation59_spill] sm:$0xff] %v11068_v3  ;;  %v5158_v51 = vadd.f32 %v5157_v47, %v5015_v42 }
 0x664   :  { %12950 = vst [vmem:[#allocation54_spill] sm:$0xff] %v11056_v5  ;;  %v5018_v18 = vmul.f32 %v11056_v5, %v11056_v5  ;;  %v4909_v38 = vsel %vm1950_vm2, %v11056_v5, 0.0  ;;  %v11074_v2 = vadd.f32 %v4734_v50, %v10817_v30 }
 0x665   :  { %v4736_v53 = vpop.f32.mrf.mxu0  ;;  %5155 = vadd.xlane.f32.xlu0 %v5154_v24  ;;  %v4910_v39 = vadd.f32 %v4909_v38, %v11068_v3 }
 0x666   :  { %v11071_v20 = vadd.f32 %v4736_v53, %v10827_v35  ;;  %12953 = vst [vmem:[#allocation58_spill] sm:$0xff] %v11074_v2  ;;  %v5161_v29 = vsel %vm1950_vm2, %v5018_v18, 0.0  ;;  %v5017_v35 = vmul.f32 %v11068_v3, %v11068_v3  ;;  %v5019_v24 = vmul.f32 %v11074_v2, %v11074_v2 }
 0x667   :  { %v4740_v28 = vpop.f32.mrf.mxu0  ;;  %5159 = vadd.xlane.f32.xlu1 %v5158_v51  ;;  %v4770_v51 = vpop.f32.mrf.mxu1 }
 0x668   :  { %12952 = vst [vmem:[#allocation105_spill] sm:$0xff] %v11071_v20  ;;  %v5020_v5 = vmul.f32 %v11071_v20, %v11071_v20  ;;  %v4913_v6 = vsel %vm1950_vm2, %v11071_v20, 0.0  ;;  %v5162_v53 = vadd.f32 %v5161_v29, %v5017_v35 }
 0x669   :  { %v4742_v47 = vpop.f32.mrf.mxu0  ;;  %4911 = vadd.xlane.f32.xlu0 %v4910_v39  ;;  %v4914_v30 = vadd.f32 %v4913_v6, %v11074_v2  ;;  %v11098_v6 = vadd.f32 %v4740_v28, %v10836_v40 }
 0x66a   :  { %v11088_v42 = vadd.f32 %v4742_v47, %v10845_v12  ;;  %v5165_v50 = vsel %vm1950_vm2, %v5020_v5, 0.0 }
 0x66b   :  { %v4744_v38 = vpop.f32.mrf.mxu0  ;;  %4915 = vadd.xlane.f32.xlu1 %v4914_v30  ;;  %12955 = vst [vmem:[#allocation108_spill] sm:$0xff] %v11098_v6  ;;  %v5166_v47 = vadd.f32 %v5165_v50, %v5019_v24  ;;  %v4772_v30 = vpop.f32.mrf.mxu1 }
 0x66c   :  { %12954 = vst [vmem:[#allocation53_spill] sm:$0xff] %v11088_v42  ;;  %v5022_v18 = vmul.f32 %v11088_v42, %v11088_v42  ;;  %v4917_v39 = vsel %vm1950_vm2, %v11088_v42, 0.0  ;;  %v11104_v20 = vadd.f32 %v4744_v38, %v10855_v8 }
 0x66d   :  { %v4746_v12 = vpop.f32.mrf.mxu0  ;;  %5163 = vadd.xlane.f32.xlu0 %v5162_v53  ;;  %v4918_v35 = vadd.f32 %v4917_v39, %v11098_v6 }
 0x66e   :  { %v11101_v5 = vadd.f32 %v4746_v12, %v10863_v52  ;;  %12957 = vst [vmem:[#allocation57_spill] sm:$0xff] %v11104_v20  ;;  %v5169_v28 = vsel %vm1950_vm2, %v5022_v18, 0.0  ;;  %v5021_v52 = vmul.f32 %v11098_v6, %v11098_v6  ;;  %v5023_v53 = vmul.f32 %v11104_v20, %v11104_v20 }
 0x66f   :  { %v4750_v29 = vpop.f32.mrf.mxu0  ;;  %5167 = vadd.xlane.f32.xlu1 %v5166_v47  ;;  %v4774_v47 = vpop.f32.mrf.mxu1 }
 0x670   :  { %12956 = vst [vmem:[#allocation52_spill] sm:$0xff] %v11101_v5  ;;  %v5024_v42 = vmul.f32 %v11101_v5, %v11101_v5  ;;  %v4921_v40 = vsel %vm1950_vm2, %v11101_v5, 0.0  ;;  %v5170_v12 = vadd.f32 %v5169_v28, %v5021_v52 }
 0x671   :  { %v4752_v50 = vpop.f32.mrf.mxu0  ;;  %4919 = vadd.xlane.f32.xlu0 %v4918_v35  ;;  %v4922_v8 = vadd.f32 %v4921_v40, %v11104_v20  ;;  %v11126_v40 = vadd.f32 %v4750_v29, %v10872_v63  ;;  %v4776_v52 = vpop.f32.mrf.mxu1  ;;  %v11138_v63 = vadd.f32 %v4772_v30, %v10981_v19  ;;  %v11153_v30 = vadd.f32 %v4770_v51, %v10965_v0 }
 0x672   :  { %v11116_v24 = vadd.f32 %v4752_v50, %v10881_v7  ;;  %v5173_v38 = vsel %vm1950_vm2, %v5024_v42, 0.0 }
 0x673   :  { %v4754_v39 = vpop.f32.mrf.mxu0  ;;  %4923 = vadd.xlane.f32.xlu1 %v4922_v8  ;;  %12959 = vst [vmem:[#allocation56_spill] sm:$0xff] %v11126_v40  ;;  %v5174_v50 = vadd.f32 %v5173_v38, %v5023_v53  ;;  %12962 = vst [vmem:[#allocation36_spill] sm:$0xff] %v11138_v63 }
 0x674   :  { %12958 = vst [vmem:[#allocation110_spill] sm:$0xff] %v11116_v24  ;;  %v5026_v18 = vmul.f32 %v11116_v24, %v11116_v24  ;;  %v4925_v35 = vsel %vm1950_vm2, %v11116_v24, 0.0  ;;  %v11132_v5 = vadd.f32 %v4754_v39, %v10891_v56  ;;  %v5025_v56 = vmul.f32 %v11126_v40, %v11126_v40  ;;  %12964 = vst [vmem:[#allocation107_spill] sm:$0xff] %v11153_v30 }
 0x675   :  { %v4756_v7 = vpop.f32.mrf.mxu0  ;;  %5171 = vadd.xlane.f32.xlu0 %v5170_v12  ;;  %v4926_v28 = vadd.f32 %v4925_v35, %v11126_v40  ;;  %v11147_v12 = vadd.f32 %v4776_v52, %v11013_v26  ;;  %v4941_v26 = vsel %vm1950_vm2, %v11138_v63, 0.0  ;;  %v11160_v52 = vadd.f32 %v4774_v47, %v10997_v4 }
 0x676   :  { %v11129_v42 = vadd.f32 %v4756_v7, %v10899_v41  ;;  %12961 = vst [vmem:[#allocation106_spill] sm:$0xff] %v11132_v5  ;;  %v5177_v41 = vsel %vm1950_vm2, %v5026_v18, 0.0  ;;  %v5027_v19 = vmul.f32 %v11132_v5, %v11132_v5 }
 0x677   :  { %5175 = vadd.xlane.f32.xlu1 %v5174_v50  ;;  %v4760_v8 = vpop.f32.mrf.mxu0  ;;  %12963 = vst [vmem:[#allocation49_spill] sm:$0xff] %v11147_v12  ;;  %v5178_v18 = vadd.f32 %v5177_v41, %v5025_v56  ;;  %v4780_v50 = vpop.f32.mrf.mxu1  ;;  %12965 = vst [vmem:[#allocation48_spill] sm:$0xff] %v11160_v52  ;;  %v5036_v0 = vmul.f32 %v11147_v12, %v11147_v12  ;;  %v4945_v41 = vsel %vm1950_vm2, %v11147_v12, 0.0 }
 0x678   :  { %12960 = vst [vmem:[#allocation37_spill] sm:$0xff] %v11129_v42  ;;  %v5028_v24 = vmul.f32 %v11129_v42, %v11129_v42  ;;  %v4929_v29 = vsel %vm1950_vm2, %v11129_v42, 0.0  ;;  %v5033_v56 = vmul.f32 %v11153_v30, %v11153_v30 }
 0x679   :  { %4927 = vadd.xlane.f32.xlu0 %v4926_v28  ;;  %v4930_v38 = vadd.f32 %v4929_v29, %v11132_v5  ;;  %v4762_v53 = vpop.f32.mrf.mxu0  ;;  %v5034_v28 = vmul.f32 %v11138_v63, %v11138_v63  ;;  %v4792_v29 = vpop.xlane.xlu1 %4791 }
 0x67a   :  { %v5044_v39 = vpop.xlane.xlu0 %5043  ;;  %v5181_v35 = vsel %vm1950_vm2, %v5028_v24, 0.0  ;;  %v4782_v63 = vpop.f32.mrf.mxu1  ;;  %v11170_v4 = vadd.f32 %v4762_v53, %v10917_v1 }
 0x67b   :  { %4931 = vadd.xlane.f32.xlu1 %v4930_v38  ;;  %v4764_v7 = vpop.f32.mrf.mxu0  ;;  %v5182_v24 = vadd.f32 %v5181_v35, %v5027_v19  ;;  %v4942_v38 = vadd.f32 %v4941_v26, %v11153_v30  ;;  %v5193_v47 = vsel %vm1950_vm2, %v5034_v28, 0.0  ;;  %v5035_v35 = vmul.f32 %v11160_v52, %v11160_v52 }
 0x67c   :  { %12966 = vst [vmem:[#allocation45_spill] sm:$0xff] %v11170_v4  ;;  %v11175_v19 = vmul.f32 0.0051020407, %v4792_v29  ;;  %v5197_v30 = vsel %vm1950_vm2, %v5036_v0, 0.0  ;;  %v5194_v1 = vadd.f32 %v5193_v47, %v5033_v56  ;;  %v4784_v53 = vpop.f32.mrf.mxu1  ;;  %v5030_v28 = vmul.f32 %v11170_v4, %v11170_v4 }
 0x67d   :  { %5179 = vadd.xlane.f32.xlu0 %v5178_v18  ;;  %v4766_v42 = vpop.f32.mrf.mxu0  ;;  %v4946_v18 = vadd.f32 %v4945_v41, %v11160_v52  ;;  %v4933_v29 = vsel %vm1950_vm2, %v11170_v4, 0.0  ;;  %v11191_v41 = vadd.f32 %v4760_v8, %v10908_v33 }
 0x67e   :  { %v4796_v51 = vpop.xlane.xlu0 %4795  ;;  %v5048_v5 = vpop.xlane.xlu1 %5047  ;;  %v11181_v26 = vadd.f32 %v4766_v42, %v10949_v16  ;;  %v5198_v16 = vadd.f32 %v5197_v30, %v5035_v35  ;;  %v11204_v30 = vadd.f32 %v4782_v63, %v11045_v14  ;;  %v5185_v35 = vsel %vm1950_vm2, %v5030_v28, 0.0 }
 0x67f   :  { %5183 = vadd.xlane.f32.xlu1 %v5182_v24  ;;  %v11178_v12 = vmul.f32 0.0051020407, %v4796_v51  ;;  %v5293_v51 = vmul.f32 %v11175_v19, %v11175_v19  ;;  %12968 = vst [vmem:[#allocation44_spill] sm:$0xff] %v11191_v41  ;;  %v4786_v33 = vpop.f32.mrf.mxu1  ;;  %v5252_v8 = vmul.f32 0.0051020407, %v5048_v5  ;;  %v5029_v52 = vmul.f32 %v11191_v41, %v11191_v41 }
 0x680   :  { %12967 = vst [vmem:[#allocation88_spill] sm:$0xff] %v11181_v26  ;;  %v5032_v0 = vmul.f32 %v11181_v26, %v11181_v26  ;;  %v4937_v47 = vsel %vm1950_vm2, %v11181_v26, 0.0  ;;  %12970 = vst [vmem:[#allocation87_spill] sm:$0xff] %v11204_v30  ;;  %v11219_v28 = vadd.f32 %v4780_v50, %v11029_v58 }
 0x681   :  { %4943 = vadd.xlane.f32.xlu0 %v4942_v38  ;;  %v5251_v38 = vmul.f32 0.0051020407, %v5044_v39  ;;  %v5294_v42 = vmul.f32 %v11178_v12, %v11178_v12  ;;  %v11200_v39 = vadd.f32 %v4764_v7, %v10933_v49 }
 0x682   :  { %v4800_v24 = vpop.xlane.xlu0 %4799  ;;  %v5189_v5 = vsel %vm1950_vm2, %v5032_v0, 0.0  ;;  %12972 = vst [vmem:[#allocation85_spill] sm:$0xff] %v11219_v28 }
 0x683   :  { %4947 = vadd.xlane.f32.xlu1 %v4946_v18  ;;  %12969 = vst [vmem:[#allocation41_spill] sm:$0xff] %v11200_v39  ;;  %v4934_v18 = vadd.f32 %v4933_v29, %v11191_v41  ;;  %v5335_v4 = vsub.f32 %v5251_v38, %v5293_v51  ;;  %v4938_v26 = vadd.f32 %v4937_v47, %v11200_v39  ;;  %v11221_v38 = vmul.f32 0.0051020407, %v4800_v24 }
 0x684   :  { %v4804_v40 = vpop.xlane.xlu1 %4803  ;;  %v5336_v49 = vsub.f32 %v5252_v8, %v5294_v42  ;;  %v5031_v14 = vmul.f32 %v11200_v39, %v11200_v39  ;;  %v5186_v29 = vadd.f32 %v5185_v35, %v5029_v52  ;;  %v5038_v51 = vmul.f32 %v11204_v30, %v11204_v30 }
 0x685   :  { %5195 = vadd.xlane.f32.xlu0 %v5194_v1  ;;  %v11216_v63 = vmul.f32 0.0051020407, %v4804_v40  ;;  %v5377_v0 = vmax.f32 %v5335_v4, 0.0  ;;  %v5037_v4 = vmul.f32 %v11219_v28, %v11219_v28 }
 0x686   :  { %v5052_v56 = vpop.xlane.xlu0 %5051  ;;  %v5190_v40 = vadd.f32 %v5189_v5, %v5031_v14  ;;  %v5378_v58 = vmax.f32 %v5336_v49, 0.0  ;;  %v5201_v8 = vsel %vm1950_vm2, %v5038_v51, 0.0 }
 0x687   :  { %5199 = vadd.xlane.f32.xlu1 %v5198_v16  ;;  %v11211_v16 = vadd.f32 %v4786_v33, %v11077_v10  ;;  %v4949_v10 = vsel %vm1950_vm2, %v11204_v30, 0.0  ;;  %v5253_v50 = vmul.f32 0.0051020407, %v5052_v56  ;;  %v5296_v33 = vmul.f32 %v11216_v63, %v11216_v63 }
 0x688   :  { %v5056_v1 = vpop.xlane.xlu1 %5055  ;;  %v5420_v14 = vadd.f32 1e-05, %v5378_v58 }
 0x689   :  { %4935 = vadd.xlane.f32.xlu0 %v4934_v18  ;;  %12971 = vst [vmem:[#allocation40_spill] sm:$0xff] %v11211_v16  ;;  %v5254_v47 = vmul.f32 0.0051020407, %v5056_v1  ;;  %v11228_v18 = vadd.f32 %v4784_v53, %v11061_v37  ;;  %v5040_v52 = vmul.f32 %v11211_v16, %v11211_v16  ;;  %v4950_v37 = vadd.f32 %v4949_v10, %v11219_v28 }
 0x68a   :  { %v4808_v7 = vpop.xlane.xlu0 %4807  ;;  %v5295_v53 = vmul.f32 %v11221_v38, %v11221_v38  ;;  %v5419_v1 = vadd.f32 1e-05, %v5377_v0  ;;  %v5202_v28 = vadd.f32 %v5201_v8, %v5037_v4 }
 0x68b   :  { %4939 = vadd.xlane.f32.xlu1 %v4938_v26  ;;  %12973 = vst [vmem:[#allocation30_spill] sm:$0xff] %v11228_v18  ;;  %v4953_v26 = vsel %vm1950_vm2, %v11211_v16, 0.0  ;;  %v5338_v35 = vsub.f32 %v5254_v47, %v5296_v33  ;;  %v5039_v49 = vmul.f32 %v11228_v18, %v11228_v18  ;;  %v11245_v16 = vmul.f32 0.0051020407, %v4808_v7 }
 0x68c   :  { %v4812_v42 = vpop.xlane.xlu1 %4811  ;;  %v4954_v5 = vadd.f32 %v4953_v26, %v11228_v18  ;;  %v5205_v10 = vsel %vm1950_vm2, %v5040_v52, 0.0  ;;  %7170 = vrsqrt.f32 %v5419_v1 }
 0x68d   :  { %5187 = vadd.xlane.f32.xlu0 %v5186_v29  ;;  %v5337_v29 = vsub.f32 %v5253_v50, %v5295_v53  ;;  %v11248_v30 = vmul.f32 0.0051020407, %v4812_v42  ;;  %v5380_v47 = vmax.f32 %v5338_v35, 0.0  ;;  %7172 = vrsqrt.f32 %v5420_v14 }
 0x68e   :  { %v5060_v24 = vpop.xlane.xlu0 %5059  ;;  %v5297_v7 = vmul.f32 %v11245_v16, %v11245_v16 }
 0x68f   :  { %5191 = vadd.xlane.f32.xlu1 %v5190_v40  ;;  %v5255_v51 = vmul.f32 0.0051020407, %v5060_v24  ;;  %v5379_v26 = vmax.f32 %v5337_v29, 0.0  ;;  %v5298_v50 = vmul.f32 %v11248_v30, %v11248_v30  ;;  %v5422_v4 = vadd.f32 1e-05, %v5380_v47 }
 0x690   :  { %v5064_v56 = vpop.xlane.xlu1 %5063 }
 0x691   :  { %4951 = vadd.xlane.f32.xlu0 %v4950_v37  ;;  %v5256_v33 = vmul.f32 0.0051020407, %v5064_v56  ;;  %v5206_v37 = vadd.f32 %v5205_v10, %v5039_v49  ;;  %v5339_v42 = vsub.f32 %v5255_v51, %v5297_v7  ;;  %v5421_v53 = vadd.f32 1e-05, %v5379_v26 }
 0x692   :  { %v4816_v40 = vpop.xlane.xlu0 %4815  ;;  %7174 = vrsqrt.f32 %v5422_v4 }
 0x693   :  { %4955 = vadd.xlane.f32.xlu1 %v4954_v5  ;;  %v5340_v24 = vsub.f32 %v5256_v33, %v5298_v50  ;;  %v11254_v8 = vmul.f32 0.0051020407, %v4816_v40  ;;  %v5381_v1 = vmax.f32 %v5339_v42, 0.0  ;;  %7176 = vrsqrt.f32 %v5421_v53  ;;  %v11269_v53 = vld [vmem:[%s12407_s4] sm:$0xff] }
 0x694   :  { %v4820_v0 = vpop.xlane.xlu1 %4819 }
 0x695   :  { %5203 = vadd.xlane.f32.xlu0 %v5202_v28  ;;  %v11256_v28 = vmul.f32 0.0051020407, %v4820_v0  ;;  %v5382_v5 = vmax.f32 %v5340_v24, 0.0  ;;  %v5299_v29 = vmul.f32 %v11254_v8, %v11254_v8  ;;  %v5423_v47 = vadd.f32 1e-05, %v5381_v1 }
 0x696   :  { %v5068_v58 = vpop.xlane.xlu0 %5067 }
 0x697   :  { %5207 = vadd.xlane.f32.xlu1 %v5206_v37  ;;  %v5257_v35 = vmul.f32 0.0051020407, %v5068_v58  ;;  %v5300_v51 = vmul.f32 %v11256_v28, %v11256_v28  ;;  %v5424_v37 = vadd.f32 1e-05, %v5382_v5  ;;  %7178 = vrsqrt.f32 %v5423_v47 }
 0x698   :  { %v5072_v52 = vpop.xlane.xlu1 %5071 }
 0x699   :  { %v5258_v14 = vmul.f32 0.0051020407, %v5072_v52  ;;  %v5341_v40 = vsub.f32 %v5257_v35, %v5299_v29  ;;  %v7171_v26 = vpop.eup %7170  ;;  %7180 = vrsqrt.f32 %v5424_v37 }
 0x69a   :  { %v4824_v56 = vpop.xlane.xlu0 %4823  ;;  %v7173_v50 = vpop.eup %7172  ;;  %v5503_v1 = vmul.f32 %v11269_v53, %v7171_v26 }
 0x69b   :  { %v5342_v0 = vsub.f32 %v5258_v14, %v5300_v51  ;;  %v11262_v7 = vmul.f32 0.0051020407, %v4824_v56  ;;  %v5383_v52 = vmax.f32 %v5341_v40, 0.0 }
 0x69c   :  { %v4828_v49 = vpop.xlane.xlu1 %4827 }
 0x69d   :  { %v11264_v42 = vmul.f32 0.0051020407, %v4828_v49  ;;  %v5384_v35 = vmax.f32 %v5342_v0, 0.0  ;;  %v5301_v56 = vmul.f32 %v11262_v7, %v11262_v7  ;;  %v11277_v49 = vld [vmem:[%s12407_s4 + $0x8] sm:$0xff]  ;;  %v5425_v51 = vadd.f32 1e-05, %v5383_v52 }
 0x69e   :  { %v5076_v10 = vpop.xlane.xlu0 %5075  ;;  %v5504_v29 = vmul.f32 %v11277_v49, %v7173_v50 }
 0x69f   :  { %v5259_v4 = vmul.f32 0.0051020407, %v5076_v10  ;;  %v5302_v10 = vmul.f32 %v11264_v42, %v11264_v42  ;;  %v5426_v37 = vadd.f32 1e-05, %v5384_v35  ;;  %v7175_v26 = vpop.eup %7174  ;;  %7182 = vrsqrt.f32 %v5425_v51 }
 0x6a0   :  { %v5080_v33 = vpop.xlane.xlu1 %5079  ;;  %v5546_v41 = vmul.f32 %v5504_v29, %v11178_v12  ;;  %v7177_v20 = vpop.eup %7176 }
 0x6a1   :  { %v5260_v5 = vmul.f32 0.0051020407, %v5080_v33  ;;  %v5343_v47 = vsub.f32 %v5259_v4, %v5301_v56  ;;  %v5545_v33 = vmul.f32 %v5503_v1, %v11175_v19  ;;  %7184 = vrsqrt.f32 %v5426_v37 }
 0x6a2   :  { %v4832_v58 = vpop.xlane.xlu0 %4831 }
 0x6a3   :  { %v5344_v0 = vsub.f32 %v5260_v5, %v5302_v10  ;;  %v11283_v18 = vmul.f32 0.0051020407, %v4832_v58  ;;  %v5385_v50 = vmax.f32 %v5343_v47, 0.0  ;;  %v11293_v58 = vld [vmem:[%s12407_s4 + $0x18] sm:$0xff]  ;;  %v11301_v5 = vld [vmem:[%s12407_s4 + $0x10] sm:$0xff] }
 0x6a4   :  { %v4836_v24 = vpop.xlane.xlu1 %4835  ;;  %v5506_v12 = vmul.f32 %v11293_v58, %v7175_v26  ;;  %v7179_v47 = vpop.eup %7178 }
 0x6a5   :  { %v11286_v6 = vmul.f32 0.0051020407, %v4836_v24  ;;  %v5386_v19 = vmax.f32 %v5344_v0, 0.0  ;;  %v5303_v24 = vmul.f32 %v11283_v18, %v11283_v18 }
 0x6a6   :  { %v5084_v14 = vpop.xlane.xlu0 %5083  ;;  %v5548_v37 = vmul.f32 %v5506_v12, %v11216_v63  ;;  %v7181_v0 = vpop.eup %7180  ;;  %v11317_v63 = vld [vmem:[%s12407_s4 + $0x20] sm:$0xff] }
 0x6a7   :  { %v5261_v52 = vmul.f32 0.0051020407, %v5084_v14  ;;  %v5304_v56 = vmul.f32 %v11286_v6, %v11286_v6  ;;  %v5427_v14 = vadd.f32 1e-05, %v5385_v50 }
 0x6a8   :  { %v5088_v40 = vpop.xlane.xlu1 %5087  ;;  %5799 = vperm.xlu1 %6728, %v5503_v1  }
 0x6a9   :  { %v5262_v1 = vmul.f32 0.0051020407, %v5088_v40  ;;  %v5345_v10 = vsub.f32 %v5261_v52, %v5303_v24  ;;  %v5428_v40 = vadd.f32 1e-05, %v5386_v19  ;;  %7186 = vrsqrt.f32 %v5427_v14 }
 0x6aa   :  { %v4840_v39 = vpop.xlane.xlu0 %4839 }
 0x6ab   :  { %5629 = vrot.lane.b32.xlu0 %v5545_v33, %s7341_s13  ;;  %v5346_v33 = vsub.f32 %v5262_v1, %v5304_v56  ;;  %v11307_v26 = vmul.f32 0.0051020407, %v4840_v39  ;;  %v5507_v39 = vmul.f32 %v11317_v63, %v7179_v47  ;;  %7188 = vrsqrt.f32 %v5428_v40 }
 0x6ac   :  { %v4844_v4 = vpop.xlane.xlu1 %4843  ;;  %5631 = vrot.lane.b32.xlu1 %v5546_v41, %s7341_s13  ;;  %v5505_v41 = vmul.f32 %v11301_v5, %v7177_v20 }
 0x6ad   :  { %v11310_v20 = vmul.f32 0.0051020407, %v4844_v4  ;;  %v5388_v19 = vmax.f32 %v5346_v33, 0.0  ;;  %v11323_v4 = vld [vmem:[%s12407_s4 + $0x28] sm:$0xff]  ;;  %v5549_v32 = vmul.f32 %v5507_v39, %v11245_v16 }
 0x6ae   :  { %v5092_v35 = vpop.xlane.xlu0 %5091  ;;  %v5547_v3 = vmul.f32 %v5505_v41, %v11221_v38  ;;  %v5508_v1 = vmul.f32 %v11323_v4, %v7181_v0 }
 0x6af   :  { %5804 = vperm.xlu0 %6729, %v5504_v29   ;;  %v5387_v29 = vmax.f32 %v5345_v10, 0.0  ;;  %v5263_v50 = vmul.f32 0.0051020407, %v5092_v35  ;;  %v5306_v35 = vmul.f32 %v11310_v20, %v11310_v20  ;;  %v7183_v10 = vpop.eup %7182 }
 0x6b0   :  { %v5096_v51 = vpop.xlane.xlu1 %5095  ;;  %5809 = vperm.xlu1 %6728, %v5505_v41   ;;  %v5550_v40 = vmul.f32 %v5508_v1, %v11248_v30  ;;  %v7185_v33 = vpop.eup %7184  ;;  %v11341_v30 = vld [vmem:[%s12407_s4 + $0x30] sm:$0xff] }
 0x6b1   :  { %v5264_v38 = vmul.f32 0.0051020407, %v5096_v51  ;;  %v5429_v41 = vadd.f32 1e-05, %v5387_v29  ;;  %v5430_v51 = vadd.f32 1e-05, %v5388_v19 }
 0x6b2   :  { %v4848_v2 = vpop.xlane.xlu0 %4847 }
 0x6b3   :  { %5635 = vrot.lane.b32.xlu0 %v5548_v37, %s7341_s13  ;;  %v5348_v47 = vsub.f32 %v5264_v38, %v5306_v35  ;;  %v11331_v37 = vmul.f32 0.0051020407, %v4848_v2  ;;  %7190 = vrsqrt.f32 %v5429_v41  ;;  %v5509_v2 = vmul.f32 %v11341_v30, %v7183_v10 }
 0x6b4   :  { %v4852_v52 = vpop.xlane.xlu1 %4851  ;;  %5633 = vrot.lane.b32.xlu1 %v5547_v3, %s7341_s13  ;;  %v5305_v3 = vmul.f32 %v11307_v26, %v11307_v26  ;;  %7192 = vrsqrt.f32 %v5430_v51 }
 0x6b5   :  { %v11334_v44 = vmul.f32 0.0051020407, %v4852_v52  ;;  %v11347_v52 = vld [vmem:[%s12407_s4 + $0x38] sm:$0xff]  ;;  %v5551_v9 = vmul.f32 %v5509_v2, %v11254_v8 }
 0x6b6   :  { %v5100_v24 = vpop.xlane.xlu0 %5099  ;;  %v5347_v56 = vsub.f32 %v5263_v50, %v5305_v3 }
 0x6b7   :  { %5819 = vperm.xlu0 %6729, %v5507_v39   ;;  %v5265_v50 = vmul.f32 0.0051020407, %v5100_v24  ;;  %v5510_v39 = vmul.f32 %v11347_v52, %v7185_v33  ;;  %v5308_v38 = vmul.f32 %v11334_v44, %v11334_v44 }
 0x6b8   :  { %v5104_v14 = vpop.xlane.xlu1 %5103  ;;  %5814 = vperm.xlu1 %6728, %v5506_v12   ;;  %v5389_v29 = vmax.f32 %v5347_v56, 0.0  ;;  %v5390_v12 = vmax.f32 %v5348_v47, 0.0  ;;  %v7187_v56 = vpop.eup %7186 }
 0x6b9   :  { %v5266_v16 = vmul.f32 0.0051020407, %v5104_v14  ;;  %v5552_v51 = vmul.f32 %v5510_v39, %v11256_v28  ;;  %v7189_v47 = vpop.eup %7188  ;;  %v11365_v28 = vld [vmem:[%s12407_s4 + $0x40] sm:$0xff] }
 0x6ba   :  { %v4856_v0 = vpop.xlane.xlu0 %4855  ;;  %v5431_v24 = vadd.f32 1e-05, %v5389_v29  ;;  %v5432_v14 = vadd.f32 1e-05, %v5390_v12 }
 0x6bb   :  { %5639 = vrot.lane.b32.xlu0 %v5550_v40, %s7341_s13  ;;  %v5350_v10 = vsub.f32 %v5266_v16, %v5308_v38  ;;  %v11355_v40 = vmul.f32 0.0051020407, %v4856_v0 }
 0x6bc   :  { %v4860_v3 = vpop.xlane.xlu1 %4859  ;;  %5637 = vrot.lane.b32.xlu1 %v5549_v32, %s7341_s13  ;;  %v5307_v32 = vmul.f32 %v11331_v37, %v11331_v37  ;;  %7194 = vrsqrt.f32 %v5431_v24 }
 0x6bd   :  { %v11358_v25 = vmul.f32 0.0051020407, %v4860_v3  ;;  %7196 = vrsqrt.f32 %v5432_v14  ;;  %v5392_v0 = vmax.f32 %v5350_v10, 0.0  ;;  %v11371_v3 = vld [vmem:[%s12407_s4 + $0x48] sm:$0xff] }
 0x6be   :  { %v5108_v19 = vpop.xlane.xlu0 %5107  ;;  %v5349_v35 = vsub.f32 %v5265_v50, %v5307_v32 }
 0x6bf   :  { %5829 = vperm.xlu0 %6729, %v5509_v2   ;;  %v5267_v50 = vmul.f32 0.0051020407, %v5108_v19  ;;  %v5512_v2 = vmul.f32 %v11371_v3, %v7189_v47  ;;  %v5310_v16 = vmul.f32 %v11358_v25, %v11358_v25 }
 0x6c0   :  { %v5112_v41 = vpop.xlane.xlu1 %5111  ;;  %5824 = vperm.xlu1 %6728, %v5508_v1   ;;  %v5391_v29 = vmax.f32 %v5349_v35, 0.0  ;;  %v5511_v1 = vmul.f32 %v11365_v28, %v7187_v56  ;;  %v7191_v35 = vpop.eup %7190 }
 0x6c1   :  { %v5268_v8 = vmul.f32 0.0051020407, %v5112_v41  ;;  %v5434_v41 = vadd.f32 1e-05, %v5392_v0  ;;  %v5554_v14 = vmul.f32 %v5512_v2, %v11264_v42  ;;  %v7193_v10 = vpop.eup %7192  ;;  %v11389_v42 = vld [vmem:[%s12407_s4 + $0x50] sm:$0xff] }
 0x6c2   :  { %v4864_v33 = vpop.xlane.xlu0 %4863  ;;  %v5433_v19 = vadd.f32 1e-05, %v5391_v29  ;;  %v5553_v13 = vmul.f32 %v5511_v1, %v11262_v7 }
 0x6c3   :  { %5643 = vrot.lane.b32.xlu0 %v5552_v51, %s7341_s13  ;;  %v5352_v56 = vsub.f32 %v5268_v8, %v5310_v16  ;;  %v11379_v51 = vmul.f32 0.0051020407, %v4864_v33 }
 0x6c4   :  { %v4868_v32 = vpop.xlane.xlu1 %4867  ;;  %5641 = vrot.lane.b32.xlu1 %v5551_v9, %s7341_s13  ;;  %v5309_v9 = vmul.f32 %v11355_v40, %v11355_v40  ;;  %7198 = vrsqrt.f32 %v5433_v19 }
 0x6c5   :  { %v11382_v23 = vmul.f32 0.0051020407, %v4868_v32  ;;  %7200 = vrsqrt.f32 %v5434_v41  ;;  %v5394_v33 = vmax.f32 %v5352_v56, 0.0  ;;  %v11395_v32 = vld [vmem:[%s12407_s4 + $0x58] sm:$0xff] }
 0x6c6   :  { %v5116_v12 = vpop.xlane.xlu0 %5115  ;;  %v5351_v38 = vsub.f32 %v5267_v50, %v5309_v9 }
 0x6c7   :  { %5839 = vperm.xlu0 %6729, %v5511_v1   ;;  %v5269_v50 = vmul.f32 0.0051020407, %v5116_v12  ;;  %v5514_v1 = vmul.f32 %v11395_v32, %v7193_v10  ;;  %v5312_v8 = vmul.f32 %v11382_v23, %v11382_v23 }
 0x6c8   :  { %v5120_v24 = vpop.xlane.xlu1 %5119  ;;  %5834 = vperm.xlu1 %6728, %v5510_v39   ;;  %v5393_v29 = vmax.f32 %v5351_v38, 0.0  ;;  %v5513_v39 = vmul.f32 %v11389_v42, %v7191_v35 }
 0x6c9   :  { %v5270_v7 = vmul.f32 0.0051020407, %v5120_v24  ;;  %v7195_v38 = vpop.eup %7194  ;;  %v5436_v24 = vadd.f32 1e-05, %v5394_v33  ;;  %v5556_v41 = vmul.f32 %v5514_v1, %v11286_v6  ;;  %v11413_v6 = vld [vmem:[%s12407_s4 + $0x60] sm:$0xff] }
 0x6ca   :  { %v4872_v47 = vpop.xlane.xlu0 %4871  ;;  %v5435_v12 = vadd.f32 1e-05, %v5393_v29  ;;  %v7197_v56 = vpop.eup %7196  ;;  %v5555_v36 = vmul.f32 %v5513_v39, %v11283_v18 }
 0x6cb   :  { %5647 = vrot.lane.b32.xlu0 %v5554_v14, %s7341_s13  ;;  %v5354_v35 = vsub.f32 %v5270_v7, %v5312_v8  ;;  %v11403_v14 = vmul.f32 0.0051020407, %v4872_v47 }
 0x6cc   :  { %v4876_v9 = vpop.xlane.xlu1 %4875  ;;  %5645 = vrot.lane.b32.xlu1 %v5553_v13, %s7341_s13  ;;  %v5311_v13 = vmul.f32 %v11379_v51, %v11379_v51  ;;  %7202 = vrsqrt.f32 %v5435_v12 }
 0x6cd   :  { %v11406_v57 = vmul.f32 0.0051020407, %v4876_v9  ;;  %7204 = vrsqrt.f32 %v5436_v24  ;;  %v5396_v47 = vmax.f32 %v5354_v35, 0.0  ;;  %v11419_v9 = vld [vmem:[%s12407_s4 + $0x68] sm:$0xff] }
 0x6ce   :  { %v5124_v0 = vpop.xlane.xlu0 %5123  ;;  %v5353_v16 = vsub.f32 %v5269_v50, %v5311_v13 }
 0x6cf   :  { %5849 = vperm.xlu0 %6729, %v5513_v39   ;;  %v5271_v50 = vmul.f32 0.0051020407, %v5124_v0  ;;  %v5516_v39 = vmul.f32 %v11419_v9, %v7197_v56  ;;  %v5314_v7 = vmul.f32 %v11406_v57, %v11406_v57 }
 0x6d0   :  { %v5128_v19 = vpop.xlane.xlu1 %5127  ;;  %5844 = vperm.xlu1 %6728, %v5512_v2   ;;  %v5395_v29 = vmax.f32 %v5353_v16, 0.0  ;;  %v5515_v2 = vmul.f32 %v11413_v6, %v7195_v38 }
 0x6d1   :  { %v5272_v18 = vmul.f32 0.0051020407, %v5128_v19  ;;  %v7199_v16 = vpop.eup %7198  ;;  %v5438_v19 = vadd.f32 1e-05, %v5396_v47  ;;  %v5558_v24 = vmul.f32 %v5516_v39, %v11310_v20  ;;  %v11437_v20 = vld [vmem:[%s12407_s4 + $0x70] sm:$0xff] }
 0x6d2   :  { %v4880_v10 = vpop.xlane.xlu0 %4879  ;;  %v5437_v0 = vadd.f32 1e-05, %v5395_v29  ;;  %v7201_v35 = vpop.eup %7200  ;;  %v5557_v62 = vmul.f32 %v5515_v2, %v11307_v26 }
 0x6d3   :  { %5651 = vrot.lane.b32.xlu0 %v5556_v41, %s7341_s13  ;;  %v5356_v38 = vsub.f32 %v5272_v18, %v5314_v7  ;;  %v11427_v41 = vmul.f32 0.0051020407, %v4880_v10 }
 0x6d4   :  { %v4884_v13 = vpop.xlane.xlu1 %4883  ;;  %5649 = vrot.lane.b32.xlu1 %v5555_v36, %s7341_s13  ;;  %v5313_v36 = vmul.f32 %v11403_v14, %v11403_v14  ;;  %7206 = vrsqrt.f32 %v5437_v0 }
 0x6d5   :  { %v11430_v34 = vmul.f32 0.0051020407, %v4884_v13  ;;  %7208 = vrsqrt.f32 %v5438_v19  ;;  %v5398_v10 = vmax.f32 %v5356_v38, 0.0  ;;  %v11443_v13 = vld [vmem:[%s12407_s4 + $0x78] sm:$0xff] }
 0x6d6   :  { %v5132_v33 = vpop.xlane.xlu0 %5131  ;;  %v5355_v8 = vsub.f32 %v5271_v50, %v5313_v36 }
 0x6d7   :  { %5859 = vperm.xlu0 %6729, %v5515_v2   ;;  %v5273_v50 = vmul.f32 0.0051020407, %v5132_v33  ;;  %v5518_v2 = vmul.f32 %v11443_v13, %v7201_v35  ;;  %v5316_v18 = vmul.f32 %v11430_v34, %v11430_v34 }
 0x6d8   :  { %v5136_v12 = vpop.xlane.xlu1 %5135  ;;  %5854 = vperm.xlu1 %6728, %v5514_v1   ;;  %v5397_v29 = vmax.f32 %v5355_v8, 0.0  ;;  %v5517_v1 = vmul.f32 %v11437_v20, %v7199_v16 }
 0x6d9   :  { %v5274_v26 = vmul.f32 0.0051020407, %v5136_v12  ;;  %v7203_v8 = vpop.eup %7202  ;;  %v5440_v12 = vadd.f32 1e-05, %v5398_v10  ;;  %v5560_v19 = vmul.f32 %v5518_v2, %v11334_v44  ;;  %v11461_v44 = vld [vmem:[%s12407_s4 + $0x80] sm:$0xff] }
 0x6da   :  { %v4888_v56 = vpop.xlane.xlu0 %4887  ;;  %v5439_v33 = vadd.f32 1e-05, %v5397_v29  ;;  %v7205_v38 = vpop.eup %7204  ;;  %v5559_v60 = vmul.f32 %v5517_v1, %v11331_v37 }
 0x6db   :  { %5655 = vrot.lane.b32.xlu0 %v5558_v24, %s7341_s13  ;;  %v5358_v16 = vsub.f32 %v5274_v26, %v5316_v18  ;;  %v11451_v24 = vmul.f32 0.0051020407, %v4888_v56 }
 0x6dc   :  { %v4892_v36 = vpop.xlane.xlu1 %4891  ;;  %5653 = vrot.lane.b32.xlu1 %v5557_v62, %s7341_s13  ;;  %v5315_v62 = vmul.f32 %v11427_v41, %v11427_v41  ;;  %7210 = vrsqrt.f32 %v5439_v33 }
 0x6dd   :  { %v11454_v11 = vmul.f32 0.0051020407, %v4892_v36  ;;  %7212 = vrsqrt.f32 %v5440_v12  ;;  %v5400_v56 = vmax.f32 %v5358_v16, 0.0  ;;  %v11467_v36 = vld [vmem:[%s12407_s4 + $0x88] sm:$0xff] }
 0x6de   :  { %v5140_v47 = vpop.xlane.xlu0 %5139  ;;  %v5357_v7 = vsub.f32 %v5273_v50, %v5315_v62 }
 0x6df   :  { %5869 = vperm.xlu0 %6729, %v5517_v1   ;;  %v5275_v50 = vmul.f32 0.0051020407, %v5140_v47  ;;  %v5520_v1 = vmul.f32 %v11467_v36, %v7205_v38  ;;  %v5318_v26 = vmul.f32 %v11454_v11, %v11454_v11 }
 0x6e0   :  { %v5144_v0 = vpop.xlane.xlu1 %5143  ;;  %5864 = vperm.xlu1 %6728, %v5516_v39   ;;  %v5399_v29 = vmax.f32 %v5357_v7, 0.0  ;;  %v5519_v39 = vmul.f32 %v11461_v44, %v7203_v8 }
 0x6e1   :  { %v5276_v37 = vmul.f32 0.0051020407, %v5144_v0  ;;  %v7207_v7 = vpop.eup %7206  ;;  %v5442_v0 = vadd.f32 1e-05, %v5400_v56  ;;  %v5562_v12 = vmul.f32 %v5520_v1, %v11358_v25  ;;  %v11485_v25 = vld [vmem:[%s12407_s4 + $0x90] sm:$0xff] }
 0x6e2   :  { %v4896_v35 = vpop.xlane.xlu0 %4895  ;;  %v5441_v47 = vadd.f32 1e-05, %v5399_v29  ;;  %v7209_v16 = vpop.eup %7208  ;;  %v5561_v22 = vmul.f32 %v5519_v39, %v11355_v40 }
 0x6e3   :  { %5659 = vrot.lane.b32.xlu0 %v5560_v19, %s7341_s13  ;;  %v5360_v8 = vsub.f32 %v5276_v37, %v5318_v26  ;;  %v11475_v19 = vmul.f32 0.0051020407, %v4896_v35 }
 0x6e4   :  { %v4900_v62 = vpop.xlane.xlu1 %4899  ;;  %5657 = vrot.lane.b32.xlu1 %v5559_v60, %s7341_s13  ;;  %v5317_v60 = vmul.f32 %v11451_v24, %v11451_v24  ;;  %7214 = vrsqrt.f32 %v5441_v47 }
 0x6e5   :  { %v11478_v43 = vmul.f32 0.0051020407, %v4900_v62  ;;  %7216 = vrsqrt.f32 %v5442_v0  ;;  %v5402_v35 = vmax.f32 %v5360_v8, 0.0  ;;  %v11491_v62 = vld [vmem:[%s12407_s4 + $0x98] sm:$0xff] }
 0x6e6   :  { %v5148_v10 = vpop.xlane.xlu0 %5147  ;;  %v5359_v18 = vsub.f32 %v5275_v50, %v5317_v60 }
 0x6e7   :  { %5879 = vperm.xlu0 %6729, %v5519_v39   ;;  %v5277_v50 = vmul.f32 0.0051020407, %v5148_v10  ;;  %v5522_v39 = vmul.f32 %v11491_v62, %v7209_v16  ;;  %v5320_v37 = vmul.f32 %v11478_v43, %v11478_v43 }
 0x6e8   :  { %v5152_v33 = vpop.xlane.xlu1 %5151  ;;  %5874 = vperm.xlu1 %6728, %v5518_v2   ;;  %v5401_v29 = vmax.f32 %v5359_v18, 0.0  ;;  %v5521_v2 = vmul.f32 %v11485_v25, %v7207_v7 }
 0x6e9   :  { %v5278_v40 = vmul.f32 0.0051020407, %v5152_v33  ;;  %v7211_v18 = vpop.eup %7210  ;;  %v5444_v33 = vadd.f32 1e-05, %v5402_v35  ;;  %v5564_v0 = vmul.f32 %v5522_v39, %v11382_v23  ;;  %v11509_v23 = vld [vmem:[%s12407_s4 + $0xa0] sm:$0xff] }
 0x6ea   :  { %v4904_v38 = vpop.xlane.xlu0 %4903  ;;  %v5443_v10 = vadd.f32 1e-05, %v5401_v29  ;;  %v7213_v8 = vpop.eup %7212  ;;  %v5563_v59 = vmul.f32 %v5521_v2, %v11379_v51 }
 0x6eb   :  { %5663 = vrot.lane.b32.xlu0 %v5562_v12, %s7341_s13  ;;  %v5362_v7 = vsub.f32 %v5278_v40, %v5320_v37  ;;  %v11499_v12 = vmul.f32 0.0051020407, %v4904_v38 }
 0x6ec   :  { %v4908_v60 = vpop.xlane.xlu1 %4907  ;;  %5661 = vrot.lane.b32.xlu1 %v5561_v22, %s7341_s13  ;;  %v5319_v22 = vmul.f32 %v11475_v19, %v11475_v19  ;;  %7218 = vrsqrt.f32 %v5443_v10 }
 0x6ed   :  { %v11502_v48 = vmul.f32 0.0051020407, %v4908_v60  ;;  %7220 = vrsqrt.f32 %v5444_v33  ;;  %v5404_v38 = vmax.f32 %v5362_v7, 0.0  ;;  %v11515_v60 = vld [vmem:[%s12407_s4 + $0xa8] sm:$0xff] }
 0x6ee   :  { %v5156_v56 = vpop.xlane.xlu0 %5155  ;;  %v5361_v26 = vsub.f32 %v5277_v50, %v5319_v22 }
 0x6ef   :  { %5889 = vperm.xlu0 %6729, %v5521_v2   ;;  %v5279_v50 = vmul.f32 0.0051020407, %v5156_v56  ;;  %v5524_v2 = vmul.f32 %v11515_v60, %v7213_v8  ;;  %v5322_v40 = vmul.f32 %v11502_v48, %v11502_v48 }
 0x6f0   :  { %v5160_v47 = vpop.xlane.xlu1 %5159  ;;  %5884 = vperm.xlu1 %6728, %v5520_v1   ;;  %v5403_v29 = vmax.f32 %v5361_v26, 0.0  ;;  %v5523_v1 = vmul.f32 %v11509_v23, %v7211_v18 }
 0x6f1   :  { %v5280_v51 = vmul.f32 0.0051020407, %v5160_v47  ;;  %v7215_v26 = vpop.eup %7214  ;;  %v5446_v47 = vadd.f32 1e-05, %v5404_v38  ;;  %v5566_v33 = vmul.f32 %v5524_v2, %v11406_v57  ;;  %v11533_v57 = vld [vmem:[%s12407_s4 + $0xb0] sm:$0xff] }
 0x6f2   :  { %v4912_v16 = vpop.xlane.xlu0 %4911  ;;  %v5445_v56 = vadd.f32 1e-05, %v5403_v29  ;;  %v7217_v7 = vpop.eup %7216  ;;  %v5565_v8 = vmul.f32 %v5523_v1, %v11403_v14  ;;  %v5525_v29 = vmul.f32 %v11533_v57, %v7215_v26  ;;  %v11539_v14 = vld [vmem:[%s12407_s4 + $0xb8] sm:$0xff] }
 0x6f3   :  { %5667 = vrot.lane.b32.xlu0 %v5564_v0, %s7341_s13  ;;  %v5364_v18 = vsub.f32 %v5280_v51, %v5322_v40  ;;  %v11525_v15 = vmul.f32 0.0051020407, %v4912_v16  ;;  %v5526_v16 = vmul.f32 %v11539_v14, %v7217_v7 }
 0x6f4   :  { %v4916_v22 = vpop.xlane.xlu1 %4915  ;;  %5665 = vrot.lane.b32.xlu1 %v5563_v59, %s7341_s13  ;;  %v5321_v59 = vmul.f32 %v11499_v12, %v11499_v12  ;;  %7222 = vrsqrt.f32 %v5445_v56 }
 0x6f5   :  { %7224 = vrsqrt.f32 %v5446_v47  ;;  %v5323_v51 = vmul.f32 %v11525_v15, %v11525_v15  ;;  %v11564_v7 = vmul.f32 0.0051020407, %v4916_v22 }
 0x6f6   :  { %v5164_v35 = vpop.xlane.xlu0 %5163  ;;  %v5363_v37 = vsub.f32 %v5279_v50, %v5321_v59 }
 0x6f7   :  { %5899 = vperm.xlu0 %6729, %v5523_v1   ;;  %v5281_v50 = vmul.f32 0.0051020407, %v5164_v35 }
 0x6f8   :  { %v5168_v10 = vpop.xlane.xlu1 %5167  ;;  %5894 = vperm.xlu1 %6728, %v5522_v39   ;;  %v5405_v46 = vmax.f32 %v5363_v37, 0.0  ;;  %v5406_v39 = vmax.f32 %v5364_v18, 0.0  ;;  %v5568_v37 = vmul.f32 %v5526_v16, %v11430_v34 }
 0x6f9   :  { %v7219_v40 = vpop.eup %7218  ;;  %v5365_v47 = vsub.f32 %v5281_v50, %v5323_v51 }
 0x6fa   :  { %v4920_v0 = vpop.xlane.xlu0 %4919  ;;  %v5447_v38 = vadd.f32 1e-05, %v5405_v46  ;;  %v5448_v56 = vadd.f32 1e-05, %v5406_v39  ;;  %v7221_v26 = vpop.eup %7220  ;;  %v11555_v46 = vld [vmem:[%s12407_s4 + $0xc0] sm:$0xff] }
 0x6fb   :  { %5671 = vrot.lane.b32.xlu0 %v5566_v33, %s7341_s13  ;;  %v5567_v33 = vmul.f32 %v5525_v29, %v11427_v41  ;;  %v5527_v34 = vmul.f32 %v11555_v46, %v7219_v40 }
 0x6fc   :  { %v11527_v31 = vpop.xlane.xlu1 %4923  ;;  %5669 = vrot.lane.b32.xlu1 %v5565_v8, %s7341_s13  ;;  %7226 = vrsqrt.f32 %v5447_v38  ;;  %v5407_v8 = vmax.f32 %v5365_v47, 0.0 }
 0x6fd   :  { %7228 = vrsqrt.f32 %v5448_v56  ;;  %v5324_v56 = vmul.f32 %v11564_v7, %v11564_v7  ;;  %v5569_v22 = vmul.f32 %v5527_v34, %v11451_v24 }
 0x6fe   :  { %v5172_v1 = vpop.xlane.xlu0 %5171 }
 0x6ff   :  { %5909 = vperm.xlu0 %6729, %v5525_v29   ;;  %v5282_v29 = vmul.f32 0.0051020407, %v5168_v10 }
 0x700   :  { %v5176_v59 = vpop.xlane.xlu1 %5175  ;;  %5904 = vperm.xlu1 %6728, %v5524_v2   ;;  %v11561_v2 = vld [vmem:[%s12407_s4 + $0xc8] sm:$0xff] }
 0x701   :  { %v5528_v41 = vmul.f32 %v11561_v2, %v7221_v26  ;;  %v7223_v38 = vpop.eup %7222  ;;  %v5366_v26 = vsub.f32 %v5282_v29, %v5324_v56 }
 0x702   :  { %v11545_v18 = vpop.xlane.xlu0 %4927  ;;  %v7225_v40 = vpop.eup %7224 }
 0x703   :  { %5675 = vrot.lane.b32.xlu0 %v5568_v37, %s7341_s13  ;;  %v5570_v51 = vmul.f32 %v5528_v41, %v11454_v11  ;;  %v5449_v37 = vadd.f32 1e-05, %v5407_v8  ;;  %v11583_v11 = vld [vmem:[%s12407_s4 + $0xd0] sm:$0xff]  ;;  %v5408_v29 = vmax.f32 %v5366_v26, 0.0 }
 0x704   :  { %v11549_v35 = vpop.xlane.xlu1 %4931  ;;  %5673 = vrot.lane.b32.xlu1 %v5567_v33, %s7341_s13  ;;  %v5529_v10 = vmul.f32 %v11583_v11, %v7223_v38 }
 0x705   :  { %7230 = vrsqrt.f32 %v5449_v37 }
 0x706   :  { %v11566_v39 = vpop.xlane.xlu0 %5179 }
 0x707   :  { %5919 = vperm.xlu0 %6729, %v5527_v34   ;;  %v11592_v34 = vmul.f32 0.0051020407, %v4920_v0  ;;  %v5571_v0 = vmul.f32 %v5529_v10, %v11475_v19 }
 0x708   :  { %v11568_v50 = vpop.xlane.xlu1 %5183  ;;  %5914 = vperm.xlu1 %6728, %v5526_v16   ;;  %v11589_v16 = vld [vmem:[%s12407_s4 + $0xd8] sm:$0xff] }
 0x709   :  { %v5530_v24 = vmul.f32 %v11589_v16, %v7225_v40  ;;  %v5325_v55 = vmul.f32 %v11592_v34, %v11592_v34  ;;  %v11605_v40 = vmul.f32 0.0051020407, %v11527_v31  ;;  %v11620_v31 = vld [vmem:[%s12407_s4 + $0xe8] sm:$0xff] }
 0x70a   :  { %v11573_v33 = vpop.xlane.xlu0 %4943 }
 0x70b   :  { %5679 = vrot.lane.b32.xlu0 %v5570_v51, %s7341_s13  ;;  %v5283_v51 = vmul.f32 0.0051020407, %v5172_v1  ;;  %v5572_v38 = vmul.f32 %v5530_v24, %v11478_v43  ;;  %v5450_v1 = vadd.f32 1e-05, %v5408_v29  ;;  %v5284_v43 = vmul.f32 0.0051020407, %v5176_v59 }
 0x70c   :  { %v11577_v47 = vpop.xlane.xlu1 %4947  ;;  %5677 = vrot.lane.b32.xlu1 %v5569_v22, %s7341_s13  ;;  %v7227_v22 = vpop.eup %7226 }
 0x70d   :  { %v7229_v61 = vpop.eup %7228  ;;  %v5367_v37 = vsub.f32 %v5283_v51, %v5325_v55  ;;  %7232 = vrsqrt.f32 %v5450_v1  ;;  %v12629_v1 = vmov 4  }
 0x70e   :  { %v11594_v8 = vpop.xlane.xlu0 %5195  ;;  %v5532_v19 = vmul.f32 %v11620_v31, %v7229_v61  ;;  %v11634_v61 = vmul.f32 0.0051020407, %v11545_v18 }
 0x70f   :  { %5929 = vperm.xlu0 %6729, %v5529_v10   ;;  %v5326_v10 = vmul.f32 %v11605_v40, %v11605_v40  ;;  %v5409_v59 = vmax.f32 %v5367_v37, 0.0 }
 0x710   :  { %v11596_v56 = vpop.xlane.xlu1 %5199  ;;  %5924 = vperm.xlu1 %6728, %v5528_v41   ;;  %v11614_v41 = vld [vmem:[%s12407_s4 + $0xe0] sm:$0xff]  ;;  %v5327_v18 = vmul.f32 %v11634_v61, %v11634_v61 }
 0x711   :  { %v5531_v21 = vmul.f32 %v11614_v41, %v7227_v22  ;;  %v5368_v51 = vsub.f32 %v5284_v43, %v5326_v10  ;;  %v5574_v22 = vmul.f32 %v5532_v19, %v11502_v48  ;;  %v5451_v27 = vadd.f32 1e-05, %v5409_v59 }
 0x712   :  { %v11601_v45 = vpop.xlane.xlu0 %4935  ;;  %v7231_v54 = vpop.eup %7230  ;;  %v5285_v48 = vmul.f32 0.0051020407, %v11566_v39 }
 0x713   :  { %5683 = vrot.lane.b32.xlu0 %v5572_v38, %s7341_s13  ;;  %7234 = vrsqrt.f32 %v5451_v27 }
 0x714   :  { %v11608_v26 = vpop.xlane.xlu1 %4939  ;;  %5681 = vrot.lane.b32.xlu1 %v5571_v0, %s7341_s13  ;;  %v5573_v0 = vmul.f32 %v5531_v21, %v11499_v12  ;;  %v5369_v59 = vsub.f32 %v5285_v48, %v5327_v18  ;;  %v11673_v48 = vld [vmem:[%s12407_s4 + $0xf8] sm:$0xff] }
 0x715   :  { %12977 = vst [vmem:[#allocation113_spill] sm:$0xff] %v11673_v48 }
 0x716   :  { %v11623_v55 = vpop.xlane.xlu0 %5187  ;;  %v5411_v27 = vmax.f32 %v5369_v59, 0.0 }
 0x717   :  { %5939 = vperm.xlu0 %6729, %v5531_v21   ;;  %v11647_v21 = vld [vmem:[%s12407_s4 + $0xf0] sm:$0xff] }
 0x718   :  { %v11627_v29 = vpop.xlane.xlu1 %5191  ;;  %5934 = vperm.xlu1 %6728, %v5530_v24   ;;  %v5410_v24 = vmax.f32 %v5368_v51, 0.0  ;;  %12974 = vst [vmem:[#allocation84_spill] sm:$0xff] %v11647_v21  ;;  %v5533_v12 = vmul.f32 %v11647_v21, %v7231_v54  ;;  %v11663_v21 = vmul.f32 0.0051020407, %v11573_v33  ;;  %v5453_v33 = vadd.f32 1e-05, %v5411_v27 }
 0x71a   :  { %v11630_v38 = vpop.xlane.xlu0 %4951  ;;  %v5452_v10 = vadd.f32 1e-05, %v5410_v24  ;;  %v5575_v39 = vmul.f32 %v5533_v12, %v11525_v15  ;;  %v7233_v54 = vpop.eup %7232  ;;  %v5286_v15 = vmul.f32 0.0051020407, %v11568_v50  ;;  %v12978_v50 = vmov 3  }
 0x71b   :  { %5687 = vrot.lane.b32.xlu0 %v5574_v22, %s7341_s13  ;;  %v5534_v18 = vmul.f32 %v11673_v48, %v7233_v54  ;;  %v11689_v48 = vmul.f32 0.0051020407, %v11601_v45  ;;  %v11700_v45 = vld [vmem:[%s12407_s4 + $0x100] sm:$0xff] }
 0x71c   :  { %v11637_v17 = vpop.xlane.xlu1 %4955  ;;  %5685 = vrot.lane.b32.xlu1 %v5573_v0, %s7341_s13  ;;  %6730 = vset.pattern.permute.xlu0 %v12629_v1  ;;  %v11657_v0 = vmul.f32 0.0051020407, %v11549_v35  ;;  %7236 = vrsqrt.f32 %v5452_v10  ;;  %v5331_v10 = vmul.f32 %v11663_v21, %v11663_v21 }
 0x71d   :  { %v5576_v54 = vmul.f32 %v5534_v18, %v11564_v7  ;;  %7238 = vrsqrt.f32 %v5453_v33 }
 0x71e   :  { %v11642_v37 = vpop.xlane.xlu0 %5203  ;;  %v5328_v35 = vmul.f32 %v11657_v0, %v11657_v0 }
 0x720   :  { %v11652_v43 = vpop.xlane.xlu1 %5207  ;;  %5944 = vperm.xlu1 %6728, %v5532_v19   ;;  %v12976_v19 = vmov 4   ;;  %v7235_v27 = vpop.eup %7234 }
 0x722   :  { %v5630_v51 = vpop.permute.xlu0 %5629 }
 0x723   :  { %v5755_v22 = vsub.f32 %v11269_v53, %v5630_v51  ;;  %v5289_v53 = vmul.f32 0.0051020407, %v11594_v8  ;;  %v5370_v8 = vsub.f32 %v5286_v15, %v5328_v35  ;;  %v5290_v15 = vmul.f32 0.0051020407, %v11596_v56 }
 0x724   :  { %v11659_v1 = vpop.permute.xlu1 %5799  ;;  %5689 = vrot.lane.b32.xlu1 %v5575_v39, %s7341_s13  ;;  %v5535_v56 = vmul.f32 %v11700_v45, %v7235_v27  ;;  %v11715_v27 = vld [vmem:[%s12407_s4 + $0x108] sm:$0xff] }
 0x725   :  { %12975 = vst [vmem:[#allocation81_spill] sm:$0xff] %v11659_v1  ;;  %6093 = vperm.xlu0 %6730, %v5755_v22   ;;  %6732 = vset.pattern.permute.xlu1 %v12976_v19  ;;  %v5373_v39 = vsub.f32 %v5289_v53, %v5331_v10  ;;  %v11683_v22 = vmul.f32 0.0051020407, %v11577_v47  ;;  %v5287_v53 = vmul.f32 0.0051020407, %v11623_v55 }
 0x727   :  { %v5332_v47 = vmul.f32 %v11683_v22, %v11683_v22 }
 0x728   :  { %v5632_v24 = vpop.permute.xlu1 %5631 }
 0x729   :  { %v5756_v59 = vsub.f32 %v11277_v49, %v5632_v24  ;;  %6731 = vset.pattern.permute.xlu0 %v12978_v50  ;;  %v5412_v49 = vmax.f32 %v5370_v8, 0.0  ;;  %v5329_v24 = vmul.f32 %v11689_v48, %v11689_v48  ;;  %v7237_v33 = vpop.eup %7236  ;;  %v5374_v55 = vsub.f32 %v5290_v15, %v5332_v47 }
 0x72a   :  { %v11680_v51 = vpop.permute.xlu0 %5804  ;;  %5949 = vperm.xlu0 %6731, %v5533_v12   ;;  %v5415_v12 = vmax.f32 %v5373_v39, 0.0 }
 0x72b   :  { %6098 = vperm.xlu1 %6732, %v5756_v59   ;;  %v5454_v10 = vadd.f32 1e-05, %v5412_v49  ;;  %v5371_v39 = vsub.f32 %v5287_v53, %v5329_v24  ;;  %v5536_v49 = vmul.f32 %v11715_v27, %v7237_v33  ;;  %v5416_v15 = vmax.f32 %v5374_v55, 0.0 }
 0x72c   :  { %v11685_v1 = vpop.permute.xlu1 %5809  ;;  %v5457_v8 = vadd.f32 1e-05, %v5415_v12  ;;  %v5577_v53 = vmul.f32 %v5535_v56, %v11592_v34  ;;  %v11726_v33 = vmul.f32 0.0051020407, %v11630_v38  ;;  %v5288_v34 = vmul.f32 0.0051020407, %v11627_v29 }
 0x72d   :  { %12979 = vst [vmem:[#allocation80_spill] sm:$0xff] %v11685_v1  ;;  %7240 = vrsqrt.f32 %v5454_v10  ;;  %v5458_v24 = vadd.f32 1e-05, %v5416_v15  ;;  %v11742_v38 = vld [vmem:[%s12407_s4 + $0x110] sm:$0xff] }
 0x72e   :  { %v5636_v35 = vpop.permute.xlu0 %5635  ;;  %5691 = vrot.lane.b32.xlu0 %v5576_v54, %s7341_s13  ;;  %7242 = vrsqrt.f32 %v5457_v8  ;;  %v5333_v29 = vmul.f32 %v11726_v33, %v11726_v33 }
 0x72f   :  { %6733 = vset.pattern.permute.xlu1 %v12978_v50  ;;  %v5758_v1 = vsub.f32 %v11293_v58, %v5636_v35  ;;  %v11721_v58 = vmul.f32 0.0051020407, %v11608_v26  ;;  %v5578_v35 = vmul.f32 %v5536_v49, %v11605_v40  ;;  %v5291_v26 = vmul.f32 0.0051020407, %v11642_v37 }
 0x730   :  { %5954 = vperm.xlu1 %6733, %v5534_v18   ;;  %v5634_v7 = vpop.permute.xlu1 %5633  ;;  %7244 = vrsqrt.f32 %v5458_v24  ;;  %v11748_v37 = vmul.f32 0.0051020407, %v11637_v17 }
 0x731   :  { %v5757_v18 = vsub.f32 %v11301_v5, %v5634_v7  ;;  %v5413_v5 = vmax.f32 %v5371_v39, 0.0  ;;  %v7239_v7 = vpop.eup %7238  ;;  %v5330_v40 = vmul.f32 %v11721_v58, %v11721_v58 }
 0x732   :  { %v11705_v59 = vpop.permute.xlu0 %5819  ;;  %5959 = vperm.xlu0 %6731, %v5535_v56   ;;  %v5537_v55 = vmul.f32 %v11742_v38, %v7239_v7 }
 0x733   :  { %v5372_v39 = vsub.f32 %v5288_v34, %v5330_v40 }
 0x734   :  { %6734 = vset.pattern.permute.xlu1 %v12976_v19  ;;  %v11709_v54 = vpop.permute.xlu1 %5814 }
 0x735   :  { %6103 = vperm.xlu1 %6734, %v5757_v18   ;;  %v5375_v18 = vsub.f32 %v5291_v26, %v5333_v29  ;;  %v5414_v24 = vmax.f32 %v5372_v39, 0.0  ;;  %v11777_v29 = vld [vmem:[%s12407_s4 + $0x118] sm:$0xff] }
 0x736   :  { %v5640_v12 = vpop.permute.xlu0 %5639  ;;  %6735 = vset.pattern.permute.xlu0 %v12976_v19 }
 0x737   :  { %6108 = vperm.xlu0 %6735, %v5758_v1   ;;  %v5455_v1 = vadd.f32 1e-05, %v5413_v5  ;;  %v5417_v34 = vmax.f32 %v5375_v18, 0.0 }
 0x738   :  { %v5638_v47 = vpop.permute.xlu1 %5637 }
 0x739   :  { %5693 = vrot.lane.b32.xlu1 %v5577_v53, %s7341_s13  ;;  %7246 = vrsqrt.f32 %v5455_v1  ;;  %v5759_v15 = vsub.f32 %v11317_v63, %v5638_v47  ;;  %v5334_v53 = vmul.f32 %v11748_v37, %v11748_v37  ;;  %v5579_v47 = vmul.f32 %v5537_v55, %v11634_v61 }
 0x73a   :  { %v11728_v10 = vpop.permute.xlu0 %5829  ;;  %6736 = vset.pattern.permute.xlu1 %v12978_v50  ;;  %v7241_v7 = vpop.eup %7240 }
 0x73b   :  { %5695 = vrot.lane.b32.xlu0 %v5578_v35, %s7341_s13  ;;  %v5760_v35 = vsub.f32 %v11323_v4, %v5640_v12  ;;  %v7243_v1 = vpop.eup %7242  ;;  %v5456_v4 = vadd.f32 1e-05, %v5414_v24  ;;  %v11770_v12 = vld [vmem:[%s12407_s4 + $0x130] sm:$0xff]  ;;  %v5538_v61 = vmul.f32 %v11777_v29, %v7241_v7 }
 0x73c   :  { %v11734_v56 = vpop.permute.xlu1 %5824  ;;  %6738 = vset.pattern.permute.xlu0 %v12978_v50  ;;  %v5541_v40 = vmul.f32 %v11770_v12, %v7243_v1 }
 0x73d   :  { %5964 = vperm.xlu1 %6736, %v5536_v49   ;;  %v5292_v49 = vmul.f32 0.0051020407, %v11652_v43  ;;  %7248 = vrsqrt.f32 %v5456_v4 }
 0x73e   :  { %v11750_v8 = vpop.permute.xlu0 %5643  ;;  %v5583_v7 = vmul.f32 %v5541_v40, %v11663_v21 }
 0x73f   :  { %5969 = vperm.xlu0 %6738, %v5537_v55   ;;  %v5376_v43 = vsub.f32 %v5292_v49, %v5334_v53  ;;  %v5459_v55 = vadd.f32 1e-05, %v5417_v34  ;;  %v5580_v53 = vmul.f32 %v5538_v61, %v11657_v0 }
 0x740   :  { %v5642_v5 = vpop.permute.xlu1 %5641 }
 0x741   :  { %6737 = vset.pattern.permute.xlu1 %v12976_v19  ;;  %v5418_v39 = vmax.f32 %v5376_v43, 0.0  ;;  %7250 = vrsqrt.f32 %v5459_v55  ;;  %v11796_v43 = vld [vmem:[%s12407_s4 + $0x120] sm:$0xff]  ;;  %v5761_v4 = vsub.f32 %v11341_v30, %v5642_v5 }
 0x742   :  { %v11758_v17 = vpop.permute.xlu0 %5839  ;;  %6113 = vperm.xlu1 %6737, %v5759_v15   ;;  %v7245_v15 = vpop.eup %7244 }
 0x743   :  { %6739 = vset.pattern.permute.xlu0 %v12976_v19  ;;  %v5460_v24 = vadd.f32 1e-05, %v5418_v39 }
 0x744   :  { %6118 = vperm.xlu0 %6739, %v5760_v35   ;;  %v11761_v63 = vpop.permute.xlu1 %5834 }
 0x745   :  { %7252 = vrsqrt.f32 %v5460_v24 }
 0x746   :  { %v11764_v26 = vpop.permute.xlu0 %5647  ;;  %5697 = vrot.lane.b32.xlu1 %v5579_v47, %s7341_s13  ;;  %v7247_v35 = vpop.eup %7246  ;;  %v11803_v47 = vld [vmem:[%s12407_s4 + $0x138] sm:$0xff] }
 0x747   :  { %6740 = vset.pattern.permute.xlu1 %v12978_v50  ;;  %v5539_v0 = vmul.f32 %v11796_v43, %v7247_v35  ;;  %v5542_v21 = vmul.f32 %v11803_v47, %v7245_v15  ;;  %v5762_v15 = vsub.f32 %v11347_v52, %v11750_v8  ;;  %v11832_v8 = vld [vmem:[%s12407_s4 + $0x128] sm:$0xff] }
 0x748   :  { %6741 = vset.pattern.permute.xlu0 %v12978_v50  ;;  %v11781_v18 = vpop.permute.xlu1 %5645 }
 0x749   :  { %5989 = vperm.xlu0 %6741, %v5541_v40   ;;  %v5584_v55 = vmul.f32 %v5542_v21, %v11683_v22  ;;  %v5581_v24 = vmul.f32 %v5539_v0, %v11689_v48 }
 0x74a   :  { %v11783_v49 = vpop.permute.xlu0 %5849  ;;  %5974 = vperm.xlu1 %6740, %v5538_v61   ;;  %v7249_v30 = vpop.eup %7248 }
 0x74b   :  { %v5540_v48 = vmul.f32 %v11832_v8, %v7249_v30 }
 0x74c   :  { %v11786_v1 = vpop.permute.xlu1 %5844 }
 0x74d   :  { %5699 = vrot.lane.b32.xlu0 %v5580_v53, %s7341_s13 }
 0x74e   :  { %v11790_v34 = vpop.permute.xlu0 %5651  ;;  %5705 = vrot.lane.b32.xlu1 %v5583_v7, %s7341_s13  ;;  %v7251_v35 = vpop.eup %7250 }
 0x74f   :  { %6742 = vset.pattern.permute.xlu1 %v12976_v19 }
 0x750   :  { %v5650_v40 = vpop.permute.xlu1 %5649 }
 0x751   :  { %5979 = vperm.xlu0 %6741, %v5539_v0  }
 0x752   :  { %v11807_v61 = vpop.permute.xlu0 %5859  ;;  %6123 = vperm.xlu1 %6742, %v5761_v4   ;;  %v11826_v4 = vld [vmem:[%s12407_s4 + $0x140] sm:$0xff]  ;;  %v7253_v0 = vpop.eup %7252 }
 0x753   :  { %12980 = vst [vmem:[#allocation83_spill] sm:$0xff] %v11807_v61  ;;  %v5543_v52 = vmul.f32 %v11826_v4, %v7251_v35  ;;  %v11840_v35 = vld [vmem:[%s12407_s4 + $0x148] sm:$0xff] }
 0x754   :  { %v11810_v39 = vpop.permute.xlu1 %5854 }
 0x755   :  { %5707 = vrot.lane.b32.xlu0 %v5584_v55, %s7341_s13 }
 0x756   :  { %v5656_v53 = vpop.permute.xlu0 %5655  ;;  %6743 = vset.pattern.permute.xlu1 %v12978_v50  ;;  %6744 = vset.pattern.permute.xlu0 %v12976_v19 }
 0x757   :  { %5994 = vperm.xlu1 %6743, %v5542_v21  }
 0x758   :  { %v5654_v5 = vpop.permute.xlu1 %5653 }
 0x759   :  { %6128 = vperm.xlu0 %6744, %v5762_v15   ;;  %v5582_v15 = vmul.f32 %v5540_v48, %v11721_v58 }
 0x75a   :  { %v11818_v22 = vpop.permute.xlu0 %5869 }
 0x75b   :  { %12981 = vst [vmem:[#allocation94_spill] sm:$0xff] %v11818_v22  ;;  %5701 = vrot.lane.b32.xlu1 %v5581_v24, %s7341_s13  ;;  %v5544_v24 = vmul.f32 %v11840_v35, %v7253_v0  ;;  %v5585_v22 = vmul.f32 %v5543_v52, %v11726_v33  ;;  %v5764_v33 = vsub.f32 %v11371_v3, %v11764_v26 }
 0x75c   :  { %v11821_v7 = vpop.permute.xlu1 %5864 }
 0x75d   :  { %6745 = vset.pattern.permute.xlu0 %v12978_v50  ;;  %v5586_v58 = vmul.f32 %v5544_v24, %v11748_v37  ;;  %v5766_v37 = vsub.f32 %v11395_v32, %v11790_v34 }
 0x75e   :  { %v5660_v21 = vpop.permute.xlu0 %5659  ;;  %5999 = vperm.xlu0 %6745, %v5543_v52  }
 0x75f   :  { %5984 = vperm.xlu1 %6743, %v5540_v48   ;;  %v5763_v48 = vsub.f32 %v11365_v28, %v11781_v18  ;;  %v5765_v18 = vsub.f32 %v11389_v42, %v5650_v40  ;;  %v5770_v32 = vsub.f32 %v11443_v13, %v5660_v21 }
 0x760   :  { %v5658_v55 = vpop.permute.xlu1 %5657 }
 0x761   :  { %v5769_v42 = vsub.f32 %v11437_v20, %v5658_v55 }
 0x762   :  { %v11844_v61 = vpop.permute.xlu0 %5879  ;;  %5703 = vrot.lane.b32.xlu0 %v5582_v15, %s7341_s13 }
 0x763   :  { %5709 = vrot.lane.b32.xlu1 %v5585_v22, %s7341_s13  ;;  %6748 = vset.pattern.permute.xlu0 %v12976_v19 }
 0x764   :  { %v11849_v30 = vpop.permute.xlu1 %5874  ;;  %6746 = vset.pattern.permute.xlu1 %v12976_v19 }
 0x766   :  { %v5664_v0 = vpop.permute.xlu0 %5663  ;;  %5711 = vrot.lane.b32.xlu0 %v5586_v58, %s7341_s13  ;;  %v5768_v58 = vsub.f32 %v11419_v9, %v5656_v53 }
 0x767   :  { %6133 = vperm.xlu1 %6746, %v5763_v48   ;;  %v5772_v9 = vsub.f32 %v11467_v36, %v5664_v0 }
 0x768   :  { %v5662_v52 = vpop.permute.xlu1 %5661 }
 0x769   :  { %v5771_v53 = vsub.f32 %v11461_v44, %v5662_v52 }
 0x76a   :  { %v11858_v22 = vpop.permute.xlu0 %5889  ;;  %6138 = vperm.xlu0 %6748, %v5764_v33  }
 0x76b   :  { %6747 = vset.pattern.permute.xlu1 %v12978_v50  ;;  %v5767_v50 = vsub.f32 %v11413_v6, %v5654_v5 }
 0x76c   :  { %6004 = vperm.xlu1 %6747, %v5544_v24   ;;  %v11863_v15 = vpop.permute.xlu1 %5884 }
 0x76e   :  { %v5668_v28 = vpop.permute.xlu0 %5667  ;;  %6148 = vperm.xlu0 %6748, %v5766_v37  }
 0x76f   :  { %v5774_v6 = vsub.f32 %v11491_v62, %v5668_v28 }
 0x770   :  { %6749 = vset.pattern.permute.xlu1 %v12976_v19  ;;  %v5666_v3 = vpop.permute.xlu1 %5665 }
 0x771   :  { %6143 = vperm.xlu1 %6749, %v5765_v18   ;;  %v5773_v21 = vsub.f32 %v11485_v25, %v5666_v3 }
 0x772   :  { %v11868_v26 = vpop.permute.xlu0 %5899  ;;  %6158 = vperm.xlu0 %6748, %v5768_v58  }
 0x774   :  { %v11872_v34 = vpop.permute.xlu1 %5894 }
 0x775   :  { %6153 = vperm.xlu1 %6749, %v5767_v50  }
 0x776   :  { %v5672_v24 = vpop.permute.xlu0 %5671  ;;  %6168 = vperm.xlu0 %6748, %v5770_v32  }
 0x777   :  { %v5776_v20 = vsub.f32 %v11515_v60, %v5672_v24 }
 0x778   :  { %v5670_v40 = vpop.permute.xlu1 %5669 }
 0x779   :  { %6163 = vperm.xlu1 %6749, %v5769_v42   ;;  %v5775_v48 = vsub.f32 %v11509_v23, %v5670_v40  ;;  %v12983_v42 = vld [vmem:[#allocation81_spill] sm:$0xff] }
 0x77a   :  { %v11876_v19 = vpop.permute.xlu0 %5909  ;;  %6178 = vperm.xlu0 %6748, %v5772_v9  }
 0x77c   :  { %v11880_v5 = vpop.permute.xlu1 %5904 }
 0x77d   :  { %6173 = vperm.xlu1 %6749, %v5771_v53  }
 0x77e   :  { %v5676_v13 = vpop.permute.xlu0 %5675  ;;  %6188 = vperm.xlu0 %6748, %v5774_v6  }
 0x77f   :  { %v5778_v44 = vsub.f32 %v11539_v14, %v5676_v13 }
 0x780   :  { %v5674_v55 = vpop.permute.xlu1 %5673 }
 0x781   :  { %6183 = vperm.xlu1 %6749, %v5773_v21   ;;  %v5777_v33 = vsub.f32 %v11533_v57, %v5674_v55 }
 0x782   :  { %v11884_v36 = vpop.permute.xlu0 %5919  ;;  %6198 = vperm.xlu0 %6748, %v5776_v20   ;;  %v12985_v20 = vld [vmem:[#allocation84_spill] sm:$0xff] }
 0x784   :  { %v11888_v0 = vpop.permute.xlu1 %5914 }
 0x785   :  { %6193 = vperm.xlu1 %6749, %v5775_v48   ;;  %v12987_v48 = vld [vmem:[#allocation10_spill] sm:$0xff] }
 0x786   :  { %v5680_v62 = vpop.permute.xlu0 %5679  ;;  %6208 = vperm.xlu0 %6748, %v5778_v44   ;;  %v6010_v44 = vmul.f32 %v11680_v51, %v12987_v48 }
 0x787   :  { %v5780_v25 = vsub.f32 %v11561_v2, %v5680_v62 }
 0x788   :  { %v5678_v52 = vpop.permute.xlu1 %5677 }
 0x789   :  { %6203 = vperm.xlu1 %6749, %v5777_v33   ;;  %v5779_v37 = vsub.f32 %v11555_v46, %v5678_v52 }
 0x78a   :  { %v11892_v60 = vpop.permute.xlu0 %5929  ;;  %6218 = vperm.xlu0 %6748, %v5780_v25  }
 0x78c   :  { %v11895_v28 = vpop.permute.xlu1 %5924 }
 0x78d   :  { %6213 = vperm.xlu1 %6749, %v5779_v37  }
 0x78e   :  { %v5684_v23 = vpop.permute.xlu0 %5683 }
 0x78f   :  { %v5782_v14 = vsub.f32 %v11589_v16, %v5684_v23  ;;  %v12982_v16 = vld [vmem:[#allocation3_spill] sm:$0xff]  ;;  %v12988_v23 = vld [vmem:[#allocation113_spill] sm:$0xff] }
 0x790   :  { %v5682_v18 = vpop.permute.xlu1 %5681  ;;  %v6007_v9 = vmul.f32 %v12983_v42, %v12982_v16 }
 0x791   :  { %v5781_v58 = vsub.f32 %v11583_v11, %v5682_v18  ;;  %6228 = vperm.xlu0 %6748, %v5782_v14   ;;  %v12984_v11 = vld [vmem:[#allocation5_spill] sm:$0xff] }
 0x792   :  { %v11899_v57 = vpop.permute.xlu0 %5939  ;;  %v6008_v40 = vmul.f32 %v12983_v42, %v12984_v11  ;;  %v12992_v42 = vld [vmem:[#allocation18_spill] sm:$0xff]  ;;  %v12993_v11 = vld [vmem:[#allocation19_spill] sm:$0xff] }
 0x793   :  { %6223 = vperm.xlu1 %6749, %v5781_v58   ;;  %v12989_v58 = vld [vmem:[#allocation14_spill] sm:$0xff] }
 0x794   :  { %v11901_v2 = vpop.permute.xlu1 %5934 }
 0x796   :  { %v5688_v3 = vpop.permute.xlu0 %5687 }
 0x797   :  { %v5784_v50 = vsub.f32 %v11620_v31, %v5688_v3  ;;  %v12990_v3 = vld [vmem:[#allocation80_spill] sm:$0xff] }
 0x798   :  { %v5686_v32 = vpop.permute.xlu1 %5685 }
 0x799   :  { %v5783_v46 = vsub.f32 %v11614_v41, %v5686_v32  ;;  %6238 = vperm.xlu0 %6748, %v5784_v50   ;;  %v12986_v41 = vld [vmem:[#allocation11_spill] sm:$0xff]  ;;  %v6011_v50 = vmul.f32 %v12990_v3, %v12989_v58 }
 0x79a   :  { %v6009_v31 = vmul.f32 %v11680_v51, %v12986_v41  ;;  %v12991_v32 = vld [vmem:[#allocation15_spill] sm:$0xff] }
 0x79b   :  { %6233 = vperm.xlu1 %6749, %v5783_v46   ;;  %v6012_v46 = vmul.f32 %v12990_v3, %v12991_v32 }
 0x79c   :  { %v11905_v24 = vpop.permute.xlu1 %5944 }
 0x7a0   :  { %v6094_v53 = vpop.permute.xlu0 %6093  ;;  %v5690_v6 = vpop.permute.xlu1 %5689 }
 0x7a1   :  { %v6301_v13 = vadd.f32 %v6094_v53, %v6007_v9  ;;  %v6302_v21 = vadd.f32 %v6094_v53, %v6008_v40  ;;  %v5785_v55 = vsub.f32 %v12985_v20, %v5690_v6  ;;  %v6013_v9 = vmul.f32 %v11709_v54, %v12992_v42 }
 0x7a2   :  { %v6014_v40 = vmul.f32 %v11709_v54, %v12993_v11 }
 0x7a3   :  { %6385 = vst [vmem:[%s12412_s7] sm:$0xff] %v6301_v13  ;;  %6386 = vst.msk [vmem:[%s12412_s7 + $0x8] sm:$0xff] %vm1950_vm2, %v6302_v21  ;;  %6243 = vperm.xlu1 %6749, %v5785_v55  }
 0x7a5   :  { %v11923_v62 = vpop.permute.xlu0 %5949 }
 0x7a6   :  { %v6099_v33 = vpop.permute.xlu1 %6098 }
 0x7a7   :  { %v6303_v25 = vadd.f32 %v6099_v33, %v6009_v31  ;;  %v6304_v52 = vadd.f32 %v6099_v33, %v6010_v44  ;;  %v12994_v33 = vld [vmem:[#allocation22_spill] sm:$0xff] }
 0x7a9   :  { %6387 = vst [vmem:[%s12412_s7 + $0x10] sm:$0xff] %v6303_v25  ;;  %6388 = vst.msk [vmem:[%s12412_s7 + $0x18] sm:$0xff] %vm1950_vm2, %v6304_v52  ;;  %v5692_v37 = vpop.permute.xlu0 %5691  ;;  %v6015_v25 = vmul.f32 %v11705_v59, %v12994_v33  ;;  %v12995_v52 = vld [vmem:[#allocation23_spill] sm:$0xff] }
 0x7aa   :  { %v5786_v14 = vsub.f32 %v12988_v23, %v5692_v37  ;;  %v6016_v37 = vmul.f32 %v11705_v59, %v12995_v52  ;;  %v13001_v52 = vld [vmem:[#allocation16_spill] sm:$0xff] }
 0x7ab   :  { %v11933_v18 = vpop.permute.xlu1 %5954 }
 0x7ac   :  { %6248 = vperm.xlu0 %6748, %v5786_v14   ;;  %v12996_v14 = vld [vmem:[#allocation26_spill] sm:$0xff] }
 0x7ad   :  { %v11935_v51 = vpop.permute.xlu0 %5959  ;;  %v6017_v58 = vmul.f32 %v11734_v56, %v12996_v14 }
 0x7b0   :  { %v6104_v16 = vpop.permute.xlu1 %6103 }
 0x7b1   :  { %v6305_v53 = vadd.f32 %v6104_v16, %v6011_v50  ;;  %v6306_v6 = vadd.f32 %v6104_v16, %v6012_v46 }
 0x7b2   :  { %v6109_v13 = vpop.permute.xlu0 %6108 }
 0x7b3   :  { %6389 = vst [vmem:[%s12412_s7 + $0x20] sm:$0xff] %v6305_v53  ;;  %6390 = vst.msk [vmem:[%s12412_s7 + $0x28] sm:$0xff] %vm1950_vm2, %v6306_v6  ;;  %v6307_v21 = vadd.f32 %v6109_v13, %v6013_v9  ;;  %v6308_v20 = vadd.f32 %v6109_v13, %v6014_v40  ;;  %v12998_v13 = vld [vmem:[#allocation12_spill] sm:$0xff] }
 0x7b4   :  { %v5694_v55 = vpop.permute.xlu1 %5693 }
 0x7b5   :  { %6391 = vst [vmem:[%s12412_s7 + $0x30] sm:$0xff] %v6307_v21  ;;  %6392 = vst.msk [vmem:[%s12412_s7 + $0x38] sm:$0xff] %vm1950_vm2, %v6308_v20  ;;  %v5787_v54 = vsub.f32 %v11700_v45, %v5694_v55  ;;  %v12997_v45 = vld [vmem:[#allocation27_spill] sm:$0xff]  ;;  %v6019_v21 = vmul.f32 %v11728_v10, %v12998_v13  ;;  %v12999_v20 = vld [vmem:[#allocation6_spill] sm:$0xff] }
 0x7b6   :  { %v5696_v41 = vpop.permute.xlu0 %5695  ;;  %v6018_v3 = vmul.f32 %v11734_v56, %v12997_v45  ;;  %v6020_v55 = vmul.f32 %v11728_v10, %v12999_v20  ;;  %v13000_v10 = vld [vmem:[#allocation21_spill] sm:$0xff] }
 0x7b7   :  { %v5788_v31 = vsub.f32 %v11715_v27, %v5696_v41  ;;  %6253 = vperm.xlu1 %6749, %v5787_v54   ;;  %v13005_v20 = vld [vmem:[#allocation25_spill] sm:$0xff] }
 0x7b8   :  { %v11961_v48 = vpop.permute.xlu1 %5964 }
 0x7b9   :  { %6258 = vperm.xlu0 %6748, %v5788_v31  }
 0x7ba   :  { %v11963_v44 = vpop.permute.xlu0 %5969 }
 0x7bd   :  { %v6114_v23 = vpop.permute.xlu1 %6113 }
 0x7be   :  { %v6309_v27 = vadd.f32 %v6114_v23, %v6015_v25  ;;  %v6310_v50 = vadd.f32 %v6114_v23, %v6016_v37  ;;  %v6021_v25 = vmul.f32 %v11761_v63, %v13000_v10  ;;  %v6022_v37 = vmul.f32 %v11761_v63, %v13001_v52  ;;  %v13008_v52 = vld [vmem:[#allocation29_spill] sm:$0xff] }
 0x7bf   :  { %v6119_v32 = vpop.permute.xlu0 %6118 }
 0x7c0   :  { %6393 = vst [vmem:[%s12412_s7 + $0x40] sm:$0xff] %v6309_v27  ;;  %6394 = vst.msk [vmem:[%s12412_s7 + $0x48] sm:$0xff] %vm1950_vm2, %v6310_v50  ;;  %v6311_v59 = vadd.f32 %v6119_v32, %v6017_v58  ;;  %v6312_v46 = vadd.f32 %v6119_v32, %v6018_v3 }
 0x7c1   :  { %v5698_v16 = vpop.permute.xlu1 %5697 }
 0x7c2   :  { %6395 = vst [vmem:[%s12412_s7 + $0x50] sm:$0xff] %v6311_v59  ;;  %6396 = vst.msk [vmem:[%s12412_s7 + $0x58] sm:$0xff] %vm1950_vm2, %v6312_v46  ;;  %v5789_v56 = vsub.f32 %v11742_v38, %v5698_v16  ;;  %v13002_v46 = vld [vmem:[#allocation20_spill] sm:$0xff] }
 0x7c3   :  { %v6023_v16 = vmul.f32 %v11758_v17, %v13002_v46 }
 0x7c4   :  { %v11988_v42 = vpop.permute.xlu0 %5989  ;;  %6263 = vperm.xlu1 %6749, %v5789_v56   ;;  %v13003_v56 = vld [vmem:[#allocation24_spill] sm:$0xff] }
 0x7c5   :  { %v11990_v9 = vpop.permute.xlu1 %5974 }
 0x7c8   :  { %v5700_v11 = vpop.permute.xlu0 %5699 }
 0x7c9   :  { %v5790_v40 = vsub.f32 %v11777_v29, %v5700_v11  ;;  %v5706_v53 = vpop.permute.xlu1 %5705  ;;  %v6024_v11 = vmul.f32 %v11758_v17, %v13003_v56  ;;  %v13013_v56 = vld [vmem:[#allocation83_spill] sm:$0xff] }
 0x7ca   :  { %v5793_v6 = vsub.f32 %v11770_v12, %v5706_v53 }
 0x7cb   :  { %6268 = vperm.xlu0 %6748, %v5790_v40  }
 0x7cc   :  { %v11998_v54 = vpop.permute.xlu0 %5979  ;;  %6283 = vperm.xlu1 %6749, %v5793_v6  }
 0x7cd   :  { %v6124_v38 = vpop.permute.xlu1 %6123 }
 0x7ce   :  { %v6313_v41 = vadd.f32 %v6124_v38, %v6019_v21  ;;  %v6314_v31 = vadd.f32 %v6124_v38, %v6020_v55  ;;  %v13004_v21 = vld [vmem:[#allocation33_spill] sm:$0xff] }
 0x7d0   :  { %6397 = vst [vmem:[%s12412_s7 + $0x60] sm:$0xff] %v6313_v41  ;;  %6398 = vst.msk [vmem:[%s12412_s7 + $0x68] sm:$0xff] %vm1950_vm2, %v6314_v31  ;;  %v5708_v12 = vpop.permute.xlu0 %5707  ;;  %v13006_v41 = vld [vmem:[#allocation17_spill] sm:$0xff] }
 0x7d1   :  { %v5794_v29 = vsub.f32 %v11803_v47, %v5708_v12  ;;  %v6029_v31 = vmul.f32 %v11810_v39, %v13006_v41  ;;  %v13007_v12 = vld [vmem:[#allocation28_spill] sm:$0xff]  ;;  %v13018_v41 = vld [vmem:[#allocation94_spill] sm:$0xff] }
 0x7d2   :  { %v12008_v33 = vpop.permute.xlu1 %5994 }
 0x7d3   :  { %6288 = vperm.xlu0 %6748, %v5794_v29  }
 0x7d4   :  { %v6129_v23 = vpop.permute.xlu0 %6128 }
 0x7d5   :  { %v6315_v14 = vadd.f32 %v6129_v23, %v6021_v25  ;;  %v6316_v58 = vadd.f32 %v6129_v23, %v6022_v37  ;;  %v6027_v37 = vmul.f32 %v11783_v49, %v13008_v52  ;;  %v13009_v23 = vld [vmem:[#allocation32_spill] sm:$0xff] }
 0x7d6   :  { %v5702_v45 = vpop.permute.xlu1 %5701 }
 0x7d7   :  { %6399 = vst [vmem:[%s12412_s7 + $0x70] sm:$0xff] %v6315_v14  ;;  %6400 = vst.msk [vmem:[%s12412_s7 + $0x78] sm:$0xff] %vm1950_vm2, %v6316_v58  ;;  %v5791_v47 = vsub.f32 %v11796_v43, %v5702_v45  ;;  %v6028_v14 = vmul.f32 %v11783_v49, %v13009_v23  ;;  %v13010_v58 = vld [vmem:[#allocation9_spill] sm:$0xff]  ;;  %v13011_v45 = vld [vmem:[#allocation7_spill] sm:$0xff] }
 0x7d9   :  { %v12022_v3 = vpop.permute.xlu0 %5999  ;;  %6273 = vperm.xlu1 %6749, %v5791_v47   ;;  %v6034_v47 = vmul.f32 %v11821_v7, %v13011_v45  ;;  %v13022_v45 = vld [vmem:[#allocation89_spill] sm:$0xff] }
 0x7da   :  { %v12024_v63 = vpop.permute.xlu1 %5984 }
 0x7dd   :  { %v5704_v27 = vpop.permute.xlu0 %5703 }
 0x7de   :  { %v5792_v50 = vsub.f32 %v11832_v8, %v5704_v27  ;;  %v5710_v32 = vpop.permute.xlu1 %5709  ;;  %v6025_v8 = vmul.f32 %v11786_v1, %v13004_v21 }
 0x7df   :  { %v5795_v59 = vsub.f32 %v11826_v4, %v5710_v32  ;;  %v6026_v4 = vmul.f32 %v11786_v1, %v13005_v20  ;;  %v6030_v1 = vmul.f32 %v11810_v39, %v13007_v12  ;;  %v6033_v39 = vmul.f32 %v11821_v7, %v13010_v58  ;;  %v13019_v12 = vld [vmem:[#allocation4_spill] sm:$0xff] }
 0x7e0   :  { %6278 = vperm.xlu0 %6748, %v5792_v50  }
 0x7e1   :  { %v5712_v40 = vpop.permute.xlu0 %5711  ;;  %6293 = vperm.xlu1 %6749, %v5795_v59  }
 0x7e2   :  { %v5796_v43 = vsub.f32 %v11840_v35, %v5712_v40  ;;  %v6134_v53 = vpop.permute.xlu1 %6133  ;;  %v13014_v40 = vld [vmem:[#allocation8_spill] sm:$0xff] }
 0x7e3   :  { %v6317_v6 = vadd.f32 %v6134_v53, %v6023_v16  ;;  %v6318_v13 = vadd.f32 %v6134_v53, %v6024_v11  ;;  %v13012_v16 = vld [vmem:[#allocation13_spill] sm:$0xff]  ;;  %v6032_v7 = vmul.f32 %v13013_v56, %v13014_v40 }
 0x7e4   :  { %6298 = vperm.xlu0 %6748, %v5796_v43   ;;  %v6031_v11 = vmul.f32 %v13013_v56, %v13012_v16  ;;  %v13015_v43 = vld [vmem:[#allocation98_spill] sm:$0xff] }
 0x7e5   :  { %6401 = vst [vmem:[%s12412_s7 + $0x80] sm:$0xff] %v6317_v6  ;;  %6402 = vst.msk [vmem:[%s12412_s7 + $0x88] sm:$0xff] %vm1950_vm2, %v6318_v13  ;;  %v6139_v17 = vpop.permute.xlu0 %6138  ;;  %v6037_v53 = vmul.f32 %v11849_v30, %v13015_v43  ;;  %v13016_v6 = vld [vmem:[#allocation2_spill] sm:$0xff] }
 0x7e6   :  { %v6319_v35 = vadd.f32 %v6139_v17, %v6025_v8  ;;  %v6320_v55 = vadd.f32 %v6139_v17, %v6026_v4  ;;  %v6038_v13 = vmul.f32 %v11849_v30, %v13016_v6  ;;  %v6036_v30 = vmul.f32 %v13018_v41, %v13019_v12  ;;  %v13028_v6 = vld [vmem:[#allocation43_spill] sm:$0xff] }
 0x7e7   :  { %v12044_v38 = vpop.permute.xlu1 %6004  ;;  %v13031_v12 = vld [vmem:[#allocation39_spill] sm:$0xff] }
 0x7e8   :  { %6403 = vst [vmem:[%s12412_s7 + $0x90] sm:$0xff] %v6319_v35  ;;  %6404 = vst.msk [vmem:[%s12412_s7 + $0x98] sm:$0xff] %vm1950_vm2, %v6320_v55  ;;  %v13017_v55 = vld [vmem:[#allocation97_spill] sm:$0xff] }
 0x7e9   :  { %v6149_v29 = vpop.permute.xlu0 %6148 }
 0x7ea   :  { %v6323_v10 = vadd.f32 %v6149_v29, %v6029_v31  ;;  %v6324_v25 = vadd.f32 %v6149_v29, %v6030_v1  ;;  %v6035_v31 = vmul.f32 %v13018_v41, %v13017_v55  ;;  %v13020_v1 = vld [vmem:[#allocation95_spill] sm:$0xff]  ;;  %v13030_v41 = vld [vmem:[#allocation100_spill] sm:$0xff] }
 0x7eb   :  { %v6041_v29 = vmul.f32 %v11863_v15, %v13020_v1 }
 0x7ec   :  { %6407 = vst [vmem:[%s12412_s7 + $0xb0] sm:$0xff] %v6323_v10  ;;  %6408 = vst.msk [vmem:[%s12412_s7 + $0xb8] sm:$0xff] %vm1950_vm2, %v6324_v25  ;;  %v6144_v27 = vpop.permute.xlu1 %6143  ;;  %v13021_v10 = vld [vmem:[#allocation65_spill] sm:$0xff] }
 0x7ed   :  { %v6321_v50 = vadd.f32 %v6144_v27, %v6027_v37  ;;  %v6322_v32 = vadd.f32 %v6144_v27, %v6028_v14  ;;  %v6159_v59 = vpop.permute.xlu0 %6158  ;;  %v6042_v25 = vmul.f32 %v11863_v15, %v13021_v10  ;;  %v13023_v27 = vld [vmem:[#allocation31_spill] sm:$0xff] }
 0x7ee   :  { %v6327_v49 = vadd.f32 %v6159_v59, %v6033_v39  ;;  %v6328_v46 = vadd.f32 %v6159_v59, %v6034_v47  ;;  %v6039_v47 = vmul.f32 %v11844_v61, %v13022_v45  ;;  %v6040_v15 = vmul.f32 %v11844_v61, %v13023_v27  ;;  %v13025_v59 = vld [vmem:[#allocation99_spill] sm:$0xff]  ;;  %v13035_v45 = vld [vmem:[#allocation101_spill] sm:$0xff] }
 0x7ef   :  { %6405 = vst [vmem:[%s12412_s7 + $0xa0] sm:$0xff] %v6321_v50  ;;  %6406 = vst.msk [vmem:[%s12412_s7 + $0xa8] sm:$0xff] %vm1950_vm2, %v6322_v32  ;;  %v13024_v50 = vld [vmem:[#allocation34_spill] sm:$0xff] }
 0x7f0   :  { %6411 = vst [vmem:[%s12412_s7 + $0xd0] sm:$0xff] %v6327_v49  ;;  %6412 = vst.msk [vmem:[%s12412_s7 + $0xd8] sm:$0xff] %vm1950_vm2, %v6328_v46  ;;  %v6154_v21 = vpop.permute.xlu1 %6153  ;;  %v6045_v32 = vmul.f32 %v11872_v34, %v13024_v50  ;;  %v6046_v49 = vmul.f32 %v11872_v34, %v13025_v59 }
 0x7f1   :  { %v6325_v8 = vadd.f32 %v6154_v21, %v6031_v11  ;;  %v6326_v20 = vadd.f32 %v6154_v21, %v6032_v7  ;;  %v6169_v4 = vpop.permute.xlu0 %6168  ;;  %v13026_v7 = vld [vmem:[#allocation35_spill] sm:$0xff]  ;;  %v13029_v21 = vld [vmem:[#allocation38_spill] sm:$0xff] }
 0x7f2   :  { %v6331_v17 = vadd.f32 %v6169_v4, %v6037_v53  ;;  %v6332_v35 = vadd.f32 %v6169_v4, %v6038_v13  ;;  %v6043_v43 = vmul.f32 %v11858_v22, %v13026_v7  ;;  %v13027_v53 = vld [vmem:[#allocation64_spill] sm:$0xff]  ;;  %v6049_v13 = vmul.f32 %v11880_v5, %v13028_v6 }
 0x7f3   :  { %6409 = vst [vmem:[%s12412_s7 + $0xc0] sm:$0xff] %v6325_v8  ;;  %6410 = vst.msk [vmem:[%s12412_s7 + $0xc8] sm:$0xff] %vm1950_vm2, %v6326_v20  ;;  %v6044_v34 = vmul.f32 %v11858_v22, %v13027_v53  ;;  %v6050_v8 = vmul.f32 %v11880_v5, %v13029_v21  ;;  %v6048_v5 = vmul.f32 %v11868_v26, %v13031_v12  ;;  %v13042_v21 = vld [vmem:[#allocation112_spill] sm:$0xff] }
 0x7f4   :  { %6415 = vst [vmem:[%s12412_s7 + $0xf0] sm:$0xff] %v6331_v17  ;;  %6416 = vst.msk [vmem:[%s12412_s7 + $0xf8] sm:$0xff] %vm1950_vm2, %v6332_v35  ;;  %v6164_v52 = vpop.permute.xlu1 %6163 }
 0x7f5   :  { %v6329_v37 = vadd.f32 %v6164_v52, %v6035_v31  ;;  %v6330_v23 = vadd.f32 %v6164_v52, %v6036_v30  ;;  %v6179_v14 = vpop.permute.xlu0 %6178  ;;  %v6047_v31 = vmul.f32 %v11868_v26, %v13030_v41  ;;  %v13032_v30 = vld [vmem:[#allocation102_spill] sm:$0xff] }
 0x7f6   :  { %v6335_v58 = vadd.f32 %v6179_v14, %v6041_v29  ;;  %v6336_v39 = vadd.f32 %v6179_v14, %v6042_v25  ;;  %v6053_v1 = vmul.f32 %v11888_v0, %v13032_v30  ;;  %v13033_v29 = vld [vmem:[#allocation47_spill] sm:$0xff]  ;;  %v13046_v30 = vld [vmem:[#allocation62_spill] sm:$0xff] }
 0x7f7   :  { %6413 = vst [vmem:[%s12412_s7 + $0xe0] sm:$0xff] %v6329_v37  ;;  %6414 = vst.msk [vmem:[%s12412_s7 + $0xe8] sm:$0xff] %vm1950_vm2, %v6330_v23  ;;  %v6054_v10 = vmul.f32 %v11888_v0, %v13033_v29  ;;  %v6052_v0 = vmul.f32 %v11876_v19, %v13035_v45  ;;  %v13047_v29 = vld [vmem:[#allocation86_spill] sm:$0xff] }
 0x7f8   :  { %6419 = vst [vmem:[%s12412_s7 + $0x110] sm:$0xff] %v6335_v58  ;;  %6420 = vst.msk [vmem:[%s12412_s7 + $0x118] sm:$0xff] %vm1950_vm2, %v6336_v39  ;;  %v6174_v61 = vpop.permute.xlu1 %6173  ;;  %v13034_v58 = vld [vmem:[#allocation42_spill] sm:$0xff] }
 0x7f9   :  { %v6333_v46 = vadd.f32 %v6174_v61, %v6039_v47  ;;  %v6334_v16 = vadd.f32 %v6174_v61, %v6040_v15  ;;  %v6189_v56 = vpop.permute.xlu0 %6188  ;;  %v6051_v39 = vmul.f32 %v11876_v19, %v13034_v58  ;;  %v13036_v47 = vld [vmem:[#allocation50_spill] sm:$0xff]  ;;  %v13037_v15 = vld [vmem:[#allocation103_spill] sm:$0xff] }
 0x7fa   :  { %v6339_v11 = vadd.f32 %v6189_v56, %v6045_v32  ;;  %v6340_v40 = vadd.f32 %v6189_v56, %v6046_v49  ;;  %v6057_v27 = vmul.f32 %v11895_v28, %v13036_v47  ;;  %v6058_v50 = vmul.f32 %v11895_v28, %v13037_v15  ;;  %v13050_v47 = vld [vmem:[#allocation58_spill] sm:$0xff]  ;;  %v13051_v15 = vld [vmem:[#allocation105_spill] sm:$0xff] }
 0x7fb   :  { %6417 = vst [vmem:[%s12412_s7 + $0x100] sm:$0xff] %v6333_v46  ;;  %6418 = vst.msk [vmem:[%s12412_s7 + $0x108] sm:$0xff] %vm1950_vm2, %v6334_v16  ;;  %v13038_v16 = vld [vmem:[#allocation51_spill] sm:$0xff] }
 0x7fc   :  { %6423 = vst [vmem:[%s12412_s7 + $0x130] sm:$0xff] %v6339_v11  ;;  %6424 = vst.msk [vmem:[%s12412_s7 + $0x138] sm:$0xff] %vm1950_vm2, %v6340_v40  ;;  %v6184_v22 = vpop.permute.xlu1 %6183  ;;  %v6055_v56 = vmul.f32 %v11884_v36, %v13038_v16  ;;  %v13039_v11 = vld [vmem:[#allocation46_spill] sm:$0xff] }
 0x7fd   :  { %v6337_v20 = vadd.f32 %v6184_v22, %v6043_v43  ;;  %v6338_v4 = vadd.f32 %v6184_v22, %v6044_v34  ;;  %v6199_v17 = vpop.permute.xlu0 %6198  ;;  %v6056_v28 = vmul.f32 %v11884_v36, %v13039_v11  ;;  %v13040_v43 = vld [vmem:[#allocation63_spill] sm:$0xff]  ;;  %v13041_v34 = vld [vmem:[#allocation60_spill] sm:$0xff]  ;;  %v13043_v22 = vld [vmem:[#allocation61_spill] sm:$0xff] }
 0x7fe   :  { %v6343_v35 = vadd.f32 %v6199_v17, %v6049_v13  ;;  %v6344_v55 = vadd.f32 %v6199_v17, %v6050_v8  ;;  %v6061_v53 = vmul.f32 %v11901_v2, %v13040_v43  ;;  %v6062_v6 = vmul.f32 %v11901_v2, %v13041_v34  ;;  %v13055_v11 = vld [vmem:[#allocation52_spill] sm:$0xff]  ;;  %v13057_v34 = vld [vmem:[#allocation110_spill] sm:$0xff] }
 0x7ff   :  { %6421 = vst [vmem:[%s12412_s7 + $0x120] sm:$0xff] %v6337_v20  ;;  %6422 = vst.msk [vmem:[%s12412_s7 + $0x128] sm:$0xff] %vm1950_vm2, %v6338_v4  ;;  %v6059_v8 = vmul.f32 %v11892_v60, %v13042_v21  ;;  %v6060_v20 = vmul.f32 %v11892_v60, %v13043_v22  ;;  %v13044_v60 = vld [vmem:[#allocation104_spill] sm:$0xff]  ;;  %v13058_v22 = vld [vmem:[#allocation106_spill] sm:$0xff] }
 0x800   :  { %6427 = vst [vmem:[%s12412_s7 + $0x150] sm:$0xff] %v6343_v35  ;;  %6428 = vst.msk [vmem:[%s12412_s7 + $0x158] sm:$0xff] %vm1950_vm2, %v6344_v55  ;;  %v6194_v26 = vpop.permute.xlu1 %6193  ;;  %v6065_v41 = vmul.f32 %v11905_v24, %v13044_v60 }
 0x801   :  { %v6341_v25 = vadd.f32 %v6194_v26, %v6047_v31  ;;  %v6342_v52 = vadd.f32 %v6194_v26, %v6048_v5  ;;  %v6209_v37 = vpop.permute.xlu0 %6208  ;;  %v13045_v31 = vld [vmem:[#allocation55_spill] sm:$0xff] }
 0x802   :  { %v6347_v23 = vadd.f32 %v6209_v37, %v6053_v1  ;;  %v6348_v14 = vadd.f32 %v6209_v37, %v6054_v10  ;;  %v6066_v12 = vmul.f32 %v11905_v24, %v13045_v31  ;;  %v6063_v1 = vmul.f32 %v11899_v57, %v13046_v30 }
 0x803   :  { %6425 = vst [vmem:[%s12412_s7 + $0x140] sm:$0xff] %v6341_v25  ;;  %6426 = vst.msk [vmem:[%s12412_s7 + $0x148] sm:$0xff] %vm1950_vm2, %v6342_v52  ;;  %v6064_v10 = vmul.f32 %v11899_v57, %v13047_v29  ;;  %v13048_v57 = vld [vmem:[#allocation59_spill] sm:$0xff] }
 0x804   :  { %6431 = vst [vmem:[%s12412_s7 + $0x170] sm:$0xff] %v6347_v23  ;;  %6432 = vst.msk [vmem:[%s12412_s7 + $0x178] sm:$0xff] %vm1950_vm2, %v6348_v14  ;;  %v6204_v19 = vpop.permute.xlu1 %6203  ;;  %v6067_v23 = vmul.f32 %v11923_v62, %v13048_v57  ;;  %v13049_v14 = vld [vmem:[#allocation54_spill] sm:$0xff] }
 0x805   :  { %v6345_v32 = vadd.f32 %v6204_v19, %v6051_v39  ;;  %v6346_v59 = vadd.f32 %v6204_v19, %v6052_v0  ;;  %v6219_v49 = vpop.permute.xlu0 %6218  ;;  %v6068_v58 = vmul.f32 %v11923_v62, %v13049_v14 }
 0x806   :  { %v6351_v61 = vadd.f32 %v6219_v49, %v6057_v27  ;;  %v6352_v46 = vadd.f32 %v6219_v49, %v6058_v50  ;;  %v6069_v27 = vmul.f32 %v11933_v18, %v13050_v47  ;;  %v6070_v50 = vmul.f32 %v11933_v18, %v13051_v15  ;;  %v13054_v18 = vld [vmem:[#allocation57_spill] sm:$0xff] }
 0x807   :  { %6429 = vst [vmem:[%s12412_s7 + $0x160] sm:$0xff] %v6345_v32  ;;  %6430 = vst.msk [vmem:[%s12412_s7 + $0x168] sm:$0xff] %vm1950_vm2, %v6346_v59  ;;  %v13052_v59 = vld [vmem:[#allocation108_spill] sm:$0xff]  ;;  %v13068_v47 = vld [vmem:[#allocation85_spill] sm:$0xff] }
 0x808   :  { %6435 = vst [vmem:[%s12412_s7 + $0x190] sm:$0xff] %v6351_v61  ;;  %6436 = vst.msk [vmem:[%s12412_s7 + $0x198] sm:$0xff] %vm1950_vm2, %v6352_v46  ;;  %v6214_v40 = vpop.permute.xlu1 %6213  ;;  %v6071_v49 = vmul.f32 %v11935_v51, %v13052_v59  ;;  %v13053_v61 = vld [vmem:[#allocation53_spill] sm:$0xff] }
 0x809   :  { %v6349_v36 = vadd.f32 %v6214_v40, %v6055_v56  ;;  %v6350_v7 = vadd.f32 %v6214_v40, %v6056_v28  ;;  %v6072_v46 = vmul.f32 %v11935_v51, %v13053_v61  ;;  %v6073_v56 = vmul.f32 %v11961_v48, %v13054_v18  ;;  %v13070_v61 = vld [vmem:[#allocation30_spill] sm:$0xff] }
 0x80a   :  { %v6074_v28 = vmul.f32 %v11961_v48, %v13055_v11  ;;  %v13056_v48 = vld [vmem:[#allocation56_spill] sm:$0xff] }
 0x80b   :  { %6433 = vst [vmem:[%s12412_s7 + $0x180] sm:$0xff] %v6349_v36  ;;  %6434 = vst.msk [vmem:[%s12412_s7 + $0x188] sm:$0xff] %vm1950_vm2, %v6350_v7 }
 0x80c   :  { %v6229_v13 = vpop.permute.xlu0 %6228 }
 0x80d   :  { %v6355_v4 = vadd.f32 %v6229_v13, %v6061_v53  ;;  %v6356_v17 = vadd.f32 %v6229_v13, %v6062_v6  ;;  %v6075_v53 = vmul.f32 %v11963_v44, %v13056_v48  ;;  %v6076_v6 = vmul.f32 %v11963_v44, %v13057_v34 }
 0x80e   :  { %v6224_v35 = vpop.permute.xlu1 %6223 }
 0x80f   :  { %6439 = vst [vmem:[%s12412_s7 + $0x1b0] sm:$0xff] %v6355_v4  ;;  %6440 = vst.msk [vmem:[%s12412_s7 + $0x1b8] sm:$0xff] %vm1950_vm2, %v6356_v17  ;;  %v6353_v2 = vadd.f32 %v6224_v35, %v6059_v8  ;;  %v6354_v55 = vadd.f32 %v6224_v35, %v6060_v20  ;;  %v6077_v20 = vmul.f32 %v11990_v9, %v13058_v22  ;;  %v13059_v4 = vld [vmem:[#allocation37_spill] sm:$0xff]  ;;  %v13060_v35 = vld [vmem:[#allocation107_spill] sm:$0xff] }
 0x810   :  { %v6078_v17 = vmul.f32 %v11990_v9, %v13059_v4  ;;  %v6083_v44 = vmul.f32 %v11988_v42, %v13060_v35 }
 0x811   :  { %6437 = vst [vmem:[%s12412_s7 + $0x1a0] sm:$0xff] %v6353_v2  ;;  %6438 = vst.msk [vmem:[%s12412_s7 + $0x1a8] sm:$0xff] %vm1950_vm2, %v6354_v55  ;;  %v13061_v2 = vld [vmem:[#allocation36_spill] sm:$0xff] }
 0x812   :  { %v6084_v55 = vmul.f32 %v11988_v42, %v13061_v2  ;;  %v13062_v42 = vld [vmem:[#allocation48_spill] sm:$0xff] }
 0x813   :  { %v6085_v9 = vmul.f32 %v12008_v33, %v13062_v42 }
 0x814   :  { %v6239_v5 = vpop.permute.xlu0 %6238 }
 0x815   :  { %v6359_v26 = vadd.f32 %v6239_v5, %v6065_v41  ;;  %v6360_v25 = vadd.f32 %v6239_v5, %v6066_v12 }
 0x816   :  { %v6234_v52 = vpop.permute.xlu1 %6233 }
 0x817   :  { %6443 = vst [vmem:[%s12412_s7 + $0x1d0] sm:$0xff] %v6359_v26  ;;  %6444 = vst.msk [vmem:[%s12412_s7 + $0x1d8] sm:$0xff] %vm1950_vm2, %v6360_v25  ;;  %v6357_v24 = vadd.f32 %v6234_v52, %v6063_v1  ;;  %v6358_v37 = vadd.f32 %v6234_v52, %v6064_v10  ;;  %v13063_v1 = vld [vmem:[#allocation49_spill] sm:$0xff]  ;;  %v13064_v52 = vld [vmem:[#allocation44_spill] sm:$0xff] }
 0x818   :  { %v6086_v29 = vmul.f32 %v12008_v33, %v13063_v1 }
 0x819   :  { %6441 = vst [vmem:[%s12412_s7 + $0x1c0] sm:$0xff] %v6357_v24  ;;  %6442 = vst.msk [vmem:[%s12412_s7 + $0x1c8] sm:$0xff] %vm1950_vm2, %v6358_v37  ;;  %v6079_v24 = vmul.f32 %v11998_v54, %v13064_v52  ;;  %v13065_v37 = vld [vmem:[#allocation45_spill] sm:$0xff] }
 0x81a   :  { %v6080_v57 = vmul.f32 %v11998_v54, %v13065_v37  ;;  %v6087_v54 = vmul.f32 %v12022_v3, %v13068_v47 }
 0x81e   :  { %v6244_v39 = vpop.permute.xlu1 %6243 }
 0x81f   :  { %v6361_v45 = vadd.f32 %v6244_v39, %v6067_v23  ;;  %v6362_v0 = vadd.f32 %v6244_v39, %v6068_v58  ;;  %v13066_v58 = vld [vmem:[#allocation41_spill] sm:$0xff] }
 0x820   :  { %v6081_v39 = vmul.f32 %v12024_v63, %v13066_v58 }
 0x821   :  { %6445 = vst [vmem:[%s12412_s7 + $0x1e0] sm:$0xff] %v6361_v45  ;;  %6446 = vst.msk [vmem:[%s12412_s7 + $0x1e8] sm:$0xff] %vm1950_vm2, %v6362_v0  ;;  %v13067_v45 = vld [vmem:[#allocation88_spill] sm:$0xff] }
 0x822   :  { %v6082_v0 = vmul.f32 %v12024_v63, %v13067_v45 }
 0x827   :  { %v6249_v19 = vpop.permute.xlu0 %6248 }
 0x828   :  { %v6363_v62 = vadd.f32 %v6249_v19, %v6069_v27  ;;  %v6364_v32 = vadd.f32 %v6249_v19, %v6070_v50  ;;  %v13069_v27 = vld [vmem:[#allocation87_spill] sm:$0xff] }
 0x829   :  { %v6088_v15 = vmul.f32 %v12022_v3, %v13069_v27 }
 0x82a   :  { %6447 = vst [vmem:[%s12412_s7 + $0x1f0] sm:$0xff] %v6363_v62  ;;  %6448 = vst.msk [vmem:[%s12412_s7 + $0x1f8] sm:$0xff] %vm1950_vm2, %v6364_v32 }
 0x832   :  { %v6254_v16 = vpop.permute.xlu1 %6253 }
 0x833   :  { %v6365_v40 = vadd.f32 %v6254_v16, %v6071_v49  ;;  %v6366_v36 = vadd.f32 %v6254_v16, %v6072_v46  ;;  %v6089_v46 = vmul.f32 %v12044_v38, %v13070_v61  ;;  %v13071_v16 = vld [vmem:[#allocation40_spill] sm:$0xff] }
 0x834   :  { %v6259_v7 = vpop.permute.xlu0 %6258  ;;  %v6090_v18 = vmul.f32 %v12044_v38, %v13071_v16 }
 0x835   :  { %6449 = vst [vmem:[%s12412_s7 + $0x200] sm:$0xff] %v6365_v40  ;;  %6450 = vst.msk [vmem:[%s12412_s7 + $0x208] sm:$0xff] %vm1950_vm2, %v6366_v36  ;;  %v6367_v51 = vadd.f32 %v6259_v7, %v6073_v56  ;;  %v6368_v43 = vadd.f32 %v6259_v7, %v6074_v28 }
 0x837   :  { %6451 = vst [vmem:[%s12412_s7 + $0x210] sm:$0xff] %v6367_v51  ;;  %6452 = vst.msk [vmem:[%s12412_s7 + $0x218] sm:$0xff] %vm1950_vm2, %v6368_v43 }
 0x83f   :  { %v6264_v13 = vpop.permute.xlu1 %6263 }
 0x840   :  { %v6369_v21 = vadd.f32 %v6264_v13, %v6075_v53  ;;  %v6370_v8 = vadd.f32 %v6264_v13, %v6076_v6 }
 0x842   :  { %6453 = vst [vmem:[%s12412_s7 + $0x220] sm:$0xff] %v6369_v21  ;;  %6454 = vst.msk [vmem:[%s12412_s7 + $0x228] sm:$0xff] %vm1950_vm2, %v6370_v8 }
 0x846   :  { %v6269_v60 = vpop.permute.xlu0 %6268 }
 0x847   :  { %v6371_v41 = vadd.f32 %v6269_v60, %v6077_v20  ;;  %v6372_v31 = vadd.f32 %v6269_v60, %v6078_v17  ;;  %v6284_v12 = vpop.permute.xlu1 %6283 }
 0x848   :  { %v6377_v5 = vadd.f32 %v6284_v12, %v6083_v44  ;;  %v6378_v30 = vadd.f32 %v6284_v12, %v6084_v55 }
 0x849   :  { %6455 = vst [vmem:[%s12412_s7 + $0x230] sm:$0xff] %v6371_v41  ;;  %6456 = vst.msk [vmem:[%s12412_s7 + $0x238] sm:$0xff] %vm1950_vm2, %v6372_v31 }
 0x84a   :  { %6461 = vst [vmem:[%s12412_s7 + $0x260] sm:$0xff] %v6377_v5  ;;  %6462 = vst.msk [vmem:[%s12412_s7 + $0x268] sm:$0xff] %vm1950_vm2, %v6378_v30 }
 0x84e   :  { %v6289_v10 = vpop.permute.xlu0 %6288 }
 0x84f   :  { %v6379_v26 = vadd.f32 %v6289_v10, %v6085_v9  ;;  %v6380_v25 = vadd.f32 %v6289_v10, %v6086_v29 }
 0x851   :  { %6463 = vst [vmem:[%s12412_s7 + $0x270] sm:$0xff] %v6379_v26  ;;  %6464 = vst.msk [vmem:[%s12412_s7 + $0x278] sm:$0xff] %vm1950_vm2, %v6380_v25 }
 0x854   :  { %v6274_v23 = vpop.permute.xlu1 %6273 }
 0x855   :  { %v6373_v33 = vadd.f32 %v6274_v23, %v6079_v24  ;;  %v6374_v14 = vadd.f32 %v6274_v23, %v6080_v57 }
 0x857   :  { %6457 = vst [vmem:[%s12412_s7 + $0x240] sm:$0xff] %v6373_v33  ;;  %6458 = vst.msk [vmem:[%s12412_s7 + $0x248] sm:$0xff] %vm1950_vm2, %v6374_v14 }
 0x85b   :  { %v6279_v50 = vpop.permute.xlu0 %6278 }
 0x85c   :  { %v6375_v19 = vadd.f32 %v6279_v50, %v6081_v39  ;;  %v6376_v62 = vadd.f32 %v6279_v50, %v6082_v0  ;;  %v6294_v32 = vpop.permute.xlu1 %6293 }
 0x85d   :  { %v6381_v59 = vadd.f32 %v6294_v32, %v6087_v54  ;;  %v6382_v49 = vadd.f32 %v6294_v32, %v6088_v15 }
 0x85e   :  { %6459 = vst [vmem:[%s12412_s7 + $0x250] sm:$0xff] %v6375_v19  ;;  %6460 = vst.msk [vmem:[%s12412_s7 + $0x258] sm:$0xff] %vm1950_vm2, %v6376_v62 }
 0x85f   :  { %6465 = vst [vmem:[%s12412_s7 + $0x280] sm:$0xff] %v6381_v59  ;;  %6466 = vst.msk [vmem:[%s12412_s7 + $0x288] sm:$0xff] %vm1950_vm2, %v6382_v49  ;;  %v6299_v3 = vpop.permute.xlu0 %6298 }
 0x860   :  { %v6383_v63 = vadd.f32 %v6299_v3, %v6089_v46  ;;  %v6384_v38 = vadd.f32 %v6299_v3, %v6090_v18 }
 0x862   :  { %6467 = vst [vmem:[%s12412_s7 + $0x290] sm:$0xff] %v6383_v63  ;;  %6468 = vst.msk [vmem:[%s12412_s7 + $0x298] sm:$0xff] %vm1950_vm2, %v6384_v38 }

</bundles_post_ra>
